<compile_context>
chip_gen: v5e
topology: v5e:2x2
jax: 0.10.0
libtpu: 0.0.40
codegen_flags: <defaults>
</compile_context>

<pallas_src>
import functools

import jax
import jax.numpy as jnp
from jax.experimental import pallas as pl
from jax.experimental.pallas import tpu as pltpu

LANES = 128                      # lane-dense channel padding for matmul outputs
VMEM_LIMIT = 32 * 1024 * 1024    # all resident blocks are now << this on v5e/v6e/v7x


# ----------------------------------------------------------------------------
# Fused 3x3 "same" conv (stride 1, pad 1) + bias + ReLU + global average pool.
# Input: channel planes [N, Cin, Hp, W+2] (zero halo), weights [128, 9*Cin],
# output: pooled features [N, 128, 1].  One K=27 MXU dot per row block.
# ----------------------------------------------------------------------------
def _conv3x3_gap_kernel(x_ref, w_ref, b_ref, o_ref, acc_ref, *,
                        tr, h, w, cin, inv_hw, guard_tail):
    r = pl.program_id(1)
    row0 = r * tr

    @pl.when(r == 0)
    def _():
        acc_ref[...] = jnp.zeros_like(acc_ref)

    # im2col-in-VMEM: slab[k = c*9+di*3+dj, rr*w + p] = xpad[c, row0+rr+di, p+dj]
    pieces = []
    for c in range(cin):
        for di in range(3):
            for dj in range(3):
                segs = [x_ref[0, c, pl.ds(row0 + rr + di, 1), pl.ds(dj, w)]
                        for rr in range(tr)]
                pieces.append(segs[0] if tr == 1 else jnp.concatenate(segs, axis=1))
    slab = jnp.concatenate(pieces, axis=0).astype(jnp.bfloat16)   # [9*cin, tr*w]

    y = jnp.dot(w_ref[...], slab, preferred_element_type=jnp.float32)  # [128, tr*w]
    y = jnp.maximum(y + b_ref[...], 0.0)                               # f32 epilogue

    if guard_tail:
        # Tail block: only accumulate rows that really exist in the image.
        for rr in range(tr):
            contrib = jnp.sum(y[:, rr * w:(rr + 1) * w], axis=1, keepdims=True)

            @pl.when(row0 + rr < h)
            def _(contrib=contrib):
                acc_ref[...] += contrib
    else:
        acc_ref[...] += jnp.sum(y, axis=1, keepdims=True)

    @pl.when(r == pl.num_programs(1) - 1)
    def _():
        o_ref[0] = acc_ref[...] * inv_hw


def conv3x3_gap_pallas(x_nchw, wgt, bias):
    """relu(conv3x3(x) + b) followed by global average pooling -> [N, 128]."""
    n, cin, h, w = x_nchw.shape
    tr = min(16, h)
    nb = pl.cdiv(h, tr)
    hp = nb * tr + 2                      # halo + (optional) tail zero rows
    xp = jnp.pad(x_nchw.astype(jnp.float32),
                 ((0, 0), (0, 0), (1, hp - h - 1), (1, 1)))
    guard_tail = (h % tr) != 0
    pooled = pl.pallas_call(
        functools.partial(_conv3x3_gap_kernel, tr=tr, h=h, w=w, cin=cin,
                          inv_hw=1.0 / float(h * w), guard_tail=guard_tail),
        out_shape=jax.ShapeDtypeStruct((n, LANES, 1), jnp.float32),
        grid=(n, nb),
        in_specs=[
            pl.BlockSpec((1, cin, hp, w + 2), lambda i, r: (i, 0, 0, 0)),
            pl.BlockSpec((LANES, 9 * cin), lambda i, r: (0, 0)),
            pl.BlockSpec((LANES, 1), lambda i, r: (0, 0)),
        ],
        out_specs=pl.BlockSpec((1, LANES, 1), lambda i, r: (i, 0, 0)),
        scratch_shapes=[pltpu.VMEM((LANES, 1), jnp.float32)],
        compiler_params=pltpu.CompilerParams(
            dimension_semantics=("parallel", "arbitrary"),
            vmem_limit_bytes=VMEM_LIMIT),
    )(xp, wgt, bias)
    return pooled.reshape(n, LANES)


# ----------------------------------------------------------------------------
# STN sampler: bilinear grid_sample (align_corners=False, zero padding).
# Per tile of TM output pixels: y-corner gather = [W,H] @ (one-hot-over-H [H,TM]
# with wy weights folded in) on the MXU, then x-interp via a masked elementwise
# multiply + sublane reduction.  Output tile is [C, TM] (TM-lane dense).
# ----------------------------------------------------------------------------
def _sampler_kernel(ix_ref, iy_ref, img_t_ref, o_ref, *, src_h, src_w, cin, tm):
    ix = ix_ref[0]                          # [1, TM] f32 source x pixel coords
    iy = iy_ref[0]                          # [1, TM]

    def onehot_t(coord, wgt, size):
        valid = (coord >= 0.0) & (coord <= float(size - 1))
        wv = jnp.where(valid, wgt, 0.0)                         # zero padding
        idx = jnp.clip(coord, 0.0, float(size - 1)).astype(jnp.int32)
        rows = jax.lax.broadcasted_iota(jnp.int32, (size, tm), 0)
        return jnp.where(rows == idx, wv, 0.0)                  # [size, TM]

    y0 = jnp.floor(iy); wy1 = iy - y0; wy0 = 1.0 - wy1
    x0 = jnp.floor(ix); wx1 = ix - x0; wx0 = 1.0 - wx1

    wy_t = (onehot_t(y0, wy0, src_h) +
            onehot_t(y0 + 1.0, wy1, src_h)).astype(jnp.bfloat16)   # [H, TM]
    wx_t = onehot_t(x0, wx0, src_w) + onehot_t(x0 + 1.0, wx1, src_w)  # [W, TM] f32

    outs = []
    for c in range(cin):
        r_t = jnp.dot(img_t_ref[0, c], wy_t,
                      preferred_element_type=jnp.float32)          # [W, TM]
        outs.append(jnp.sum(r_t * wx_t, axis=0, keepdims=True))    # [1, TM]
    o_ref[0] = jnp.concatenate(outs, axis=0).astype(o_ref.dtype)   # [C, TM]


def _pixel_coords(theta, out_h, out_w, src_h, src_w):
    """align_corners=False base grid + unnormalization (PyTorch defaults)."""
    ys = (2.0 * jnp.arange(out_h, dtype=jnp.float32) + 1.0) / out_h - 1.0
    xs = (2.0 * jnp.arange(out_w, dtype=jnp.float32) + 1.0) / out_w - 1.0
    gy, gx = jnp.meshgrid(ys, xs, indexing="ij")
    base = jnp.stack([gx, gy, jnp.ones_like(gx)], axis=-1).reshape(-1, 3)   # [M,3]
    g = jnp.einsum("nij,mj->nmi", theta, base)                              # [N,M,2]
    ix = ((g[..., 0] + 1.0) * src_w - 1.0) * 0.5
    iy = ((g[..., 1] + 1.0) * src_h - 1.0) * 0.5
    return ix, iy                                                           # [N,M]


def grid_sample_pallas(x_nchw, theta, out_h, out_w, *, tm=256):
    n, c, h, w = x_nchw.shape
    m = out_h * out_w
    m_pad = pl.cdiv(m, tm) * tm
    ix, iy = _pixel_coords(theta, out_h, out_w, h, w)
    pad = ((0, 0), (0, m_pad - m))
    # Padded tail coords are out of bounds -> sampler writes zeros (sliced off).
    ix = jnp.pad(ix, pad, constant_values=-2.0).reshape(n, 1, m_pad)
    iy = jnp.pad(iy, pad, constant_values=-2.0).reshape(n, 1, m_pad)
    img_t = jnp.transpose(x_nchw, (0, 1, 3, 2)).astype(jnp.bfloat16)  # [N,C,W,H]
    out = pl.pallas_call(
        functools.partial(_sampler_kernel, src_h=h, src_w=w, cin=c, tm=tm),
        out_shape=jax.ShapeDtypeStruct((n, c, m_pad), jnp.float32),
        grid=(n, m_pad // tm),
        in_specs=[
            pl.BlockSpec((1, 1, tm), lambda i, t: (i, 0, t)),
            pl.BlockSpec((1, 1, tm), lambda i, t: (i, 0, t)),
            pl.BlockSpec((1, c, w, h), lambda i, t: (i, 0, 0, 0)),
        ],
        out_specs=pl.BlockSpec((1, c, tm), lambda i, t: (i, 0, t)),
        compiler_params=pltpu.CompilerParams(
            dimension_semantics=("parallel", "parallel"),
            vmem_limit_bytes=VMEM_LIMIT),
    )(ix, iy, img_t)
    return out[:, :, :m].reshape(n, c, out_h, out_w)


# ----------------------------------------------------------------------------
# Fused head kernels (everything resident in VMEM, single launch each).
# ----------------------------------------------------------------------------
def _loc_head_kernel(p_ref, w1_ref, b1_ref, w2_ref, b2_ref, o_ref):
    h1 = jnp.dot(p_ref[...], w1_ref[...],
                 preferred_element_type=jnp.float32) + b1_ref[...]
    h1 = jnp.maximum(h1, 0.0)
    o_ref[...] = jnp.dot(h1, w2_ref[...],
                         preferred_element_type=jnp.float32) + b2_ref[...]


def loc_head_pallas(pooled, w1, b1, w2, b2):
    n = pooled.shape[0]
    return pl.pallas_call(
        _loc_head_kernel,
        out_shape=jax.ShapeDtypeStruct((n, LANES), jnp.float32),
        in_specs=[pl.BlockSpec(memory_space=pltpu.MemorySpace.VMEM)] * 5,
        out_specs=pl.BlockSpec(memory_space=pltpu.MemorySpace.VMEM),
        compiler_params=pltpu.CompilerParams(vmem_limit_bytes=VMEM_LIMIT),
    )(pooled, w1, b1, w2, b2)


def _fc_kernel(p_ref, w_ref, b_ref, o_ref):
    o_ref[...] = jnp.dot(p_ref[...], w_ref[...],
                         preferred_element_type=jnp.float32) + b_ref[...]


def fc_pallas(pooled, w, b):
    n = pooled.shape[0]
    return pl.pallas_call(
        _fc_kernel,
        out_shape=jax.ShapeDtypeStruct((n, LANES), jnp.float32),
        in_specs=[pl.BlockSpec(memory_space=pltpu.MemorySpace.VMEM)] * 3,
        out_specs=pl.BlockSpec(memory_space=pltpu.MemorySpace.VMEM),
        compiler_params=pltpu.CompilerParams(vmem_limit_bytes=VMEM_LIMIT),
    )(pooled, w, b)


# ----------------------------------------------------------------------------
# Parameters (PyTorch-layout) + packing into kernel-friendly weights.
# ----------------------------------------------------------------------------
def init_params(key, num_classes=5, loc_ch=8, loc_hidden=32, stem_ch=8):
    ks = jax.random.split(key, 4)
    s = 0.1
    return {
        # STN localization net
        "loc_conv_w": s * jax.random.normal(ks[0], (loc_ch, 3, 3, 3), jnp.float32),
        "loc_conv_b": jnp.zeros((loc_ch,), jnp.float32),
        "loc_fc1_w": s * jax.random.normal(ks[1], (loc_ch, loc_hidden), jnp.float32),
        "loc_fc1_b": jnp.zeros((loc_hidden,), jnp.float32),
        # final theta fc: zero weight, identity-affine bias (standard STN init)
        "loc_fc2_w": jnp.zeros((loc_hidden, 6), jnp.float32),
        "loc_fc2_b": jnp.array([1.0, 0.0, 0.0, 0.0, 1.0, 0.0], jnp.float32),
        # DCNN stand-in (conv stem + GAP + fc head)
        "stem_conv_w": s * jax.random.normal(ks[2], (stem_ch, 3, 3, 3), jnp.float32),
        "stem_conv_b": jnp.zeros((stem_ch,), jnp.float32),
        "fc_w": s * jax.random.normal(ks[3], (stem_ch, num_classes), jnp.float32),
        "fc_b": jnp.zeros((num_classes,), jnp.float32),
    }


def _pack_conv(w, b, lanes=LANES):
    # torch [cout, cin, kh, kw] -> [128, cin*9] bf16 (row=cout, col=(c,di,dj))
    cout = w.shape[0]
    wt = jnp.pad(w.reshape(cout, -1), ((0, lanes - cout), (0, 0))).astype(jnp.bfloat16)
    bias = jnp.pad(b, (0, lanes - cout)).reshape(lanes, 1).astype(jnp.float32)
    return wt, bias


def _pack_fc(w, b, lanes=LANES):
    kin, nout = w.shape
    wp = jnp.pad(w, ((0, lanes - kin), (0, lanes - nout))).astype(jnp.float32)
    bp = jnp.pad(b, (0, lanes - nout)).reshape(1, lanes).astype(jnp.float32)
    return wp, bp


def pack_params(p):
    lw, lb = _pack_conv(p["loc_conv_w"], p["loc_conv_b"])
    sw, sb = _pack_conv(p["stem_conv_w"], p["stem_conv_b"])
    f1w, f1b = _pack_fc(p["loc_fc1_w"], p["loc_fc1_b"])
    f2w, f2b = _pack_fc(p["loc_fc2_w"], p["loc_fc2_b"])
    cw, cb = _pack_fc(p["fc_w"], p["fc_b"])
    return {"loc_conv_w": lw, "loc_conv_b": lb,
            "loc_fc1_w": f1w, "loc_fc1_b": f1b,
            "loc_fc2_w": f2w, "loc_fc2_b": f2b,
            "stem_conv_w": sw, "stem_conv_b": sb,
            "fc_w": cw, "fc_b": cb}


# ----------------------------------------------------------------------------
# Forward (inference path of stn_dcnn.forward)
# ----------------------------------------------------------------------------
def stn_dcnn_forward(packed, x_nchw, *, dcnn_inputsize, num_classes):
    n = x_nchw.shape[0]
    x = x_nchw.astype(jnp.float32)

    # --- STN localization: conv3x3+ReLU + GAP (fused) -> fc+ReLU -> fc (theta) ---
    pooled_loc = conv3x3_gap_pallas(x, packed["loc_conv_w"], packed["loc_conv_b"])
    theta = loc_head_pallas(pooled_loc,
                            packed["loc_fc1_w"], packed["loc_fc1_b"],
                            packed["loc_fc2_w"], packed["loc_fc2_b"])[:, :6]
    theta = theta.reshape(n, 2, 3)

    # --- STN sampler: affine grid + bilinear resample to dcnn input size ---
    xs = grid_sample_pallas(x, theta, dcnn_inputsize, dcnn_inputsize)

    # --- DCNN stand-in: conv stem + GAP (fused) + Linear(num_classes) ---
    pooled = conv3x3_gap_pallas(xs, packed["stem_conv_w"], packed["stem_conv_b"])
    logits = fc_pallas(pooled, packed["fc_w"], packed["fc_b"])
    return logits[:, :num_classes]


# ----------------------------------------------------------------------------
if __name__ == "__main__":
    key = jax.random.PRNGKey(0)
    k_x, k_p = jax.random.split(key)

    num_classes = 5
    # Real module uses 224 (resnet/vgg) or 299 (inception); toy size here.
    dcnn_inputsize = 16
    x = jax.random.normal(k_x, (2, 3, 16, 16), jnp.float32)           # NCHW

    params = init_params(k_p, num_classes=num_classes)
    packed = pack_params(params)

    fwd = jax.jit(functools.partial(stn_dcnn_forward,
                                    dcnn_inputsize=dcnn_inputsize,
                                    num_classes=num_classes))
    logits = fwd(packed, x)
    jax.block_until_ready(logits)

    assert logits.shape == (2, num_classes)
    assert bool(jnp.all(jnp.isfinite(logits)))
    print("KERNEL_OK")
</pallas_src>

<mosaic_0001>
module attributes {stable_mosaic.version = 11 : i64} {
  func.func @_loc_head_kernel(%arg0: memref<2x128xf32, #tpu.memory_space<vmem>>, %arg1: memref<128x128xf32, #tpu.memory_space<vmem>>, %arg2: memref<1x128xf32, #tpu.memory_space<vmem>>, %arg3: memref<128x128xf32, #tpu.memory_space<vmem>>, %arg4: memref<1x128xf32, #tpu.memory_space<vmem>>, %arg5: memref<2x128xf32, #tpu.memory_space<vmem>>) attributes {dimension_semantics = [], scalar_prefetch = 0 : i64, scratch_operands = 0 : i64, tpu.core_type = #tpu.core_type<tc>} {
    %c0 = arith.constant 0 : index
    %c0_0 = arith.constant 0 : index
    %0 = vector.load %arg0[%c0, %c0_0] : memref<2x128xf32, #tpu.memory_space<vmem>>, vector<2x128xf32>
    %c0_1 = arith.constant 0 : index
    %c0_2 = arith.constant 0 : index
    %1 = vector.load %arg1[%c0_1, %c0_2] : memref<128x128xf32, #tpu.memory_space<vmem>>, vector<128x128xf32>
    %cst = arith.constant dense<0.000000e+00> : vector<2x128xf32>
    %2 = tpu.matmul %0, %1, %cst {dimension_numbers = #tpu.dot_dimension_numbers<[1], [0], [0], [1], [0, 0, 1, 1], [], []>} : vector<2x128xf32>, vector<128x128xf32>, vector<2x128xf32> -> vector<2x128xf32>
    %c0_3 = arith.constant 0 : index
    %c0_4 = arith.constant 0 : index
    %3 = vector.load %arg2[%c0_3, %c0_4] : memref<1x128xf32, #tpu.memory_space<vmem>>, vector<1x128xf32>
    %4 = vector.broadcast %3 : vector<1x128xf32> to vector<2x128xf32>
    %5 = arith.addf %2, %4 : vector<2x128xf32>
    %cst_5 = arith.constant 0.000000e+00 : f32
    %6 = vector.broadcast %cst_5 : f32 to vector<2x128xf32>
    %7 = arith.maximumf %5, %6 : vector<2x128xf32>
    %c0_6 = arith.constant 0 : index
    %c0_7 = arith.constant 0 : index
    %8 = vector.load %arg3[%c0_6, %c0_7] : memref<128x128xf32, #tpu.memory_space<vmem>>, vector<128x128xf32>
    %cst_8 = arith.constant dense<0.000000e+00> : vector<2x128xf32>
    %9 = tpu.matmul %7, %8, %cst_8 {dimension_numbers = #tpu.dot_dimension_numbers<[1], [0], [0], [1], [0, 0, 1, 1], [], []>} : vector<2x128xf32>, vector<128x128xf32>, vector<2x128xf32> -> vector<2x128xf32>
    %c0_9 = arith.constant 0 : index
    %c0_10 = arith.constant 0 : index
    %10 = vector.load %arg4[%c0_9, %c0_10] : memref<1x128xf32, #tpu.memory_space<vmem>>, vector<1x128xf32>
    %11 = vector.broadcast %10 : vector<1x128xf32> to vector<2x128xf32>
    %12 = arith.addf %9, %11 : vector<2x128xf32>
    %c0_11 = arith.constant 0 : index
    %c0_12 = arith.constant 0 : index
    %13 = vector.load %arg5[%c0_11, %c0_12] : memref<2x128xf32, #tpu.memory_space<vmem>>, vector<2x128xf32>
    tpu.vector_store %arg5[%c0_11, %c0_12], %12 {strides = array<i32>} : memref<2x128xf32, #tpu.memory_space<vmem>>, vector<2x128xf32>,
    return
  }
}

module attributes {stable_mosaic.version = 11 : i64} {
  func.func @_sampler_kernel(%arg0: i32, %arg1: i32, %arg2: memref<1x1x256xf32, #tpu.memory_space<vmem>>, %arg3: memref<1x1x256xf32, #tpu.memory_space<vmem>>, %arg4: memref<1x3x16x16xbf16, #tpu.memory_space<vmem>>, %arg5: memref<1x3x256xf32, #tpu.memory_space<vmem>>) attributes {dimension_semantics = [#tpu.dimension_semantics<parallel>, #tpu.dimension_semantics<parallel>], iteration_bounds = array<i64: 2, 1>, scalar_prefetch = 0 : i64, scratch_operands = 0 : i64, tpu.core_type = #tpu.core_type<tc>, window_params = [{transform_indices = @transform_0, window_bounds = array<i64: 1, 1, 256>}, {transform_indices = @transform_1, window_bounds = array<i64: 1, 1, 256>}, {transform_indices = @transform_2, window_bounds = array<i64: 1, 3, 16, 16>}, {transform_indices = @transform_3, window_bounds = array<i64: 1, 3, 256>}]} {
    %c0 = arith.constant 0 : index
    %c0_0 = arith.constant 0 : index
    %c0_1 = arith.constant 0 : index
    %0 = vector.load %arg2[%c0, %c0_0, %c0_1] : memref<1x1x256xf32, #tpu.memory_space<vmem>>, vector<1x1x256xf32>
    %1 = vector.shape_cast %0 : vector<1x1x256xf32> to vector<1x256xf32>
    %c0_2 = arith.constant 0 : index
    %c0_3 = arith.constant 0 : index
    %c0_4 = arith.constant 0 : index
    %2 = vector.load %arg3[%c0_2, %c0_3, %c0_4] : memref<1x1x256xf32, #tpu.memory_space<vmem>>, vector<1x1x256xf32>
    %3 = vector.shape_cast %2 : vector<1x1x256xf32> to vector<1x256xf32>
    %4 = math.floor %3 : vector<1x256xf32>
    %5 = arith.subf %3, %4 : vector<1x256xf32>
    %cst = arith.constant 1.000000e+00 : f32
    %6 = vector.broadcast %cst : f32 to vector<1x256xf32>
    %7 = arith.subf %6, %5 : vector<1x256xf32>
    %8 = math.floor %1 : vector<1x256xf32>
    %9 = arith.subf %1, %8 : vector<1x256xf32>
    %cst_5 = arith.constant 1.000000e+00 : f32
    %10 = vector.broadcast %cst_5 : f32 to vector<1x256xf32>
    %11 = arith.subf %10, %9 : vector<1x256xf32>
    %cst_6 = arith.constant 0.000000e+00 : f32
    %12 = vector.broadcast %cst_6 : f32 to vector<1x256xf32>
    %13 = arith.cmpf oge, %4, %12 : vector<1x256xf32>
    %cst_7 = arith.constant 1.500000e+01 : f32
    %14 = vector.broadcast %cst_7 : f32 to vector<1x256xf32>
    %15 = arith.cmpf ole, %4, %14 : vector<1x256xf32>
    %16 = arith.andi %13, %15 : vector<1x256xi1>
    %cst_8 = arith.constant 0.000000e+00 : f32
    %17 = vector.broadcast %cst_8 : f32 to vector<1x256xf32>
    %18 = arith.select %16, %7, %17 : vector<1x256xi1>, vector<1x256xf32>
    %cst_9 = arith.constant 0.000000e+00 : f32
    %cst_10 = arith.constant 1.500000e+01 : f32
    %19 = vector.broadcast %cst_9 : f32 to vector<1x256xf32>
    %20 = arith.maximumf %19, %4 : vector<1x256xf32>
    %21 = vector.broadcast %cst_10 : f32 to vector<1x256xf32>
    %22 = arith.minimumf %21, %20 : vector<1x256xf32>
    %23 = arith.fptosi %22 : vector<1x256xf32> to vector<1x256xi32>
    %24 = tpu.iota {dimensions = array<i32: 0>} : vector<16x256xi32>
    %25 = vector.broadcast %23 : vector<1x256xi32> to vector<16x256xi32>
    %26 = arith.cmpi eq, %24, %25 : vector<16x256xi32>
    %cst_11 = arith.constant 0.000000e+00 : f32
    %27 = vector.shape_cast %18 : vector<1x256xf32> to vector<1x256xf32>
    %28 = vector.broadcast %27 : vector<1x256xf32> to vector<16x256xf32>
    %29 = vector.broadcast %cst_11 : f32 to vector<16x256xf32>
    %30 = arith.select %26, %28, %29 : vector<16x256xi1>, vector<16x256xf32>
    %cst_12 = arith.constant 1.000000e+00 : f32
    %31 = vector.broadcast %cst_12 : f32 to vector<1x256xf32>
    %32 = arith.addf %4, %31 : vector<1x256xf32>
    %cst_13 = arith.constant 0.000000e+00 : f32
    %33 = vector.broadcast %cst_13 : f32 to vector<1x256xf32>
    %34 = arith.cmpf oge, %32, %33 : vector<1x256xf32>
    %cst_14 = arith.constant 1.500000e+01 : f32
    %35 = vector.broadcast %cst_14 : f32 to vector<1x256xf32>
    %36 = arith.cmpf ole, %32, %35 : vector<1x256xf32>
    %37 = arith.andi %34, %36 : vector<1x256xi1>
    %cst_15 = arith.constant 0.000000e+00 : f32
    %38 = vector.broadcast %cst_15 : f32 to vector<1x256xf32>
    %39 = arith.select %37, %5, %38 : vector<1x256xi1>, vector<1x256xf32>
    %cst_16 = arith.constant 0.000000e+00 : f32
    %cst_17 = arith.constant 1.500000e+01 : f32
    %40 = vector.broadcast %cst_16 : f32 to vector<1x256xf32>
    %41 = arith.maximumf %40, %32 : vector<1x256xf32>
    %42 = vector.broadcast %cst_17 : f32 to vector<1x256xf32>
    %43 = arith.minimumf %42, %41 : vector<1x256xf32>
    %44 = arith.fptosi %43 : vector<1x256xf32> to vector<1x256xi32>
    %45 = tpu.iota {dimensions = array<i32: 0>} : vector<16x256xi32>
    %46 = vector.broadcast %44 : vector<1x256xi32> to vector<16x256xi32>
    %47 = arith.cmpi eq, %45, %46 : vector<16x256xi32>
    %cst_18 = arith.constant 0.000000e+00 : f32
    %48 = vector.shape_cast %39 : vector<1x256xf32> to vector<1x256xf32>
    %49 = vector.broadcast %48 : vector<1x256xf32> to vector<16x256xf32>
    %50 = vector.broadcast %cst_18 : f32 to vector<16x256xf32>
    %51 = arith.select %47, %49, %50 : vector<16x256xi1>, vector<16x256xf32>
    %52 = arith.addf %30, %51 : vector<16x256xf32>
    %53 = arith.truncf %52 : vector<16x256xf32> to vector<16x256xbf16>
    %cst_19 = arith.constant 0.000000e+00 : f32
    %54 = vector.broadcast %cst_19 : f32 to vector<1x256xf32>
    %55 = arith.cmpf oge, %8, %54 : vector<1x256xf32>
    %cst_20 = arith.constant 1.500000e+01 : f32
    %56 = vector.broadcast %cst_20 : f32 to vector<1x256xf32>
    %57 = arith.cmpf ole, %8, %56 : vector<1x256xf32>
    %58 = arith.andi %55, %57 : vector<1x256xi1>
    %cst_21 = arith.constant 0.000000e+00 : f32
    %59 = vector.broadcast %cst_21 : f32 to vector<1x256xf32>
    %60 = arith.select %58, %11, %59 : vector<1x256xi1>, vector<1x256xf32>
    %cst_22 = arith.constant 0.000000e+00 : f32
    %cst_23 = arith.constant 1.500000e+01 : f32
    %61 = vector.broadcast %cst_22 : f32 to vector<1x256xf32>
    %62 = arith.maximumf %61, %8 : vector<1x256xf32>
    %63 = vector.broadcast %cst_23 : f32 to vector<1x256xf32>
    %64 = arith.minimumf %63, %62 : vector<1x256xf32>
    %65 = arith.fptosi %64 : vector<1x256xf32> to vector<1x256xi32>
    %66 = tpu.iota {dimensions = array<i32: 0>} : vector<16x256xi32>
    %67 = vector.broadcast %65 : vector<1x256xi32> to vector<16x256xi32>
    %68 = arith.cmpi eq, %66, %67 : vector<16x256xi32>
    %cst_24 = arith.constant 0.000000e+00 : f32
    %69 = vector.shape_cast %60 : vector<1x256xf32> to vector<1x256xf32>
    %70 = vector.broadcast %69 : vector<1x256xf32> to vector<16x256xf32>
    %71 = vector.broadcast %cst_24 : f32 to vector<16x256xf32>
    %72 = arith.select %68, %70, %71 : vector<16x256xi1>, vector<16x256xf32>
    %cst_25 = arith.constant 1.000000e+00 : f32
    %73 = vector.broadcast %cst_25 : f32 to vector<1x256xf32>
    %74 = arith.addf %8, %73 : vector<1x256xf32>
    %cst_26 = arith.constant 0.000000e+00 : f32
    %75 = vector.broadcast %cst_26 : f32 to vector<1x256xf32>
    %76 = arith.cmpf oge, %74, %75 : vector<1x256xf32>
    %cst_27 = arith.constant 1.500000e+01 : f32
    %77 = vector.broadcast %cst_27 : f32 to vector<1x256xf32>
    %78 = arith.cmpf ole, %74, %77 : vector<1x256xf32>
    %79 = arith.andi %76, %78 : vector<1x256xi1>
    %cst_28 = arith.constant 0.000000e+00 : f32
    %80 = vector.broadcast %cst_28 : f32 to vector<1x256xf32>
    %81 = arith.select %79, %9, %80 : vector<1x256xi1>, vector<1x256xf32>
    %cst_29 = arith.constant 0.000000e+00 : f32
    %cst_30 = arith.constant 1.500000e+01 : f32
    %82 = vector.broadcast %cst_29 : f32 to vector<1x256xf32>
    %83 = arith.maximumf %82, %74 : vector<1x256xf32>
    %84 = vector.broadcast %cst_30 : f32 to vector<1x256xf32>
    %85 = arith.minimumf %84, %83 : vector<1x256xf32>
    %86 = arith.fptosi %85 : vector<1x256xf32> to vector<1x256xi32>
    %87 = tpu.iota {dimensions = array<i32: 0>} : vector<16x256xi32>
    %88 = vector.broadcast %86 : vector<1x256xi32> to vector<16x256xi32>
    %89 = arith.cmpi eq, %87, %88 : vector<16x256xi32>
    %cst_31 = arith.constant 0.000000e+00 : f32
    %90 = vector.shape_cast %81 : vector<1x256xf32> to vector<1x256xf32>
    %91 = vector.broadcast %90 : vector<1x256xf32> to vector<16x256xf32>
    %92 = vector.broadcast %cst_31 : f32 to vector<16x256xf32>
    %93 = arith.select %89, %91, %92 : vector<16x256xi1>, vector<16x256xf32>
    %94 = arith.addf %72, %93 : vector<16x256xf32>
    %c0_32 = arith.constant 0 : index
    %c0_33 = arith.constant 0 : index
    %c0_34 = arith.constant 0 : index
    %c0_35 = arith.constant 0 : index
    %95 = vector.load %arg4[%c0_32, %c0_33, %c0_34, %c0_35] : memref<1x3x16x16xbf16, #tpu.memory_space<vmem>>, vector<1x1x16x16xbf16>
    %96 = vector.shape_cast %95 : vector<1x1x16x16xbf16> to vector<16x16xbf16>
    %cst_36 = arith.constant dense<0.000000e+00> : vector<16x256xf32>
    %97 = tpu.matmul %96, %53, %cst_36 {dimension_numbers = #tpu.dot_dimension_numbers<[1], [0], [0], [1], [0, 0, 1, 1], [], []>} : vector<16x16xbf16>, vector<16x256xbf16>, vector<16x256xf32> -> vector<16x256xf32>
    %98 = arith.mulf %97, %94 : vector<16x256xf32>
    %cst_37 = arith.constant dense<0.000000e+00> : vector<256xf32>
    %99 = vector.multi_reduction <add>, %98, %cst_37 [0] : vector<16x256xf32> to vector<256xf32>
    %100 = vector.shape_cast %99 : vector<256xf32> to vector<1x256xf32>
    %c0_38 = arith.constant 0 : index
    %c1 = arith.constant 1 : index
    %c0_39 = arith.constant 0 : index
    %c0_40 = arith.constant 0 : index
    %101 = vector.load %arg4[%c0_38, %c1, %c0_39, %c0_40] : memref<1x3x16x16xbf16, #tpu.memory_space<vmem>>, vector<1x1x16x16xbf16>
    %102 = vector.shape_cast %101 : vector<1x1x16x16xbf16> to vector<16x16xbf16>
    %cst_41 = arith.constant dense<0.000000e+00> : vector<16x256xf32>
    %103 = tpu.matmul %102, %53, %cst_41 {dimension_numbers = #tpu.dot_dimension_numbers<[1], [0], [0], [1], [0, 0, 1, 1], [], []>} : vector<16x16xbf16>, vector<16x256xbf16>, vector<16x256xf32> -> vector<16x256xf32>
    %104 = arith.mulf %103, %94 : vector<16x256xf32>
    %cst_42 = arith.constant dense<0.000000e+00> : vector<256xf32>
    %105 = vector.multi_reduction <add>, %104, %cst_42 [0] : vector<16x256xf32> to vector<256xf32>
    %106 = vector.shape_cast %105 : vector<256xf32> to vector<1x256xf32>
    %c0_43 = arith.constant 0 : index
    %c2 = arith.constant 2 : index
    %c0_44 = arith.constant 0 : index
    %c0_45 = arith.constant 0 : index
    %107 = vector.load %arg4[%c0_43, %c2, %c0_44, %c0_45] : memref<1x3x16x16xbf16, #tpu.memory_space<vmem>>, vector<1x1x16x16xbf16>
    %108 = vector.shape_cast %107 : vector<1x1x16x16xbf16> to vector<16x16xbf16>
    %cst_46 = arith.constant dense<0.000000e+00> : vector<16x256xf32>
    %109 = tpu.matmul %108, %53, %cst_46 {dimension_numbers = #tpu.dot_dimension_numbers<[1], [0], [0], [1], [0, 0, 1, 1], [], []>} : vector<16x16xbf16>, vector<16x256xbf16>, vector<16x256xf32> -> vector<16x256xf32>
    %110 = arith.mulf %109, %94 : vector<16x256xf32>
    %cst_47 = arith.constant dense<0.000000e+00> : vector<256xf32>
    %111 = vector.multi_reduction <add>, %110, %cst_47 [0] : vector<16x256xf32> to vector<256xf32>
    %112 = vector.shape_cast %111 : vector<256xf32> to vector<1x256xf32>
    %113 = tpu.concatenate %100, %106, %112 in 0 : vector<1x256xf32>, vector<1x256xf32>, vector<1x256xf32> -> vector<3x256xf32>
    %c0_48 = arith.constant 0 : index
    %c0_49 = arith.constant 0 : index
    %c0_50 = arith.constant 0 : index
    %114 = vector.load %arg5[%c0_48, %c0_49, %c0_50] : memref<1x3x256xf32, #tpu.memory_space<vmem>>, vector<1x3x256xf32>
    %115 = vector.shape_cast %114 : vector<1x3x256xf32> to vector<3x256xf32>
    %116 = vector.shape_cast %113 : vector<3x256xf32> to vector<1x3x256xf32>
    tpu.vector_store %arg5[%c0_48, %c0_49, %c0_50], %116 {strides = array<i32>} : memref<1x3x256xf32, #tpu.memory_space<vmem>>, vector<1x3x256xf32>,
    return
  }
  func.func @transform_0(%arg0: i32, %arg1: i32) -> (i32, i32, i32) {
    %c0_i32 = arith.constant 0 : i32
    %c0_i32_0 = arith.constant 0 : i32
    return %arg0, %c0_i32, %arg1 : i32, i32, i32
  }
  func.func @transform_1(%arg0: i32, %arg1: i32) -> (i32, i32, i32) {
    %c0_i32 = arith.constant 0 : i32
    %c0_i32_0 = arith.constant 0 : i32
    return %arg0, %c0_i32, %arg1 : i32, i32, i32
  }
  func.func @transform_2(%arg0: i32, %arg1: i32) -> (i32, i32, i32, i32) {
    %c0_i32 = arith.constant 0 : i32
    %c0_i32_0 = arith.constant 0 : i32
    %c0_i32_1 = arith.constant 0 : i32
    %c0_i32_2 = arith.constant 0 : i32
    return %arg0, %c0_i32, %c0_i32_0, %c0_i32_1 : i32, i32, i32, i32
  }
  func.func @transform_3(%arg0: i32, %arg1: i32) -> (i32, i32, i32) {
    %c0_i32 = arith.constant 0 : i32
    %c0_i32_0 = arith.constant 0 : i32
    return %arg0, %c0_i32, %arg1 : i32, i32, i32
  }
}

module attributes {stable_mosaic.version = 11 : i64} {
  func.func @_conv3x3_gap_kernel(%arg0: i32, %arg1: i32, %arg2: memref<1x3x18x18xf32, #tpu.memory_space<vmem>>, %arg3: memref<128x27xbf16, #tpu.memory_space<vmem>>, %arg4: memref<128x1xf32, #tpu.memory_space<vmem>>, %arg5: memref<1x128x1xf32, #tpu.memory_space<vmem>>, %arg6: memref<128x1xf32, #tpu.memory_space<vmem>>) attributes {dimension_semantics = [#tpu.dimension_semantics<parallel>, #tpu.dimension_semantics<arbitrary>], iteration_bounds = array<i64: 2, 1>, scalar_prefetch = 0 : i64, scratch_operands = 1 : i64, tpu.core_type = #tpu.core_type<tc>, window_params = [{transform_indices = @transform_0, window_bounds = array<i64: 1, 3, 18, 18>}, {pipeline_mode = #tpu.pipeline_mode<synchronous>, transform_indices = @transform_1, window_bounds = array<i64: 128, 27>}, {pipeline_mode = #tpu.pipeline_mode<synchronous>, transform_indices = @transform_2, window_bounds = array<i64: 128, 1>}, {transform_indices = @transform_3, window_bounds = array<i64: 1, 128, 1>}]} {
    %c16_i32 = arith.constant 16 : i32
    %0 = arith.muli %arg1, %c16_i32 : i32
    %c0_i32 = arith.constant 0 : i32
    %1 = arith.cmpi eq, %arg1, %c0_i32 : i32
    %2 = arith.extui %1 : i1 to i32
    %c0_i32_0 = arith.constant 0 : i32
    %3 = arith.cmpi ne, %2, %c0_i32_0 : i32
    scf.if %3 {
      %cst_2155 = arith.constant 0.000000e+00 : f32
      %2210 = vector.broadcast %cst_2155 : f32 to vector<128x1xf32>
      %c0_2156 = arith.constant 0 : index
      %c0_2157 = arith.constant 0 : index
      %2211 = vector.load %arg6[%c0_2156, %c0_2157] : memref<128x1xf32, #tpu.memory_space<vmem>>, vector<128x1xf32>
      tpu.vector_store %arg6[%c0_2156, %c0_2157], %2210 {strides = array<i32>} : memref<128x1xf32, #tpu.memory_space<vmem>>, vector<128x1xf32>,
    } else {
    }
    %c0_i32_1 = arith.constant 0 : i32
    %4 = arith.addi %0, %c0_i32_1 : i32
    %c0_i32_2 = arith.constant 0 : i32
    %5 = arith.addi %4, %c0_i32_2 : i32
    %c0 = arith.constant 0 : index
    %c0_3 = arith.constant 0 : index
    %6 = arith.index_cast %5 : i32 to index
    %c0_4 = arith.constant 0 : index
    %7 = vector.load %arg2[%c0, %c0_3, %6, %c0_4] : memref<1x3x18x18xf32, #tpu.memory_space<vmem>>, vector<1x1x1x16xf32>
    %8 = vector.shape_cast %7 : vector<1x1x1x16xf32> to vector<1x16xf32>
    %c1_i32 = arith.constant 1 : i32
    %9 = arith.addi %0, %c1_i32 : i32
    %c0_i32_5 = arith.constant 0 : i32
    %10 = arith.addi %9, %c0_i32_5 : i32
    %c0_6 = arith.constant 0 : index
    %c0_7 = arith.constant 0 : index
    %11 = arith.index_cast %10 : i32 to index
    %c0_8 = arith.constant 0 : index
    %12 = vector.load %arg2[%c0_6, %c0_7, %11, %c0_8] : memref<1x3x18x18xf32, #tpu.memory_space<vmem>>, vector<1x1x1x16xf32>
    %13 = vector.shape_cast %12 : vector<1x1x1x16xf32> to vector<1x16xf32>
    %c2_i32 = arith.constant 2 : i32
    %14 = arith.addi %0, %c2_i32 : i32
    %c0_i32_9 = arith.constant 0 : i32
    %15 = arith.addi %14, %c0_i32_9 : i32
    %c0_10 = arith.constant 0 : index
    %c0_11 = arith.constant 0 : index
    %16 = arith.index_cast %15 : i32 to index
    %c0_12 = arith.constant 0 : index
    %17 = vector.load %arg2[%c0_10, %c0_11, %16, %c0_12] : memref<1x3x18x18xf32, #tpu.memory_space<vmem>>, vector<1x1x1x16xf32>
    %18 = vector.shape_cast %17 : vector<1x1x1x16xf32> to vector<1x16xf32>
    %c3_i32 = arith.constant 3 : i32
    %19 = arith.addi %0, %c3_i32 : i32
    %c0_i32_13 = arith.constant 0 : i32
    %20 = arith.addi %19, %c0_i32_13 : i32
    %c0_14 = arith.constant 0 : index
    %c0_15 = arith.constant 0 : index
    %21 = arith.index_cast %20 : i32 to index
    %c0_16 = arith.constant 0 : index
    %22 = vector.load %arg2[%c0_14, %c0_15, %21, %c0_16] : memref<1x3x18x18xf32, #tpu.memory_space<vmem>>, vector<1x1x1x16xf32>
    %23 = vector.shape_cast %22 : vector<1x1x1x16xf32> to vector<1x16xf32>
    %c4_i32 = arith.constant 4 : i32
    %24 = arith.addi %0, %c4_i32 : i32
    %c0_i32_17 = arith.constant 0 : i32
    %25 = arith.addi %24, %c0_i32_17 : i32
    %c0_18 = arith.constant 0 : index
    %c0_19 = arith.constant 0 : index
    %26 = arith.index_cast %25 : i32 to index
    %c0_20 = arith.constant 0 : index
    %27 = vector.load %arg2[%c0_18, %c0_19, %26, %c0_20] : memref<1x3x18x18xf32, #tpu.memory_space<vmem>>, vector<1x1x1x16xf32>
    %28 = vector.shape_cast %27 : vector<1x1x1x16xf32> to vector<1x16xf32>
    %c5_i32 = arith.constant 5 : i32
    %29 = arith.addi %0, %c5_i32 : i32
    %c0_i32_21 = arith.constant 0 : i32
    %30 = arith.addi %29, %c0_i32_21 : i32
    %c0_22 = arith.constant 0 : index
    %c0_23 = arith.constant 0 : index
    %31 = arith.index_cast %30 : i32 to index
    %c0_24 = arith.constant 0 : index
    %32 = vector.load %arg2[%c0_22, %c0_23, %31, %c0_24] : memref<1x3x18x18xf32, #tpu.memory_space<vmem>>, vector<1x1x1x16xf32>
    %33 = vector.shape_cast %32 : vector<1x1x1x16xf32> to vector<1x16xf32>
    %c6_i32 = arith.constant 6 : i32
    %34 = arith.addi %0, %c6_i32 : i32
    %c0_i32_25 = arith.constant 0 : i32
    %35 = arith.addi %34, %c0_i32_25 : i32
    %c0_26 = arith.constant 0 : index
    %c0_27 = arith.constant 0 : index
    %36 = arith.index_cast %35 : i32 to index
    %c0_28 = arith.constant 0 : index
    %37 = vector.load %arg2[%c0_26, %c0_27, %36, %c0_28] : memref<1x3x18x18xf32, #tpu.memory_space<vmem>>, vector<1x1x1x16xf32>
    %38 = vector.shape_cast %37 : vector<1x1x1x16xf32> to vector<1x16xf32>
    %c7_i32 = arith.constant 7 : i32
    %39 = arith.addi %0, %c7_i32 : i32
    %c0_i32_29 = arith.constant 0 : i32
    %40 = arith.addi %39, %c0_i32_29 : i32
    %c0_30 = arith.constant 0 : index
    %c0_31 = arith.constant 0 : index
    %41 = arith.index_cast %40 : i32 to index
    %c0_32 = arith.constant 0 : index
    %42 = vector.load %arg2[%c0_30, %c0_31, %41, %c0_32] : memref<1x3x18x18xf32, #tpu.memory_space<vmem>>, vector<1x1x1x16xf32>
    %43 = vector.shape_cast %42 : vector<1x1x1x16xf32> to vector<1x16xf32>
    %c8_i32 = arith.constant 8 : i32
    %44 = arith.addi %0, %c8_i32 : i32
    %c0_i32_33 = arith.constant 0 : i32
    %45 = arith.addi %44, %c0_i32_33 : i32
    %c0_34 = arith.constant 0 : index
    %c0_35 = arith.constant 0 : index
    %46 = arith.index_cast %45 : i32 to index
    %c0_36 = arith.constant 0 : index
    %47 = vector.load %arg2[%c0_34, %c0_35, %46, %c0_36] : memref<1x3x18x18xf32, #tpu.memory_space<vmem>>, vector<1x1x1x16xf32>
    %48 = vector.shape_cast %47 : vector<1x1x1x16xf32> to vector<1x16xf32>
    %c9_i32 = arith.constant 9 : i32
    %49 = arith.addi %0, %c9_i32 : i32
    %c0_i32_37 = arith.constant 0 : i32
    %50 = arith.addi %49, %c0_i32_37 : i32
    %c0_38 = arith.constant 0 : index
    %c0_39 = arith.constant 0 : index
    %51 = arith.index_cast %50 : i32 to index
    %c0_40 = arith.constant 0 : index
    %52 = vector.load %arg2[%c0_38, %c0_39, %51, %c0_40] : memref<1x3x18x18xf32, #tpu.memory_space<vmem>>, vector<1x1x1x16xf32>
    %53 = vector.shape_cast %52 : vector<1x1x1x16xf32> to vector<1x16xf32>
    %c10_i32 = arith.constant 10 : i32
    %54 = arith.addi %0, %c10_i32 : i32
    %c0_i32_41 = arith.constant 0 : i32
    %55 = arith.addi %54, %c0_i32_41 : i32
    %c0_42 = arith.constant 0 : index
    %c0_43 = arith.constant 0 : index
    %56 = arith.index_cast %55 : i32 to index
    %c0_44 = arith.constant 0 : index
    %57 = vector.load %arg2[%c0_42, %c0_43, %56, %c0_44] : memref<1x3x18x18xf32, #tpu.memory_space<vmem>>, vector<1x1x1x16xf32>
    %58 = vector.shape_cast %57 : vector<1x1x1x16xf32> to vector<1x16xf32>
    %c11_i32 = arith.constant 11 : i32
    %59 = arith.addi %0, %c11_i32 : i32
    %c0_i32_45 = arith.constant 0 : i32
    %60 = arith.addi %59, %c0_i32_45 : i32
    %c0_46 = arith.constant 0 : index
    %c0_47 = arith.constant 0 : index
    %61 = arith.index_cast %60 : i32 to index
    %c0_48 = arith.constant 0 : index
    %62 = vector.load %arg2[%c0_46, %c0_47, %61, %c0_48] : memref<1x3x18x18xf32, #tpu.memory_space<vmem>>, vector<1x1x1x16xf32>
    %63 = vector.shape_cast %62 : vector<1x1x1x16xf32> to vector<1x16xf32>
    %c12_i32 = arith.constant 12 : i32
    %64 = arith.addi %0, %c12_i32 : i32
    %c0_i32_49 = arith.constant 0 : i32
    %65 = arith.addi %64, %c0_i32_49 : i32
    %c0_50 = arith.constant 0 : index
    %c0_51 = arith.constant 0 : index
    %66 = arith.index_cast %65 : i32 to index
    %c0_52 = arith.constant 0 : index
    %67 = vector.load %arg2[%c0_50, %c0_51, %66, %c0_52] : memref<1x3x18x18xf32, #tpu.memory_space<vmem>>, vector<1x1x1x16xf32>
    %68 = vector.shape_cast %67 : vector<1x1x1x16xf32> to vector<1x16xf32>
    %c13_i32 = arith.constant 13 : i32
    %69 = arith.addi %0, %c13_i32 : i32
    %c0_i32_53 = arith.constant 0 : i32
    %70 = arith.addi %69, %c0_i32_53 : i32
    %c0_54 = arith.constant 0 : index
    %c0_55 = arith.constant 0 : index
    %71 = arith.index_cast %70 : i32 to index
    %c0_56 = arith.constant 0 : index
    %72 = vector.load %arg2[%c0_54, %c0_55, %71, %c0_56] : memref<1x3x18x18xf32, #tpu.memory_space<vmem>>, vector<1x1x1x16xf32>
    %73 = vector.shape_cast %72 : vector<1x1x1x16xf32> to vector<1x16xf32>
    %c14_i32 = arith.constant 14 : i32
    %74 = arith.addi %0, %c14_i32 : i32
    %c0_i32_57 = arith.constant 0 : i32
    %75 = arith.addi %74, %c0_i32_57 : i32
    %c0_58 = arith.constant 0 : index
    %c0_59 = arith.constant 0 : index
    %76 = arith.index_cast %75 : i32 to index
    %c0_60 = arith.constant 0 : index
    %77 = vector.load %arg2[%c0_58, %c0_59, %76, %c0_60] : memref<1x3x18x18xf32, #tpu.memory_space<vmem>>, vector<1x1x1x16xf32>
    %78 = vector.shape_cast %77 : vector<1x1x1x16xf32> to vector<1x16xf32>
    %c15_i32 = arith.constant 15 : i32
    %79 = arith.addi %0, %c15_i32 : i32
    %c0_i32_61 = arith.constant 0 : i32
    %80 = arith.addi %79, %c0_i32_61 : i32
    %c0_62 = arith.constant 0 : index
    %c0_63 = arith.constant 0 : index
    %81 = arith.index_cast %80 : i32 to index
    %c0_64 = arith.constant 0 : index
    %82 = vector.load %arg2[%c0_62, %c0_63, %81, %c0_64] : memref<1x3x18x18xf32, #tpu.memory_space<vmem>>, vector<1x1x1x16xf32>
    %83 = vector.shape_cast %82 : vector<1x1x1x16xf32> to vector<1x16xf32>
    %84 = tpu.concatenate %8, %13, %18, %23, %28, %33, %38, %43, %48, %53, %58, %63, %68, %73, %78, %83 in 1 : vector<1x16xf32>, vector<1x16xf32>, vector<1x16xf32>, vector<1x16xf32>, vector<1x16xf32>, vector<1x16xf32>, vector<1x16xf32>, vector<1x16xf32>, vector<1x16xf32>, vector<1x16xf32>, vector<1x16xf32>, vector<1x16xf32>, vector<1x16xf32>, vector<1x16xf32>, vector<1x16xf32>, vector<1x16xf32> -> vector<1x256xf32>
    %c0_i32_65 = arith.constant 0 : i32
    %85 = arith.addi %0, %c0_i32_65 : i32
    %c0_i32_66 = arith.constant 0 : i32
    %86 = arith.addi %85, %c0_i32_66 : i32
    %c0_67 = arith.constant 0 : index
    %c0_68 = arith.constant 0 : index
    %87 = arith.index_cast %86 : i32 to index
    %c1 = arith.constant 1 : index
    %88 = vector.load %arg2[%c0_67, %c0_68, %87, %c1] : memref<1x3x18x18xf32, #tpu.memory_space<vmem>>, vector<1x1x1x16xf32>
    %89 = vector.shape_cast %88 : vector<1x1x1x16xf32> to vector<1x16xf32>
    %c1_i32_69 = arith.constant 1 : i32
    %90 = arith.addi %0, %c1_i32_69 : i32
    %c0_i32_70 = arith.constant 0 : i32
    %91 = arith.addi %90, %c0_i32_70 : i32
    %c0_71 = arith.constant 0 : index
    %c0_72 = arith.constant 0 : index
    %92 = arith.index_cast %91 : i32 to index
    %c1_73 = arith.constant 1 : index
    %93 = vector.load %arg2[%c0_71, %c0_72, %92, %c1_73] : memref<1x3x18x18xf32, #tpu.memory_space<vmem>>, vector<1x1x1x16xf32>
    %94 = vector.shape_cast %93 : vector<1x1x1x16xf32> to vector<1x16xf32>
    %c2_i32_74 = arith.constant 2 : i32
    %95 = arith.addi %0, %c2_i32_74 : i32
    %c0_i32_75 = arith.constant 0 : i32
    %96 = arith.addi %95, %c0_i32_75 : i32
    %c0_76 = arith.constant 0 : index
    %c0_77 = arith.constant 0 : index
    %97 = arith.index_cast %96 : i32 to index
    %c1_78 = arith.constant 1 : index
    %98 = vector.load %arg2[%c0_76, %c0_77, %97, %c1_78] : memref<1x3x18x18xf32, #tpu.memory_space<vmem>>, vector<1x1x1x16xf32>
    %99 = vector.shape_cast %98 : vector<1x1x1x16xf32> to vector<1x16xf32>
    %c3_i32_79 = arith.constant 3 : i32
    %100 = arith.addi %0, %c3_i32_79 : i32
    %c0_i32_80 = arith.constant 0 : i32
    %101 = arith.addi %100, %c0_i32_80 : i32
    %c0_81 = arith.constant 0 : index
    %c0_82 = arith.constant 0 : index
    %102 = arith.index_cast %101 : i32 to index
    %c1_83 = arith.constant 1 : index
    %103 = vector.load %arg2[%c0_81, %c0_82, %102, %c1_83] : memref<1x3x18x18xf32, #tpu.memory_space<vmem>>, vector<1x1x1x16xf32>
    %104 = vector.shape_cast %103 : vector<1x1x1x16xf32> to vector<1x16xf32>
    %c4_i32_84 = arith.constant 4 : i32
    %105 = arith.addi %0, %c4_i32_84 : i32
    %c0_i32_85 = arith.constant 0 : i32
    %106 = arith.addi %105, %c0_i32_85 : i32
    %c0_86 = arith.constant 0 : index
    %c0_87 = arith.constant 0 : index
    %107 = arith.index_cast %106 : i32 to index
    %c1_88 = arith.constant 1 : index
    %108 = vector.load %arg2[%c0_86, %c0_87, %107, %c1_88] : memref<1x3x18x18xf32, #tpu.memory_space<vmem>>, vector<1x1x1x16xf32>
    %109 = vector.shape_cast %108 : vector<1x1x1x16xf32> to vector<1x16xf32>
    %c5_i32_89 = arith.constant 5 : i32
    %110 = arith.addi %0, %c5_i32_89 : i32
    %c0_i32_90 = arith.constant 0 : i32
    %111 = arith.addi %110, %c0_i32_90 : i32
    %c0_91 = arith.constant 0 : index
    %c0_92 = arith.constant 0 : index
    %112 = arith.index_cast %111 : i32 to index
    %c1_93 = arith.constant 1 : index
    %113 = vector.load %arg2[%c0_91, %c0_92, %112, %c1_93] : memref<1x3x18x18xf32, #tpu.memory_space<vmem>>, vector<1x1x1x16xf32>
    %114 = vector.shape_cast %113 : vector<1x1x1x16xf32> to vector<1x16xf32>
    %c6_i32_94 = arith.constant 6 : i32
    %115 = arith.addi %0, %c6_i32_94 : i32
    %c0_i32_95 = arith.constant 0 : i32
    %116 = arith.addi %115, %c0_i32_95 : i32
    %c0_96 = arith.constant 0 : index
    %c0_97 = arith.constant 0 : index
    %117 = arith.index_cast %116 : i32 to index
    %c1_98 = arith.constant 1 : index
    %118 = vector.load %arg2[%c0_96, %c0_97, %117, %c1_98] : memref<1x3x18x18xf32, #tpu.memory_space<vmem>>, vector<1x1x1x16xf32>
    %119 = vector.shape_cast %118 : vector<1x1x1x16xf32> to vector<1x16xf32>
    %c7_i32_99 = arith.constant 7 : i32
    %120 = arith.addi %0, %c7_i32_99 : i32
    %c0_i32_100 = arith.constant 0 : i32
    %121 = arith.addi %120, %c0_i32_100 : i32
    %c0_101 = arith.constant 0 : index
    %c0_102 = arith.constant 0 : index
    %122 = arith.index_cast %121 : i32 to index
    %c1_103 = arith.constant 1 : index
    %123 = vector.load %arg2[%c0_101, %c0_102, %122, %c1_103] : memref<1x3x18x18xf32, #tpu.memory_space<vmem>>, vector<1x1x1x16xf32>
    %124 = vector.shape_cast %123 : vector<1x1x1x16xf32> to vector<1x16xf32>
    %c8_i32_104 = arith.constant 8 : i32
    %125 = arith.addi %0, %c8_i32_104 : i32
    %c0_i32_105 = arith.constant 0 : i32
    %126 = arith.addi %125, %c0_i32_105 : i32
    %c0_106 = arith.constant 0 : index
    %c0_107 = arith.constant 0 : index
    %127 = arith.index_cast %126 : i32 to index
    %c1_108 = arith.constant 1 : index
    %128 = vector.load %arg2[%c0_106, %c0_107, %127, %c1_108] : memref<1x3x18x18xf32, #tpu.memory_space<vmem>>, vector<1x1x1x16xf32>
    %129 = vector.shape_cast %128 : vector<1x1x1x16xf32> to vector<1x16xf32>
    %c9_i32_109 = arith.constant 9 : i32
    %130 = arith.addi %0, %c9_i32_109 : i32
    %c0_i32_110 = arith.constant 0 : i32
    %131 = arith.addi %130, %c0_i32_110 : i32
    %c0_111 = arith.constant 0 : index
    %c0_112 = arith.constant 0 : index
    %132 = arith.index_cast %131 : i32 to index
    %c1_113 = arith.constant 1 : index
    %133 = vector.load %arg2[%c0_111, %c0_112, %132, %c1_113] : memref<1x3x18x18xf32, #tpu.memory_space<vmem>>, vector<1x1x1x16xf32>
    %134 = vector.shape_cast %133 : vector<1x1x1x16xf32> to vector<1x16xf32>
    %c10_i32_114 = arith.constant 10 : i32
    %135 = arith.addi %0, %c10_i32_114 : i32
    %c0_i32_115 = arith.constant 0 : i32
    %136 = arith.addi %135, %c0_i32_115 : i32
    %c0_116 = arith.constant 0 : index
    %c0_117 = arith.constant 0 : index
    %137 = arith.index_cast %136 : i32 to index
    %c1_118 = arith.constant 1 : index
    %138 = vector.load %arg2[%c0_116, %c0_117, %137, %c1_118] : memref<1x3x18x18xf32, #tpu.memory_space<vmem>>, vector<1x1x1x16xf32>
    %139 = vector.shape_cast %138 : vector<1x1x1x16xf32> to vector<1x16xf32>
    %c11_i32_119 = arith.constant 11 : i32
    %140 = arith.addi %0, %c11_i32_119 : i32
    %c0_i32_120 = arith.constant 0 : i32
    %141 = arith.addi %140, %c0_i32_120 : i32
    %c0_121 = arith.constant 0 : index
    %c0_122 = arith.constant 0 : index
    %142 = arith.index_cast %141 : i32 to index
    %c1_123 = arith.constant 1 : index
    %143 = vector.load %arg2[%c0_121, %c0_122, %142, %c1_123] : memref<1x3x18x18xf32, #tpu.memory_space<vmem>>, vector<1x1x1x16xf32>
    %144 = vector.shape_cast %143 : vector<1x1x1x16xf32> to vector<1x16xf32>
    %c12_i32_124 = arith.constant 12 : i32
    %145 = arith.addi %0, %c12_i32_124 : i32
    %c0_i32_125 = arith.constant 0 : i32
    %146 = arith.addi %145, %c0_i32_125 : i32
    %c0_126 = arith.constant 0 : index
    %c0_127 = arith.constant 0 : index
    %147 = arith.index_cast %146 : i32 to index
    %c1_128 = arith.constant 1 : index
    %148 = vector.load %arg2[%c0_126, %c0_127, %147, %c1_128] : memref<1x3x18x18xf32, #tpu.memory_space<vmem>>, vector<1x1x1x16xf32>
    %149 = vector.shape_cast %148 : vector<1x1x1x16xf32> to vector<1x16xf32>
    %c13_i32_129 = arith.constant 13 : i32
    %150 = arith.addi %0, %c13_i32_129 : i32
    %c0_i32_130 = arith.constant 0 : i32
    %151 = arith.addi %150, %c0_i32_130 : i32
    %c0_131 = arith.constant 0 : index
    %c0_132 = arith.constant 0 : index
    %152 = arith.index_cast %151 : i32 to index
    %c1_133 = arith.constant 1 : index
    %153 = vector.load %arg2[%c0_131, %c0_132, %152, %c1_133] : memref<1x3x18x18xf32, #tpu.memory_space<vmem>>, vector<1x1x1x16xf32>
    %154 = vector.shape_cast %153 : vector<1x1x1x16xf32> to vector<1x16xf32>
    %c14_i32_134 = arith.constant 14 : i32
    %155 = arith.addi %0, %c14_i32_134 : i32
    %c0_i32_135 = arith.constant 0 : i32
    %156 = arith.addi %155, %c0_i32_135 : i32
    %c0_136 = arith.constant 0 : index
    %c0_137 = arith.constant 0 : index
    %157 = arith.index_cast %156 : i32 to index
    %c1_138 = arith.constant 1 : index
    %158 = vector.load %arg2[%c0_136, %c0_137, %157, %c1_138] : memref<1x3x18x18xf32, #tpu.memory_space<vmem>>, vector<1x1x1x16xf32>
    %159 = vector.shape_cast %158 : vector<1x1x1x16xf32> to vector<1x16xf32>
    %c15_i32_139 = arith.constant 15 : i32
    %160 = arith.addi %0, %c15_i32_139 : i32
    %c0_i32_140 = arith.constant 0 : i32
    %161 = arith.addi %160, %c0_i32_140 : i32
    %c0_141 = arith.constant 0 : index
    %c0_142 = arith.constant 0 : index
    %162 = arith.index_cast %161 : i32 to index
    %c1_143 = arith.constant 1 : index
    %163 = vector.load %arg2[%c0_141, %c0_142, %162, %c1_143] : memref<1x3x18x18xf32, #tpu.memory_space<vmem>>, vector<1x1x1x16xf32>
    %164 = vector.shape_cast %163 : vector<1x1x1x16xf32> to vector<1x16xf32>
    %165 = tpu.concatenate %89, %94, %99, %104, %109, %114, %119, %124, %129, %134, %139, %144, %149, %154, %159, %164 in 1 : vector<1x16xf32>, vector<1x16xf32>, vector<1x16xf32>, vector<1x16xf32>, vector<1x16xf32>, vector<1x16xf32>, vector<1x16xf32>, vector<1x16xf32>, vector<1x16xf32>, vector<1x16xf32>, vector<1x16xf32>, vector<1x16xf32>, vector<1x16xf32>, vector<1x16xf32>, vector<1x16xf32>, vector<1x16xf32> -> vector<1x256xf32>
    %c0_i32_144 = arith.constant 0 : i32
    %166 = arith.addi %0, %c0_i32_144 : i32
    %c0_i32_145 = arith.constant 0 : i32
    %167 = arith.addi %166, %c0_i32_145 : i32
    %c0_146 = arith.constant 0 : index
    %c0_147 = arith.constant 0 : index
    %168 = arith.index_cast %167 : i32 to index
    %c2 = arith.constant 2 : index
    %169 = vector.load %arg2[%c0_146, %c0_147, %168, %c2] : memref<1x3x18x18xf32, #tpu.memory_space<vmem>>, vector<1x1x1x16xf32>
    %170 = vector.shape_cast %169 : vector<1x1x1x16xf32> to vector<1x16xf32>
    %c1_i32_148 = arith.constant 1 : i32
    %171 = arith.addi %0, %c1_i32_148 : i32
    %c0_i32_149 = arith.constant 0 : i32
    %172 = arith.addi %171, %c0_i32_149 : i32
    %c0_150 = arith.constant 0 : index
    %c0_151 = arith.constant 0 : index
    %173 = arith.index_cast %172 : i32 to index
    %c2_152 = arith.constant 2 : index
    %174 = vector.load %arg2[%c0_150, %c0_151, %173, %c2_152] : memref<1x3x18x18xf32, #tpu.memory_space<vmem>>, vector<1x1x1x16xf32>
    %175 = vector.shape_cast %174 : vector<1x1x1x16xf32> to vector<1x16xf32>
    %c2_i32_153 = arith.constant 2 : i32
    %176 = arith.addi %0, %c2_i32_153 : i32
    %c0_i32_154 = arith.constant 0 : i32
    %177 = arith.addi %176, %c0_i32_154 : i32
    %c0_155 = arith.constant 0 : index
    %c0_156 = arith.constant 0 : index
    %178 = arith.index_cast %177 : i32 to index
    %c2_157 = arith.constant 2 : index
    %179 = vector.load %arg2[%c0_155, %c0_156, %178, %c2_157] : memref<1x3x18x18xf32, #tpu.memory_space<vmem>>, vector<1x1x1x16xf32>
    %180 = vector.shape_cast %179 : vector<1x1x1x16xf32> to vector<1x16xf32>
    %c3_i32_158 = arith.constant 3 : i32
    %181 = arith.addi %0, %c3_i32_158 : i32
    %c0_i32_159 = arith.constant 0 : i32
    %182 = arith.addi %181, %c0_i32_159 : i32
    %c0_160 = arith.constant 0 : index
    %c0_161 = arith.constant 0 : index
    %183 = arith.index_cast %182 : i32 to index
    %c2_162 = arith.constant 2 : index
    %184 = vector.load %arg2[%c0_160, %c0_161, %183, %c2_162] : memref<1x3x18x18xf32, #tpu.memory_space<vmem>>, vector<1x1x1x16xf32>
    %185 = vector.shape_cast %184 : vector<1x1x1x16xf32> to vector<1x16xf32>
    %c4_i32_163 = arith.constant 4 : i32
    %186 = arith.addi %0, %c4_i32_163 : i32
    %c0_i32_164 = arith.constant 0 : i32
    %187 = arith.addi %186, %c0_i32_164 : i32
    %c0_165 = arith.constant 0 : index
    %c0_166 = arith.constant 0 : index
    %188 = arith.index_cast %187 : i32 to index
    %c2_167 = arith.constant 2 : index
    %189 = vector.load %arg2[%c0_165, %c0_166, %188, %c2_167] : memref<1x3x18x18xf32, #tpu.memory_space<vmem>>, vector<1x1x1x16xf32>
    %190 = vector.shape_cast %189 : vector<1x1x1x16xf32> to vector<1x16xf32>
    %c5_i32_168 = arith.constant 5 : i32
    %191 = arith.addi %0, %c5_i32_168 : i32
    %c0_i32_169 = arith.constant 0 : i32
    %192 = arith.addi %191, %c0_i32_169 : i32
    %c0_170 = arith.constant 0 : index
    %c0_171 = arith.constant 0 : index
    %193 = arith.index_cast %192 : i32 to index
    %c2_172 = arith.constant 2 : index
    %194 = vector.load %arg2[%c0_170, %c0_171, %193, %c2_172] : memref<1x3x18x18xf32, #tpu.memory_space<vmem>>, vector<1x1x1x16xf32>
    %195 = vector.shape_cast %194 : vector<1x1x1x16xf32> to vector<1x16xf32>
    %c6_i32_173 = arith.constant 6 : i32
    %196 = arith.addi %0, %c6_i32_173 : i32
    %c0_i32_174 = arith.constant 0 : i32
    %197 = arith.addi %196, %c0_i32_174 : i32
    %c0_175 = arith.constant 0 : index
    %c0_176 = arith.constant 0 : index
    %198 = arith.index_cast %197 : i32 to index
    %c2_177 = arith.constant 2 : index
    %199 = vector.load %arg2[%c0_175, %c0_176, %198, %c2_177] : memref<1x3x18x18xf32, #tpu.memory_space<vmem>>, vector<1x1x1x16xf32>
    %200 = vector.shape_cast %199 : vector<1x1x1x16xf32> to vector<1x16xf32>
    %c7_i32_178 = arith.constant 7 : i32
    %201 = arith.addi %0, %c7_i32_178 : i32
    %c0_i32_179 = arith.constant 0 : i32
    %202 = arith.addi %201, %c0_i32_179 : i32
    %c0_180 = arith.constant 0 : index
    %c0_181 = arith.constant 0 : index
    %203 = arith.index_cast %202 : i32 to index
    %c2_182 = arith.constant 2 : index
    %204 = vector.load %arg2[%c0_180, %c0_181, %203, %c2_182] : memref<1x3x18x18xf32, #tpu.memory_space<vmem>>, vector<1x1x1x16xf32>
    %205 = vector.shape_cast %204 : vector<1x1x1x16xf32> to vector<1x16xf32>
    %c8_i32_183 = arith.constant 8 : i32
    %206 = arith.addi %0, %c8_i32_183 : i32
    %c0_i32_184 = arith.constant 0 : i32
    %207 = arith.addi %206, %c0_i32_184 : i32
    %c0_185 = arith.constant 0 : index
    %c0_186 = arith.constant 0 : index
    %208 = arith.index_cast %207 : i32 to index
    %c2_187 = arith.constant 2 : index
    %209 = vector.load %arg2[%c0_185, %c0_186, %208, %c2_187] : memref<1x3x18x18xf32, #tpu.memory_space<vmem>>, vector<1x1x1x16xf32>
    %210 = vector.shape_cast %209 : vector<1x1x1x16xf32> to vector<1x16xf32>
    %c9_i32_188 = arith.constant 9 : i32
    %211 = arith.addi %0, %c9_i32_188 : i32
    %c0_i32_189 = arith.constant 0 : i32
    %212 = arith.addi %211, %c0_i32_189 : i32
    %c0_190 = arith.constant 0 : index
    %c0_191 = arith.constant 0 : index
    %213 = arith.index_cast %212 : i32 to index
    %c2_192 = arith.constant 2 : index
    %214 = vector.load %arg2[%c0_190, %c0_191, %213, %c2_192] : memref<1x3x18x18xf32, #tpu.memory_space<vmem>>, vector<1x1x1x16xf32>
    %215 = vector.shape_cast %214 : vector<1x1x1x16xf32> to vector<1x16xf32>
    %c10_i32_193 = arith.constant 10 : i32
    %216 = arith.addi %0, %c10_i32_193 : i32
    %c0_i32_194 = arith.constant 0 : i32
    %217 = arith.addi %216, %c0_i32_194 : i32
    %c0_195 = arith.constant 0 : index
    %c0_196 = arith.constant 0 : index
    %218 = arith.index_cast %217 : i32 to index
    %c2_197 = arith.constant 2 : index
    %219 = vector.load %arg2[%c0_195, %c0_196, %218, %c2_197] : memref<1x3x18x18xf32, #tpu.memory_space<vmem>>, vector<1x1x1x16xf32>
    %220 = vector.shape_cast %219 : vector<1x1x1x16xf32> to vector<1x16xf32>
    %c11_i32_198 = arith.constant 11 : i32
    %221 = arith.addi %0, %c11_i32_198 : i32
    %c0_i32_199 = arith.constant 0 : i32
    %222 = arith.addi %221, %c0_i32_199 : i32
    %c0_200 = arith.constant 0 : index
    %c0_201 = arith.constant 0 : index
    %223 = arith.index_cast %222 : i32 to index
    %c2_202 = arith.constant 2 : index
    %224 = vector.load %arg2[%c0_200, %c0_201, %223, %c2_202] : memref<1x3x18x18xf32, #tpu.memory_space<vmem>>, vector<1x1x1x16xf32>
    %225 = vector.shape_cast %224 : vector<1x1x1x16xf32> to vector<1x16xf32>
    %c12_i32_203 = arith.constant 12 : i32
    %226 = arith.addi %0, %c12_i32_203 : i32
    %c0_i32_204 = arith.constant 0 : i32
    %227 = arith.addi %226, %c0_i32_204 : i32
    %c0_205 = arith.constant 0 : index
    %c0_206 = arith.constant 0 : index
    %228 = arith.index_cast %227 : i32 to index
    %c2_207 = arith.constant 2 : index
    %229 = vector.load %arg2[%c0_205, %c0_206, %228, %c2_207] : memref<1x3x18x18xf32, #tpu.memory_space<vmem>>, vector<1x1x1x16xf32>
    %230 = vector.shape_cast %229 : vector<1x1x1x16xf32> to vector<1x16xf32>
    %c13_i32_208 = arith.constant 13 : i32
    %231 = arith.addi %0, %c13_i32_208 : i32
    %c0_i32_209 = arith.constant 0 : i32
    %232 = arith.addi %231, %c0_i32_209 : i32
    %c0_210 = arith.constant 0 : index
    %c0_211 = arith.constant 0 : index
    %233 = arith.index_cast %232 : i32 to index
    %c2_212 = arith.constant 2 : index
    %234 = vector.load %arg2[%c0_210, %c0_211, %233, %c2_212] : memref<1x3x18x18xf32, #tpu.memory_space<vmem>>, vector<1x1x1x16xf32>
    %235 = vector.shape_cast %234 : vector<1x1x1x16xf32> to vector<1x16xf32>
    %c14_i32_213 = arith.constant 14 : i32
    %236 = arith.addi %0, %c14_i32_213 : i32
    %c0_i32_214 = arith.constant 0 : i32
    %237 = arith.addi %236, %c0_i32_214 : i32
    %c0_215 = arith.constant 0 : index
    %c0_216 = arith.constant 0 : index
    %238 = arith.index_cast %237 : i32 to index
    %c2_217 = arith.constant 2 : index
    %239 = vector.load %arg2[%c0_215, %c0_216, %238, %c2_217] : memref<1x3x18x18xf32, #tpu.memory_space<vmem>>, vector<1x1x1x16xf32>
    %240 = vector.shape_cast %239 : vector<1x1x1x16xf32> to vector<1x16xf32>
    %c15_i32_218 = arith.constant 15 : i32
    %241 = arith.addi %0, %c15_i32_218 : i32
    %c0_i32_219 = arith.constant 0 : i32
    %242 = arith.addi %241, %c0_i32_219 : i32
    %c0_220 = arith.constant 0 : index
    %c0_221 = arith.constant 0 : index
    %243 = arith.index_cast %242 : i32 to index
    %c2_222 = arith.constant 2 : index
    %244 = vector.load %arg2[%c0_220, %c0_221, %243, %c2_222] : memref<1x3x18x18xf32, #tpu.memory_space<vmem>>, vector<1x1x1x16xf32>
    %245 = vector.shape_cast %244 : vector<1x1x1x16xf32> to vector<1x16xf32>
    %246 = tpu.concatenate %170, %175, %180, %185, %190, %195, %200, %205, %210, %215, %220, %225, %230, %235, %240, %245 in 1 : vector<1x16xf32>, vector<1x16xf32>, vector<1x16xf32>, vector<1x16xf32>, vector<1x16xf32>, vector<1x16xf32>, vector<1x16xf32>, vector<1x16xf32>, vector<1x16xf32>, vector<1x16xf32>, vector<1x16xf32>, vector<1x16xf32>, vector<1x16xf32>, vector<1x16xf32>, vector<1x16xf32>, vector<1x16xf32> -> vector<1x256xf32>
    %c0_i32_223 = arith.constant 0 : i32
    %247 = arith.addi %0, %c0_i32_223 : i32
    %c1_i32_224 = arith.constant 1 : i32
    %248 = arith.addi %247, %c1_i32_224 : i32
    %c0_225 = arith.constant 0 : index
    %c0_226 = arith.constant 0 : index
    %249 = arith.index_cast %248 : i32 to index
    %c0_227 = arith.constant 0 : index
    %250 = vector.load %arg2[%c0_225, %c0_226, %249, %c0_227] : memref<1x3x18x18xf32, #tpu.memory_space<vmem>>, vector<1x1x1x16xf32>
    %251 = vector.shape_cast %250 : vector<1x1x1x16xf32> to vector<1x16xf32>
    %c1_i32_228 = arith.constant 1 : i32
    %252 = arith.addi %0, %c1_i32_228 : i32
    %c1_i32_229 = arith.constant 1 : i32
    %253 = arith.addi %252, %c1_i32_229 : i32
    %c0_230 = arith.constant 0 : index
    %c0_231 = arith.constant 0 : index
    %254 = arith.index_cast %253 : i32 to index
    %c0_232 = arith.constant 0 : index
    %255 = vector.load %arg2[%c0_230, %c0_231, %254, %c0_232] : memref<1x3x18x18xf32, #tpu.memory_space<vmem>>, vector<1x1x1x16xf32>
    %256 = vector.shape_cast %255 : vector<1x1x1x16xf32> to vector<1x16xf32>
    %c2_i32_233 = arith.constant 2 : i32
    %257 = arith.addi %0, %c2_i32_233 : i32
    %c1_i32_234 = arith.constant 1 : i32
    %258 = arith.addi %257, %c1_i32_234 : i32
    %c0_235 = arith.constant 0 : index
    %c0_236 = arith.constant 0 : index
    %259 = arith.index_cast %258 : i32 to index
    %c0_237 = arith.constant 0 : index
    %260 = vector.load %arg2[%c0_235, %c0_236, %259, %c0_237] : memref<1x3x18x18xf32, #tpu.memory_space<vmem>>, vector<1x1x1x16xf32>
    %261 = vector.shape_cast %260 : vector<1x1x1x16xf32> to vector<1x16xf32>
    %c3_i32_238 = arith.constant 3 : i32
    %262 = arith.addi %0, %c3_i32_238 : i32
    %c1_i32_239 = arith.constant 1 : i32
    %263 = arith.addi %262, %c1_i32_239 : i32
    %c0_240 = arith.constant 0 : index
    %c0_241 = arith.constant 0 : index
    %264 = arith.index_cast %263 : i32 to index
    %c0_242 = arith.constant 0 : index
    %265 = vector.load %arg2[%c0_240, %c0_241, %264, %c0_242] : memref<1x3x18x18xf32, #tpu.memory_space<vmem>>, vector<1x1x1x16xf32>
    %266 = vector.shape_cast %265 : vector<1x1x1x16xf32> to vector<1x16xf32>
    %c4_i32_243 = arith.constant 4 : i32
    %267 = arith.addi %0, %c4_i32_243 : i32
    %c1_i32_244 = arith.constant 1 : i32
    %268 = arith.addi %267, %c1_i32_244 : i32
    %c0_245 = arith.constant 0 : index
    %c0_246 = arith.constant 0 : index
    %269 = arith.index_cast %268 : i32 to index
    %c0_247 = arith.constant 0 : index
    %270 = vector.load %arg2[%c0_245, %c0_246, %269, %c0_247] : memref<1x3x18x18xf32, #tpu.memory_space<vmem>>, vector<1x1x1x16xf32>
    %271 = vector.shape_cast %270 : vector<1x1x1x16xf32> to vector<1x16xf32>
    %c5_i32_248 = arith.constant 5 : i32
    %272 = arith.addi %0, %c5_i32_248 : i32
    %c1_i32_249 = arith.constant 1 : i32
    %273 = arith.addi %272, %c1_i32_249 : i32
    %c0_250 = arith.constant 0 : index
    %c0_251 = arith.constant 0 : index
    %274 = arith.index_cast %273 : i32 to index
    %c0_252 = arith.constant 0 : index
    %275 = vector.load %arg2[%c0_250, %c0_251, %274, %c0_252] : memref<1x3x18x18xf32, #tpu.memory_space<vmem>>, vector<1x1x1x16xf32>
    %276 = vector.shape_cast %275 : vector<1x1x1x16xf32> to vector<1x16xf32>
    %c6_i32_253 = arith.constant 6 : i32
    %277 = arith.addi %0, %c6_i32_253 : i32
    %c1_i32_254 = arith.constant 1 : i32
    %278 = arith.addi %277, %c1_i32_254 : i32
    %c0_255 = arith.constant 0 : index
    %c0_256 = arith.constant 0 : index
    %279 = arith.index_cast %278 : i32 to index
    %c0_257 = arith.constant 0 : index
    %280 = vector.load %arg2[%c0_255, %c0_256, %279, %c0_257] : memref<1x3x18x18xf32, #tpu.memory_space<vmem>>, vector<1x1x1x16xf32>
    %281 = vector.shape_cast %280 : vector<1x1x1x16xf32> to vector<1x16xf32>
    %c7_i32_258 = arith.constant 7 : i32
    %282 = arith.addi %0, %c7_i32_258 : i32
    %c1_i32_259 = arith.constant 1 : i32
    %283 = arith.addi %282, %c1_i32_259 : i32
    %c0_260 = arith.constant 0 : index
    %c0_261 = arith.constant 0 : index
    %284 = arith.index_cast %283 : i32 to index
    %c0_262 = arith.constant 0 : index
    %285 = vector.load %arg2[%c0_260, %c0_261, %284, %c0_262] : memref<1x3x18x18xf32, #tpu.memory_space<vmem>>, vector<1x1x1x16xf32>
    %286 = vector.shape_cast %285 : vector<1x1x1x16xf32> to vector<1x16xf32>
    %c8_i32_263 = arith.constant 8 : i32
    %287 = arith.addi %0, %c8_i32_263 : i32
    %c1_i32_264 = arith.constant 1 : i32
    %288 = arith.addi %287, %c1_i32_264 : i32
    %c0_265 = arith.constant 0 : index
    %c0_266 = arith.constant 0 : index
    %289 = arith.index_cast %288 : i32 to index
    %c0_267 = arith.constant 0 : index
    %290 = vector.load %arg2[%c0_265, %c0_266, %289, %c0_267] : memref<1x3x18x18xf32, #tpu.memory_space<vmem>>, vector<1x1x1x16xf32>
    %291 = vector.shape_cast %290 : vector<1x1x1x16xf32> to vector<1x16xf32>
    %c9_i32_268 = arith.constant 9 : i32
    %292 = arith.addi %0, %c9_i32_268 : i32
    %c1_i32_269 = arith.constant 1 : i32
    %293 = arith.addi %292, %c1_i32_269 : i32
    %c0_270 = arith.constant 0 : index
    %c0_271 = arith.constant 0 : index
    %294 = arith.index_cast %293 : i32 to index
    %c0_272 = arith.constant 0 : index
    %295 = vector.load %arg2[%c0_270, %c0_271, %294, %c0_272] : memref<1x3x18x18xf32, #tpu.memory_space<vmem>>, vector<1x1x1x16xf32>
    %296 = vector.shape_cast %295 : vector<1x1x1x16xf32> to vector<1x16xf32>
    %c10_i32_273 = arith.constant 10 : i32
    %297 = arith.addi %0, %c10_i32_273 : i32
    %c1_i32_274 = arith.constant 1 : i32
    %298 = arith.addi %297, %c1_i32_274 : i32
    %c0_275 = arith.constant 0 : index
    %c0_276 = arith.constant 0 : index
    %299 = arith.index_cast %298 : i32 to index
    %c0_277 = arith.constant 0 : index
    %300 = vector.load %arg2[%c0_275, %c0_276, %299, %c0_277] : memref<1x3x18x18xf32, #tpu.memory_space<vmem>>, vector<1x1x1x16xf32>
    %301 = vector.shape_cast %300 : vector<1x1x1x16xf32> to vector<1x16xf32>
    %c11_i32_278 = arith.constant 11 : i32
    %302 = arith.addi %0, %c11_i32_278 : i32
    %c1_i32_279 = arith.constant 1 : i32
    %303 = arith.addi %302, %c1_i32_279 : i32
    %c0_280 = arith.constant 0 : index
    %c0_281 = arith.constant 0 : index
    %304 = arith.index_cast %303 : i32 to index
    %c0_282 = arith.constant 0 : index
    %305 = vector.load %arg2[%c0_280, %c0_281, %304, %c0_282] : memref<1x3x18x18xf32, #tpu.memory_space<vmem>>, vector<1x1x1x16xf32>
    %306 = vector.shape_cast %305 : vector<1x1x1x16xf32> to vector<1x16xf32>
    %c12_i32_283 = arith.constant 12 : i32
    %307 = arith.addi %0, %c12_i32_283 : i32
    %c1_i32_284 = arith.constant 1 : i32
    %308 = arith.addi %307, %c1_i32_284 : i32
    %c0_285 = arith.constant 0 : index
    %c0_286 = arith.constant 0 : index
    %309 = arith.index_cast %308 : i32 to index
    %c0_287 = arith.constant 0 : index
    %310 = vector.load %arg2[%c0_285, %c0_286, %309, %c0_287] : memref<1x3x18x18xf32, #tpu.memory_space<vmem>>, vector<1x1x1x16xf32>
    %311 = vector.shape_cast %310 : vector<1x1x1x16xf32> to vector<1x16xf32>
    %c13_i32_288 = arith.constant 13 : i32
    %312 = arith.addi %0, %c13_i32_288 : i32
    %c1_i32_289 = arith.constant 1 : i32
    %313 = arith.addi %312, %c1_i32_289 : i32
    %c0_290 = arith.constant 0 : index
    %c0_291 = arith.constant 0 : index
    %314 = arith.index_cast %313 : i32 to index
    %c0_292 = arith.constant 0 : index
    %315 = vector.load %arg2[%c0_290, %c0_291, %314, %c0_292] : memref<1x3x18x18xf32, #tpu.memory_space<vmem>>, vector<1x1x1x16xf32>
    %316 = vector.shape_cast %315 : vector<1x1x1x16xf32> to vector<1x16xf32>
    %c14_i32_293 = arith.constant 14 : i32
    %317 = arith.addi %0, %c14_i32_293 : i32
    %c1_i32_294 = arith.constant 1 : i32
    %318 = arith.addi %317, %c1_i32_294 : i32
    %c0_295 = arith.constant 0 : index
    %c0_296 = arith.constant 0 : index
    %319 = arith.index_cast %318 : i32 to index
    %c0_297 = arith.constant 0 : index
    %320 = vector.load %arg2[%c0_295, %c0_296, %319, %c0_297] : memref<1x3x18x18xf32, #tpu.memory_space<vmem>>, vector<1x1x1x16xf32>
    %321 = vector.shape_cast %320 : vector<1x1x1x16xf32> to vector<1x16xf32>
    %c15_i32_298 = arith.constant 15 : i32
    %322 = arith.addi %0, %c15_i32_298 : i32
    %c1_i32_299 = arith.constant 1 : i32
    %323 = arith.addi %322, %c1_i32_299 : i32
    %c0_300 = arith.constant 0 : index
    %c0_301 = arith.constant 0 : index
    %324 = arith.index_cast %323 : i32 to index
    %c0_302 = arith.constant 0 : index
    %325 = vector.load %arg2[%c0_300, %c0_301, %324, %c0_302] : memref<1x3x18x18xf32, #tpu.memory_space<vmem>>, vector<1x1x1x16xf32>
    %326 = vector.shape_cast %325 : vector<1x1x1x16xf32> to vector<1x16xf32>
    %327 = tpu.concatenate %251, %256, %261, %266, %271, %276, %281, %286, %291, %296, %301, %306, %311, %316, %321, %326 in 1 : vector<1x16xf32>, vector<1x16xf32>, vector<1x16xf32>, vector<1x16xf32>, vector<1x16xf32>, vector<1x16xf32>, vector<1x16xf32>, vector<1x16xf32>, vector<1x16xf32>, vector<1x16xf32>, vector<1x16xf32>, vector<1x16xf32>, vector<1x16xf32>, vector<1x16xf32>, vector<1x16xf32>, vector<1x16xf32> -> vector<1x256xf32>
    %c0_i32_303 = arith.constant 0 : i32
    %328 = arith.addi %0, %c0_i32_303 : i32
    %c1_i32_304 = arith.constant 1 : i32
    %329 = arith.addi %328, %c1_i32_304 : i32
    %c0_305 = arith.constant 0 : index
    %c0_306 = arith.constant 0 : index
    %330 = arith.index_cast %329 : i32 to index
    %c1_307 = arith.constant 1 : index
    %331 = vector.load %arg2[%c0_305, %c0_306, %330, %c1_307] : memref<1x3x18x18xf32, #tpu.memory_space<vmem>>, vector<1x1x1x16xf32>
    %332 = vector.shape_cast %331 : vector<1x1x1x16xf32> to vector<1x16xf32>
    %c1_i32_308 = arith.constant 1 : i32
    %333 = arith.addi %0, %c1_i32_308 : i32
    %c1_i32_309 = arith.constant 1 : i32
    %334 = arith.addi %333, %c1_i32_309 : i32
    %c0_310 = arith.constant 0 : index
    %c0_311 = arith.constant 0 : index
    %335 = arith.index_cast %334 : i32 to index
    %c1_312 = arith.constant 1 : index
    %336 = vector.load %arg2[%c0_310, %c0_311, %335, %c1_312] : memref<1x3x18x18xf32, #tpu.memory_space<vmem>>, vector<1x1x1x16xf32>
    %337 = vector.shape_cast %336 : vector<1x1x1x16xf32> to vector<1x16xf32>
    %c2_i32_313 = arith.constant 2 : i32
    %338 = arith.addi %0, %c2_i32_313 : i32
    %c1_i32_314 = arith.constant 1 : i32
    %339 = arith.addi %338, %c1_i32_314 : i32
    %c0_315 = arith.constant 0 : index
    %c0_316 = arith.constant 0 : index
    %340 = arith.index_cast %339 : i32 to index
    %c1_317 = arith.constant 1 : index
    %341 = vector.load %arg2[%c0_315, %c0_316, %340, %c1_317] : memref<1x3x18x18xf32, #tpu.memory_space<vmem>>, vector<1x1x1x16xf32>
    %342 = vector.shape_cast %341 : vector<1x1x1x16xf32> to vector<1x16xf32>
    %c3_i32_318 = arith.constant 3 : i32
    %343 = arith.addi %0, %c3_i32_318 : i32
    %c1_i32_319 = arith.constant 1 : i32
    %344 = arith.addi %343, %c1_i32_319 : i32
    %c0_320 = arith.constant 0 : index
    %c0_321 = arith.constant 0 : index
    %345 = arith.index_cast %344 : i32 to index
    %c1_322 = arith.constant 1 : index
    %346 = vector.load %arg2[%c0_320, %c0_321, %345, %c1_322] : memref<1x3x18x18xf32, #tpu.memory_space<vmem>>, vector<1x1x1x16xf32>
    %347 = vector.shape_cast %346 : vector<1x1x1x16xf32> to vector<1x16xf32>
    %c4_i32_323 = arith.constant 4 : i32
    %348 = arith.addi %0, %c4_i32_323 : i32
    %c1_i32_324 = arith.constant 1 : i32
    %349 = arith.addi %348, %c1_i32_324 : i32
    %c0_325 = arith.constant 0 : index
    %c0_326 = arith.constant 0 : index
    %350 = arith.index_cast %349 : i32 to index
    %c1_327 = arith.constant 1 : index
    %351 = vector.load %arg2[%c0_325, %c0_326, %350, %c1_327] : memref<1x3x18x18xf32, #tpu.memory_space<vmem>>, vector<1x1x1x16xf32>
    %352 = vector.shape_cast %351 : vector<1x1x1x16xf32> to vector<1x16xf32>
    %c5_i32_328 = arith.constant 5 : i32
    %353 = arith.addi %0, %c5_i32_328 : i32
    %c1_i32_329 = arith.constant 1 : i32
    %354 = arith.addi %353, %c1_i32_329 : i32
    %c0_330 = arith.constant 0 : index
    %c0_331 = arith.constant 0 : index
    %355 = arith.index_cast %354 : i32 to index
    %c1_332 = arith.constant 1 : index
    %356 = vector.load %arg2[%c0_330, %c0_331, %355, %c1_332] : memref<1x3x18x18xf32, #tpu.memory_space<vmem>>, vector<1x1x1x16xf32>
    %357 = vector.shape_cast %356 : vector<1x1x1x16xf32> to vector<1x16xf32>
    %c6_i32_333 = arith.constant 6 : i32
    %358 = arith.addi %0, %c6_i32_333 : i32
    %c1_i32_334 = arith.constant 1 : i32
    %359 = arith.addi %358, %c1_i32_334 : i32
    %c0_335 = arith.constant 0 : index
    %c0_336 = arith.constant 0 : index
    %360 = arith.index_cast %359 : i32 to index
    %c1_337 = arith.constant 1 : index
    %361 = vector.load %arg2[%c0_335, %c0_336, %360, %c1_337] : memref<1x3x18x18xf32, #tpu.memory_space<vmem>>, vector<1x1x1x16xf32>
    %362 = vector.shape_cast %361 : vector<1x1x1x16xf32> to vector<1x16xf32>
    %c7_i32_338 = arith.constant 7 : i32
    %363 = arith.addi %0, %c7_i32_338 : i32
    %c1_i32_339 = arith.constant 1 : i32
    %364 = arith.addi %363, %c1_i32_339 : i32
    %c0_340 = arith.constant 0 : index
    %c0_341 = arith.constant 0 : index
    %365 = arith.index_cast %364 : i32 to index
    %c1_342 = arith.constant 1 : index
    %366 = vector.load %arg2[%c0_340, %c0_341, %365, %c1_342] : memref<1x3x18x18xf32, #tpu.memory_space<vmem>>, vector<1x1x1x16xf32>
    %367 = vector.shape_cast %366 : vector<1x1x1x16xf32> to vector<1x16xf32>
    %c8_i32_343 = arith.constant 8 : i32
    %368 = arith.addi %0, %c8_i32_343 : i32
    %c1_i32_344 = arith.constant 1 : i32
    %369 = arith.addi %368, %c1_i32_344 : i32
    %c0_345 = arith.constant 0 : index
    %c0_346 = arith.constant 0 : index
    %370 = arith.index_cast %369 : i32 to index
    %c1_347 = arith.constant 1 : index
    %371 = vector.load %arg2[%c0_345, %c0_346, %370, %c1_347] : memref<1x3x18x18xf32, #tpu.memory_space<vmem>>, vector<1x1x1x16xf32>
    %372 = vector.shape_cast %371 : vector<1x1x1x16xf32> to vector<1x16xf32>
    %c9_i32_348 = arith.constant 9 : i32
    %373 = arith.addi %0, %c9_i32_348 : i32
    %c1_i32_349 = arith.constant 1 : i32
    %374 = arith.addi %373, %c1_i32_349 : i32
    %c0_350 = arith.constant 0 : index
    %c0_351 = arith.constant 0 : index
    %375 = arith.index_cast %374 : i32 to index
    %c1_352 = arith.constant 1 : index
    %376 = vector.load %arg2[%c0_350, %c0_351, %375, %c1_352] : memref<1x3x18x18xf32, #tpu.memory_space<vmem>>, vector<1x1x1x16xf32>
    %377 = vector.shape_cast %376 : vector<1x1x1x16xf32> to vector<1x16xf32>
    %c10_i32_353 = arith.constant 10 : i32
    %378 = arith.addi %0, %c10_i32_353 : i32
    %c1_i32_354 = arith.constant 1 : i32
    %379 = arith.addi %378, %c1_i32_354 : i32
    %c0_355 = arith.constant 0 : index
    %c0_356 = arith.constant 0 : index
    %380 = arith.index_cast %379 : i32 to index
    %c1_357 = arith.constant 1 : index
    %381 = vector.load %arg2[%c0_355, %c0_356, %380, %c1_357] : memref<1x3x18x18xf32, #tpu.memory_space<vmem>>, vector<1x1x1x16xf32>
    %382 = vector.shape_cast %381 : vector<1x1x1x16xf32> to vector<1x16xf32>
    %c11_i32_358 = arith.constant 11 : i32
    %383 = arith.addi %0, %c11_i32_358 : i32
    %c1_i32_359 = arith.constant 1 : i32
    %384 = arith.addi %383, %c1_i32_359 : i32
    %c0_360 = arith.constant 0 : index
    %c0_361 = arith.constant 0 : index
    %385 = arith.index_cast %384 : i32 to index
    %c1_362 = arith.constant 1 : index
    %386 = vector.load %arg2[%c0_360, %c0_361, %385, %c1_362] : memref<1x3x18x18xf32, #tpu.memory_space<vmem>>, vector<1x1x1x16xf32>
    %387 = vector.shape_cast %386 : vector<1x1x1x16xf32> to vector<1x16xf32>
    %c12_i32_363 = arith.constant 12 : i32
    %388 = arith.addi %0, %c12_i32_363 : i32
    %c1_i32_364 = arith.constant 1 : i32
    %389 = arith.addi %388, %c1_i32_364 : i32
    %c0_365 = arith.constant 0 : index
    %c0_366 = arith.constant 0 : index
    %390 = arith.index_cast %389 : i32 to index
    %c1_367 = arith.constant 1 : index
    %391 = vector.load %arg2[%c0_365, %c0_366, %390, %c1_367] : memref<1x3x18x18xf32, #tpu.memory_space<vmem>>, vector<1x1x1x16xf32>
    %392 = vector.shape_cast %391 : vector<1x1x1x16xf32> to vector<1x16xf32>
    %c13_i32_368 = arith.constant 13 : i32
    %393 = arith.addi %0, %c13_i32_368 : i32
    %c1_i32_369 = arith.constant 1 : i32
    %394 = arith.addi %393, %c1_i32_369 : i32
    %c0_370 = arith.constant 0 : index
    %c0_371 = arith.constant 0 : index
    %395 = arith.index_cast %394 : i32 to index
    %c1_372 = arith.constant 1 : index
    %396 = vector.load %arg2[%c0_370, %c0_371, %395, %c1_372] : memref<1x3x18x18xf32, #tpu.memory_space<vmem>>, vector<1x1x1x16xf32>
    %397 = vector.shape_cast %396 : vector<1x1x1x16xf32> to vector<1x16xf32>
    %c14_i32_373 = arith.constant 14 : i32
    %398 = arith.addi %0, %c14_i32_373 : i32
    %c1_i32_374 = arith.constant 1 : i32
    %399 = arith.addi %398, %c1_i32_374 : i32
    %c0_375 = arith.constant 0 : index
    %c0_376 = arith.constant 0 : index
    %400 = arith.index_cast %399 : i32 to index
    %c1_377 = arith.constant 1 : index
    %401 = vector.load %arg2[%c0_375, %c0_376, %400, %c1_377] : memref<1x3x18x18xf32, #tpu.memory_space<vmem>>, vector<1x1x1x16xf32>
    %402 = vector.shape_cast %401 : vector<1x1x1x16xf32> to vector<1x16xf32>
    %c15_i32_378 = arith.constant 15 : i32
    %403 = arith.addi %0, %c15_i32_378 : i32
    %c1_i32_379 = arith.constant 1 : i32
    %404 = arith.addi %403, %c1_i32_379 : i32
    %c0_380 = arith.constant 0 : index
    %c0_381 = arith.constant 0 : index
    %405 = arith.index_cast %404 : i32 to index
    %c1_382 = arith.constant 1 : index
    %406 = vector.load %arg2[%c0_380, %c0_381, %405, %c1_382] : memref<1x3x18x18xf32, #tpu.memory_space<vmem>>, vector<1x1x1x16xf32>
    %407 = vector.shape_cast %406 : vector<1x1x1x16xf32> to vector<1x16xf32>
    %408 = tpu.concatenate %332, %337, %342, %347, %352, %357, %362, %367, %372, %377, %382, %387, %392, %397, %402, %407 in 1 : vector<1x16xf32>, vector<1x16xf32>, vector<1x16xf32>, vector<1x16xf32>, vector<1x16xf32>, vector<1x16xf32>, vector<1x16xf32>, vector<1x16xf32>, vector<1x16xf32>, vector<1x16xf32>, vector<1x16xf32>, vector<1x16xf32>, vector<1x16xf32>, vector<1x16xf32>, vector<1x16xf32>, vector<1x16xf32> -> vector<1x256xf32>
    %c0_i32_383 = arith.constant 0 : i32
    %409 = arith.addi %0, %c0_i32_383 : i32
    %c1_i32_384 = arith.constant 1 : i32
    %410 = arith.addi %409, %c1_i32_384 : i32
    %c0_385 = arith.constant 0 : index
    %c0_386 = arith.constant 0 : index
    %411 = arith.index_cast %410 : i32 to index
    %c2_387 = arith.constant 2 : index
    %412 = vector.load %arg2[%c0_385, %c0_386, %411, %c2_387] : memref<1x3x18x18xf32, #tpu.memory_space<vmem>>, vector<1x1x1x16xf32>
    %413 = vector.shape_cast %412 : vector<1x1x1x16xf32> to vector<1x16xf32>
    %c1_i32_388 = arith.constant 1 : i32
    %414 = arith.addi %0, %c1_i32_388 : i32
    %c1_i32_389 = arith.constant 1 : i32
    %415 = arith.addi %414, %c1_i32_389 : i32
    %c0_390 = arith.constant 0 : index
    %c0_391 = arith.constant 0 : index
    %416 = arith.index_cast %415 : i32 to index
    %c2_392 = arith.constant 2 : index
    %417 = vector.load %arg2[%c0_390, %c0_391, %416, %c2_392] : memref<1x3x18x18xf32, #tpu.memory_space<vmem>>, vector<1x1x1x16xf32>
    %418 = vector.shape_cast %417 : vector<1x1x1x16xf32> to vector<1x16xf32>
    %c2_i32_393 = arith.constant 2 : i32
    %419 = arith.addi %0, %c2_i32_393 : i32
    %c1_i32_394 = arith.constant 1 : i32
    %420 = arith.addi %419, %c1_i32_394 : i32
    %c0_395 = arith.constant 0 : index
    %c0_396 = arith.constant 0 : index
    %421 = arith.index_cast %420 : i32 to index
    %c2_397 = arith.constant 2 : index
    %422 = vector.load %arg2[%c0_395, %c0_396, %421, %c2_397] : memref<1x3x18x18xf32, #tpu.memory_space<vmem>>, vector<1x1x1x16xf32>
    %423 = vector.shape_cast %422 : vector<1x1x1x16xf32> to vector<1x16xf32>
    %c3_i32_398 = arith.constant 3 : i32
    %424 = arith.addi %0, %c3_i32_398 : i32
    %c1_i32_399 = arith.constant 1 : i32
    %425 = arith.addi %424, %c1_i32_399 : i32
    %c0_400 = arith.constant 0 : index
    %c0_401 = arith.constant 0 : index
    %426 = arith.index_cast %425 : i32 to index
    %c2_402 = arith.constant 2 : index
    %427 = vector.load %arg2[%c0_400, %c0_401, %426, %c2_402] : memref<1x3x18x18xf32, #tpu.memory_space<vmem>>, vector<1x1x1x16xf32>
    %428 = vector.shape_cast %427 : vector<1x1x1x16xf32> to vector<1x16xf32>
    %c4_i32_403 = arith.constant 4 : i32
    %429 = arith.addi %0, %c4_i32_403 : i32
    %c1_i32_404 = arith.constant 1 : i32
    %430 = arith.addi %429, %c1_i32_404 : i32
    %c0_405 = arith.constant 0 : index
    %c0_406 = arith.constant 0 : index
    %431 = arith.index_cast %430 : i32 to index
    %c2_407 = arith.constant 2 : index
    %432 = vector.load %arg2[%c0_405, %c0_406, %431, %c2_407] : memref<1x3x18x18xf32, #tpu.memory_space<vmem>>, vector<1x1x1x16xf32>
    %433 = vector.shape_cast %432 : vector<1x1x1x16xf32> to vector<1x16xf32>
    %c5_i32_408 = arith.constant 5 : i32
    %434 = arith.addi %0, %c5_i32_408 : i32
    %c1_i32_409 = arith.constant 1 : i32
    %435 = arith.addi %434, %c1_i32_409 : i32
    %c0_410 = arith.constant 0 : index
    %c0_411 = arith.constant 0 : index
    %436 = arith.index_cast %435 : i32 to index
    %c2_412 = arith.constant 2 : index
    %437 = vector.load %arg2[%c0_410, %c0_411, %436, %c2_412] : memref<1x3x18x18xf32, #tpu.memory_space<vmem>>, vector<1x1x1x16xf32>
    %438 = vector.shape_cast %437 : vector<1x1x1x16xf32> to vector<1x16xf32>
    %c6_i32_413 = arith.constant 6 : i32
    %439 = arith.addi %0, %c6_i32_413 : i32
    %c1_i32_414 = arith.constant 1 : i32
    %440 = arith.addi %439, %c1_i32_414 : i32
    %c0_415 = arith.constant 0 : index
    %c0_416 = arith.constant 0 : index
    %441 = arith.index_cast %440 : i32 to index
    %c2_417 = arith.constant 2 : index
    %442 = vector.load %arg2[%c0_415, %c0_416, %441, %c2_417] : memref<1x3x18x18xf32, #tpu.memory_space<vmem>>, vector<1x1x1x16xf32>
    %443 = vector.shape_cast %442 : vector<1x1x1x16xf32> to vector<1x16xf32>
    %c7_i32_418 = arith.constant 7 : i32
    %444 = arith.addi %0, %c7_i32_418 : i32
    %c1_i32_419 = arith.constant 1 : i32
    %445 = arith.addi %444, %c1_i32_419 : i32
    %c0_420 = arith.constant 0 : index
    %c0_421 = arith.constant 0 : index
    %446 = arith.index_cast %445 : i32 to index
    %c2_422 = arith.constant 2 : index
    %447 = vector.load %arg2[%c0_420, %c0_421, %446, %c2_422] : memref<1x3x18x18xf32, #tpu.memory_space<vmem>>, vector<1x1x1x16xf32>
    %448 = vector.shape_cast %447 : vector<1x1x1x16xf32> to vector<1x16xf32>
    %c8_i32_423 = arith.constant 8 : i32
    %449 = arith.addi %0, %c8_i32_423 : i32
    %c1_i32_424 = arith.constant 1 : i32
    %450 = arith.addi %449, %c1_i32_424 : i32
    %c0_425 = arith.constant 0 : index
    %c0_426 = arith.constant 0 : index
    %451 = arith.index_cast %450 : i32 to index
    %c2_427 = arith.constant 2 : index
    %452 = vector.load %arg2[%c0_425, %c0_426, %451, %c2_427] : memref<1x3x18x18xf32, #tpu.memory_space<vmem>>, vector<1x1x1x16xf32>
    %453 = vector.shape_cast %452 : vector<1x1x1x16xf32> to vector<1x16xf32>
    %c9_i32_428 = arith.constant 9 : i32
    %454 = arith.addi %0, %c9_i32_428 : i32
    %c1_i32_429 = arith.constant 1 : i32
    %455 = arith.addi %454, %c1_i32_429 : i32
    %c0_430 = arith.constant 0 : index
    %c0_431 = arith.constant 0 : index
    %456 = arith.index_cast %455 : i32 to index
    %c2_432 = arith.constant 2 : index
    %457 = vector.load %arg2[%c0_430, %c0_431, %456, %c2_432] : memref<1x3x18x18xf32, #tpu.memory_space<vmem>>, vector<1x1x1x16xf32>
    %458 = vector.shape_cast %457 : vector<1x1x1x16xf32> to vector<1x16xf32>
    %c10_i32_433 = arith.constant 10 : i32
    %459 = arith.addi %0, %c10_i32_433 : i32
    %c1_i32_434 = arith.constant 1 : i32
    %460 = arith.addi %459, %c1_i32_434 : i32
    %c0_435 = arith.constant 0 : index
    %c0_436 = arith.constant 0 : index
    %461 = arith.index_cast %460 : i32 to index
    %c2_437 = arith.constant 2 : index
    %462 = vector.load %arg2[%c0_435, %c0_436, %461, %c2_437] : memref<1x3x18x18xf32, #tpu.memory_space<vmem>>, vector<1x1x1x16xf32>
    %463 = vector.shape_cast %462 : vector<1x1x1x16xf32> to vector<1x16xf32>
    %c11_i32_438 = arith.constant 11 : i32
    %464 = arith.addi %0, %c11_i32_438 : i32
    %c1_i32_439 = arith.constant 1 : i32
    %465 = arith.addi %464, %c1_i32_439 : i32
    %c0_440 = arith.constant 0 : index
    %c0_441 = arith.constant 0 : index
    %466 = arith.index_cast %465 : i32 to index
    %c2_442 = arith.constant 2 : index
    %467 = vector.load %arg2[%c0_440, %c0_441, %466, %c2_442] : memref<1x3x18x18xf32, #tpu.memory_space<vmem>>, vector<1x1x1x16xf32>
    %468 = vector.shape_cast %467 : vector<1x1x1x16xf32> to vector<1x16xf32>
    %c12_i32_443 = arith.constant 12 : i32
    %469 = arith.addi %0, %c12_i32_443 : i32
    %c1_i32_444 = arith.constant 1 : i32
    %470 = arith.addi %469, %c1_i32_444 : i32
    %c0_445 = arith.constant 0 : index
    %c0_446 = arith.constant 0 : index
    %471 = arith.index_cast %470 : i32 to index
    %c2_447 = arith.constant 2 : index
    %472 = vector.load %arg2[%c0_445, %c0_446, %471, %c2_447] : memref<1x3x18x18xf32, #tpu.memory_space<vmem>>, vector<1x1x1x16xf32>
    %473 = vector.shape_cast %472 : vector<1x1x1x16xf32> to vector<1x16xf32>
    %c13_i32_448 = arith.constant 13 : i32
    %474 = arith.addi %0, %c13_i32_448 : i32
    %c1_i32_449 = arith.constant 1 : i32
    %475 = arith.addi %474, %c1_i32_449 : i32
    %c0_450 = arith.constant 0 : index
    %c0_451 = arith.constant 0 : index
    %476 = arith.index_cast %475 : i32 to index
    %c2_452 = arith.constant 2 : index
    %477 = vector.load %arg2[%c0_450, %c0_451, %476, %c2_452] : memref<1x3x18x18xf32, #tpu.memory_space<vmem>>, vector<1x1x1x16xf32>
    %478 = vector.shape_cast %477 : vector<1x1x1x16xf32> to vector<1x16xf32>
    %c14_i32_453 = arith.constant 14 : i32
    %479 = arith.addi %0, %c14_i32_453 : i32
    %c1_i32_454 = arith.constant 1 : i32
    %480 = arith.addi %479, %c1_i32_454 : i32
    %c0_455 = arith.constant 0 : index
    %c0_456 = arith.constant 0 : index
    %481 = arith.index_cast %480 : i32 to index
    %c2_457 = arith.constant 2 : index
    %482 = vector.load %arg2[%c0_455, %c0_456, %481, %c2_457] : memref<1x3x18x18xf32, #tpu.memory_space<vmem>>, vector<1x1x1x16xf32>
    %483 = vector.shape_cast %482 : vector<1x1x1x16xf32> to vector<1x16xf32>
    %c15_i32_458 = arith.constant 15 : i32
    %484 = arith.addi %0, %c15_i32_458 : i32
    %c1_i32_459 = arith.constant 1 : i32
    %485 = arith.addi %484, %c1_i32_459 : i32
    %c0_460 = arith.constant 0 : index
    %c0_461 = arith.constant 0 : index
    %486 = arith.index_cast %485 : i32 to index
    %c2_462 = arith.constant 2 : index
    %487 = vector.load %arg2[%c0_460, %c0_461, %486, %c2_462] : memref<1x3x18x18xf32, #tpu.memory_space<vmem>>, vector<1x1x1x16xf32>
    %488 = vector.shape_cast %487 : vector<1x1x1x16xf32> to vector<1x16xf32>
    %489 = tpu.concatenate %413, %418, %423, %428, %433, %438, %443, %448, %453, %458, %463, %468, %473, %478, %483, %488 in 1 : vector<1x16xf32>, vector<1x16xf32>, vector<1x16xf32>, vector<1x16xf32>, vector<1x16xf32>, vector<1x16xf32>, vector<1x16xf32>, vector<1x16xf32>, vector<1x16xf32>, vector<1x16xf32>, vector<1x16xf32>, vector<1x16xf32>, vector<1x16xf32>, vector<1x16xf32>, vector<1x16xf32>, vector<1x16xf32> -> vector<1x256xf32>
    %c0_i32_463 = arith.constant 0 : i32
    %490 = arith.addi %0, %c0_i32_463 : i32
    %c2_i32_464 = arith.constant 2 : i32
    %491 = arith.addi %490, %c2_i32_464 : i32
    %c0_465 = arith.constant 0 : index
    %c0_466 = arith.constant 0 : index
    %492 = arith.index_cast %491 : i32 to index
    %c0_467 = arith.constant 0 : index
    %493 = vector.load %arg2[%c0_465, %c0_466, %492, %c0_467] : memref<1x3x18x18xf32, #tpu.memory_space<vmem>>, vector<1x1x1x16xf32>
    %494 = vector.shape_cast %493 : vector<1x1x1x16xf32> to vector<1x16xf32>
    %c1_i32_468 = arith.constant 1 : i32
    %495 = arith.addi %0, %c1_i32_468 : i32
    %c2_i32_469 = arith.constant 2 : i32
    %496 = arith.addi %495, %c2_i32_469 : i32
    %c0_470 = arith.constant 0 : index
    %c0_471 = arith.constant 0 : index
    %497 = arith.index_cast %496 : i32 to index
    %c0_472 = arith.constant 0 : index
    %498 = vector.load %arg2[%c0_470, %c0_471, %497, %c0_472] : memref<1x3x18x18xf32, #tpu.memory_space<vmem>>, vector<1x1x1x16xf32>
    %499 = vector.shape_cast %498 : vector<1x1x1x16xf32> to vector<1x16xf32>
    %c2_i32_473 = arith.constant 2 : i32
    %500 = arith.addi %0, %c2_i32_473 : i32
    %c2_i32_474 = arith.constant 2 : i32
    %501 = arith.addi %500, %c2_i32_474 : i32
    %c0_475 = arith.constant 0 : index
    %c0_476 = arith.constant 0 : index
    %502 = arith.index_cast %501 : i32 to index
    %c0_477 = arith.constant 0 : index
    %503 = vector.load %arg2[%c0_475, %c0_476, %502, %c0_477] : memref<1x3x18x18xf32, #tpu.memory_space<vmem>>, vector<1x1x1x16xf32>
    %504 = vector.shape_cast %503 : vector<1x1x1x16xf32> to vector<1x16xf32>
    %c3_i32_478 = arith.constant 3 : i32
    %505 = arith.addi %0, %c3_i32_478 : i32
    %c2_i32_479 = arith.constant 2 : i32
    %506 = arith.addi %505, %c2_i32_479 : i32
    %c0_480 = arith.constant 0 : index
    %c0_481 = arith.constant 0 : index
    %507 = arith.index_cast %506 : i32 to index
    %c0_482 = arith.constant 0 : index
    %508 = vector.load %arg2[%c0_480, %c0_481, %507, %c0_482] : memref<1x3x18x18xf32, #tpu.memory_space<vmem>>, vector<1x1x1x16xf32>
    %509 = vector.shape_cast %508 : vector<1x1x1x16xf32> to vector<1x16xf32>
    %c4_i32_483 = arith.constant 4 : i32
    %510 = arith.addi %0, %c4_i32_483 : i32
    %c2_i32_484 = arith.constant 2 : i32
    %511 = arith.addi %510, %c2_i32_484 : i32
    %c0_485 = arith.constant 0 : index
    %c0_486 = arith.constant 0 : index
    %512 = arith.index_cast %511 : i32 to index
    %c0_487 = arith.constant 0 : index
    %513 = vector.load %arg2[%c0_485, %c0_486, %512, %c0_487] : memref<1x3x18x18xf32, #tpu.memory_space<vmem>>, vector<1x1x1x16xf32>
    %514 = vector.shape_cast %513 : vector<1x1x1x16xf32> to vector<1x16xf32>
    %c5_i32_488 = arith.constant 5 : i32
    %515 = arith.addi %0, %c5_i32_488 : i32
    %c2_i32_489 = arith.constant 2 : i32
    %516 = arith.addi %515, %c2_i32_489 : i32
    %c0_490 = arith.constant 0 : index
    %c0_491 = arith.constant 0 : index
    %517 = arith.index_cast %516 : i32 to index
    %c0_492 = arith.constant 0 : index
    %518 = vector.load %arg2[%c0_490, %c0_491, %517, %c0_492] : memref<1x3x18x18xf32, #tpu.memory_space<vmem>>, vector<1x1x1x16xf32>
    %519 = vector.shape_cast %518 : vector<1x1x1x16xf32> to vector<1x16xf32>
    %c6_i32_493 = arith.constant 6 : i32
    %520 = arith.addi %0, %c6_i32_493 : i32
    %c2_i32_494 = arith.constant 2 : i32
    %521 = arith.addi %520, %c2_i32_494 : i32
    %c0_495 = arith.constant 0 : index
    %c0_496 = arith.constant 0 : index
    %522 = arith.index_cast %521 : i32 to index
    %c0_497 = arith.constant 0 : index
    %523 = vector.load %arg2[%c0_495, %c0_496, %522, %c0_497] : memref<1x3x18x18xf32, #tpu.memory_space<vmem>>, vector<1x1x1x16xf32>
    %524 = vector.shape_cast %523 : vector<1x1x1x16xf32> to vector<1x16xf32>
    %c7_i32_498 = arith.constant 7 : i32
    %525 = arith.addi %0, %c7_i32_498 : i32
    %c2_i32_499 = arith.constant 2 : i32
    %526 = arith.addi %525, %c2_i32_499 : i32
    %c0_500 = arith.constant 0 : index
    %c0_501 = arith.constant 0 : index
    %527 = arith.index_cast %526 : i32 to index
    %c0_502 = arith.constant 0 : index
    %528 = vector.load %arg2[%c0_500, %c0_501, %527, %c0_502] : memref<1x3x18x18xf32, #tpu.memory_space<vmem>>, vector<1x1x1x16xf32>
    %529 = vector.shape_cast %528 : vector<1x1x1x16xf32> to vector<1x16xf32>
    %c8_i32_503 = arith.constant 8 : i32
    %530 = arith.addi %0, %c8_i32_503 : i32
    %c2_i32_504 = arith.constant 2 : i32
    %531 = arith.addi %530, %c2_i32_504 : i32
    %c0_505 = arith.constant 0 : index
    %c0_506 = arith.constant 0 : index
    %532 = arith.index_cast %531 : i32 to index
    %c0_507 = arith.constant 0 : index
    %533 = vector.load %arg2[%c0_505, %c0_506, %532, %c0_507] : memref<1x3x18x18xf32, #tpu.memory_space<vmem>>, vector<1x1x1x16xf32>
    %534 = vector.shape_cast %533 : vector<1x1x1x16xf32> to vector<1x16xf32>
    %c9_i32_508 = arith.constant 9 : i32
    %535 = arith.addi %0, %c9_i32_508 : i32
    %c2_i32_509 = arith.constant 2 : i32
    %536 = arith.addi %535, %c2_i32_509 : i32
    %c0_510 = arith.constant 0 : index
    %c0_511 = arith.constant 0 : index
    %537 = arith.index_cast %536 : i32 to index
    %c0_512 = arith.constant 0 : index
    %538 = vector.load %arg2[%c0_510, %c0_511, %537, %c0_512] : memref<1x3x18x18xf32, #tpu.memory_space<vmem>>, vector<1x1x1x16xf32>
    %539 = vector.shape_cast %538 : vector<1x1x1x16xf32> to vector<1x16xf32>
    %c10_i32_513 = arith.constant 10 : i32
    %540 = arith.addi %0, %c10_i32_513 : i32
    %c2_i32_514 = arith.constant 2 : i32
    %541 = arith.addi %540, %c2_i32_514 : i32
    %c0_515 = arith.constant 0 : index
    %c0_516 = arith.constant 0 : index
    %542 = arith.index_cast %541 : i32 to index
    %c0_517 = arith.constant 0 : index
    %543 = vector.load %arg2[%c0_515, %c0_516, %542, %c0_517] : memref<1x3x18x18xf32, #tpu.memory_space<vmem>>, vector<1x1x1x16xf32>
    %544 = vector.shape_cast %543 : vector<1x1x1x16xf32> to vector<1x16xf32>
    %c11_i32_518 = arith.constant 11 : i32
    %545 = arith.addi %0, %c11_i32_518 : i32
    %c2_i32_519 = arith.constant 2 : i32
    %546 = arith.addi %545, %c2_i32_519 : i32
    %c0_520 = arith.constant 0 : index
    %c0_521 = arith.constant 0 : index
    %547 = arith.index_cast %546 : i32 to index
    %c0_522 = arith.constant 0 : index
    %548 = vector.load %arg2[%c0_520, %c0_521, %547, %c0_522] : memref<1x3x18x18xf32, #tpu.memory_space<vmem>>, vector<1x1x1x16xf32>
    %549 = vector.shape_cast %548 : vector<1x1x1x16xf32> to vector<1x16xf32>
    %c12_i32_523 = arith.constant 12 : i32
    %550 = arith.addi %0, %c12_i32_523 : i32
    %c2_i32_524 = arith.constant 2 : i32
    %551 = arith.addi %550, %c2_i32_524 : i32
    %c0_525 = arith.constant 0 : index
    %c0_526 = arith.constant 0 : index
    %552 = arith.index_cast %551 : i32 to index
    %c0_527 = arith.constant 0 : index
    %553 = vector.load %arg2[%c0_525, %c0_526, %552, %c0_527] : memref<1x3x18x18xf32, #tpu.memory_space<vmem>>, vector<1x1x1x16xf32>
    %554 = vector.shape_cast %553 : vector<1x1x1x16xf32> to vector<1x16xf32>
    %c13_i32_528 = arith.constant 13 : i32
    %555 = arith.addi %0, %c13_i32_528 : i32
    %c2_i32_529 = arith.constant 2 : i32
    %556 = arith.addi %555, %c2_i32_529 : i32
    %c0_530 = arith.constant 0 : index
    %c0_531 = arith.constant 0 : index
    %557 = arith.index_cast %556 : i32 to index
    %c0_532 = arith.constant 0 : index
    %558 = vector.load %arg2[%c0_530, %c0_531, %557, %c0_532] : memref<1x3x18x18xf32, #tpu.memory_space<vmem>>, vector<1x1x1x16xf32>
    %559 = vector.shape_cast %558 : vector<1x1x1x16xf32> to vector<1x16xf32>
    %c14_i32_533 = arith.constant 14 : i32
    %560 = arith.addi %0, %c14_i32_533 : i32
    %c2_i32_534 = arith.constant 2 : i32
    %561 = arith.addi %560, %c2_i32_534 : i32
    %c0_535 = arith.constant 0 : index
    %c0_536 = arith.constant 0 : index
    %562 = arith.index_cast %561 : i32 to index
    %c0_537 = arith.constant 0 : index
    %563 = vector.load %arg2[%c0_535, %c0_536, %562, %c0_537] : memref<1x3x18x18xf32, #tpu.memory_space<vmem>>, vector<1x1x1x16xf32>
    %564 = vector.shape_cast %563 : vector<1x1x1x16xf32> to vector<1x16xf32>
    %c15_i32_538 = arith.constant 15 : i32
    %565 = arith.addi %0, %c15_i32_538 : i32
    %c2_i32_539 = arith.constant 2 : i32
    %566 = arith.addi %565, %c2_i32_539 : i32
    %c0_540 = arith.constant 0 : index
    %c0_541 = arith.constant 0 : index
    %567 = arith.index_cast %566 : i32 to index
    %c0_542 = arith.constant 0 : index
    %568 = vector.load %arg2[%c0_540, %c0_541, %567, %c0_542] : memref<1x3x18x18xf32, #tpu.memory_space<vmem>>, vector<1x1x1x16xf32>
    %569 = vector.shape_cast %568 : vector<1x1x1x16xf32> to vector<1x16xf32>
    %570 = tpu.concatenate %494, %499, %504, %509, %514, %519, %524, %529, %534, %539, %544, %549, %554, %559, %564, %569 in 1 : vector<1x16xf32>, vector<1x16xf32>, vector<1x16xf32>, vector<1x16xf32>, vector<1x16xf32>, vector<1x16xf32>, vector<1x16xf32>, vector<1x16xf32>, vector<1x16xf32>, vector<1x16xf32>, vector<1x16xf32>, vector<1x16xf32>, vector<1x16xf32>, vector<1x16xf32>, vector<1x16xf32>, vector<1x16xf32> -> vector<1x256xf32>
    %c0_i32_543 = arith.constant 0 : i32
    %571 = arith.addi %0, %c0_i32_543 : i32
    %c2_i32_544 = arith.constant 2 : i32
    %572 = arith.addi %571, %c2_i32_544 : i32
    %c0_545 = arith.constant 0 : index
    %c0_546 = arith.constant 0 : index
    %573 = arith.index_cast %572 : i32 to index
    %c1_547 = arith.constant 1 : index
    %574 = vector.load %arg2[%c0_545, %c0_546, %573, %c1_547] : memref<1x3x18x18xf32, #tpu.memory_space<vmem>>, vector<1x1x1x16xf32>
    %575 = vector.shape_cast %574 : vector<1x1x1x16xf32> to vector<1x16xf32>
    %c1_i32_548 = arith.constant 1 : i32
    %576 = arith.addi %0, %c1_i32_548 : i32
    %c2_i32_549 = arith.constant 2 : i32
    %577 = arith.addi %576, %c2_i32_549 : i32
    %c0_550 = arith.constant 0 : index
    %c0_551 = arith.constant 0 : index
    %578 = arith.index_cast %577 : i32 to index
    %c1_552 = arith.constant 1 : index
    %579 = vector.load %arg2[%c0_550, %c0_551, %578, %c1_552] : memref<1x3x18x18xf32, #tpu.memory_space<vmem>>, vector<1x1x1x16xf32>
    %580 = vector.shape_cast %579 : vector<1x1x1x16xf32> to vector<1x16xf32>
    %c2_i32_553 = arith.constant 2 : i32
    %581 = arith.addi %0, %c2_i32_553 : i32
    %c2_i32_554 = arith.constant 2 : i32
    %582 = arith.addi %581, %c2_i32_554 : i32
    %c0_555 = arith.constant 0 : index
    %c0_556 = arith.constant 0 : index
    %583 = arith.index_cast %582 : i32 to index
    %c1_557 = arith.constant 1 : index
    %584 = vector.load %arg2[%c0_555, %c0_556, %583, %c1_557] : memref<1x3x18x18xf32, #tpu.memory_space<vmem>>, vector<1x1x1x16xf32>
    %585 = vector.shape_cast %584 : vector<1x1x1x16xf32> to vector<1x16xf32>
    %c3_i32_558 = arith.constant 3 : i32
    %586 = arith.addi %0, %c3_i32_558 : i32
    %c2_i32_559 = arith.constant 2 : i32
    %587 = arith.addi %586, %c2_i32_559 : i32
    %c0_560 = arith.constant 0 : index
    %c0_561 = arith.constant 0 : index
    %588 = arith.index_cast %587 : i32 to index
    %c1_562 = arith.constant 1 : index
    %589 = vector.load %arg2[%c0_560, %c0_561, %588, %c1_562] : memref<1x3x18x18xf32, #tpu.memory_space<vmem>>, vector<1x1x1x16xf32>
    %590 = vector.shape_cast %589 : vector<1x1x1x16xf32> to vector<1x16xf32>
    %c4_i32_563 = arith.constant 4 : i32
    %591 = arith.addi %0, %c4_i32_563 : i32
    %c2_i32_564 = arith.constant 2 : i32
    %592 = arith.addi %591, %c2_i32_564 : i32
    %c0_565 = arith.constant 0 : index
    %c0_566 = arith.constant 0 : index
    %593 = arith.index_cast %592 : i32 to index
    %c1_567 = arith.constant 1 : index
    %594 = vector.load %arg2[%c0_565, %c0_566, %593, %c1_567] : memref<1x3x18x18xf32, #tpu.memory_space<vmem>>, vector<1x1x1x16xf32>
    %595 = vector.shape_cast %594 : vector<1x1x1x16xf32> to vector<1x16xf32>
    %c5_i32_568 = arith.constant 5 : i32
    %596 = arith.addi %0, %c5_i32_568 : i32
    %c2_i32_569 = arith.constant 2 : i32
    %597 = arith.addi %596, %c2_i32_569 : i32
    %c0_570 = arith.constant 0 : index
    %c0_571 = arith.constant 0 : index
    %598 = arith.index_cast %597 : i32 to index
    %c1_572 = arith.constant 1 : index
    %599 = vector.load %arg2[%c0_570, %c0_571, %598, %c1_572] : memref<1x3x18x18xf32, #tpu.memory_space<vmem>>, vector<1x1x1x16xf32>
    %600 = vector.shape_cast %599 : vector<1x1x1x16xf32> to vector<1x16xf32>
    %c6_i32_573 = arith.constant 6 : i32
    %601 = arith.addi %0, %c6_i32_573 : i32
    %c2_i32_574 = arith.constant 2 : i32
    %602 = arith.addi %601, %c2_i32_574 : i32
    %c0_575 = arith.constant 0 : index
    %c0_576 = arith.constant 0 : index
    %603 = arith.index_cast %602 : i32 to index
    %c1_577 = arith.constant 1 : index
    %604 = vector.load %arg2[%c0_575, %c0_576, %603, %c1_577] : memref<1x3x18x18xf32, #tpu.memory_space<vmem>>, vector<1x1x1x16xf32>
    %605 = vector.shape_cast %604 : vector<1x1x1x16xf32> to vector<1x16xf32>
    %c7_i32_578 = arith.constant 7 : i32
    %606 = arith.addi %0, %c7_i32_578 : i32
    %c2_i32_579 = arith.constant 2 : i32
    %607 = arith.addi %606, %c2_i32_579 : i32
    %c0_580 = arith.constant 0 : index
    %c0_581 = arith.constant 0 : index
    %608 = arith.index_cast %607 : i32 to index
    %c1_582 = arith.constant 1 : index
    %609 = vector.load %arg2[%c0_580, %c0_581, %608, %c1_582] : memref<1x3x18x18xf32, #tpu.memory_space<vmem>>, vector<1x1x1x16xf32>
    %610 = vector.shape_cast %609 : vector<1x1x1x16xf32> to vector<1x16xf32>
    %c8_i32_583 = arith.constant 8 : i32
    %611 = arith.addi %0, %c8_i32_583 : i32
    %c2_i32_584 = arith.constant 2 : i32
    %612 = arith.addi %611, %c2_i32_584 : i32
    %c0_585 = arith.constant 0 : index
    %c0_586 = arith.constant 0 : index
    %613 = arith.index_cast %612 : i32 to index
    %c1_587 = arith.constant 1 : index
    %614 = vector.load %arg2[%c0_585, %c0_586, %613, %c1_587] : memref<1x3x18x18xf32, #tpu.memory_space<vmem>>, vector<1x1x1x16xf32>
    %615 = vector.shape_cast %614 : vector<1x1x1x16xf32> to vector<1x16xf32>
    %c9_i32_588 = arith.constant 9 : i32
    %616 = arith.addi %0, %c9_i32_588 : i32
    %c2_i32_589 = arith.constant 2 : i32
    %617 = arith.addi %616, %c2_i32_589 : i32
    %c0_590 = arith.constant 0 : index
    %c0_591 = arith.constant 0 : index
    %618 = arith.index_cast %617 : i32 to index
    %c1_592 = arith.constant 1 : index
    %619 = vector.load %arg2[%c0_590, %c0_591, %618, %c1_592] : memref<1x3x18x18xf32, #tpu.memory_space<vmem>>, vector<1x1x1x16xf32>
    %620 = vector.shape_cast %619 : vector<1x1x1x16xf32> to vector<1x16xf32>
    %c10_i32_593 = arith.constant 10 : i32
    %621 = arith.addi %0, %c10_i32_593 : i32
    %c2_i32_594 = arith.constant 2 : i32
    %622 = arith.addi %621, %c2_i32_594 : i32
    %c0_595 = arith.constant 0 : index
    %c0_596 = arith.constant 0 : index
    %623 = arith.index_cast %622 : i32 to index
    %c1_597 = arith.constant 1 : index
    %624 = vector.load %arg2[%c0_595, %c0_596, %623, %c1_597] : memref<1x3x18x18xf32, #tpu.memory_space<vmem>>, vector<1x1x1x16xf32>
    %625 = vector.shape_cast %624 : vector<1x1x1x16xf32> to vector<1x16xf32>
    %c11_i32_598 = arith.constant 11 : i32
    %626 = arith.addi %0, %c11_i32_598 : i32
    %c2_i32_599 = arith.constant 2 : i32
    %627 = arith.addi %626, %c2_i32_599 : i32
    %c0_600 = arith.constant 0 : index
    %c0_601 = arith.constant 0 : index
    %628 = arith.index_cast %627 : i32 to index
    %c1_602 = arith.constant 1 : index
    %629 = vector.load %arg2[%c0_600, %c0_601, %628, %c1_602] : memref<1x3x18x18xf32, #tpu.memory_space<vmem>>, vector<1x1x1x16xf32>
    %630 = vector.shape_cast %629 : vector<1x1x1x16xf32> to vector<1x16xf32>
    %c12_i32_603 = arith.constant 12 : i32
    %631 = arith.addi %0, %c12_i32_603 : i32
    %c2_i32_604 = arith.constant 2 : i32
    %632 = arith.addi %631, %c2_i32_604 : i32
    %c0_605 = arith.constant 0 : index
    %c0_606 = arith.constant 0 : index
    %633 = arith.index_cast %632 : i32 to index
    %c1_607 = arith.constant 1 : index
    %634 = vector.load %arg2[%c0_605, %c0_606, %633, %c1_607] : memref<1x3x18x18xf32, #tpu.memory_space<vmem>>, vector<1x1x1x16xf32>
    %635 = vector.shape_cast %634 : vector<1x1x1x16xf32> to vector<1x16xf32>
    %c13_i32_608 = arith.constant 13 : i32
    %636 = arith.addi %0, %c13_i32_608 : i32
    %c2_i32_609 = arith.constant 2 : i32
    %637 = arith.addi %636, %c2_i32_609 : i32
    %c0_610 = arith.constant 0 : index
    %c0_611 = arith.constant 0 : index
    %638 = arith.index_cast %637 : i32 to index
    %c1_612 = arith.constant 1 : index
    %639 = vector.load %arg2[%c0_610, %c0_611, %638, %c1_612] : memref<1x3x18x18xf32, #tpu.memory_space<vmem>>, vector<1x1x1x16xf32>
    %640 = vector.shape_cast %639 : vector<1x1x1x16xf32> to vector<1x16xf32>
    %c14_i32_613 = arith.constant 14 : i32
    %641 = arith.addi %0, %c14_i32_613 : i32
    %c2_i32_614 = arith.constant 2 : i32
    %642 = arith.addi %641, %c2_i32_614 : i32
    %c0_615 = arith.constant 0 : index
    %c0_616 = arith.constant 0 : index
    %643 = arith.index_cast %642 : i32 to index
    %c1_617 = arith.constant 1 : index
    %644 = vector.load %arg2[%c0_615, %c0_616, %643, %c1_617] : memref<1x3x18x18xf32, #tpu.memory_space<vmem>>, vector<1x1x1x16xf32>
    %645 = vector.shape_cast %644 : vector<1x1x1x16xf32> to vector<1x16xf32>
    %c15_i32_618 = arith.constant 15 : i32
    %646 = arith.addi %0, %c15_i32_618 : i32
    %c2_i32_619 = arith.constant 2 : i32
    %647 = arith.addi %646, %c2_i32_619 : i32
    %c0_620 = arith.constant 0 : index
    %c0_621 = arith.constant 0 : index
    %648 = arith.index_cast %647 : i32 to index
    %c1_622 = arith.constant 1 : index
    %649 = vector.load %arg2[%c0_620, %c0_621, %648, %c1_622] : memref<1x3x18x18xf32, #tpu.memory_space<vmem>>, vector<1x1x1x16xf32>
    %650 = vector.shape_cast %649 : vector<1x1x1x16xf32> to vector<1x16xf32>
    %651 = tpu.concatenate %575, %580, %585, %590, %595, %600, %605, %610, %615, %620, %625, %630, %635, %640, %645, %650 in 1 : vector<1x16xf32>, vector<1x16xf32>, vector<1x16xf32>, vector<1x16xf32>, vector<1x16xf32>, vector<1x16xf32>, vector<1x16xf32>, vector<1x16xf32>, vector<1x16xf32>, vector<1x16xf32>, vector<1x16xf32>, vector<1x16xf32>, vector<1x16xf32>, vector<1x16xf32>, vector<1x16xf32>, vector<1x16xf32> -> vector<1x256xf32>
    %c0_i32_623 = arith.constant 0 : i32
    %652 = arith.addi %0, %c0_i32_623 : i32
    %c2_i32_624 = arith.constant 2 : i32
    %653 = arith.addi %652, %c2_i32_624 : i32
    %c0_625 = arith.constant 0 : index
    %c0_626 = arith.constant 0 : index
    %654 = arith.index_cast %653 : i32 to index
    %c2_627 = arith.constant 2 : index
    %655 = vector.load %arg2[%c0_625, %c0_626, %654, %c2_627] : memref<1x3x18x18xf32, #tpu.memory_space<vmem>>, vector<1x1x1x16xf32>
    %656 = vector.shape_cast %655 : vector<1x1x1x16xf32> to vector<1x16xf32>
    %c1_i32_628 = arith.constant 1 : i32
    %657 = arith.addi %0, %c1_i32_628 : i32
    %c2_i32_629 = arith.constant 2 : i32
    %658 = arith.addi %657, %c2_i32_629 : i32
    %c0_630 = arith.constant 0 : index
    %c0_631 = arith.constant 0 : index
    %659 = arith.index_cast %658 : i32 to index
    %c2_632 = arith.constant 2 : index
    %660 = vector.load %arg2[%c0_630, %c0_631, %659, %c2_632] : memref<1x3x18x18xf32, #tpu.memory_space<vmem>>, vector<1x1x1x16xf32>
    %661 = vector.shape_cast %660 : vector<1x1x1x16xf32> to vector<1x16xf32>
    %c2_i32_633 = arith.constant 2 : i32
    %662 = arith.addi %0, %c2_i32_633 : i32
    %c2_i32_634 = arith.constant 2 : i32
    %663 = arith.addi %662, %c2_i32_634 : i32
    %c0_635 = arith.constant 0 : index
    %c0_636 = arith.constant 0 : index
    %664 = arith.index_cast %663 : i32 to index
    %c2_637 = arith.constant 2 : index
    %665 = vector.load %arg2[%c0_635, %c0_636, %664, %c2_637] : memref<1x3x18x18xf32, #tpu.memory_space<vmem>>, vector<1x1x1x16xf32>
    %666 = vector.shape_cast %665 : vector<1x1x1x16xf32> to vector<1x16xf32>
    %c3_i32_638 = arith.constant 3 : i32
    %667 = arith.addi %0, %c3_i32_638 : i32
    %c2_i32_639 = arith.constant 2 : i32
    %668 = arith.addi %667, %c2_i32_639 : i32
    %c0_640 = arith.constant 0 : index
    %c0_641 = arith.constant 0 : index
    %669 = arith.index_cast %668 : i32 to index
    %c2_642 = arith.constant 2 : index
    %670 = vector.load %arg2[%c0_640, %c0_641, %669, %c2_642] : memref<1x3x18x18xf32, #tpu.memory_space<vmem>>, vector<1x1x1x16xf32>
    %671 = vector.shape_cast %670 : vector<1x1x1x16xf32> to vector<1x16xf32>
    %c4_i32_643 = arith.constant 4 : i32
    %672 = arith.addi %0, %c4_i32_643 : i32
    %c2_i32_644 = arith.constant 2 : i32
    %673 = arith.addi %672, %c2_i32_644 : i32
    %c0_645 = arith.constant 0 : index
    %c0_646 = arith.constant 0 : index
    %674 = arith.index_cast %673 : i32 to index
    %c2_647 = arith.constant 2 : index
    %675 = vector.load %arg2[%c0_645, %c0_646, %674, %c2_647] : memref<1x3x18x18xf32, #tpu.memory_space<vmem>>, vector<1x1x1x16xf32>
    %676 = vector.shape_cast %675 : vector<1x1x1x16xf32> to vector<1x16xf32>
    %c5_i32_648 = arith.constant 5 : i32
    %677 = arith.addi %0, %c5_i32_648 : i32
    %c2_i32_649 = arith.constant 2 : i32
    %678 = arith.addi %677, %c2_i32_649 : i32
    %c0_650 = arith.constant 0 : index
    %c0_651 = arith.constant 0 : index
    %679 = arith.index_cast %678 : i32 to index
    %c2_652 = arith.constant 2 : index
    %680 = vector.load %arg2[%c0_650, %c0_651, %679, %c2_652] : memref<1x3x18x18xf32, #tpu.memory_space<vmem>>, vector<1x1x1x16xf32>
    %681 = vector.shape_cast %680 : vector<1x1x1x16xf32> to vector<1x16xf32>
    %c6_i32_653 = arith.constant 6 : i32
    %682 = arith.addi %0, %c6_i32_653 : i32
    %c2_i32_654 = arith.constant 2 : i32
    %683 = arith.addi %682, %c2_i32_654 : i32
    %c0_655 = arith.constant 0 : index
    %c0_656 = arith.constant 0 : index
    %684 = arith.index_cast %683 : i32 to index
    %c2_657 = arith.constant 2 : index
    %685 = vector.load %arg2[%c0_655, %c0_656, %684, %c2_657] : memref<1x3x18x18xf32, #tpu.memory_space<vmem>>, vector<1x1x1x16xf32>
    %686 = vector.shape_cast %685 : vector<1x1x1x16xf32> to vector<1x16xf32>
    %c7_i32_658 = arith.constant 7 : i32
    %687 = arith.addi %0, %c7_i32_658 : i32
    %c2_i32_659 = arith.constant 2 : i32
    %688 = arith.addi %687, %c2_i32_659 : i32
    %c0_660 = arith.constant 0 : index
    %c0_661 = arith.constant 0 : index
    %689 = arith.index_cast %688 : i32 to index
    %c2_662 = arith.constant 2 : index
    %690 = vector.load %arg2[%c0_660, %c0_661, %689, %c2_662] : memref<1x3x18x18xf32, #tpu.memory_space<vmem>>, vector<1x1x1x16xf32>
    %691 = vector.shape_cast %690 : vector<1x1x1x16xf32> to vector<1x16xf32>
    %c8_i32_663 = arith.constant 8 : i32
    %692 = arith.addi %0, %c8_i32_663 : i32
    %c2_i32_664 = arith.constant 2 : i32
    %693 = arith.addi %692, %c2_i32_664 : i32
    %c0_665 = arith.constant 0 : index
    %c0_666 = arith.constant 0 : index
    %694 = arith.index_cast %693 : i32 to index
    %c2_667 = arith.constant 2 : index
    %695 = vector.load %arg2[%c0_665, %c0_666, %694, %c2_667] : memref<1x3x18x18xf32, #tpu.memory_space<vmem>>, vector<1x1x1x16xf32>
    %696 = vector.shape_cast %695 : vector<1x1x1x16xf32> to vector<1x16xf32>
    %c9_i32_668 = arith.constant 9 : i32
    %697 = arith.addi %0, %c9_i32_668 : i32
    %c2_i32_669 = arith.constant 2 : i32
    %698 = arith.addi %697, %c2_i32_669 : i32
    %c0_670 = arith.constant 0 : index
    %c0_671 = arith.constant 0 : index
    %699 = arith.index_cast %698 : i32 to index
    %c2_672 = arith.constant 2 : index
    %700 = vector.load %arg2[%c0_670, %c0_671, %699, %c2_672] : memref<1x3x18x18xf32, #tpu.memory_space<vmem>>, vector<1x1x1x16xf32>
    %701 = vector.shape_cast %700 : vector<1x1x1x16xf32> to vector<1x16xf32>
    %c10_i32_673 = arith.constant 10 : i32
    %702 = arith.addi %0, %c10_i32_673 : i32
    %c2_i32_674 = arith.constant 2 : i32
    %703 = arith.addi %702, %c2_i32_674 : i32
    %c0_675 = arith.constant 0 : index
    %c0_676 = arith.constant 0 : index
    %704 = arith.index_cast %703 : i32 to index
    %c2_677 = arith.constant 2 : index
    %705 = vector.load %arg2[%c0_675, %c0_676, %704, %c2_677] : memref<1x3x18x18xf32, #tpu.memory_space<vmem>>, vector<1x1x1x16xf32>
    %706 = vector.shape_cast %705 : vector<1x1x1x16xf32> to vector<1x16xf32>
    %c11_i32_678 = arith.constant 11 : i32
    %707 = arith.addi %0, %c11_i32_678 : i32
    %c2_i32_679 = arith.constant 2 : i32
    %708 = arith.addi %707, %c2_i32_679 : i32
    %c0_680 = arith.constant 0 : index
    %c0_681 = arith.constant 0 : index
    %709 = arith.index_cast %708 : i32 to index
    %c2_682 = arith.constant 2 : index
    %710 = vector.load %arg2[%c0_680, %c0_681, %709, %c2_682] : memref<1x3x18x18xf32, #tpu.memory_space<vmem>>, vector<1x1x1x16xf32>
    %711 = vector.shape_cast %710 : vector<1x1x1x16xf32> to vector<1x16xf32>
    %c12_i32_683 = arith.constant 12 : i32
    %712 = arith.addi %0, %c12_i32_683 : i32
    %c2_i32_684 = arith.constant 2 : i32
    %713 = arith.addi %712, %c2_i32_684 : i32
    %c0_685 = arith.constant 0 : index
    %c0_686 = arith.constant 0 : index
    %714 = arith.index_cast %713 : i32 to index
    %c2_687 = arith.constant 2 : index
    %715 = vector.load %arg2[%c0_685, %c0_686, %714, %c2_687] : memref<1x3x18x18xf32, #tpu.memory_space<vmem>>, vector<1x1x1x16xf32>
    %716 = vector.shape_cast %715 : vector<1x1x1x16xf32> to vector<1x16xf32>
    %c13_i32_688 = arith.constant 13 : i32
    %717 = arith.addi %0, %c13_i32_688 : i32
    %c2_i32_689 = arith.constant 2 : i32
    %718 = arith.addi %717, %c2_i32_689 : i32
    %c0_690 = arith.constant 0 : index
    %c0_691 = arith.constant 0 : index
    %719 = arith.index_cast %718 : i32 to index
    %c2_692 = arith.constant 2 : index
    %720 = vector.load %arg2[%c0_690, %c0_691, %719, %c2_692] : memref<1x3x18x18xf32, #tpu.memory_space<vmem>>, vector<1x1x1x16xf32>
    %721 = vector.shape_cast %720 : vector<1x1x1x16xf32> to vector<1x16xf32>
    %c14_i32_693 = arith.constant 14 : i32
    %722 = arith.addi %0, %c14_i32_693 : i32
    %c2_i32_694 = arith.constant 2 : i32
    %723 = arith.addi %722, %c2_i32_694 : i32
    %c0_695 = arith.constant 0 : index
    %c0_696 = arith.constant 0 : index
    %724 = arith.index_cast %723 : i32 to index
    %c2_697 = arith.constant 2 : index
    %725 = vector.load %arg2[%c0_695, %c0_696, %724, %c2_697] : memref<1x3x18x18xf32, #tpu.memory_space<vmem>>, vector<1x1x1x16xf32>
    %726 = vector.shape_cast %725 : vector<1x1x1x16xf32> to vector<1x16xf32>
    %c15_i32_698 = arith.constant 15 : i32
    %727 = arith.addi %0, %c15_i32_698 : i32
    %c2_i32_699 = arith.constant 2 : i32
    %728 = arith.addi %727, %c2_i32_699 : i32
    %c0_700 = arith.constant 0 : index
    %c0_701 = arith.constant 0 : index
    %729 = arith.index_cast %728 : i32 to index
    %c2_702 = arith.constant 2 : index
    %730 = vector.load %arg2[%c0_700, %c0_701, %729, %c2_702] : memref<1x3x18x18xf32, #tpu.memory_space<vmem>>, vector<1x1x1x16xf32>
    %731 = vector.shape_cast %730 : vector<1x1x1x16xf32> to vector<1x16xf32>
    %732 = tpu.concatenate %656, %661, %666, %671, %676, %681, %686, %691, %696, %701, %706, %711, %716, %721, %726, %731 in 1 : vector<1x16xf32>, vector<1x16xf32>, vector<1x16xf32>, vector<1x16xf32>, vector<1x16xf32>, vector<1x16xf32>, vector<1x16xf32>, vector<1x16xf32>, vector<1x16xf32>, vector<1x16xf32>, vector<1x16xf32>, vector<1x16xf32>, vector<1x16xf32>, vector<1x16xf32>, vector<1x16xf32>, vector<1x16xf32> -> vector<1x256xf32>
    %c0_i32_703 = arith.constant 0 : i32
    %733 = arith.addi %0, %c0_i32_703 : i32
    %c0_i32_704 = arith.constant 0 : i32
    %734 = arith.addi %733, %c0_i32_704 : i32
    %c0_705 = arith.constant 0 : index
    %c1_706 = arith.constant 1 : index
    %735 = arith.index_cast %734 : i32 to index
    %c0_707 = arith.constant 0 : index
    %736 = vector.load %arg2[%c0_705, %c1_706, %735, %c0_707] : memref<1x3x18x18xf32, #tpu.memory_space<vmem>>, vector<1x1x1x16xf32>
    %737 = vector.shape_cast %736 : vector<1x1x1x16xf32> to vector<1x16xf32>
    %c1_i32_708 = arith.constant 1 : i32
    %738 = arith.addi %0, %c1_i32_708 : i32
    %c0_i32_709 = arith.constant 0 : i32
    %739 = arith.addi %738, %c0_i32_709 : i32
    %c0_710 = arith.constant 0 : index
    %c1_711 = arith.constant 1 : index
    %740 = arith.index_cast %739 : i32 to index
    %c0_712 = arith.constant 0 : index
    %741 = vector.load %arg2[%c0_710, %c1_711, %740, %c0_712] : memref<1x3x18x18xf32, #tpu.memory_space<vmem>>, vector<1x1x1x16xf32>
    %742 = vector.shape_cast %741 : vector<1x1x1x16xf32> to vector<1x16xf32>
    %c2_i32_713 = arith.constant 2 : i32
    %743 = arith.addi %0, %c2_i32_713 : i32
    %c0_i32_714 = arith.constant 0 : i32
    %744 = arith.addi %743, %c0_i32_714 : i32
    %c0_715 = arith.constant 0 : index
    %c1_716 = arith.constant 1 : index
    %745 = arith.index_cast %744 : i32 to index
    %c0_717 = arith.constant 0 : index
    %746 = vector.load %arg2[%c0_715, %c1_716, %745, %c0_717] : memref<1x3x18x18xf32, #tpu.memory_space<vmem>>, vector<1x1x1x16xf32>
    %747 = vector.shape_cast %746 : vector<1x1x1x16xf32> to vector<1x16xf32>
    %c3_i32_718 = arith.constant 3 : i32
    %748 = arith.addi %0, %c3_i32_718 : i32
    %c0_i32_719 = arith.constant 0 : i32
    %749 = arith.addi %748, %c0_i32_719 : i32
    %c0_720 = arith.constant 0 : index
    %c1_721 = arith.constant 1 : index
    %750 = arith.index_cast %749 : i32 to index
    %c0_722 = arith.constant 0 : index
    %751 = vector.load %arg2[%c0_720, %c1_721, %750, %c0_722] : memref<1x3x18x18xf32, #tpu.memory_space<vmem>>, vector<1x1x1x16xf32>
    %752 = vector.shape_cast %751 : vector<1x1x1x16xf32> to vector<1x16xf32>
    %c4_i32_723 = arith.constant 4 : i32
    %753 = arith.addi %0, %c4_i32_723 : i32
    %c0_i32_724 = arith.constant 0 : i32
    %754 = arith.addi %753, %c0_i32_724 : i32
    %c0_725 = arith.constant 0 : index
    %c1_726 = arith.constant 1 : index
    %755 = arith.index_cast %754 : i32 to index
    %c0_727 = arith.constant 0 : index
    %756 = vector.load %arg2[%c0_725, %c1_726, %755, %c0_727] : memref<1x3x18x18xf32, #tpu.memory_space<vmem>>, vector<1x1x1x16xf32>
    %757 = vector.shape_cast %756 : vector<1x1x1x16xf32> to vector<1x16xf32>
    %c5_i32_728 = arith.constant 5 : i32
    %758 = arith.addi %0, %c5_i32_728 : i32
    %c0_i32_729 = arith.constant 0 : i32
    %759 = arith.addi %758, %c0_i32_729 : i32
    %c0_730 = arith.constant 0 : index
    %c1_731 = arith.constant 1 : index
    %760 = arith.index_cast %759 : i32 to index
    %c0_732 = arith.constant 0 : index
    %761 = vector.load %arg2[%c0_730, %c1_731, %760, %c0_732] : memref<1x3x18x18xf32, #tpu.memory_space<vmem>>, vector<1x1x1x16xf32>
    %762 = vector.shape_cast %761 : vector<1x1x1x16xf32> to vector<1x16xf32>
    %c6_i32_733 = arith.constant 6 : i32
    %763 = arith.addi %0, %c6_i32_733 : i32
    %c0_i32_734 = arith.constant 0 : i32
    %764 = arith.addi %763, %c0_i32_734 : i32
    %c0_735 = arith.constant 0 : index
    %c1_736 = arith.constant 1 : index
    %765 = arith.index_cast %764 : i32 to index
    %c0_737 = arith.constant 0 : index
    %766 = vector.load %arg2[%c0_735, %c1_736, %765, %c0_737] : memref<1x3x18x18xf32, #tpu.memory_space<vmem>>, vector<1x1x1x16xf32>
    %767 = vector.shape_cast %766 : vector<1x1x1x16xf32> to vector<1x16xf32>
    %c7_i32_738 = arith.constant 7 : i32
    %768 = arith.addi %0, %c7_i32_738 : i32
    %c0_i32_739 = arith.constant 0 : i32
    %769 = arith.addi %768, %c0_i32_739 : i32
    %c0_740 = arith.constant 0 : index
    %c1_741 = arith.constant 1 : index
    %770 = arith.index_cast %769 : i32 to index
    %c0_742 = arith.constant 0 : index
    %771 = vector.load %arg2[%c0_740, %c1_741, %770, %c0_742] : memref<1x3x18x18xf32, #tpu.memory_space<vmem>>, vector<1x1x1x16xf32>
    %772 = vector.shape_cast %771 : vector<1x1x1x16xf32> to vector<1x16xf32>
    %c8_i32_743 = arith.constant 8 : i32
    %773 = arith.addi %0, %c8_i32_743 : i32
    %c0_i32_744 = arith.constant 0 : i32
    %774 = arith.addi %773, %c0_i32_744 : i32
    %c0_745 = arith.constant 0 : index
    %c1_746 = arith.constant 1 : index
    %775 = arith.index_cast %774 : i32 to index
    %c0_747 = arith.constant 0 : index
    %776 = vector.load %arg2[%c0_745, %c1_746, %775, %c0_747] : memref<1x3x18x18xf32, #tpu.memory_space<vmem>>, vector<1x1x1x16xf32>
    %777 = vector.shape_cast %776 : vector<1x1x1x16xf32> to vector<1x16xf32>
    %c9_i32_748 = arith.constant 9 : i32
    %778 = arith.addi %0, %c9_i32_748 : i32
    %c0_i32_749 = arith.constant 0 : i32
    %779 = arith.addi %778, %c0_i32_749 : i32
    %c0_750 = arith.constant 0 : index
    %c1_751 = arith.constant 1 : index
    %780 = arith.index_cast %779 : i32 to index
    %c0_752 = arith.constant 0 : index
    %781 = vector.load %arg2[%c0_750, %c1_751, %780, %c0_752] : memref<1x3x18x18xf32, #tpu.memory_space<vmem>>, vector<1x1x1x16xf32>
    %782 = vector.shape_cast %781 : vector<1x1x1x16xf32> to vector<1x16xf32>
    %c10_i32_753 = arith.constant 10 : i32
    %783 = arith.addi %0, %c10_i32_753 : i32
    %c0_i32_754 = arith.constant 0 : i32
    %784 = arith.addi %783, %c0_i32_754 : i32
    %c0_755 = arith.constant 0 : index
    %c1_756 = arith.constant 1 : index
    %785 = arith.index_cast %784 : i32 to index
    %c0_757 = arith.constant 0 : index
    %786 = vector.load %arg2[%c0_755, %c1_756, %785, %c0_757] : memref<1x3x18x18xf32, #tpu.memory_space<vmem>>, vector<1x1x1x16xf32>
    %787 = vector.shape_cast %786 : vector<1x1x1x16xf32> to vector<1x16xf32>
    %c11_i32_758 = arith.constant 11 : i32
    %788 = arith.addi %0, %c11_i32_758 : i32
    %c0_i32_759 = arith.constant 0 : i32
    %789 = arith.addi %788, %c0_i32_759 : i32
    %c0_760 = arith.constant 0 : index
    %c1_761 = arith.constant 1 : index
    %790 = arith.index_cast %789 : i32 to index
    %c0_762 = arith.constant 0 : index
    %791 = vector.load %arg2[%c0_760, %c1_761, %790, %c0_762] : memref<1x3x18x18xf32, #tpu.memory_space<vmem>>, vector<1x1x1x16xf32>
    %792 = vector.shape_cast %791 : vector<1x1x1x16xf32> to vector<1x16xf32>
    %c12_i32_763 = arith.constant 12 : i32
    %793 = arith.addi %0, %c12_i32_763 : i32
    %c0_i32_764 = arith.constant 0 : i32
    %794 = arith.addi %793, %c0_i32_764 : i32
    %c0_765 = arith.constant 0 : index
    %c1_766 = arith.constant 1 : index
    %795 = arith.index_cast %794 : i32 to index
    %c0_767 = arith.constant 0 : index
    %796 = vector.load %arg2[%c0_765, %c1_766, %795, %c0_767] : memref<1x3x18x18xf32, #tpu.memory_space<vmem>>, vector<1x1x1x16xf32>
    %797 = vector.shape_cast %796 : vector<1x1x1x16xf32> to vector<1x16xf32>
    %c13_i32_768 = arith.constant 13 : i32
    %798 = arith.addi %0, %c13_i32_768 : i32
    %c0_i32_769 = arith.constant 0 : i32
    %799 = arith.addi %798, %c0_i32_769 : i32
    %c0_770 = arith.constant 0 : index
    %c1_771 = arith.constant 1 : index
    %800 = arith.index_cast %799 : i32 to index
    %c0_772 = arith.constant 0 : index
    %801 = vector.load %arg2[%c0_770, %c1_771, %800, %c0_772] : memref<1x3x18x18xf32, #tpu.memory_space<vmem>>, vector<1x1x1x16xf32>
    %802 = vector.shape_cast %801 : vector<1x1x1x16xf32> to vector<1x16xf32>
    %c14_i32_773 = arith.constant 14 : i32
    %803 = arith.addi %0, %c14_i32_773 : i32
    %c0_i32_774 = arith.constant 0 : i32
    %804 = arith.addi %803, %c0_i32_774 : i32
    %c0_775 = arith.constant 0 : index
    %c1_776 = arith.constant 1 : index
    %805 = arith.index_cast %804 : i32 to index
    %c0_777 = arith.constant 0 : index
    %806 = vector.load %arg2[%c0_775, %c1_776, %805, %c0_777] : memref<1x3x18x18xf32, #tpu.memory_space<vmem>>, vector<1x1x1x16xf32>
    %807 = vector.shape_cast %806 : vector<1x1x1x16xf32> to vector<1x16xf32>
    %c15_i32_778 = arith.constant 15 : i32
    %808 = arith.addi %0, %c15_i32_778 : i32
    %c0_i32_779 = arith.constant 0 : i32
    %809 = arith.addi %808, %c0_i32_779 : i32
    %c0_780 = arith.constant 0 : index
    %c1_781 = arith.constant 1 : index
    %810 = arith.index_cast %809 : i32 to index
    %c0_782 = arith.constant 0 : index
    %811 = vector.load %arg2[%c0_780, %c1_781, %810, %c0_782] : memref<1x3x18x18xf32, #tpu.memory_space<vmem>>, vector<1x1x1x16xf32>
    %812 = vector.shape_cast %811 : vector<1x1x1x16xf32> to vector<1x16xf32>
    %813 = tpu.concatenate %737, %742, %747, %752, %757, %762, %767, %772, %777, %782, %787, %792, %797, %802, %807, %812 in 1 : vector<1x16xf32>, vector<1x16xf32>, vector<1x16xf32>, vector<1x16xf32>, vector<1x16xf32>, vector<1x16xf32>, vector<1x16xf32>, vector<1x16xf32>, vector<1x16xf32>, vector<1x16xf32>, vector<1x16xf32>, vector<1x16xf32>, vector<1x16xf32>, vector<1x16xf32>, vector<1x16xf32>, vector<1x16xf32> -> vector<1x256xf32>
    %c0_i32_783 = arith.constant 0 : i32
    %814 = arith.addi %0, %c0_i32_783 : i32
    %c0_i32_784 = arith.constant 0 : i32
    %815 = arith.addi %814, %c0_i32_784 : i32
    %c0_785 = arith.constant 0 : index
    %c1_786 = arith.constant 1 : index
    %816 = arith.index_cast %815 : i32 to index
    %c1_787 = arith.constant 1 : index
    %817 = vector.load %arg2[%c0_785, %c1_786, %816, %c1_787] : memref<1x3x18x18xf32, #tpu.memory_space<vmem>>, vector<1x1x1x16xf32>
    %818 = vector.shape_cast %817 : vector<1x1x1x16xf32> to vector<1x16xf32>
    %c1_i32_788 = arith.constant 1 : i32
    %819 = arith.addi %0, %c1_i32_788 : i32
    %c0_i32_789 = arith.constant 0 : i32
    %820 = arith.addi %819, %c0_i32_789 : i32
    %c0_790 = arith.constant 0 : index
    %c1_791 = arith.constant 1 : index
    %821 = arith.index_cast %820 : i32 to index
    %c1_792 = arith.constant 1 : index
    %822 = vector.load %arg2[%c0_790, %c1_791, %821, %c1_792] : memref<1x3x18x18xf32, #tpu.memory_space<vmem>>, vector<1x1x1x16xf32>
    %823 = vector.shape_cast %822 : vector<1x1x1x16xf32> to vector<1x16xf32>
    %c2_i32_793 = arith.constant 2 : i32
    %824 = arith.addi %0, %c2_i32_793 : i32
    %c0_i32_794 = arith.constant 0 : i32
    %825 = arith.addi %824, %c0_i32_794 : i32
    %c0_795 = arith.constant 0 : index
    %c1_796 = arith.constant 1 : index
    %826 = arith.index_cast %825 : i32 to index
    %c1_797 = arith.constant 1 : index
    %827 = vector.load %arg2[%c0_795, %c1_796, %826, %c1_797] : memref<1x3x18x18xf32, #tpu.memory_space<vmem>>, vector<1x1x1x16xf32>
    %828 = vector.shape_cast %827 : vector<1x1x1x16xf32> to vector<1x16xf32>
    %c3_i32_798 = arith.constant 3 : i32
    %829 = arith.addi %0, %c3_i32_798 : i32
    %c0_i32_799 = arith.constant 0 : i32
    %830 = arith.addi %829, %c0_i32_799 : i32
    %c0_800 = arith.constant 0 : index
    %c1_801 = arith.constant 1 : index
    %831 = arith.index_cast %830 : i32 to index
    %c1_802 = arith.constant 1 : index
    %832 = vector.load %arg2[%c0_800, %c1_801, %831, %c1_802] : memref<1x3x18x18xf32, #tpu.memory_space<vmem>>, vector<1x1x1x16xf32>
    %833 = vector.shape_cast %832 : vector<1x1x1x16xf32> to vector<1x16xf32>
    %c4_i32_803 = arith.constant 4 : i32
    %834 = arith.addi %0, %c4_i32_803 : i32
    %c0_i32_804 = arith.constant 0 : i32
    %835 = arith.addi %834, %c0_i32_804 : i32
    %c0_805 = arith.constant 0 : index
    %c1_806 = arith.constant 1 : index
    %836 = arith.index_cast %835 : i32 to index
    %c1_807 = arith.constant 1 : index
    %837 = vector.load %arg2[%c0_805, %c1_806, %836, %c1_807] : memref<1x3x18x18xf32, #tpu.memory_space<vmem>>, vector<1x1x1x16xf32>
    %838 = vector.shape_cast %837 : vector<1x1x1x16xf32> to vector<1x16xf32>
    %c5_i32_808 = arith.constant 5 : i32
    %839 = arith.addi %0, %c5_i32_808 : i32
    %c0_i32_809 = arith.constant 0 : i32
    %840 = arith.addi %839, %c0_i32_809 : i32
    %c0_810 = arith.constant 0 : index
    %c1_811 = arith.constant 1 : index
    %841 = arith.index_cast %840 : i32 to index
    %c1_812 = arith.constant 1 : index
    %842 = vector.load %arg2[%c0_810, %c1_811, %841, %c1_812] : memref<1x3x18x18xf32, #tpu.memory_space<vmem>>, vector<1x1x1x16xf32>
    %843 = vector.shape_cast %842 : vector<1x1x1x16xf32> to vector<1x16xf32>
    %c6_i32_813 = arith.constant 6 : i32
    %844 = arith.addi %0, %c6_i32_813 : i32
    %c0_i32_814 = arith.constant 0 : i32
    %845 = arith.addi %844, %c0_i32_814 : i32
    %c0_815 = arith.constant 0 : index
    %c1_816 = arith.constant 1 : index
    %846 = arith.index_cast %845 : i32 to index
    %c1_817 = arith.constant 1 : index
    %847 = vector.load %arg2[%c0_815, %c1_816, %846, %c1_817] : memref<1x3x18x18xf32, #tpu.memory_space<vmem>>, vector<1x1x1x16xf32>
    %848 = vector.shape_cast %847 : vector<1x1x1x16xf32> to vector<1x16xf32>
    %c7_i32_818 = arith.constant 7 : i32
    %849 = arith.addi %0, %c7_i32_818 : i32
    %c0_i32_819 = arith.constant 0 : i32
    %850 = arith.addi %849, %c0_i32_819 : i32
    %c0_820 = arith.constant 0 : index
    %c1_821 = arith.constant 1 : index
    %851 = arith.index_cast %850 : i32 to index
    %c1_822 = arith.constant 1 : index
    %852 = vector.load %arg2[%c0_820, %c1_821, %851, %c1_822] : memref<1x3x18x18xf32, #tpu.memory_space<vmem>>, vector<1x1x1x16xf32>
    %853 = vector.shape_cast %852 : vector<1x1x1x16xf32> to vector<1x16xf32>
    %c8_i32_823 = arith.constant 8 : i32
    %854 = arith.addi %0, %c8_i32_823 : i32
    %c0_i32_824 = arith.constant 0 : i32
    %855 = arith.addi %854, %c0_i32_824 : i32
    %c0_825 = arith.constant 0 : index
    %c1_826 = arith.constant 1 : index
    %856 = arith.index_cast %855 : i32 to index
    %c1_827 = arith.constant 1 : index
    %857 = vector.load %arg2[%c0_825, %c1_826, %856, %c1_827] : memref<1x3x18x18xf32, #tpu.memory_space<vmem>>, vector<1x1x1x16xf32>
    %858 = vector.shape_cast %857 : vector<1x1x1x16xf32> to vector<1x16xf32>
    %c9_i32_828 = arith.constant 9 : i32
    %859 = arith.addi %0, %c9_i32_828 : i32
    %c0_i32_829 = arith.constant 0 : i32
    %860 = arith.addi %859, %c0_i32_829 : i32
    %c0_830 = arith.constant 0 : index
    %c1_831 = arith.constant 1 : index
    %861 = arith.index_cast %860 : i32 to index
    %c1_832 = arith.constant 1 : index
    %862 = vector.load %arg2[%c0_830, %c1_831, %861, %c1_832] : memref<1x3x18x18xf32, #tpu.memory_space<vmem>>, vector<1x1x1x16xf32>
    %863 = vector.shape_cast %862 : vector<1x1x1x16xf32> to vector<1x16xf32>
    %c10_i32_833 = arith.constant 10 : i32
    %864 = arith.addi %0, %c10_i32_833 : i32
    %c0_i32_834 = arith.constant 0 : i32
    %865 = arith.addi %864, %c0_i32_834 : i32
    %c0_835 = arith.constant 0 : index
    %c1_836 = arith.constant 1 : index
    %866 = arith.index_cast %865 : i32 to index
    %c1_837 = arith.constant 1 : index
    %867 = vector.load %arg2[%c0_835, %c1_836, %866, %c1_837] : memref<1x3x18x18xf32, #tpu.memory_space<vmem>>, vector<1x1x1x16xf32>
    %868 = vector.shape_cast %867 : vector<1x1x1x16xf32> to vector<1x16xf32>
    %c11_i32_838 = arith.constant 11 : i32
    %869 = arith.addi %0, %c11_i32_838 : i32
    %c0_i32_839 = arith.constant 0 : i32
    %870 = arith.addi %869, %c0_i32_839 : i32
    %c0_840 = arith.constant 0 : index
    %c1_841 = arith.constant 1 : index
    %871 = arith.index_cast %870 : i32 to index
    %c1_842 = arith.constant 1 : index
    %872 = vector.load %arg2[%c0_840, %c1_841, %871, %c1_842] : memref<1x3x18x18xf32, #tpu.memory_space<vmem>>, vector<1x1x1x16xf32>
    %873 = vector.shape_cast %872 : vector<1x1x1x16xf32> to vector<1x16xf32>
    %c12_i32_843 = arith.constant 12 : i32
    %874 = arith.addi %0, %c12_i32_843 : i32
    %c0_i32_844 = arith.constant 0 : i32
    %875 = arith.addi %874, %c0_i32_844 : i32
    %c0_845 = arith.constant 0 : index
    %c1_846 = arith.constant 1 : index
    %876 = arith.index_cast %875 : i32 to index
    %c1_847 = arith.constant 1 : index
    %877 = vector.load %arg2[%c0_845, %c1_846, %876, %c1_847] : memref<1x3x18x18xf32, #tpu.memory_space<vmem>>, vector<1x1x1x16xf32>
    %878 = vector.shape_cast %877 : vector<1x1x1x16xf32> to vector<1x16xf32>
    %c13_i32_848 = arith.constant 13 : i32
    %879 = arith.addi %0, %c13_i32_848 : i32
    %c0_i32_849 = arith.constant 0 : i32
    %880 = arith.addi %879, %c0_i32_849 : i32
    %c0_850 = arith.constant 0 : index
    %c1_851 = arith.constant 1 : index
    %881 = arith.index_cast %880 : i32 to index
    %c1_852 = arith.constant 1 : index
    %882 = vector.load %arg2[%c0_850, %c1_851, %881, %c1_852] : memref<1x3x18x18xf32, #tpu.memory_space<vmem>>, vector<1x1x1x16xf32>
    %883 = vector.shape_cast %882 : vector<1x1x1x16xf32> to vector<1x16xf32>
    %c14_i32_853 = arith.constant 14 : i32
    %884 = arith.addi %0, %c14_i32_853 : i32
    %c0_i32_854 = arith.constant 0 : i32
    %885 = arith.addi %884, %c0_i32_854 : i32
    %c0_855 = arith.constant 0 : index
    %c1_856 = arith.constant 1 : index
    %886 = arith.index_cast %885 : i32 to index
    %c1_857 = arith.constant 1 : index
    %887 = vector.load %arg2[%c0_855, %c1_856, %886, %c1_857] : memref<1x3x18x18xf32, #tpu.memory_space<vmem>>, vector<1x1x1x16xf32>
    %888 = vector.shape_cast %887 : vector<1x1x1x16xf32> to vector<1x16xf32>
    %c15_i32_858 = arith.constant 15 : i32
    %889 = arith.addi %0, %c15_i32_858 : i32
    %c0_i32_859 = arith.constant 0 : i32
    %890 = arith.addi %889, %c0_i32_859 : i32
    %c0_860 = arith.constant 0 : index
    %c1_861 = arith.constant 1 : index
    %891 = arith.index_cast %890 : i32 to index
    %c1_862 = arith.constant 1 : index
    %892 = vector.load %arg2[%c0_860, %c1_861, %891, %c1_862] : memref<1x3x18x18xf32, #tpu.memory_space<vmem>>, vector<1x1x1x16xf32>
    %893 = vector.shape_cast %892 : vector<1x1x1x16xf32> to vector<1x16xf32>
    %894 = tpu.concatenate %818, %823, %828, %833, %838, %843, %848, %853, %858, %863, %868, %873, %878, %883, %888, %893 in 1 : vector<1x16xf32>, vector<1x16xf32>, vector<1x16xf32>, vector<1x16xf32>, vector<1x16xf32>, vector<1x16xf32>, vector<1x16xf32>, vector<1x16xf32>, vector<1x16xf32>, vector<1x16xf32>, vector<1x16xf32>, vector<1x16xf32>, vector<1x16xf32>, vector<1x16xf32>, vector<1x16xf32>, vector<1x16xf32> -> vector<1x256xf32>
    %c0_i32_863 = arith.constant 0 : i32
    %895 = arith.addi %0, %c0_i32_863 : i32
    %c0_i32_864 = arith.constant 0 : i32
    %896 = arith.addi %895, %c0_i32_864 : i32
    %c0_865 = arith.constant 0 : index
    %c1_866 = arith.constant 1 : index
    %897 = arith.index_cast %896 : i32 to index
    %c2_867 = arith.constant 2 : index
    %898 = vector.load %arg2[%c0_865, %c1_866, %897, %c2_867] : memref<1x3x18x18xf32, #tpu.memory_space<vmem>>, vector<1x1x1x16xf32>
    %899 = vector.shape_cast %898 : vector<1x1x1x16xf32> to vector<1x16xf32>
    %c1_i32_868 = arith.constant 1 : i32
    %900 = arith.addi %0, %c1_i32_868 : i32
    %c0_i32_869 = arith.constant 0 : i32
    %901 = arith.addi %900, %c0_i32_869 : i32
    %c0_870 = arith.constant 0 : index
    %c1_871 = arith.constant 1 : index
    %902 = arith.index_cast %901 : i32 to index
    %c2_872 = arith.constant 2 : index
    %903 = vector.load %arg2[%c0_870, %c1_871, %902, %c2_872] : memref<1x3x18x18xf32, #tpu.memory_space<vmem>>, vector<1x1x1x16xf32>
    %904 = vector.shape_cast %903 : vector<1x1x1x16xf32> to vector<1x16xf32>
    %c2_i32_873 = arith.constant 2 : i32
    %905 = arith.addi %0, %c2_i32_873 : i32
    %c0_i32_874 = arith.constant 0 : i32
    %906 = arith.addi %905, %c0_i32_874 : i32
    %c0_875 = arith.constant 0 : index
    %c1_876 = arith.constant 1 : index
    %907 = arith.index_cast %906 : i32 to index
    %c2_877 = arith.constant 2 : index
    %908 = vector.load %arg2[%c0_875, %c1_876, %907, %c2_877] : memref<1x3x18x18xf32, #tpu.memory_space<vmem>>, vector<1x1x1x16xf32>
    %909 = vector.shape_cast %908 : vector<1x1x1x16xf32> to vector<1x16xf32>
    %c3_i32_878 = arith.constant 3 : i32
    %910 = arith.addi %0, %c3_i32_878 : i32
    %c0_i32_879 = arith.constant 0 : i32
    %911 = arith.addi %910, %c0_i32_879 : i32
    %c0_880 = arith.constant 0 : index
    %c1_881 = arith.constant 1 : index
    %912 = arith.index_cast %911 : i32 to index
    %c2_882 = arith.constant 2 : index
    %913 = vector.load %arg2[%c0_880, %c1_881, %912, %c2_882] : memref<1x3x18x18xf32, #tpu.memory_space<vmem>>, vector<1x1x1x16xf32>
    %914 = vector.shape_cast %913 : vector<1x1x1x16xf32> to vector<1x16xf32>
    %c4_i32_883 = arith.constant 4 : i32
    %915 = arith.addi %0, %c4_i32_883 : i32
    %c0_i32_884 = arith.constant 0 : i32
    %916 = arith.addi %915, %c0_i32_884 : i32
    %c0_885 = arith.constant 0 : index
    %c1_886 = arith.constant 1 : index
    %917 = arith.index_cast %916 : i32 to index
    %c2_887 = arith.constant 2 : index
    %918 = vector.load %arg2[%c0_885, %c1_886, %917, %c2_887] : memref<1x3x18x18xf32, #tpu.memory_space<vmem>>, vector<1x1x1x16xf32>
    %919 = vector.shape_cast %918 : vector<1x1x1x16xf32> to vector<1x16xf32>
    %c5_i32_888 = arith.constant 5 : i32
    %920 = arith.addi %0, %c5_i32_888 : i32
    %c0_i32_889 = arith.constant 0 : i32
    %921 = arith.addi %920, %c0_i32_889 : i32
    %c0_890 = arith.constant 0 : index
    %c1_891 = arith.constant 1 : index
    %922 = arith.index_cast %921 : i32 to index
    %c2_892 = arith.constant 2 : index
    %923 = vector.load %arg2[%c0_890, %c1_891, %922, %c2_892] : memref<1x3x18x18xf32, #tpu.memory_space<vmem>>, vector<1x1x1x16xf32>
    %924 = vector.shape_cast %923 : vector<1x1x1x16xf32> to vector<1x16xf32>
    %c6_i32_893 = arith.constant 6 : i32
    %925 = arith.addi %0, %c6_i32_893 : i32
    %c0_i32_894 = arith.constant 0 : i32
    %926 = arith.addi %925, %c0_i32_894 : i32
    %c0_895 = arith.constant 0 : index
    %c1_896 = arith.constant 1 : index
    %927 = arith.index_cast %926 : i32 to index
    %c2_897 = arith.constant 2 : index
    %928 = vector.load %arg2[%c0_895, %c1_896, %927, %c2_897] : memref<1x3x18x18xf32, #tpu.memory_space<vmem>>, vector<1x1x1x16xf32>
    %929 = vector.shape_cast %928 : vector<1x1x1x16xf32> to vector<1x16xf32>
    %c7_i32_898 = arith.constant 7 : i32
    %930 = arith.addi %0, %c7_i32_898 : i32
    %c0_i32_899 = arith.constant 0 : i32
    %931 = arith.addi %930, %c0_i32_899 : i32
    %c0_900 = arith.constant 0 : index
    %c1_901 = arith.constant 1 : index
    %932 = arith.index_cast %931 : i32 to index
    %c2_902 = arith.constant 2 : index
    %933 = vector.load %arg2[%c0_900, %c1_901, %932, %c2_902] : memref<1x3x18x18xf32, #tpu.memory_space<vmem>>, vector<1x1x1x16xf32>
    %934 = vector.shape_cast %933 : vector<1x1x1x16xf32> to vector<1x16xf32>
    %c8_i32_903 = arith.constant 8 : i32
    %935 = arith.addi %0, %c8_i32_903 : i32
    %c0_i32_904 = arith.constant 0 : i32
    %936 = arith.addi %935, %c0_i32_904 : i32
    %c0_905 = arith.constant 0 : index
    %c1_906 = arith.constant 1 : index
    %937 = arith.index_cast %936 : i32 to index
    %c2_907 = arith.constant 2 : index
    %938 = vector.load %arg2[%c0_905, %c1_906, %937, %c2_907] : memref<1x3x18x18xf32, #tpu.memory_space<vmem>>, vector<1x1x1x16xf32>
    %939 = vector.shape_cast %938 : vector<1x1x1x16xf32> to vector<1x16xf32>
    %c9_i32_908 = arith.constant 9 : i32
    %940 = arith.addi %0, %c9_i32_908 : i32
    %c0_i32_909 = arith.constant 0 : i32
    %941 = arith.addi %940, %c0_i32_909 : i32
    %c0_910 = arith.constant 0 : index
    %c1_911 = arith.constant 1 : index
    %942 = arith.index_cast %941 : i32 to index
    %c2_912 = arith.constant 2 : index
    %943 = vector.load %arg2[%c0_910, %c1_911, %942, %c2_912] : memref<1x3x18x18xf32, #tpu.memory_space<vmem>>, vector<1x1x1x16xf32>
    %944 = vector.shape_cast %943 : vector<1x1x1x16xf32> to vector<1x16xf32>
    %c10_i32_913 = arith.constant 10 : i32
    %945 = arith.addi %0, %c10_i32_913 : i32
    %c0_i32_914 = arith.constant 0 : i32
    %946 = arith.addi %945, %c0_i32_914 : i32
    %c0_915 = arith.constant 0 : index
    %c1_916 = arith.constant 1 : index
    %947 = arith.index_cast %946 : i32 to index
    %c2_917 = arith.constant 2 : index
    %948 = vector.load %arg2[%c0_915, %c1_916, %947, %c2_917] : memref<1x3x18x18xf32, #tpu.memory_space<vmem>>, vector<1x1x1x16xf32>
    %949 = vector.shape_cast %948 : vector<1x1x1x16xf32> to vector<1x16xf32>
    %c11_i32_918 = arith.constant 11 : i32
    %950 = arith.addi %0, %c11_i32_918 : i32
    %c0_i32_919 = arith.constant 0 : i32
    %951 = arith.addi %950, %c0_i32_919 : i32
    %c0_920 = arith.constant 0 : index
    %c1_921 = arith.constant 1 : index
    %952 = arith.index_cast %951 : i32 to index
    %c2_922 = arith.constant 2 : index
    %953 = vector.load %arg2[%c0_920, %c1_921, %952, %c2_922] : memref<1x3x18x18xf32, #tpu.memory_space<vmem>>, vector<1x1x1x16xf32>
    %954 = vector.shape_cast %953 : vector<1x1x1x16xf32> to vector<1x16xf32>
    %c12_i32_923 = arith.constant 12 : i32
    %955 = arith.addi %0, %c12_i32_923 : i32
    %c0_i32_924 = arith.constant 0 : i32
    %956 = arith.addi %955, %c0_i32_924 : i32
    %c0_925 = arith.constant 0 : index
    %c1_926 = arith.constant 1 : index
    %957 = arith.index_cast %956 : i32 to index
    %c2_927 = arith.constant 2 : index
    %958 = vector.load %arg2[%c0_925, %c1_926, %957, %c2_927] : memref<1x3x18x18xf32, #tpu.memory_space<vmem>>, vector<1x1x1x16xf32>
    %959 = vector.shape_cast %958 : vector<1x1x1x16xf32> to vector<1x16xf32>
    %c13_i32_928 = arith.constant 13 : i32
    %960 = arith.addi %0, %c13_i32_928 : i32
    %c0_i32_929 = arith.constant 0 : i32
    %961 = arith.addi %960, %c0_i32_929 : i32
    %c0_930 = arith.constant 0 : index
    %c1_931 = arith.constant 1 : index
    %962 = arith.index_cast %961 : i32 to index
    %c2_932 = arith.constant 2 : index
    %963 = vector.load %arg2[%c0_930, %c1_931, %962, %c2_932] : memref<1x3x18x18xf32, #tpu.memory_space<vmem>>, vector<1x1x1x16xf32>
    %964 = vector.shape_cast %963 : vector<1x1x1x16xf32> to vector<1x16xf32>
    %c14_i32_933 = arith.constant 14 : i32
    %965 = arith.addi %0, %c14_i32_933 : i32
    %c0_i32_934 = arith.constant 0 : i32
    %966 = arith.addi %965, %c0_i32_934 : i32
    %c0_935 = arith.constant 0 : index
    %c1_936 = arith.constant 1 : index
    %967 = arith.index_cast %966 : i32 to index
    %c2_937 = arith.constant 2 : index
    %968 = vector.load %arg2[%c0_935, %c1_936, %967, %c2_937] : memref<1x3x18x18xf32, #tpu.memory_space<vmem>>, vector<1x1x1x16xf32>
    %969 = vector.shape_cast %968 : vector<1x1x1x16xf32> to vector<1x16xf32>
    %c15_i32_938 = arith.constant 15 : i32
    %970 = arith.addi %0, %c15_i32_938 : i32
    %c0_i32_939 = arith.constant 0 : i32
    %971 = arith.addi %970, %c0_i32_939 : i32
    %c0_940 = arith.constant 0 : index
    %c1_941 = arith.constant 1 : index
    %972 = arith.index_cast %971 : i32 to index
    %c2_942 = arith.constant 2 : index
    %973 = vector.load %arg2[%c0_940, %c1_941, %972, %c2_942] : memref<1x3x18x18xf32, #tpu.memory_space<vmem>>, vector<1x1x1x16xf32>
    %974 = vector.shape_cast %973 : vector<1x1x1x16xf32> to vector<1x16xf32>
    %975 = tpu.concatenate %899, %904, %909, %914, %919, %924, %929, %934, %939, %944, %949, %954, %959, %964, %969, %974 in 1 : vector<1x16xf32>, vector<1x16xf32>, vector<1x16xf32>, vector<1x16xf32>, vector<1x16xf32>, vector<1x16xf32>, vector<1x16xf32>, vector<1x16xf32>, vector<1x16xf32>, vector<1x16xf32>, vector<1x16xf32>, vector<1x16xf32>, vector<1x16xf32>, vector<1x16xf32>, vector<1x16xf32>, vector<1x16xf32> -> vector<1x256xf32>
    %c0_i32_943 = arith.constant 0 : i32
    %976 = arith.addi %0, %c0_i32_943 : i32
    %c1_i32_944 = arith.constant 1 : i32
    %977 = arith.addi %976, %c1_i32_944 : i32
    %c0_945 = arith.constant 0 : index
    %c1_946 = arith.constant 1 : index
    %978 = arith.index_cast %977 : i32 to index
    %c0_947 = arith.constant 0 : index
    %979 = vector.load %arg2[%c0_945, %c1_946, %978, %c0_947] : memref<1x3x18x18xf32, #tpu.memory_space<vmem>>, vector<1x1x1x16xf32>
    %980 = vector.shape_cast %979 : vector<1x1x1x16xf32> to vector<1x16xf32>
    %c1_i32_948 = arith.constant 1 : i32
    %981 = arith.addi %0, %c1_i32_948 : i32
    %c1_i32_949 = arith.constant 1 : i32
    %982 = arith.addi %981, %c1_i32_949 : i32
    %c0_950 = arith.constant 0 : index
    %c1_951 = arith.constant 1 : index
    %983 = arith.index_cast %982 : i32 to index
    %c0_952 = arith.constant 0 : index
    %984 = vector.load %arg2[%c0_950, %c1_951, %983, %c0_952] : memref<1x3x18x18xf32, #tpu.memory_space<vmem>>, vector<1x1x1x16xf32>
    %985 = vector.shape_cast %984 : vector<1x1x1x16xf32> to vector<1x16xf32>
    %c2_i32_953 = arith.constant 2 : i32
    %986 = arith.addi %0, %c2_i32_953 : i32
    %c1_i32_954 = arith.constant 1 : i32
    %987 = arith.addi %986, %c1_i32_954 : i32
    %c0_955 = arith.constant 0 : index
    %c1_956 = arith.constant 1 : index
    %988 = arith.index_cast %987 : i32 to index
    %c0_957 = arith.constant 0 : index
    %989 = vector.load %arg2[%c0_955, %c1_956, %988, %c0_957] : memref<1x3x18x18xf32, #tpu.memory_space<vmem>>, vector<1x1x1x16xf32>
    %990 = vector.shape_cast %989 : vector<1x1x1x16xf32> to vector<1x16xf32>
    %c3_i32_958 = arith.constant 3 : i32
    %991 = arith.addi %0, %c3_i32_958 : i32
    %c1_i32_959 = arith.constant 1 : i32
    %992 = arith.addi %991, %c1_i32_959 : i32
    %c0_960 = arith.constant 0 : index
    %c1_961 = arith.constant 1 : index
    %993 = arith.index_cast %992 : i32 to index
    %c0_962 = arith.constant 0 : index
    %994 = vector.load %arg2[%c0_960, %c1_961, %993, %c0_962] : memref<1x3x18x18xf32, #tpu.memory_space<vmem>>, vector<1x1x1x16xf32>
    %995 = vector.shape_cast %994 : vector<1x1x1x16xf32> to vector<1x16xf32>
    %c4_i32_963 = arith.constant 4 : i32
    %996 = arith.addi %0, %c4_i32_963 : i32
    %c1_i32_964 = arith.constant 1 : i32
    %997 = arith.addi %996, %c1_i32_964 : i32
    %c0_965 = arith.constant 0 : index
    %c1_966 = arith.constant 1 : index
    %998 = arith.index_cast %997 : i32 to index
    %c0_967 = arith.constant 0 : index
    %999 = vector.load %arg2[%c0_965, %c1_966, %998, %c0_967] : memref<1x3x18x18xf32, #tpu.memory_space<vmem>>, vector<1x1x1x16xf32>
    %1000 = vector.shape_cast %999 : vector<1x1x1x16xf32> to vector<1x16xf32>
    %c5_i32_968 = arith.constant 5 : i32
    %1001 = arith.addi %0, %c5_i32_968 : i32
    %c1_i32_969 = arith.constant 1 : i32
    %1002 = arith.addi %1001, %c1_i32_969 : i32
    %c0_970 = arith.constant 0 : index
    %c1_971 = arith.constant 1 : index
    %1003 = arith.index_cast %1002 : i32 to index
    %c0_972 = arith.constant 0 : index
    %1004 = vector.load %arg2[%c0_970, %c1_971, %1003, %c0_972] : memref<1x3x18x18xf32, #tpu.memory_space<vmem>>, vector<1x1x1x16xf32>
    %1005 = vector.shape_cast %1004 : vector<1x1x1x16xf32> to vector<1x16xf32>
    %c6_i32_973 = arith.constant 6 : i32
    %1006 = arith.addi %0, %c6_i32_973 : i32
    %c1_i32_974 = arith.constant 1 : i32
    %1007 = arith.addi %1006, %c1_i32_974 : i32
    %c0_975 = arith.constant 0 : index
    %c1_976 = arith.constant 1 : index
    %1008 = arith.index_cast %1007 : i32 to index
    %c0_977 = arith.constant 0 : index
    %1009 = vector.load %arg2[%c0_975, %c1_976, %1008, %c0_977] : memref<1x3x18x18xf32, #tpu.memory_space<vmem>>, vector<1x1x1x16xf32>
    %1010 = vector.shape_cast %1009 : vector<1x1x1x16xf32> to vector<1x16xf32>
    %c7_i32_978 = arith.constant 7 : i32
    %1011 = arith.addi %0, %c7_i32_978 : i32
    %c1_i32_979 = arith.constant 1 : i32
    %1012 = arith.addi %1011, %c1_i32_979 : i32
    %c0_980 = arith.constant 0 : index
    %c1_981 = arith.constant 1 : index
    %1013 = arith.index_cast %1012 : i32 to index
    %c0_982 = arith.constant 0 : index
    %1014 = vector.load %arg2[%c0_980, %c1_981, %1013, %c0_982] : memref<1x3x18x18xf32, #tpu.memory_space<vmem>>, vector<1x1x1x16xf32>
    %1015 = vector.shape_cast %1014 : vector<1x1x1x16xf32> to vector<1x16xf32>
    %c8_i32_983 = arith.constant 8 : i32
    %1016 = arith.addi %0, %c8_i32_983 : i32
    %c1_i32_984 = arith.constant 1 : i32
    %1017 = arith.addi %1016, %c1_i32_984 : i32
    %c0_985 = arith.constant 0 : index
    %c1_986 = arith.constant 1 : index
    %1018 = arith.index_cast %1017 : i32 to index
    %c0_987 = arith.constant 0 : index
    %1019 = vector.load %arg2[%c0_985, %c1_986, %1018, %c0_987] : memref<1x3x18x18xf32, #tpu.memory_space<vmem>>, vector<1x1x1x16xf32>
    %1020 = vector.shape_cast %1019 : vector<1x1x1x16xf32> to vector<1x16xf32>
    %c9_i32_988 = arith.constant 9 : i32
    %1021 = arith.addi %0, %c9_i32_988 : i32
    %c1_i32_989 = arith.constant 1 : i32
    %1022 = arith.addi %1021, %c1_i32_989 : i32
    %c0_990 = arith.constant 0 : index
    %c1_991 = arith.constant 1 : index
    %1023 = arith.index_cast %1022 : i32 to index
    %c0_992 = arith.constant 0 : index
    %1024 = vector.load %arg2[%c0_990, %c1_991, %1023, %c0_992] : memref<1x3x18x18xf32, #tpu.memory_space<vmem>>, vector<1x1x1x16xf32>
    %1025 = vector.shape_cast %1024 : vector<1x1x1x16xf32> to vector<1x16xf32>
    %c10_i32_993 = arith.constant 10 : i32
    %1026 = arith.addi %0, %c10_i32_993 : i32
    %c1_i32_994 = arith.constant 1 : i32
    %1027 = arith.addi %1026, %c1_i32_994 : i32
    %c0_995 = arith.constant 0 : index
    %c1_996 = arith.constant 1 : index
    %1028 = arith.index_cast %1027 : i32 to index
    %c0_997 = arith.constant 0 : index
    %1029 = vector.load %arg2[%c0_995, %c1_996, %1028, %c0_997] : memref<1x3x18x18xf32, #tpu.memory_space<vmem>>, vector<1x1x1x16xf32>
    %1030 = vector.shape_cast %1029 : vector<1x1x1x16xf32> to vector<1x16xf32>
    %c11_i32_998 = arith.constant 11 : i32
    %1031 = arith.addi %0, %c11_i32_998 : i32
    %c1_i32_999 = arith.constant 1 : i32
    %1032 = arith.addi %1031, %c1_i32_999 : i32
    %c0_1000 = arith.constant 0 : index
    %c1_1001 = arith.constant 1 : index
    %1033 = arith.index_cast %1032 : i32 to index
    %c0_1002 = arith.constant 0 : index
    %1034 = vector.load %arg2[%c0_1000, %c1_1001, %1033, %c0_1002] : memref<1x3x18x18xf32, #tpu.memory_space<vmem>>, vector<1x1x1x16xf32>
    %1035 = vector.shape_cast %1034 : vector<1x1x1x16xf32> to vector<1x16xf32>
    %c12_i32_1003 = arith.constant 12 : i32
    %1036 = arith.addi %0, %c12_i32_1003 : i32
    %c1_i32_1004 = arith.constant 1 : i32
    %1037 = arith.addi %1036, %c1_i32_1004 : i32
    %c0_1005 = arith.constant 0 : index
    %c1_1006 = arith.constant 1 : index
    %1038 = arith.index_cast %1037 : i32 to index
    %c0_1007 = arith.constant 0 : index
    %1039 = vector.load %arg2[%c0_1005, %c1_1006, %1038, %c0_1007] : memref<1x3x18x18xf32, #tpu.memory_space<vmem>>, vector<1x1x1x16xf32>
    %1040 = vector.shape_cast %1039 : vector<1x1x1x16xf32> to vector<1x16xf32>
    %c13_i32_1008 = arith.constant 13 : i32
    %1041 = arith.addi %0, %c13_i32_1008 : i32
    %c1_i32_1009 = arith.constant 1 : i32
    %1042 = arith.addi %1041, %c1_i32_1009 : i32
    %c0_1010 = arith.constant 0 : index
    %c1_1011 = arith.constant 1 : index
    %1043 = arith.index_cast %1042 : i32 to index
    %c0_1012 = arith.constant 0 : index
    %1044 = vector.load %arg2[%c0_1010, %c1_1011, %1043, %c0_1012] : memref<1x3x18x18xf32, #tpu.memory_space<vmem>>, vector<1x1x1x16xf32>
    %1045 = vector.shape_cast %1044 : vector<1x1x1x16xf32> to vector<1x16xf32>
    %c14_i32_1013 = arith.constant 14 : i32
    %1046 = arith.addi %0, %c14_i32_1013 : i32
    %c1_i32_1014 = arith.constant 1 : i32
    %1047 = arith.addi %1046, %c1_i32_1014 : i32
    %c0_1015 = arith.constant 0 : index
    %c1_1016 = arith.constant 1 : index
    %1048 = arith.index_cast %1047 : i32 to index
    %c0_1017 = arith.constant 0 : index
    %1049 = vector.load %arg2[%c0_1015, %c1_1016, %1048, %c0_1017] : memref<1x3x18x18xf32, #tpu.memory_space<vmem>>, vector<1x1x1x16xf32>
    %1050 = vector.shape_cast %1049 : vector<1x1x1x16xf32> to vector<1x16xf32>
    %c15_i32_1018 = arith.constant 15 : i32
    %1051 = arith.addi %0, %c15_i32_1018 : i32
    %c1_i32_1019 = arith.constant 1 : i32
    %1052 = arith.addi %1051, %c1_i32_1019 : i32
    %c0_1020 = arith.constant 0 : index
    %c1_1021 = arith.constant 1 : index
    %1053 = arith.index_cast %1052 : i32 to index
    %c0_1022 = arith.constant 0 : index
    %1054 = vector.load %arg2[%c0_1020, %c1_1021, %1053, %c0_1022] : memref<1x3x18x18xf32, #tpu.memory_space<vmem>>, vector<1x1x1x16xf32>
    %1055 = vector.shape_cast %1054 : vector<1x1x1x16xf32> to vector<1x16xf32>
    %1056 = tpu.concatenate %980, %985, %990, %995, %1000, %1005, %1010, %1015, %1020, %1025, %1030, %1035, %1040, %1045, %1050, %1055 in 1 : vector<1x16xf32>, vector<1x16xf32>, vector<1x16xf32>, vector<1x16xf32>, vector<1x16xf32>, vector<1x16xf32>, vector<1x16xf32>, vector<1x16xf32>, vector<1x16xf32>, vector<1x16xf32>, vector<1x16xf32>, vector<1x16xf32>, vector<1x16xf32>, vector<1x16xf32>, vector<1x16xf32>, vector<1x16xf32> -> vector<1x256xf32>
    %c0_i32_1023 = arith.constant 0 : i32
    %1057 = arith.addi %0, %c0_i32_1023 : i32
    %c1_i32_1024 = arith.constant 1 : i32
    %1058 = arith.addi %1057, %c1_i32_1024 : i32
    %c0_1025 = arith.constant 0 : index
    %c1_1026 = arith.constant 1 : index
    %1059 = arith.index_cast %1058 : i32 to index
    %c1_1027 = arith.constant 1 : index
    %1060 = vector.load %arg2[%c0_1025, %c1_1026, %1059, %c1_1027] : memref<1x3x18x18xf32, #tpu.memory_space<vmem>>, vector<1x1x1x16xf32>
    %1061 = vector.shape_cast %1060 : vector<1x1x1x16xf32> to vector<1x16xf32>
    %c1_i32_1028 = arith.constant 1 : i32
    %1062 = arith.addi %0, %c1_i32_1028 : i32
    %c1_i32_1029 = arith.constant 1 : i32
    %1063 = arith.addi %1062, %c1_i32_1029 : i32
    %c0_1030 = arith.constant 0 : index
    %c1_1031 = arith.constant 1 : index
    %1064 = arith.index_cast %1063 : i32 to index
    %c1_1032 = arith.constant 1 : index
    %1065 = vector.load %arg2[%c0_1030, %c1_1031, %1064, %c1_1032] : memref<1x3x18x18xf32, #tpu.memory_space<vmem>>, vector<1x1x1x16xf32>
    %1066 = vector.shape_cast %1065 : vector<1x1x1x16xf32> to vector<1x16xf32>
    %c2_i32_1033 = arith.constant 2 : i32
    %1067 = arith.addi %0, %c2_i32_1033 : i32
    %c1_i32_1034 = arith.constant 1 : i32
    %1068 = arith.addi %1067, %c1_i32_1034 : i32
    %c0_1035 = arith.constant 0 : index
    %c1_1036 = arith.constant 1 : index
    %1069 = arith.index_cast %1068 : i32 to index
    %c1_1037 = arith.constant 1 : index
    %1070 = vector.load %arg2[%c0_1035, %c1_1036, %1069, %c1_1037] : memref<1x3x18x18xf32, #tpu.memory_space<vmem>>, vector<1x1x1x16xf32>
    %1071 = vector.shape_cast %1070 : vector<1x1x1x16xf32> to vector<1x16xf32>
    %c3_i32_1038 = arith.constant 3 : i32
    %1072 = arith.addi %0, %c3_i32_1038 : i32
    %c1_i32_1039 = arith.constant 1 : i32
    %1073 = arith.addi %1072, %c1_i32_1039 : i32
    %c0_1040 = arith.constant 0 : index
    %c1_1041 = arith.constant 1 : index
    %1074 = arith.index_cast %1073 : i32 to index
    %c1_1042 = arith.constant 1 : index
    %1075 = vector.load %arg2[%c0_1040, %c1_1041, %1074, %c1_1042] : memref<1x3x18x18xf32, #tpu.memory_space<vmem>>, vector<1x1x1x16xf32>
    %1076 = vector.shape_cast %1075 : vector<1x1x1x16xf32> to vector<1x16xf32>
    %c4_i32_1043 = arith.constant 4 : i32
    %1077 = arith.addi %0, %c4_i32_1043 : i32
    %c1_i32_1044 = arith.constant 1 : i32
    %1078 = arith.addi %1077, %c1_i32_1044 : i32
    %c0_1045 = arith.constant 0 : index
    %c1_1046 = arith.constant 1 : index
    %1079 = arith.index_cast %1078 : i32 to index
    %c1_1047 = arith.constant 1 : index
    %1080 = vector.load %arg2[%c0_1045, %c1_1046, %1079, %c1_1047] : memref<1x3x18x18xf32, #tpu.memory_space<vmem>>, vector<1x1x1x16xf32>
    %1081 = vector.shape_cast %1080 : vector<1x1x1x16xf32> to vector<1x16xf32>
    %c5_i32_1048 = arith.constant 5 : i32
    %1082 = arith.addi %0, %c5_i32_1048 : i32
    %c1_i32_1049 = arith.constant 1 : i32
    %1083 = arith.addi %1082, %c1_i32_1049 : i32
    %c0_1050 = arith.constant 0 : index
    %c1_1051 = arith.constant 1 : index
    %1084 = arith.index_cast %1083 : i32 to index
    %c1_1052 = arith.constant 1 : index
    %1085 = vector.load %arg2[%c0_1050, %c1_1051, %1084, %c1_1052] : memref<1x3x18x18xf32, #tpu.memory_space<vmem>>, vector<1x1x1x16xf32>
    %1086 = vector.shape_cast %1085 : vector<1x1x1x16xf32> to vector<1x16xf32>
    %c6_i32_1053 = arith.constant 6 : i32
    %1087 = arith.addi %0, %c6_i32_1053 : i32
    %c1_i32_1054 = arith.constant 1 : i32
    %1088 = arith.addi %1087, %c1_i32_1054 : i32
    %c0_1055 = arith.constant 0 : index
    %c1_1056 = arith.constant 1 : index
    %1089 = arith.index_cast %1088 : i32 to index
    %c1_1057 = arith.constant 1 : index
    %1090 = vector.load %arg2[%c0_1055, %c1_1056, %1089, %c1_1057] : memref<1x3x18x18xf32, #tpu.memory_space<vmem>>, vector<1x1x1x16xf32>
    %1091 = vector.shape_cast %1090 : vector<1x1x1x16xf32> to vector<1x16xf32>
    %c7_i32_1058 = arith.constant 7 : i32
    %1092 = arith.addi %0, %c7_i32_1058 : i32
    %c1_i32_1059 = arith.constant 1 : i32
    %1093 = arith.addi %1092, %c1_i32_1059 : i32
    %c0_1060 = arith.constant 0 : index
    %c1_1061 = arith.constant 1 : index
    %1094 = arith.index_cast %1093 : i32 to index
    %c1_1062 = arith.constant 1 : index
    %1095 = vector.load %arg2[%c0_1060, %c1_1061, %1094, %c1_1062] : memref<1x3x18x18xf32, #tpu.memory_space<vmem>>, vector<1x1x1x16xf32>
    %1096 = vector.shape_cast %1095 : vector<1x1x1x16xf32> to vector<1x16xf32>
    %c8_i32_1063 = arith.constant 8 : i32
    %1097 = arith.addi %0, %c8_i32_1063 : i32
    %c1_i32_1064 = arith.constant 1 : i32
    %1098 = arith.addi %1097, %c1_i32_1064 : i32
    %c0_1065 = arith.constant 0 : index
    %c1_1066 = arith.constant 1 : index
    %1099 = arith.index_cast %1098 : i32 to index
    %c1_1067 = arith.constant 1 : index
    %1100 = vector.load %arg2[%c0_1065, %c1_1066, %1099, %c1_1067] : memref<1x3x18x18xf32, #tpu.memory_space<vmem>>, vector<1x1x1x16xf32>
    %1101 = vector.shape_cast %1100 : vector<1x1x1x16xf32> to vector<1x16xf32>
    %c9_i32_1068 = arith.constant 9 : i32
    %1102 = arith.addi %0, %c9_i32_1068 : i32
    %c1_i32_1069 = arith.constant 1 : i32
    %1103 = arith.addi %1102, %c1_i32_1069 : i32
    %c0_1070 = arith.constant 0 : index
    %c1_1071 = arith.constant 1 : index
    %1104 = arith.index_cast %1103 : i32 to index
    %c1_1072 = arith.constant 1 : index
    %1105 = vector.load %arg2[%c0_1070, %c1_1071, %1104, %c1_1072] : memref<1x3x18x18xf32, #tpu.memory_space<vmem>>, vector<1x1x1x16xf32>
    %1106 = vector.shape_cast %1105 : vector<1x1x1x16xf32> to vector<1x16xf32>
    %c10_i32_1073 = arith.constant 10 : i32
    %1107 = arith.addi %0, %c10_i32_1073 : i32
    %c1_i32_1074 = arith.constant 1 : i32
    %1108 = arith.addi %1107, %c1_i32_1074 : i32
    %c0_1075 = arith.constant 0 : index
    %c1_1076 = arith.constant 1 : index
    %1109 = arith.index_cast %1108 : i32 to index
    %c1_1077 = arith.constant 1 : index
    %1110 = vector.load %arg2[%c0_1075, %c1_1076, %1109, %c1_1077] : memref<1x3x18x18xf32, #tpu.memory_space<vmem>>, vector<1x1x1x16xf32>
    %1111 = vector.shape_cast %1110 : vector<1x1x1x16xf32> to vector<1x16xf32>
    %c11_i32_1078 = arith.constant 11 : i32
    %1112 = arith.addi %0, %c11_i32_1078 : i32
    %c1_i32_1079 = arith.constant 1 : i32
    %1113 = arith.addi %1112, %c1_i32_1079 : i32
    %c0_1080 = arith.constant 0 : index
    %c1_1081 = arith.constant 1 : index
    %1114 = arith.index_cast %1113 : i32 to index
    %c1_1082 = arith.constant 1 : index
    %1115 = vector.load %arg2[%c0_1080, %c1_1081, %1114, %c1_1082] : memref<1x3x18x18xf32, #tpu.memory_space<vmem>>, vector<1x1x1x16xf32>
    %1116 = vector.shape_cast %1115 : vector<1x1x1x16xf32> to vector<1x16xf32>
    %c12_i32_1083 = arith.constant 12 : i32
    %1117 = arith.addi %0, %c12_i32_1083 : i32
    %c1_i32_1084 = arith.constant 1 : i32
    %1118 = arith.addi %1117, %c1_i32_1084 : i32
    %c0_1085 = arith.constant 0 : index
    %c1_1086 = arith.constant 1 : index
    %1119 = arith.index_cast %1118 : i32 to index
    %c1_1087 = arith.constant 1 : index
    %1120 = vector.load %arg2[%c0_1085, %c1_1086, %1119, %c1_1087] : memref<1x3x18x18xf32, #tpu.memory_space<vmem>>, vector<1x1x1x16xf32>
    %1121 = vector.shape_cast %1120 : vector<1x1x1x16xf32> to vector<1x16xf32>
    %c13_i32_1088 = arith.constant 13 : i32
    %1122 = arith.addi %0, %c13_i32_1088 : i32
    %c1_i32_1089 = arith.constant 1 : i32
    %1123 = arith.addi %1122, %c1_i32_1089 : i32
    %c0_1090 = arith.constant 0 : index
    %c1_1091 = arith.constant 1 : index
    %1124 = arith.index_cast %1123 : i32 to index
    %c1_1092 = arith.constant 1 : index
    %1125 = vector.load %arg2[%c0_1090, %c1_1091, %1124, %c1_1092] : memref<1x3x18x18xf32, #tpu.memory_space<vmem>>, vector<1x1x1x16xf32>
    %1126 = vector.shape_cast %1125 : vector<1x1x1x16xf32> to vector<1x16xf32>
    %c14_i32_1093 = arith.constant 14 : i32
    %1127 = arith.addi %0, %c14_i32_1093 : i32
    %c1_i32_1094 = arith.constant 1 : i32
    %1128 = arith.addi %1127, %c1_i32_1094 : i32
    %c0_1095 = arith.constant 0 : index
    %c1_1096 = arith.constant 1 : index
    %1129 = arith.index_cast %1128 : i32 to index
    %c1_1097 = arith.constant 1 : index
    %1130 = vector.load %arg2[%c0_1095, %c1_1096, %1129, %c1_1097] : memref<1x3x18x18xf32, #tpu.memory_space<vmem>>, vector<1x1x1x16xf32>
    %1131 = vector.shape_cast %1130 : vector<1x1x1x16xf32> to vector<1x16xf32>
    %c15_i32_1098 = arith.constant 15 : i32
    %1132 = arith.addi %0, %c15_i32_1098 : i32
    %c1_i32_1099 = arith.constant 1 : i32
    %1133 = arith.addi %1132, %c1_i32_1099 : i32
    %c0_1100 = arith.constant 0 : index
    %c1_1101 = arith.constant 1 : index
    %1134 = arith.index_cast %1133 : i32 to index
    %c1_1102 = arith.constant 1 : index
    %1135 = vector.load %arg2[%c0_1100, %c1_1101, %1134, %c1_1102] : memref<1x3x18x18xf32, #tpu.memory_space<vmem>>, vector<1x1x1x16xf32>
    %1136 = vector.shape_cast %1135 : vector<1x1x1x16xf32> to vector<1x16xf32>
    %1137 = tpu.concatenate %1061, %1066, %1071, %1076, %1081, %1086, %1091, %1096, %1101, %1106, %1111, %1116, %1121, %1126, %1131, %1136 in 1 : vector<1x16xf32>, vector<1x16xf32>, vector<1x16xf32>, vector<1x16xf32>, vector<1x16xf32>, vector<1x16xf32>, vector<1x16xf32>, vector<1x16xf32>, vector<1x16xf32>, vector<1x16xf32>, vector<1x16xf32>, vector<1x16xf32>, vector<1x16xf32>, vector<1x16xf32>, vector<1x16xf32>, vector<1x16xf32> -> vector<1x256xf32>
    %c0_i32_1103 = arith.constant 0 : i32
    %1138 = arith.addi %0, %c0_i32_1103 : i32
    %c1_i32_1104 = arith.constant 1 : i32
    %1139 = arith.addi %1138, %c1_i32_1104 : i32
    %c0_1105 = arith.constant 0 : index
    %c1_1106 = arith.constant 1 : index
    %1140 = arith.index_cast %1139 : i32 to index
    %c2_1107 = arith.constant 2 : index
    %1141 = vector.load %arg2[%c0_1105, %c1_1106, %1140, %c2_1107] : memref<1x3x18x18xf32, #tpu.memory_space<vmem>>, vector<1x1x1x16xf32>
    %1142 = vector.shape_cast %1141 : vector<1x1x1x16xf32> to vector<1x16xf32>
    %c1_i32_1108 = arith.constant 1 : i32
    %1143 = arith.addi %0, %c1_i32_1108 : i32
    %c1_i32_1109 = arith.constant 1 : i32
    %1144 = arith.addi %1143, %c1_i32_1109 : i32
    %c0_1110 = arith.constant 0 : index
    %c1_1111 = arith.constant 1 : index
    %1145 = arith.index_cast %1144 : i32 to index
    %c2_1112 = arith.constant 2 : index
    %1146 = vector.load %arg2[%c0_1110, %c1_1111, %1145, %c2_1112] : memref<1x3x18x18xf32, #tpu.memory_space<vmem>>, vector<1x1x1x16xf32>
    %1147 = vector.shape_cast %1146 : vector<1x1x1x16xf32> to vector<1x16xf32>
    %c2_i32_1113 = arith.constant 2 : i32
    %1148 = arith.addi %0, %c2_i32_1113 : i32
    %c1_i32_1114 = arith.constant 1 : i32
    %1149 = arith.addi %1148, %c1_i32_1114 : i32
    %c0_1115 = arith.constant 0 : index
    %c1_1116 = arith.constant 1 : index
    %1150 = arith.index_cast %1149 : i32 to index
    %c2_1117 = arith.constant 2 : index
    %1151 = vector.load %arg2[%c0_1115, %c1_1116, %1150, %c2_1117] : memref<1x3x18x18xf32, #tpu.memory_space<vmem>>, vector<1x1x1x16xf32>
    %1152 = vector.shape_cast %1151 : vector<1x1x1x16xf32> to vector<1x16xf32>
    %c3_i32_1118 = arith.constant 3 : i32
    %1153 = arith.addi %0, %c3_i32_1118 : i32
    %c1_i32_1119 = arith.constant 1 : i32
    %1154 = arith.addi %1153, %c1_i32_1119 : i32
    %c0_1120 = arith.constant 0 : index
    %c1_1121 = arith.constant 1 : index
    %1155 = arith.index_cast %1154 : i32 to index
    %c2_1122 = arith.constant 2 : index
    %1156 = vector.load %arg2[%c0_1120, %c1_1121, %1155, %c2_1122] : memref<1x3x18x18xf32, #tpu.memory_space<vmem>>, vector<1x1x1x16xf32>
    %1157 = vector.shape_cast %1156 : vector<1x1x1x16xf32> to vector<1x16xf32>
    %c4_i32_1123 = arith.constant 4 : i32
    %1158 = arith.addi %0, %c4_i32_1123 : i32
    %c1_i32_1124 = arith.constant 1 : i32
    %1159 = arith.addi %1158, %c1_i32_1124 : i32
    %c0_1125 = arith.constant 0 : index
    %c1_1126 = arith.constant 1 : index
    %1160 = arith.index_cast %1159 : i32 to index
    %c2_1127 = arith.constant 2 : index
    %1161 = vector.load %arg2[%c0_1125, %c1_1126, %1160, %c2_1127] : memref<1x3x18x18xf32, #tpu.memory_space<vmem>>, vector<1x1x1x16xf32>
    %1162 = vector.shape_cast %1161 : vector<1x1x1x16xf32> to vector<1x16xf32>
    %c5_i32_1128 = arith.constant 5 : i32
    %1163 = arith.addi %0, %c5_i32_1128 : i32
    %c1_i32_1129 = arith.constant 1 : i32
    %1164 = arith.addi %1163, %c1_i32_1129 : i32
    %c0_1130 = arith.constant 0 : index
    %c1_1131 = arith.constant 1 : index
    %1165 = arith.index_cast %1164 : i32 to index
    %c2_1132 = arith.constant 2 : index
    %1166 = vector.load %arg2[%c0_1130, %c1_1131, %1165, %c2_1132] : memref<1x3x18x18xf32, #tpu.memory_space<vmem>>, vector<1x1x1x16xf32>
    %1167 = vector.shape_cast %1166 : vector<1x1x1x16xf32> to vector<1x16xf32>
    %c6_i32_1133 = arith.constant 6 : i32
    %1168 = arith.addi %0, %c6_i32_1133 : i32
    %c1_i32_1134 = arith.constant 1 : i32
    %1169 = arith.addi %1168, %c1_i32_1134 : i32
    %c0_1135 = arith.constant 0 : index
    %c1_1136 = arith.constant 1 : index
    %1170 = arith.index_cast %1169 : i32 to index
    %c2_1137 = arith.constant 2 : index
    %1171 = vector.load %arg2[%c0_1135, %c1_1136, %1170, %c2_1137] : memref<1x3x18x18xf32, #tpu.memory_space<vmem>>, vector<1x1x1x16xf32>
    %1172 = vector.shape_cast %1171 : vector<1x1x1x16xf32> to vector<1x16xf32>
    %c7_i32_1138 = arith.constant 7 : i32
    %1173 = arith.addi %0, %c7_i32_1138 : i32
    %c1_i32_1139 = arith.constant 1 : i32
    %1174 = arith.addi %1173, %c1_i32_1139 : i32
    %c0_1140 = arith.constant 0 : index
    %c1_1141 = arith.constant 1 : index
    %1175 = arith.index_cast %1174 : i32 to index
    %c2_1142 = arith.constant 2 : index
    %1176 = vector.load %arg2[%c0_1140, %c1_1141, %1175, %c2_1142] : memref<1x3x18x18xf32, #tpu.memory_space<vmem>>, vector<1x1x1x16xf32>
    %1177 = vector.shape_cast %1176 : vector<1x1x1x16xf32> to vector<1x16xf32>
    %c8_i32_1143 = arith.constant 8 : i32
    %1178 = arith.addi %0, %c8_i32_1143 : i32
    %c1_i32_1144 = arith.constant 1 : i32
    %1179 = arith.addi %1178, %c1_i32_1144 : i32
    %c0_1145 = arith.constant 0 : index
    %c1_1146 = arith.constant 1 : index
    %1180 = arith.index_cast %1179 : i32 to index
    %c2_1147 = arith.constant 2 : index
    %1181 = vector.load %arg2[%c0_1145, %c1_1146, %1180, %c2_1147] : memref<1x3x18x18xf32, #tpu.memory_space<vmem>>, vector<1x1x1x16xf32>
    %1182 = vector.shape_cast %1181 : vector<1x1x1x16xf32> to vector<1x16xf32>
    %c9_i32_1148 = arith.constant 9 : i32
    %1183 = arith.addi %0, %c9_i32_1148 : i32
    %c1_i32_1149 = arith.constant 1 : i32
    %1184 = arith.addi %1183, %c1_i32_1149 : i32
    %c0_1150 = arith.constant 0 : index
    %c1_1151 = arith.constant 1 : index
    %1185 = arith.index_cast %1184 : i32 to index
    %c2_1152 = arith.constant 2 : index
    %1186 = vector.load %arg2[%c0_1150, %c1_1151, %1185, %c2_1152] : memref<1x3x18x18xf32, #tpu.memory_space<vmem>>, vector<1x1x1x16xf32>
    %1187 = vector.shape_cast %1186 : vector<1x1x1x16xf32> to vector<1x16xf32>
    %c10_i32_1153 = arith.constant 10 : i32
    %1188 = arith.addi %0, %c10_i32_1153 : i32
    %c1_i32_1154 = arith.constant 1 : i32
    %1189 = arith.addi %1188, %c1_i32_1154 : i32
    %c0_1155 = arith.constant 0 : index
    %c1_1156 = arith.constant 1 : index
    %1190 = arith.index_cast %1189 : i32 to index
    %c2_1157 = arith.constant 2 : index
    %1191 = vector.load %arg2[%c0_1155, %c1_1156, %1190, %c2_1157] : memref<1x3x18x18xf32, #tpu.memory_space<vmem>>, vector<1x1x1x16xf32>
    %1192 = vector.shape_cast %1191 : vector<1x1x1x16xf32> to vector<1x16xf32>
    %c11_i32_1158 = arith.constant 11 : i32
    %1193 = arith.addi %0, %c11_i32_1158 : i32
    %c1_i32_1159 = arith.constant 1 : i32
    %1194 = arith.addi %1193, %c1_i32_1159 : i32
    %c0_1160 = arith.constant 0 : index
    %c1_1161 = arith.constant 1 : index
    %1195 = arith.index_cast %1194 : i32 to index
    %c2_1162 = arith.constant 2 : index
    %1196 = vector.load %arg2[%c0_1160, %c1_1161, %1195, %c2_1162] : memref<1x3x18x18xf32, #tpu.memory_space<vmem>>, vector<1x1x1x16xf32>
    %1197 = vector.shape_cast %1196 : vector<1x1x1x16xf32> to vector<1x16xf32>
    %c12_i32_1163 = arith.constant 12 : i32
    %1198 = arith.addi %0, %c12_i32_1163 : i32
    %c1_i32_1164 = arith.constant 1 : i32
    %1199 = arith.addi %1198, %c1_i32_1164 : i32
    %c0_1165 = arith.constant 0 : index
    %c1_1166 = arith.constant 1 : index
    %1200 = arith.index_cast %1199 : i32 to index
    %c2_1167 = arith.constant 2 : index
    %1201 = vector.load %arg2[%c0_1165, %c1_1166, %1200, %c2_1167] : memref<1x3x18x18xf32, #tpu.memory_space<vmem>>, vector<1x1x1x16xf32>
    %1202 = vector.shape_cast %1201 : vector<1x1x1x16xf32> to vector<1x16xf32>
    %c13_i32_1168 = arith.constant 13 : i32
    %1203 = arith.addi %0, %c13_i32_1168 : i32
    %c1_i32_1169 = arith.constant 1 : i32
    %1204 = arith.addi %1203, %c1_i32_1169 : i32
    %c0_1170 = arith.constant 0 : index
    %c1_1171 = arith.constant 1 : index
    %1205 = arith.index_cast %1204 : i32 to index
    %c2_1172 = arith.constant 2 : index
    %1206 = vector.load %arg2[%c0_1170, %c1_1171, %1205, %c2_1172] : memref<1x3x18x18xf32, #tpu.memory_space<vmem>>, vector<1x1x1x16xf32>
    %1207 = vector.shape_cast %1206 : vector<1x1x1x16xf32> to vector<1x16xf32>
    %c14_i32_1173 = arith.constant 14 : i32
    %1208 = arith.addi %0, %c14_i32_1173 : i32
    %c1_i32_1174 = arith.constant 1 : i32
    %1209 = arith.addi %1208, %c1_i32_1174 : i32
    %c0_1175 = arith.constant 0 : index
    %c1_1176 = arith.constant 1 : index
    %1210 = arith.index_cast %1209 : i32 to index
    %c2_1177 = arith.constant 2 : index
    %1211 = vector.load %arg2[%c0_1175, %c1_1176, %1210, %c2_1177] : memref<1x3x18x18xf32, #tpu.memory_space<vmem>>, vector<1x1x1x16xf32>
    %1212 = vector.shape_cast %1211 : vector<1x1x1x16xf32> to vector<1x16xf32>
    %c15_i32_1178 = arith.constant 15 : i32
    %1213 = arith.addi %0, %c15_i32_1178 : i32
    %c1_i32_1179 = arith.constant 1 : i32
    %1214 = arith.addi %1213, %c1_i32_1179 : i32
    %c0_1180 = arith.constant 0 : index
    %c1_1181 = arith.constant 1 : index
    %1215 = arith.index_cast %1214 : i32 to index
    %c2_1182 = arith.constant 2 : index
    %1216 = vector.load %arg2[%c0_1180, %c1_1181, %1215, %c2_1182] : memref<1x3x18x18xf32, #tpu.memory_space<vmem>>, vector<1x1x1x16xf32>
    %1217 = vector.shape_cast %1216 : vector<1x1x1x16xf32> to vector<1x16xf32>
    %1218 = tpu.concatenate %1142, %1147, %1152, %1157, %1162, %1167, %1172, %1177, %1182, %1187, %1192, %1197, %1202, %1207, %1212, %1217 in 1 : vector<1x16xf32>, vector<1x16xf32>, vector<1x16xf32>, vector<1x16xf32>, vector<1x16xf32>, vector<1x16xf32>, vector<1x16xf32>, vector<1x16xf32>, vector<1x16xf32>, vector<1x16xf32>, vector<1x16xf32>, vector<1x16xf32>, vector<1x16xf32>, vector<1x16xf32>, vector<1x16xf32>, vector<1x16xf32> -> vector<1x256xf32>
    %c0_i32_1183 = arith.constant 0 : i32
    %1219 = arith.addi %0, %c0_i32_1183 : i32
    %c2_i32_1184 = arith.constant 2 : i32
    %1220 = arith.addi %1219, %c2_i32_1184 : i32
    %c0_1185 = arith.constant 0 : index
    %c1_1186 = arith.constant 1 : index
    %1221 = arith.index_cast %1220 : i32 to index
    %c0_1187 = arith.constant 0 : index
    %1222 = vector.load %arg2[%c0_1185, %c1_1186, %1221, %c0_1187] : memref<1x3x18x18xf32, #tpu.memory_space<vmem>>, vector<1x1x1x16xf32>
    %1223 = vector.shape_cast %1222 : vector<1x1x1x16xf32> to vector<1x16xf32>
    %c1_i32_1188 = arith.constant 1 : i32
    %1224 = arith.addi %0, %c1_i32_1188 : i32
    %c2_i32_1189 = arith.constant 2 : i32
    %1225 = arith.addi %1224, %c2_i32_1189 : i32
    %c0_1190 = arith.constant 0 : index
    %c1_1191 = arith.constant 1 : index
    %1226 = arith.index_cast %1225 : i32 to index
    %c0_1192 = arith.constant 0 : index
    %1227 = vector.load %arg2[%c0_1190, %c1_1191, %1226, %c0_1192] : memref<1x3x18x18xf32, #tpu.memory_space<vmem>>, vector<1x1x1x16xf32>
    %1228 = vector.shape_cast %1227 : vector<1x1x1x16xf32> to vector<1x16xf32>
    %c2_i32_1193 = arith.constant 2 : i32
    %1229 = arith.addi %0, %c2_i32_1193 : i32
    %c2_i32_1194 = arith.constant 2 : i32
    %1230 = arith.addi %1229, %c2_i32_1194 : i32
    %c0_1195 = arith.constant 0 : index
    %c1_1196 = arith.constant 1 : index
    %1231 = arith.index_cast %1230 : i32 to index
    %c0_1197 = arith.constant 0 : index
    %1232 = vector.load %arg2[%c0_1195, %c1_1196, %1231, %c0_1197] : memref<1x3x18x18xf32, #tpu.memory_space<vmem>>, vector<1x1x1x16xf32>
    %1233 = vector.shape_cast %1232 : vector<1x1x1x16xf32> to vector<1x16xf32>
    %c3_i32_1198 = arith.constant 3 : i32
    %1234 = arith.addi %0, %c3_i32_1198 : i32
    %c2_i32_1199 = arith.constant 2 : i32
    %1235 = arith.addi %1234, %c2_i32_1199 : i32
    %c0_1200 = arith.constant 0 : index
    %c1_1201 = arith.constant 1 : index
    %1236 = arith.index_cast %1235 : i32 to index
    %c0_1202 = arith.constant 0 : index
    %1237 = vector.load %arg2[%c0_1200, %c1_1201, %1236, %c0_1202] : memref<1x3x18x18xf32, #tpu.memory_space<vmem>>, vector<1x1x1x16xf32>
    %1238 = vector.shape_cast %1237 : vector<1x1x1x16xf32> to vector<1x16xf32>
    %c4_i32_1203 = arith.constant 4 : i32
    %1239 = arith.addi %0, %c4_i32_1203 : i32
    %c2_i32_1204 = arith.constant 2 : i32
    %1240 = arith.addi %1239, %c2_i32_1204 : i32
    %c0_1205 = arith.constant 0 : index
    %c1_1206 = arith.constant 1 : index
    %1241 = arith.index_cast %1240 : i32 to index
    %c0_1207 = arith.constant 0 : index
    %1242 = vector.load %arg2[%c0_1205, %c1_1206, %1241, %c0_1207] : memref<1x3x18x18xf32, #tpu.memory_space<vmem>>, vector<1x1x1x16xf32>
    %1243 = vector.shape_cast %1242 : vector<1x1x1x16xf32> to vector<1x16xf32>
    %c5_i32_1208 = arith.constant 5 : i32
    %1244 = arith.addi %0, %c5_i32_1208 : i32
    %c2_i32_1209 = arith.constant 2 : i32
    %1245 = arith.addi %1244, %c2_i32_1209 : i32
    %c0_1210 = arith.constant 0 : index
    %c1_1211 = arith.constant 1 : index
    %1246 = arith.index_cast %1245 : i32 to index
    %c0_1212 = arith.constant 0 : index
    %1247 = vector.load %arg2[%c0_1210, %c1_1211, %1246, %c0_1212] : memref<1x3x18x18xf32, #tpu.memory_space<vmem>>, vector<1x1x1x16xf32>
    %1248 = vector.shape_cast %1247 : vector<1x1x1x16xf32> to vector<1x16xf32>
    %c6_i32_1213 = arith.constant 6 : i32
    %1249 = arith.addi %0, %c6_i32_1213 : i32
    %c2_i32_1214 = arith.constant 2 : i32
    %1250 = arith.addi %1249, %c2_i32_1214 : i32
    %c0_1215 = arith.constant 0 : index
    %c1_1216 = arith.constant 1 : index
    %1251 = arith.index_cast %1250 : i32 to index
    %c0_1217 = arith.constant 0 : index
    %1252 = vector.load %arg2[%c0_1215, %c1_1216, %1251, %c0_1217] : memref<1x3x18x18xf32, #tpu.memory_space<vmem>>, vector<1x1x1x16xf32>
    %1253 = vector.shape_cast %1252 : vector<1x1x1x16xf32> to vector<1x16xf32>
    %c7_i32_1218 = arith.constant 7 : i32
    %1254 = arith.addi %0, %c7_i32_1218 : i32
    %c2_i32_1219 = arith.constant 2 : i32
    %1255 = arith.addi %1254, %c2_i32_1219 : i32
    %c0_1220 = arith.constant 0 : index
    %c1_1221 = arith.constant 1 : index
    %1256 = arith.index_cast %1255 : i32 to index
    %c0_1222 = arith.constant 0 : index
    %1257 = vector.load %arg2[%c0_1220, %c1_1221, %1256, %c0_1222] : memref<1x3x18x18xf32, #tpu.memory_space<vmem>>, vector<1x1x1x16xf32>
    %1258 = vector.shape_cast %1257 : vector<1x1x1x16xf32> to vector<1x16xf32>
    %c8_i32_1223 = arith.constant 8 : i32
    %1259 = arith.addi %0, %c8_i32_1223 : i32
    %c2_i32_1224 = arith.constant 2 : i32
    %1260 = arith.addi %1259, %c2_i32_1224 : i32
    %c0_1225 = arith.constant 0 : index
    %c1_1226 = arith.constant 1 : index
    %1261 = arith.index_cast %1260 : i32 to index
    %c0_1227 = arith.constant 0 : index
    %1262 = vector.load %arg2[%c0_1225, %c1_1226, %1261, %c0_1227] : memref<1x3x18x18xf32, #tpu.memory_space<vmem>>, vector<1x1x1x16xf32>
    %1263 = vector.shape_cast %1262 : vector<1x1x1x16xf32> to vector<1x16xf32>
    %c9_i32_1228 = arith.constant 9 : i32
    %1264 = arith.addi %0, %c9_i32_1228 : i32
    %c2_i32_1229 = arith.constant 2 : i32
    %1265 = arith.addi %1264, %c2_i32_1229 : i32
    %c0_1230 = arith.constant 0 : index
    %c1_1231 = arith.constant 1 : index
    %1266 = arith.index_cast %1265 : i32 to index
    %c0_1232 = arith.constant 0 : index
    %1267 = vector.load %arg2[%c0_1230, %c1_1231, %1266, %c0_1232] : memref<1x3x18x18xf32, #tpu.memory_space<vmem>>, vector<1x1x1x16xf32>
    %1268 = vector.shape_cast %1267 : vector<1x1x1x16xf32> to vector<1x16xf32>
    %c10_i32_1233 = arith.constant 10 : i32
    %1269 = arith.addi %0, %c10_i32_1233 : i32
    %c2_i32_1234 = arith.constant 2 : i32
    %1270 = arith.addi %1269, %c2_i32_1234 : i32
    %c0_1235 = arith.constant 0 : index
    %c1_1236 = arith.constant 1 : index
    %1271 = arith.index_cast %1270 : i32 to index
    %c0_1237 = arith.constant 0 : index
    %1272 = vector.load %arg2[%c0_1235, %c1_1236, %1271, %c0_1237] : memref<1x3x18x18xf32, #tpu.memory_space<vmem>>, vector<1x1x1x16xf32>
    %1273 = vector.shape_cast %1272 : vector<1x1x1x16xf32> to vector<1x16xf32>
    %c11_i32_1238 = arith.constant 11 : i32
    %1274 = arith.addi %0, %c11_i32_1238 : i32
    %c2_i32_1239 = arith.constant 2 : i32
    %1275 = arith.addi %1274, %c2_i32_1239 : i32
    %c0_1240 = arith.constant 0 : index
    %c1_1241 = arith.constant 1 : index
    %1276 = arith.index_cast %1275 : i32 to index
    %c0_1242 = arith.constant 0 : index
    %1277 = vector.load %arg2[%c0_1240, %c1_1241, %1276, %c0_1242] : memref<1x3x18x18xf32, #tpu.memory_space<vmem>>, vector<1x1x1x16xf32>
    %1278 = vector.shape_cast %1277 : vector<1x1x1x16xf32> to vector<1x16xf32>
    %c12_i32_1243 = arith.constant 12 : i32
    %1279 = arith.addi %0, %c12_i32_1243 : i32
    %c2_i32_1244 = arith.constant 2 : i32
    %1280 = arith.addi %1279, %c2_i32_1244 : i32
    %c0_1245 = arith.constant 0 : index
    %c1_1246 = arith.constant 1 : index
    %1281 = arith.index_cast %1280 : i32 to index
    %c0_1247 = arith.constant 0 : index
    %1282 = vector.load %arg2[%c0_1245, %c1_1246, %1281, %c0_1247] : memref<1x3x18x18xf32, #tpu.memory_space<vmem>>, vector<1x1x1x16xf32>
    %1283 = vector.shape_cast %1282 : vector<1x1x1x16xf32> to vector<1x16xf32>
    %c13_i32_1248 = arith.constant 13 : i32
    %1284 = arith.addi %0, %c13_i32_1248 : i32
    %c2_i32_1249 = arith.constant 2 : i32
    %1285 = arith.addi %1284, %c2_i32_1249 : i32
    %c0_1250 = arith.constant 0 : index
    %c1_1251 = arith.constant 1 : index
    %1286 = arith.index_cast %1285 : i32 to index
    %c0_1252 = arith.constant 0 : index
    %1287 = vector.load %arg2[%c0_1250, %c1_1251, %1286, %c0_1252] : memref<1x3x18x18xf32, #tpu.memory_space<vmem>>, vector<1x1x1x16xf32>
    %1288 = vector.shape_cast %1287 : vector<1x1x1x16xf32> to vector<1x16xf32>
    %c14_i32_1253 = arith.constant 14 : i32
    %1289 = arith.addi %0, %c14_i32_1253 : i32
    %c2_i32_1254 = arith.constant 2 : i32
    %1290 = arith.addi %1289, %c2_i32_1254 : i32
    %c0_1255 = arith.constant 0 : index
    %c1_1256 = arith.constant 1 : index
    %1291 = arith.index_cast %1290 : i32 to index
    %c0_1257 = arith.constant 0 : index
    %1292 = vector.load %arg2[%c0_1255, %c1_1256, %1291, %c0_1257] : memref<1x3x18x18xf32, #tpu.memory_space<vmem>>, vector<1x1x1x16xf32>
    %1293 = vector.shape_cast %1292 : vector<1x1x1x16xf32> to vector<1x16xf32>
    %c15_i32_1258 = arith.constant 15 : i32
    %1294 = arith.addi %0, %c15_i32_1258 : i32
    %c2_i32_1259 = arith.constant 2 : i32
    %1295 = arith.addi %1294, %c2_i32_1259 : i32
    %c0_1260 = arith.constant 0 : index
    %c1_1261 = arith.constant 1 : index
    %1296 = arith.index_cast %1295 : i32 to index
    %c0_1262 = arith.constant 0 : index
    %1297 = vector.load %arg2[%c0_1260, %c1_1261, %1296, %c0_1262] : memref<1x3x18x18xf32, #tpu.memory_space<vmem>>, vector<1x1x1x16xf32>
    %1298 = vector.shape_cast %1297 : vector<1x1x1x16xf32> to vector<1x16xf32>
    %1299 = tpu.concatenate %1223, %1228, %1233, %1238, %1243, %1248, %1253, %1258, %1263, %1268, %1273, %1278, %1283, %1288, %1293, %1298 in 1 : vector<1x16xf32>, vector<1x16xf32>, vector<1x16xf32>, vector<1x16xf32>, vector<1x16xf32>, vector<1x16xf32>, vector<1x16xf32>, vector<1x16xf32>, vector<1x16xf32>, vector<1x16xf32>, vector<1x16xf32>, vector<1x16xf32>, vector<1x16xf32>, vector<1x16xf32>, vector<1x16xf32>, vector<1x16xf32> -> vector<1x256xf32>
    %c0_i32_1263 = arith.constant 0 : i32
    %1300 = arith.addi %0, %c0_i32_1263 : i32
    %c2_i32_1264 = arith.constant 2 : i32
    %1301 = arith.addi %1300, %c2_i32_1264 : i32
    %c0_1265 = arith.constant 0 : index
    %c1_1266 = arith.constant 1 : index
    %1302 = arith.index_cast %1301 : i32 to index
    %c1_1267 = arith.constant 1 : index
    %1303 = vector.load %arg2[%c0_1265, %c1_1266, %1302, %c1_1267] : memref<1x3x18x18xf32, #tpu.memory_space<vmem>>, vector<1x1x1x16xf32>
    %1304 = vector.shape_cast %1303 : vector<1x1x1x16xf32> to vector<1x16xf32>
    %c1_i32_1268 = arith.constant 1 : i32
    %1305 = arith.addi %0, %c1_i32_1268 : i32
    %c2_i32_1269 = arith.constant 2 : i32
    %1306 = arith.addi %1305, %c2_i32_1269 : i32
    %c0_1270 = arith.constant 0 : index
    %c1_1271 = arith.constant 1 : index
    %1307 = arith.index_cast %1306 : i32 to index
    %c1_1272 = arith.constant 1 : index
    %1308 = vector.load %arg2[%c0_1270, %c1_1271, %1307, %c1_1272] : memref<1x3x18x18xf32, #tpu.memory_space<vmem>>, vector<1x1x1x16xf32>
    %1309 = vector.shape_cast %1308 : vector<1x1x1x16xf32> to vector<1x16xf32>
    %c2_i32_1273 = arith.constant 2 : i32
    %1310 = arith.addi %0, %c2_i32_1273 : i32
    %c2_i32_1274 = arith.constant 2 : i32
    %1311 = arith.addi %1310, %c2_i32_1274 : i32
    %c0_1275 = arith.constant 0 : index
    %c1_1276 = arith.constant 1 : index
    %1312 = arith.index_cast %1311 : i32 to index
    %c1_1277 = arith.constant 1 : index
    %1313 = vector.load %arg2[%c0_1275, %c1_1276, %1312, %c1_1277] : memref<1x3x18x18xf32, #tpu.memory_space<vmem>>, vector<1x1x1x16xf32>
    %1314 = vector.shape_cast %1313 : vector<1x1x1x16xf32> to vector<1x16xf32>
    %c3_i32_1278 = arith.constant 3 : i32
    %1315 = arith.addi %0, %c3_i32_1278 : i32
    %c2_i32_1279 = arith.constant 2 : i32
    %1316 = arith.addi %1315, %c2_i32_1279 : i32
    %c0_1280 = arith.constant 0 : index
    %c1_1281 = arith.constant 1 : index
    %1317 = arith.index_cast %1316 : i32 to index
    %c1_1282 = arith.constant 1 : index
    %1318 = vector.load %arg2[%c0_1280, %c1_1281, %1317, %c1_1282] : memref<1x3x18x18xf32, #tpu.memory_space<vmem>>, vector<1x1x1x16xf32>
    %1319 = vector.shape_cast %1318 : vector<1x1x1x16xf32> to vector<1x16xf32>
    %c4_i32_1283 = arith.constant 4 : i32
    %1320 = arith.addi %0, %c4_i32_1283 : i32
    %c2_i32_1284 = arith.constant 2 : i32
    %1321 = arith.addi %1320, %c2_i32_1284 : i32
    %c0_1285 = arith.constant 0 : index
    %c1_1286 = arith.constant 1 : index
    %1322 = arith.index_cast %1321 : i32 to index
    %c1_1287 = arith.constant 1 : index
    %1323 = vector.load %arg2[%c0_1285, %c1_1286, %1322, %c1_1287] : memref<1x3x18x18xf32, #tpu.memory_space<vmem>>, vector<1x1x1x16xf32>
    %1324 = vector.shape_cast %1323 : vector<1x1x1x16xf32> to vector<1x16xf32>
    %c5_i32_1288 = arith.constant 5 : i32
    %1325 = arith.addi %0, %c5_i32_1288 : i32
    %c2_i32_1289 = arith.constant 2 : i32
    %1326 = arith.addi %1325, %c2_i32_1289 : i32
    %c0_1290 = arith.constant 0 : index
    %c1_1291 = arith.constant 1 : index
    %1327 = arith.index_cast %1326 : i32 to index
    %c1_1292 = arith.constant 1 : index
    %1328 = vector.load %arg2[%c0_1290, %c1_1291, %1327, %c1_1292] : memref<1x3x18x18xf32, #tpu.memory_space<vmem>>, vector<1x1x1x16xf32>
    %1329 = vector.shape_cast %1328 : vector<1x1x1x16xf32> to vector<1x16xf32>
    %c6_i32_1293 = arith.constant 6 : i32
    %1330 = arith.addi %0, %c6_i32_1293 : i32
    %c2_i32_1294 = arith.constant 2 : i32
    %1331 = arith.addi %1330, %c2_i32_1294 : i32
    %c0_1295 = arith.constant 0 : index
    %c1_1296 = arith.constant 1 : index
    %1332 = arith.index_cast %1331 : i32 to index
    %c1_1297 = arith.constant 1 : index
    %1333 = vector.load %arg2[%c0_1295, %c1_1296, %1332, %c1_1297] : memref<1x3x18x18xf32, #tpu.memory_space<vmem>>, vector<1x1x1x16xf32>
    %1334 = vector.shape_cast %1333 : vector<1x1x1x16xf32> to vector<1x16xf32>
    %c7_i32_1298 = arith.constant 7 : i32
    %1335 = arith.addi %0, %c7_i32_1298 : i32
    %c2_i32_1299 = arith.constant 2 : i32
    %1336 = arith.addi %1335, %c2_i32_1299 : i32
    %c0_1300 = arith.constant 0 : index
    %c1_1301 = arith.constant 1 : index
    %1337 = arith.index_cast %1336 : i32 to index
    %c1_1302 = arith.constant 1 : index
    %1338 = vector.load %arg2[%c0_1300, %c1_1301, %1337, %c1_1302] : memref<1x3x18x18xf32, #tpu.memory_space<vmem>>, vector<1x1x1x16xf32>
    %1339 = vector.shape_cast %1338 : vector<1x1x1x16xf32> to vector<1x16xf32>
    %c8_i32_1303 = arith.constant 8 : i32
    %1340 = arith.addi %0, %c8_i32_1303 : i32
    %c2_i32_1304 = arith.constant 2 : i32
    %1341 = arith.addi %1340, %c2_i32_1304 : i32
    %c0_1305 = arith.constant 0 : index
    %c1_1306 = arith.constant 1 : index
    %1342 = arith.index_cast %1341 : i32 to index
    %c1_1307 = arith.constant 1 : index
    %1343 = vector.load %arg2[%c0_1305, %c1_1306, %1342, %c1_1307] : memref<1x3x18x18xf32, #tpu.memory_space<vmem>>, vector<1x1x1x16xf32>
    %1344 = vector.shape_cast %1343 : vector<1x1x1x16xf32> to vector<1x16xf32>
    %c9_i32_1308 = arith.constant 9 : i32
    %1345 = arith.addi %0, %c9_i32_1308 : i32
    %c2_i32_1309 = arith.constant 2 : i32
    %1346 = arith.addi %1345, %c2_i32_1309 : i32
    %c0_1310 = arith.constant 0 : index
    %c1_1311 = arith.constant 1 : index
    %1347 = arith.index_cast %1346 : i32 to index
    %c1_1312 = arith.constant 1 : index
    %1348 = vector.load %arg2[%c0_1310, %c1_1311, %1347, %c1_1312] : memref<1x3x18x18xf32, #tpu.memory_space<vmem>>, vector<1x1x1x16xf32>
    %1349 = vector.shape_cast %1348 : vector<1x1x1x16xf32> to vector<1x16xf32>
    %c10_i32_1313 = arith.constant 10 : i32
    %1350 = arith.addi %0, %c10_i32_1313 : i32
    %c2_i32_1314 = arith.constant 2 : i32
    %1351 = arith.addi %1350, %c2_i32_1314 : i32
    %c0_1315 = arith.constant 0 : index
    %c1_1316 = arith.constant 1 : index
    %1352 = arith.index_cast %1351 : i32 to index
    %c1_1317 = arith.constant 1 : index
    %1353 = vector.load %arg2[%c0_1315, %c1_1316, %1352, %c1_1317] : memref<1x3x18x18xf32, #tpu.memory_space<vmem>>, vector<1x1x1x16xf32>
    %1354 = vector.shape_cast %1353 : vector<1x1x1x16xf32> to vector<1x16xf32>
    %c11_i32_1318 = arith.constant 11 : i32
    %1355 = arith.addi %0, %c11_i32_1318 : i32
    %c2_i32_1319 = arith.constant 2 : i32
    %1356 = arith.addi %1355, %c2_i32_1319 : i32
    %c0_1320 = arith.constant 0 : index
    %c1_1321 = arith.constant 1 : index
    %1357 = arith.index_cast %1356 : i32 to index
    %c1_1322 = arith.constant 1 : index
    %1358 = vector.load %arg2[%c0_1320, %c1_1321, %1357, %c1_1322] : memref<1x3x18x18xf32, #tpu.memory_space<vmem>>, vector<1x1x1x16xf32>
    %1359 = vector.shape_cast %1358 : vector<1x1x1x16xf32> to vector<1x16xf32>
    %c12_i32_1323 = arith.constant 12 : i32
    %1360 = arith.addi %0, %c12_i32_1323 : i32
    %c2_i32_1324 = arith.constant 2 : i32
    %1361 = arith.addi %1360, %c2_i32_1324 : i32
    %c0_1325 = arith.constant 0 : index
    %c1_1326 = arith.constant 1 : index
    %1362 = arith.index_cast %1361 : i32 to index
    %c1_1327 = arith.constant 1 : index
    %1363 = vector.load %arg2[%c0_1325, %c1_1326, %1362, %c1_1327] : memref<1x3x18x18xf32, #tpu.memory_space<vmem>>, vector<1x1x1x16xf32>
    %1364 = vector.shape_cast %1363 : vector<1x1x1x16xf32> to vector<1x16xf32>
    %c13_i32_1328 = arith.constant 13 : i32
    %1365 = arith.addi %0, %c13_i32_1328 : i32
    %c2_i32_1329 = arith.constant 2 : i32
    %1366 = arith.addi %1365, %c2_i32_1329 : i32
    %c0_1330 = arith.constant 0 : index
    %c1_1331 = arith.constant 1 : index
    %1367 = arith.index_cast %1366 : i32 to index
    %c1_1332 = arith.constant 1 : index
    %1368 = vector.load %arg2[%c0_1330, %c1_1331, %1367, %c1_1332] : memref<1x3x18x18xf32, #tpu.memory_space<vmem>>, vector<1x1x1x16xf32>
    %1369 = vector.shape_cast %1368 : vector<1x1x1x16xf32> to vector<1x16xf32>
    %c14_i32_1333 = arith.constant 14 : i32
    %1370 = arith.addi %0, %c14_i32_1333 : i32
    %c2_i32_1334 = arith.constant 2 : i32
    %1371 = arith.addi %1370, %c2_i32_1334 : i32
    %c0_1335 = arith.constant 0 : index
    %c1_1336 = arith.constant 1 : index
    %1372 = arith.index_cast %1371 : i32 to index
    %c1_1337 = arith.constant 1 : index
    %1373 = vector.load %arg2[%c0_1335, %c1_1336, %1372, %c1_1337] : memref<1x3x18x18xf32, #tpu.memory_space<vmem>>, vector<1x1x1x16xf32>
    %1374 = vector.shape_cast %1373 : vector<1x1x1x16xf32> to vector<1x16xf32>
    %c15_i32_1338 = arith.constant 15 : i32
    %1375 = arith.addi %0, %c15_i32_1338 : i32
    %c2_i32_1339 = arith.constant 2 : i32
    %1376 = arith.addi %1375, %c2_i32_1339 : i32
    %c0_1340 = arith.constant 0 : index
    %c1_1341 = arith.constant 1 : index
    %1377 = arith.index_cast %1376 : i32 to index
    %c1_1342 = arith.constant 1 : index
    %1378 = vector.load %arg2[%c0_1340, %c1_1341, %1377, %c1_1342] : memref<1x3x18x18xf32, #tpu.memory_space<vmem>>, vector<1x1x1x16xf32>
    %1379 = vector.shape_cast %1378 : vector<1x1x1x16xf32> to vector<1x16xf32>
    %1380 = tpu.concatenate %1304, %1309, %1314, %1319, %1324, %1329, %1334, %1339, %1344, %1349, %1354, %1359, %1364, %1369, %1374, %1379 in 1 : vector<1x16xf32>, vector<1x16xf32>, vector<1x16xf32>, vector<1x16xf32>, vector<1x16xf32>, vector<1x16xf32>, vector<1x16xf32>, vector<1x16xf32>, vector<1x16xf32>, vector<1x16xf32>, vector<1x16xf32>, vector<1x16xf32>, vector<1x16xf32>, vector<1x16xf32>, vector<1x16xf32>, vector<1x16xf32> -> vector<1x256xf32>
    %c0_i32_1343 = arith.constant 0 : i32
    %1381 = arith.addi %0, %c0_i32_1343 : i32
    %c2_i32_1344 = arith.constant 2 : i32
    %1382 = arith.addi %1381, %c2_i32_1344 : i32
    %c0_1345 = arith.constant 0 : index
    %c1_1346 = arith.constant 1 : index
    %1383 = arith.index_cast %1382 : i32 to index
    %c2_1347 = arith.constant 2 : index
    %1384 = vector.load %arg2[%c0_1345, %c1_1346, %1383, %c2_1347] : memref<1x3x18x18xf32, #tpu.memory_space<vmem>>, vector<1x1x1x16xf32>
    %1385 = vector.shape_cast %1384 : vector<1x1x1x16xf32> to vector<1x16xf32>
    %c1_i32_1348 = arith.constant 1 : i32
    %1386 = arith.addi %0, %c1_i32_1348 : i32
    %c2_i32_1349 = arith.constant 2 : i32
    %1387 = arith.addi %1386, %c2_i32_1349 : i32
    %c0_1350 = arith.constant 0 : index
    %c1_1351 = arith.constant 1 : index
    %1388 = arith.index_cast %1387 : i32 to index
    %c2_1352 = arith.constant 2 : index
    %1389 = vector.load %arg2[%c0_1350, %c1_1351, %1388, %c2_1352] : memref<1x3x18x18xf32, #tpu.memory_space<vmem>>, vector<1x1x1x16xf32>
    %1390 = vector.shape_cast %1389 : vector<1x1x1x16xf32> to vector<1x16xf32>
    %c2_i32_1353 = arith.constant 2 : i32
    %1391 = arith.addi %0, %c2_i32_1353 : i32
    %c2_i32_1354 = arith.constant 2 : i32
    %1392 = arith.addi %1391, %c2_i32_1354 : i32
    %c0_1355 = arith.constant 0 : index
    %c1_1356 = arith.constant 1 : index
    %1393 = arith.index_cast %1392 : i32 to index
    %c2_1357 = arith.constant 2 : index
    %1394 = vector.load %arg2[%c0_1355, %c1_1356, %1393, %c2_1357] : memref<1x3x18x18xf32, #tpu.memory_space<vmem>>, vector<1x1x1x16xf32>
    %1395 = vector.shape_cast %1394 : vector<1x1x1x16xf32> to vector<1x16xf32>
    %c3_i32_1358 = arith.constant 3 : i32
    %1396 = arith.addi %0, %c3_i32_1358 : i32
    %c2_i32_1359 = arith.constant 2 : i32
    %1397 = arith.addi %1396, %c2_i32_1359 : i32
    %c0_1360 = arith.constant 0 : index
    %c1_1361 = arith.constant 1 : index
    %1398 = arith.index_cast %1397 : i32 to index
    %c2_1362 = arith.constant 2 : index
    %1399 = vector.load %arg2[%c0_1360, %c1_1361, %1398, %c2_1362] : memref<1x3x18x18xf32, #tpu.memory_space<vmem>>, vector<1x1x1x16xf32>
    %1400 = vector.shape_cast %1399 : vector<1x1x1x16xf32> to vector<1x16xf32>
    %c4_i32_1363 = arith.constant 4 : i32
    %1401 = arith.addi %0, %c4_i32_1363 : i32
    %c2_i32_1364 = arith.constant 2 : i32
    %1402 = arith.addi %1401, %c2_i32_1364 : i32
    %c0_1365 = arith.constant 0 : index
    %c1_1366 = arith.constant 1 : index
    %1403 = arith.index_cast %1402 : i32 to index
    %c2_1367 = arith.constant 2 : index
    %1404 = vector.load %arg2[%c0_1365, %c1_1366, %1403, %c2_1367] : memref<1x3x18x18xf32, #tpu.memory_space<vmem>>, vector<1x1x1x16xf32>
    %1405 = vector.shape_cast %1404 : vector<1x1x1x16xf32> to vector<1x16xf32>
    %c5_i32_1368 = arith.constant 5 : i32
    %1406 = arith.addi %0, %c5_i32_1368 : i32
    %c2_i32_1369 = arith.constant 2 : i32
    %1407 = arith.addi %1406, %c2_i32_1369 : i32
    %c0_1370 = arith.constant 0 : index
    %c1_1371 = arith.constant 1 : index
    %1408 = arith.index_cast %1407 : i32 to index
    %c2_1372 = arith.constant 2 : index
    %1409 = vector.load %arg2[%c0_1370, %c1_1371, %1408, %c2_1372] : memref<1x3x18x18xf32, #tpu.memory_space<vmem>>, vector<1x1x1x16xf32>
    %1410 = vector.shape_cast %1409 : vector<1x1x1x16xf32> to vector<1x16xf32>
    %c6_i32_1373 = arith.constant 6 : i32
    %1411 = arith.addi %0, %c6_i32_1373 : i32
    %c2_i32_1374 = arith.constant 2 : i32
    %1412 = arith.addi %1411, %c2_i32_1374 : i32
    %c0_1375 = arith.constant 0 : index
    %c1_1376 = arith.constant 1 : index
    %1413 = arith.index_cast %1412 : i32 to index
    %c2_1377 = arith.constant 2 : index
    %1414 = vector.load %arg2[%c0_1375, %c1_1376, %1413, %c2_1377] : memref<1x3x18x18xf32, #tpu.memory_space<vmem>>, vector<1x1x1x16xf32>
    %1415 = vector.shape_cast %1414 : vector<1x1x1x16xf32> to vector<1x16xf32>
    %c7_i32_1378 = arith.constant 7 : i32
    %1416 = arith.addi %0, %c7_i32_1378 : i32
    %c2_i32_1379 = arith.constant 2 : i32
    %1417 = arith.addi %1416, %c2_i32_1379 : i32
    %c0_1380 = arith.constant 0 : index
    %c1_1381 = arith.constant 1 : index
    %1418 = arith.index_cast %1417 : i32 to index
    %c2_1382 = arith.constant 2 : index
    %1419 = vector.load %arg2[%c0_1380, %c1_1381, %1418, %c2_1382] : memref<1x3x18x18xf32, #tpu.memory_space<vmem>>, vector<1x1x1x16xf32>
    %1420 = vector.shape_cast %1419 : vector<1x1x1x16xf32> to vector<1x16xf32>
    %c8_i32_1383 = arith.constant 8 : i32
    %1421 = arith.addi %0, %c8_i32_1383 : i32
    %c2_i32_1384 = arith.constant 2 : i32
    %1422 = arith.addi %1421, %c2_i32_1384 : i32
    %c0_1385 = arith.constant 0 : index
    %c1_1386 = arith.constant 1 : index
    %1423 = arith.index_cast %1422 : i32 to index
    %c2_1387 = arith.constant 2 : index
    %1424 = vector.load %arg2[%c0_1385, %c1_1386, %1423, %c2_1387] : memref<1x3x18x18xf32, #tpu.memory_space<vmem>>, vector<1x1x1x16xf32>
    %1425 = vector.shape_cast %1424 : vector<1x1x1x16xf32> to vector<1x16xf32>
    %c9_i32_1388 = arith.constant 9 : i32
    %1426 = arith.addi %0, %c9_i32_1388 : i32
    %c2_i32_1389 = arith.constant 2 : i32
    %1427 = arith.addi %1426, %c2_i32_1389 : i32
    %c0_1390 = arith.constant 0 : index
    %c1_1391 = arith.constant 1 : index
    %1428 = arith.index_cast %1427 : i32 to index
    %c2_1392 = arith.constant 2 : index
    %1429 = vector.load %arg2[%c0_1390, %c1_1391, %1428, %c2_1392] : memref<1x3x18x18xf32, #tpu.memory_space<vmem>>, vector<1x1x1x16xf32>
    %1430 = vector.shape_cast %1429 : vector<1x1x1x16xf32> to vector<1x16xf32>
    %c10_i32_1393 = arith.constant 10 : i32
    %1431 = arith.addi %0, %c10_i32_1393 : i32
    %c2_i32_1394 = arith.constant 2 : i32
    %1432 = arith.addi %1431, %c2_i32_1394 : i32
    %c0_1395 = arith.constant 0 : index
    %c1_1396 = arith.constant 1 : index
    %1433 = arith.index_cast %1432 : i32 to index
    %c2_1397 = arith.constant 2 : index
    %1434 = vector.load %arg2[%c0_1395, %c1_1396, %1433, %c2_1397] : memref<1x3x18x18xf32, #tpu.memory_space<vmem>>, vector<1x1x1x16xf32>
    %1435 = vector.shape_cast %1434 : vector<1x1x1x16xf32> to vector<1x16xf32>
    %c11_i32_1398 = arith.constant 11 : i32
    %1436 = arith.addi %0, %c11_i32_1398 : i32
    %c2_i32_1399 = arith.constant 2 : i32
    %1437 = arith.addi %1436, %c2_i32_1399 : i32
    %c0_1400 = arith.constant 0 : index
    %c1_1401 = arith.constant 1 : index
    %1438 = arith.index_cast %1437 : i32 to index
    %c2_1402 = arith.constant 2 : index
    %1439 = vector.load %arg2[%c0_1400, %c1_1401, %1438, %c2_1402] : memref<1x3x18x18xf32, #tpu.memory_space<vmem>>, vector<1x1x1x16xf32>
    %1440 = vector.shape_cast %1439 : vector<1x1x1x16xf32> to vector<1x16xf32>
    %c12_i32_1403 = arith.constant 12 : i32
    %1441 = arith.addi %0, %c12_i32_1403 : i32
    %c2_i32_1404 = arith.constant 2 : i32
    %1442 = arith.addi %1441, %c2_i32_1404 : i32
    %c0_1405 = arith.constant 0 : index
    %c1_1406 = arith.constant 1 : index
    %1443 = arith.index_cast %1442 : i32 to index
    %c2_1407 = arith.constant 2 : index
    %1444 = vector.load %arg2[%c0_1405, %c1_1406, %1443, %c2_1407] : memref<1x3x18x18xf32, #tpu.memory_space<vmem>>, vector<1x1x1x16xf32>
    %1445 = vector.shape_cast %1444 : vector<1x1x1x16xf32> to vector<1x16xf32>
    %c13_i32_1408 = arith.constant 13 : i32
    %1446 = arith.addi %0, %c13_i32_1408 : i32
    %c2_i32_1409 = arith.constant 2 : i32
    %1447 = arith.addi %1446, %c2_i32_1409 : i32
    %c0_1410 = arith.constant 0 : index
    %c1_1411 = arith.constant 1 : index
    %1448 = arith.index_cast %1447 : i32 to index
    %c2_1412 = arith.constant 2 : index
    %1449 = vector.load %arg2[%c0_1410, %c1_1411, %1448, %c2_1412] : memref<1x3x18x18xf32, #tpu.memory_space<vmem>>, vector<1x1x1x16xf32>
    %1450 = vector.shape_cast %1449 : vector<1x1x1x16xf32> to vector<1x16xf32>
    %c14_i32_1413 = arith.constant 14 : i32
    %1451 = arith.addi %0, %c14_i32_1413 : i32
    %c2_i32_1414 = arith.constant 2 : i32
    %1452 = arith.addi %1451, %c2_i32_1414 : i32
    %c0_1415 = arith.constant 0 : index
    %c1_1416 = arith.constant 1 : index
    %1453 = arith.index_cast %1452 : i32 to index
    %c2_1417 = arith.constant 2 : index
    %1454 = vector.load %arg2[%c0_1415, %c1_1416, %1453, %c2_1417] : memref<1x3x18x18xf32, #tpu.memory_space<vmem>>, vector<1x1x1x16xf32>
    %1455 = vector.shape_cast %1454 : vector<1x1x1x16xf32> to vector<1x16xf32>
    %c15_i32_1418 = arith.constant 15 : i32
    %1456 = arith.addi %0, %c15_i32_1418 : i32
    %c2_i32_1419 = arith.constant 2 : i32
    %1457 = arith.addi %1456, %c2_i32_1419 : i32
    %c0_1420 = arith.constant 0 : index
    %c1_1421 = arith.constant 1 : index
    %1458 = arith.index_cast %1457 : i32 to index
    %c2_1422 = arith.constant 2 : index
    %1459 = vector.load %arg2[%c0_1420, %c1_1421, %1458, %c2_1422] : memref<1x3x18x18xf32, #tpu.memory_space<vmem>>, vector<1x1x1x16xf32>
    %1460 = vector.shape_cast %1459 : vector<1x1x1x16xf32> to vector<1x16xf32>
    %1461 = tpu.concatenate %1385, %1390, %1395, %1400, %1405, %1410, %1415, %1420, %1425, %1430, %1435, %1440, %1445, %1450, %1455, %1460 in 1 : vector<1x16xf32>, vector<1x16xf32>, vector<1x16xf32>, vector<1x16xf32>, vector<1x16xf32>, vector<1x16xf32>, vector<1x16xf32>, vector<1x16xf32>, vector<1x16xf32>, vector<1x16xf32>, vector<1x16xf32>, vector<1x16xf32>, vector<1x16xf32>, vector<1x16xf32>, vector<1x16xf32>, vector<1x16xf32> -> vector<1x256xf32>
    %c0_i32_1423 = arith.constant 0 : i32
    %1462 = arith.addi %0, %c0_i32_1423 : i32
    %c0_i32_1424 = arith.constant 0 : i32
    %1463 = arith.addi %1462, %c0_i32_1424 : i32
    %c0_1425 = arith.constant 0 : index
    %c2_1426 = arith.constant 2 : index
    %1464 = arith.index_cast %1463 : i32 to index
    %c0_1427 = arith.constant 0 : index
    %1465 = vector.load %arg2[%c0_1425, %c2_1426, %1464, %c0_1427] : memref<1x3x18x18xf32, #tpu.memory_space<vmem>>, vector<1x1x1x16xf32>
    %1466 = vector.shape_cast %1465 : vector<1x1x1x16xf32> to vector<1x16xf32>
    %c1_i32_1428 = arith.constant 1 : i32
    %1467 = arith.addi %0, %c1_i32_1428 : i32
    %c0_i32_1429 = arith.constant 0 : i32
    %1468 = arith.addi %1467, %c0_i32_1429 : i32
    %c0_1430 = arith.constant 0 : index
    %c2_1431 = arith.constant 2 : index
    %1469 = arith.index_cast %1468 : i32 to index
    %c0_1432 = arith.constant 0 : index
    %1470 = vector.load %arg2[%c0_1430, %c2_1431, %1469, %c0_1432] : memref<1x3x18x18xf32, #tpu.memory_space<vmem>>, vector<1x1x1x16xf32>
    %1471 = vector.shape_cast %1470 : vector<1x1x1x16xf32> to vector<1x16xf32>
    %c2_i32_1433 = arith.constant 2 : i32
    %1472 = arith.addi %0, %c2_i32_1433 : i32
    %c0_i32_1434 = arith.constant 0 : i32
    %1473 = arith.addi %1472, %c0_i32_1434 : i32
    %c0_1435 = arith.constant 0 : index
    %c2_1436 = arith.constant 2 : index
    %1474 = arith.index_cast %1473 : i32 to index
    %c0_1437 = arith.constant 0 : index
    %1475 = vector.load %arg2[%c0_1435, %c2_1436, %1474, %c0_1437] : memref<1x3x18x18xf32, #tpu.memory_space<vmem>>, vector<1x1x1x16xf32>
    %1476 = vector.shape_cast %1475 : vector<1x1x1x16xf32> to vector<1x16xf32>
    %c3_i32_1438 = arith.constant 3 : i32
    %1477 = arith.addi %0, %c3_i32_1438 : i32
    %c0_i32_1439 = arith.constant 0 : i32
    %1478 = arith.addi %1477, %c0_i32_1439 : i32
    %c0_1440 = arith.constant 0 : index
    %c2_1441 = arith.constant 2 : index
    %1479 = arith.index_cast %1478 : i32 to index
    %c0_1442 = arith.constant 0 : index
    %1480 = vector.load %arg2[%c0_1440, %c2_1441, %1479, %c0_1442] : memref<1x3x18x18xf32, #tpu.memory_space<vmem>>, vector<1x1x1x16xf32>
    %1481 = vector.shape_cast %1480 : vector<1x1x1x16xf32> to vector<1x16xf32>
    %c4_i32_1443 = arith.constant 4 : i32
    %1482 = arith.addi %0, %c4_i32_1443 : i32
    %c0_i32_1444 = arith.constant 0 : i32
    %1483 = arith.addi %1482, %c0_i32_1444 : i32
    %c0_1445 = arith.constant 0 : index
    %c2_1446 = arith.constant 2 : index
    %1484 = arith.index_cast %1483 : i32 to index
    %c0_1447 = arith.constant 0 : index
    %1485 = vector.load %arg2[%c0_1445, %c2_1446, %1484, %c0_1447] : memref<1x3x18x18xf32, #tpu.memory_space<vmem>>, vector<1x1x1x16xf32>
    %1486 = vector.shape_cast %1485 : vector<1x1x1x16xf32> to vector<1x16xf32>
    %c5_i32_1448 = arith.constant 5 : i32
    %1487 = arith.addi %0, %c5_i32_1448 : i32
    %c0_i32_1449 = arith.constant 0 : i32
    %1488 = arith.addi %1487, %c0_i32_1449 : i32
    %c0_1450 = arith.constant 0 : index
    %c2_1451 = arith.constant 2 : index
    %1489 = arith.index_cast %1488 : i32 to index
    %c0_1452 = arith.constant 0 : index
    %1490 = vector.load %arg2[%c0_1450, %c2_1451, %1489, %c0_1452] : memref<1x3x18x18xf32, #tpu.memory_space<vmem>>, vector<1x1x1x16xf32>
    %1491 = vector.shape_cast %1490 : vector<1x1x1x16xf32> to vector<1x16xf32>
    %c6_i32_1453 = arith.constant 6 : i32
    %1492 = arith.addi %0, %c6_i32_1453 : i32
    %c0_i32_1454 = arith.constant 0 : i32
    %1493 = arith.addi %1492, %c0_i32_1454 : i32
    %c0_1455 = arith.constant 0 : index
    %c2_1456 = arith.constant 2 : index
    %1494 = arith.index_cast %1493 : i32 to index
    %c0_1457 = arith.constant 0 : index
    %1495 = vector.load %arg2[%c0_1455, %c2_1456, %1494, %c0_1457] : memref<1x3x18x18xf32, #tpu.memory_space<vmem>>, vector<1x1x1x16xf32>
    %1496 = vector.shape_cast %1495 : vector<1x1x1x16xf32> to vector<1x16xf32>
    %c7_i32_1458 = arith.constant 7 : i32
    %1497 = arith.addi %0, %c7_i32_1458 : i32
    %c0_i32_1459 = arith.constant 0 : i32
    %1498 = arith.addi %1497, %c0_i32_1459 : i32
    %c0_1460 = arith.constant 0 : index
    %c2_1461 = arith.constant 2 : index
    %1499 = arith.index_cast %1498 : i32 to index
    %c0_1462 = arith.constant 0 : index
    %1500 = vector.load %arg2[%c0_1460, %c2_1461, %1499, %c0_1462] : memref<1x3x18x18xf32, #tpu.memory_space<vmem>>, vector<1x1x1x16xf32>
    %1501 = vector.shape_cast %1500 : vector<1x1x1x16xf32> to vector<1x16xf32>
    %c8_i32_1463 = arith.constant 8 : i32
    %1502 = arith.addi %0, %c8_i32_1463 : i32
    %c0_i32_1464 = arith.constant 0 : i32
    %1503 = arith.addi %1502, %c0_i32_1464 : i32
    %c0_1465 = arith.constant 0 : index
    %c2_1466 = arith.constant 2 : index
    %1504 = arith.index_cast %1503 : i32 to index
    %c0_1467 = arith.constant 0 : index
    %1505 = vector.load %arg2[%c0_1465, %c2_1466, %1504, %c0_1467] : memref<1x3x18x18xf32, #tpu.memory_space<vmem>>, vector<1x1x1x16xf32>
    %1506 = vector.shape_cast %1505 : vector<1x1x1x16xf32> to vector<1x16xf32>
    %c9_i32_1468 = arith.constant 9 : i32
    %1507 = arith.addi %0, %c9_i32_1468 : i32
    %c0_i32_1469 = arith.constant 0 : i32
    %1508 = arith.addi %1507, %c0_i32_1469 : i32
    %c0_1470 = arith.constant 0 : index
    %c2_1471 = arith.constant 2 : index
    %1509 = arith.index_cast %1508 : i32 to index
    %c0_1472 = arith.constant 0 : index
    %1510 = vector.load %arg2[%c0_1470, %c2_1471, %1509, %c0_1472] : memref<1x3x18x18xf32, #tpu.memory_space<vmem>>, vector<1x1x1x16xf32>
    %1511 = vector.shape_cast %1510 : vector<1x1x1x16xf32> to vector<1x16xf32>
    %c10_i32_1473 = arith.constant 10 : i32
    %1512 = arith.addi %0, %c10_i32_1473 : i32
    %c0_i32_1474 = arith.constant 0 : i32
    %1513 = arith.addi %1512, %c0_i32_1474 : i32
    %c0_1475 = arith.constant 0 : index
    %c2_1476 = arith.constant 2 : index
    %1514 = arith.index_cast %1513 : i32 to index
    %c0_1477 = arith.constant 0 : index
    %1515 = vector.load %arg2[%c0_1475, %c2_1476, %1514, %c0_1477] : memref<1x3x18x18xf32, #tpu.memory_space<vmem>>, vector<1x1x1x16xf32>
    %1516 = vector.shape_cast %1515 : vector<1x1x1x16xf32> to vector<1x16xf32>
    %c11_i32_1478 = arith.constant 11 : i32
    %1517 = arith.addi %0, %c11_i32_1478 : i32
    %c0_i32_1479 = arith.constant 0 : i32
    %1518 = arith.addi %1517, %c0_i32_1479 : i32
    %c0_1480 = arith.constant 0 : index
    %c2_1481 = arith.constant 2 : index
    %1519 = arith.index_cast %1518 : i32 to index
    %c0_1482 = arith.constant 0 : index
    %1520 = vector.load %arg2[%c0_1480, %c2_1481, %1519, %c0_1482] : memref<1x3x18x18xf32, #tpu.memory_space<vmem>>, vector<1x1x1x16xf32>
    %1521 = vector.shape_cast %1520 : vector<1x1x1x16xf32> to vector<1x16xf32>
    %c12_i32_1483 = arith.constant 12 : i32
    %1522 = arith.addi %0, %c12_i32_1483 : i32
    %c0_i32_1484 = arith.constant 0 : i32
    %1523 = arith.addi %1522, %c0_i32_1484 : i32
    %c0_1485 = arith.constant 0 : index
    %c2_1486 = arith.constant 2 : index
    %1524 = arith.index_cast %1523 : i32 to index
    %c0_1487 = arith.constant 0 : index
    %1525 = vector.load %arg2[%c0_1485, %c2_1486, %1524, %c0_1487] : memref<1x3x18x18xf32, #tpu.memory_space<vmem>>, vector<1x1x1x16xf32>
    %1526 = vector.shape_cast %1525 : vector<1x1x1x16xf32> to vector<1x16xf32>
    %c13_i32_1488 = arith.constant 13 : i32
    %1527 = arith.addi %0, %c13_i32_1488 : i32
    %c0_i32_1489 = arith.constant 0 : i32
    %1528 = arith.addi %1527, %c0_i32_1489 : i32
    %c0_1490 = arith.constant 0 : index
    %c2_1491 = arith.constant 2 : index
    %1529 = arith.index_cast %1528 : i32 to index
    %c0_1492 = arith.constant 0 : index
    %1530 = vector.load %arg2[%c0_1490, %c2_1491, %1529, %c0_1492] : memref<1x3x18x18xf32, #tpu.memory_space<vmem>>, vector<1x1x1x16xf32>
    %1531 = vector.shape_cast %1530 : vector<1x1x1x16xf32> to vector<1x16xf32>
    %c14_i32_1493 = arith.constant 14 : i32
    %1532 = arith.addi %0, %c14_i32_1493 : i32
    %c0_i32_1494 = arith.constant 0 : i32
    %1533 = arith.addi %1532, %c0_i32_1494 : i32
    %c0_1495 = arith.constant 0 : index
    %c2_1496 = arith.constant 2 : index
    %1534 = arith.index_cast %1533 : i32 to index
    %c0_1497 = arith.constant 0 : index
    %1535 = vector.load %arg2[%c0_1495, %c2_1496, %1534, %c0_1497] : memref<1x3x18x18xf32, #tpu.memory_space<vmem>>, vector<1x1x1x16xf32>
    %1536 = vector.shape_cast %1535 : vector<1x1x1x16xf32> to vector<1x16xf32>
    %c15_i32_1498 = arith.constant 15 : i32
    %1537 = arith.addi %0, %c15_i32_1498 : i32
    %c0_i32_1499 = arith.constant 0 : i32
    %1538 = arith.addi %1537, %c0_i32_1499 : i32
    %c0_1500 = arith.constant 0 : index
    %c2_1501 = arith.constant 2 : index
    %1539 = arith.index_cast %1538 : i32 to index
    %c0_1502 = arith.constant 0 : index
    %1540 = vector.load %arg2[%c0_1500, %c2_1501, %1539, %c0_1502] : memref<1x3x18x18xf32, #tpu.memory_space<vmem>>, vector<1x1x1x16xf32>
    %1541 = vector.shape_cast %1540 : vector<1x1x1x16xf32> to vector<1x16xf32>
    %1542 = tpu.concatenate %1466, %1471, %1476, %1481, %1486, %1491, %1496, %1501, %1506, %1511, %1516, %1521, %1526, %1531, %1536, %1541 in 1 : vector<1x16xf32>, vector<1x16xf32>, vector<1x16xf32>, vector<1x16xf32>, vector<1x16xf32>, vector<1x16xf32>, vector<1x16xf32>, vector<1x16xf32>, vector<1x16xf32>, vector<1x16xf32>, vector<1x16xf32>, vector<1x16xf32>, vector<1x16xf32>, vector<1x16xf32>, vector<1x16xf32>, vector<1x16xf32> -> vector<1x256xf32>
    %c0_i32_1503 = arith.constant 0 : i32
    %1543 = arith.addi %0, %c0_i32_1503 : i32
    %c0_i32_1504 = arith.constant 0 : i32
    %1544 = arith.addi %1543, %c0_i32_1504 : i32
    %c0_1505 = arith.constant 0 : index
    %c2_1506 = arith.constant 2 : index
    %1545 = arith.index_cast %1544 : i32 to index
    %c1_1507 = arith.constant 1 : index
    %1546 = vector.load %arg2[%c0_1505, %c2_1506, %1545, %c1_1507] : memref<1x3x18x18xf32, #tpu.memory_space<vmem>>, vector<1x1x1x16xf32>
    %1547 = vector.shape_cast %1546 : vector<1x1x1x16xf32> to vector<1x16xf32>
    %c1_i32_1508 = arith.constant 1 : i32
    %1548 = arith.addi %0, %c1_i32_1508 : i32
    %c0_i32_1509 = arith.constant 0 : i32
    %1549 = arith.addi %1548, %c0_i32_1509 : i32
    %c0_1510 = arith.constant 0 : index
    %c2_1511 = arith.constant 2 : index
    %1550 = arith.index_cast %1549 : i32 to index
    %c1_1512 = arith.constant 1 : index
    %1551 = vector.load %arg2[%c0_1510, %c2_1511, %1550, %c1_1512] : memref<1x3x18x18xf32, #tpu.memory_space<vmem>>, vector<1x1x1x16xf32>
    %1552 = vector.shape_cast %1551 : vector<1x1x1x16xf32> to vector<1x16xf32>
    %c2_i32_1513 = arith.constant 2 : i32
    %1553 = arith.addi %0, %c2_i32_1513 : i32
    %c0_i32_1514 = arith.constant 0 : i32
    %1554 = arith.addi %1553, %c0_i32_1514 : i32
    %c0_1515 = arith.constant 0 : index
    %c2_1516 = arith.constant 2 : index
    %1555 = arith.index_cast %1554 : i32 to index
    %c1_1517 = arith.constant 1 : index
    %1556 = vector.load %arg2[%c0_1515, %c2_1516, %1555, %c1_1517] : memref<1x3x18x18xf32, #tpu.memory_space<vmem>>, vector<1x1x1x16xf32>
    %1557 = vector.shape_cast %1556 : vector<1x1x1x16xf32> to vector<1x16xf32>
    %c3_i32_1518 = arith.constant 3 : i32
    %1558 = arith.addi %0, %c3_i32_1518 : i32
    %c0_i32_1519 = arith.constant 0 : i32
    %1559 = arith.addi %1558, %c0_i32_1519 : i32
    %c0_1520 = arith.constant 0 : index
    %c2_1521 = arith.constant 2 : index
    %1560 = arith.index_cast %1559 : i32 to index
    %c1_1522 = arith.constant 1 : index
    %1561 = vector.load %arg2[%c0_1520, %c2_1521, %1560, %c1_1522] : memref<1x3x18x18xf32, #tpu.memory_space<vmem>>, vector<1x1x1x16xf32>
    %1562 = vector.shape_cast %1561 : vector<1x1x1x16xf32> to vector<1x16xf32>
    %c4_i32_1523 = arith.constant 4 : i32
    %1563 = arith.addi %0, %c4_i32_1523 : i32
    %c0_i32_1524 = arith.constant 0 : i32
    %1564 = arith.addi %1563, %c0_i32_1524 : i32
    %c0_1525 = arith.constant 0 : index
    %c2_1526 = arith.constant 2 : index
    %1565 = arith.index_cast %1564 : i32 to index
    %c1_1527 = arith.constant 1 : index
    %1566 = vector.load %arg2[%c0_1525, %c2_1526, %1565, %c1_1527] : memref<1x3x18x18xf32, #tpu.memory_space<vmem>>, vector<1x1x1x16xf32>
    %1567 = vector.shape_cast %1566 : vector<1x1x1x16xf32> to vector<1x16xf32>
    %c5_i32_1528 = arith.constant 5 : i32
    %1568 = arith.addi %0, %c5_i32_1528 : i32
    %c0_i32_1529 = arith.constant 0 : i32
    %1569 = arith.addi %1568, %c0_i32_1529 : i32
    %c0_1530 = arith.constant 0 : index
    %c2_1531 = arith.constant 2 : index
    %1570 = arith.index_cast %1569 : i32 to index
    %c1_1532 = arith.constant 1 : index
    %1571 = vector.load %arg2[%c0_1530, %c2_1531, %1570, %c1_1532] : memref<1x3x18x18xf32, #tpu.memory_space<vmem>>, vector<1x1x1x16xf32>
    %1572 = vector.shape_cast %1571 : vector<1x1x1x16xf32> to vector<1x16xf32>
    %c6_i32_1533 = arith.constant 6 : i32
    %1573 = arith.addi %0, %c6_i32_1533 : i32
    %c0_i32_1534 = arith.constant 0 : i32
    %1574 = arith.addi %1573, %c0_i32_1534 : i32
    %c0_1535 = arith.constant 0 : index
    %c2_1536 = arith.constant 2 : index
    %1575 = arith.index_cast %1574 : i32 to index
    %c1_1537 = arith.constant 1 : index
    %1576 = vector.load %arg2[%c0_1535, %c2_1536, %1575, %c1_1537] : memref<1x3x18x18xf32, #tpu.memory_space<vmem>>, vector<1x1x1x16xf32>
    %1577 = vector.shape_cast %1576 : vector<1x1x1x16xf32> to vector<1x16xf32>
    %c7_i32_1538 = arith.constant 7 : i32
    %1578 = arith.addi %0, %c7_i32_1538 : i32
    %c0_i32_1539 = arith.constant 0 : i32
    %1579 = arith.addi %1578, %c0_i32_1539 : i32
    %c0_1540 = arith.constant 0 : index
    %c2_1541 = arith.constant 2 : index
    %1580 = arith.index_cast %1579 : i32 to index
    %c1_1542 = arith.constant 1 : index
    %1581 = vector.load %arg2[%c0_1540, %c2_1541, %1580, %c1_1542] : memref<1x3x18x18xf32, #tpu.memory_space<vmem>>, vector<1x1x1x16xf32>
    %1582 = vector.shape_cast %1581 : vector<1x1x1x16xf32> to vector<1x16xf32>
    %c8_i32_1543 = arith.constant 8 : i32
    %1583 = arith.addi %0, %c8_i32_1543 : i32
    %c0_i32_1544 = arith.constant 0 : i32
    %1584 = arith.addi %1583, %c0_i32_1544 : i32
    %c0_1545 = arith.constant 0 : index
    %c2_1546 = arith.constant 2 : index
    %1585 = arith.index_cast %1584 : i32 to index
    %c1_1547 = arith.constant 1 : index
    %1586 = vector.load %arg2[%c0_1545, %c2_1546, %1585, %c1_1547] : memref<1x3x18x18xf32, #tpu.memory_space<vmem>>, vector<1x1x1x16xf32>
    %1587 = vector.shape_cast %1586 : vector<1x1x1x16xf32> to vector<1x16xf32>
    %c9_i32_1548 = arith.constant 9 : i32
    %1588 = arith.addi %0, %c9_i32_1548 : i32
    %c0_i32_1549 = arith.constant 0 : i32
    %1589 = arith.addi %1588, %c0_i32_1549 : i32
    %c0_1550 = arith.constant 0 : index
    %c2_1551 = arith.constant 2 : index
    %1590 = arith.index_cast %1589 : i32 to index
    %c1_1552 = arith.constant 1 : index
    %1591 = vector.load %arg2[%c0_1550, %c2_1551, %1590, %c1_1552] : memref<1x3x18x18xf32, #tpu.memory_space<vmem>>, vector<1x1x1x16xf32>
    %1592 = vector.shape_cast %1591 : vector<1x1x1x16xf32> to vector<1x16xf32>
    %c10_i32_1553 = arith.constant 10 : i32
    %1593 = arith.addi %0, %c10_i32_1553 : i32
    %c0_i32_1554 = arith.constant 0 : i32
    %1594 = arith.addi %1593, %c0_i32_1554 : i32
    %c0_1555 = arith.constant 0 : index
    %c2_1556 = arith.constant 2 : index
    %1595 = arith.index_cast %1594 : i32 to index
    %c1_1557 = arith.constant 1 : index
    %1596 = vector.load %arg2[%c0_1555, %c2_1556, %1595, %c1_1557] : memref<1x3x18x18xf32, #tpu.memory_space<vmem>>, vector<1x1x1x16xf32>
    %1597 = vector.shape_cast %1596 : vector<1x1x1x16xf32> to vector<1x16xf32>
    %c11_i32_1558 = arith.constant 11 : i32
    %1598 = arith.addi %0, %c11_i32_1558 : i32
    %c0_i32_1559 = arith.constant 0 : i32
    %1599 = arith.addi %1598, %c0_i32_1559 : i32
    %c0_1560 = arith.constant 0 : index
    %c2_1561 = arith.constant 2 : index
    %1600 = arith.index_cast %1599 : i32 to index
    %c1_1562 = arith.constant 1 : index
    %1601 = vector.load %arg2[%c0_1560, %c2_1561, %1600, %c1_1562] : memref<1x3x18x18xf32, #tpu.memory_space<vmem>>, vector<1x1x1x16xf32>
    %1602 = vector.shape_cast %1601 : vector<1x1x1x16xf32> to vector<1x16xf32>
    %c12_i32_1563 = arith.constant 12 : i32
    %1603 = arith.addi %0, %c12_i32_1563 : i32
    %c0_i32_1564 = arith.constant 0 : i32
    %1604 = arith.addi %1603, %c0_i32_1564 : i32
    %c0_1565 = arith.constant 0 : index
    %c2_1566 = arith.constant 2 : index
    %1605 = arith.index_cast %1604 : i32 to index
    %c1_1567 = arith.constant 1 : index
    %1606 = vector.load %arg2[%c0_1565, %c2_1566, %1605, %c1_1567] : memref<1x3x18x18xf32, #tpu.memory_space<vmem>>, vector<1x1x1x16xf32>
    %1607 = vector.shape_cast %1606 : vector<1x1x1x16xf32> to vector<1x16xf32>
    %c13_i32_1568 = arith.constant 13 : i32
    %1608 = arith.addi %0, %c13_i32_1568 : i32
    %c0_i32_1569 = arith.constant 0 : i32
    %1609 = arith.addi %1608, %c0_i32_1569 : i32
    %c0_1570 = arith.constant 0 : index
    %c2_1571 = arith.constant 2 : index
    %1610 = arith.index_cast %1609 : i32 to index
    %c1_1572 = arith.constant 1 : index
    %1611 = vector.load %arg2[%c0_1570, %c2_1571, %1610, %c1_1572] : memref<1x3x18x18xf32, #tpu.memory_space<vmem>>, vector<1x1x1x16xf32>
    %1612 = vector.shape_cast %1611 : vector<1x1x1x16xf32> to vector<1x16xf32>
    %c14_i32_1573 = arith.constant 14 : i32
    %1613 = arith.addi %0, %c14_i32_1573 : i32
    %c0_i32_1574 = arith.constant 0 : i32
    %1614 = arith.addi %1613, %c0_i32_1574 : i32
    %c0_1575 = arith.constant 0 : index
    %c2_1576 = arith.constant 2 : index
    %1615 = arith.index_cast %1614 : i32 to index
    %c1_1577 = arith.constant 1 : index
    %1616 = vector.load %arg2[%c0_1575, %c2_1576, %1615, %c1_1577] : memref<1x3x18x18xf32, #tpu.memory_space<vmem>>, vector<1x1x1x16xf32>
    %1617 = vector.shape_cast %1616 : vector<1x1x1x16xf32> to vector<1x16xf32>
    %c15_i32_1578 = arith.constant 15 : i32
    %1618 = arith.addi %0, %c15_i32_1578 : i32
    %c0_i32_1579 = arith.constant 0 : i32
    %1619 = arith.addi %1618, %c0_i32_1579 : i32
    %c0_1580 = arith.constant 0 : index
    %c2_1581 = arith.constant 2 : index
    %1620 = arith.index_cast %1619 : i32 to index
    %c1_1582 = arith.constant 1 : index
    %1621 = vector.load %arg2[%c0_1580, %c2_1581, %1620, %c1_1582] : memref<1x3x18x18xf32, #tpu.memory_space<vmem>>, vector<1x1x1x16xf32>
    %1622 = vector.shape_cast %1621 : vector<1x1x1x16xf32> to vector<1x16xf32>
    %1623 = tpu.concatenate %1547, %1552, %1557, %1562, %1567, %1572, %1577, %1582, %1587, %1592, %1597, %1602, %1607, %1612, %1617, %1622 in 1 : vector<1x16xf32>, vector<1x16xf32>, vector<1x16xf32>, vector<1x16xf32>, vector<1x16xf32>, vector<1x16xf32>, vector<1x16xf32>, vector<1x16xf32>, vector<1x16xf32>, vector<1x16xf32>, vector<1x16xf32>, vector<1x16xf32>, vector<1x16xf32>, vector<1x16xf32>, vector<1x16xf32>, vector<1x16xf32> -> vector<1x256xf32>
    %c0_i32_1583 = arith.constant 0 : i32
    %1624 = arith.addi %0, %c0_i32_1583 : i32
    %c0_i32_1584 = arith.constant 0 : i32
    %1625 = arith.addi %1624, %c0_i32_1584 : i32
    %c0_1585 = arith.constant 0 : index
    %c2_1586 = arith.constant 2 : index
    %1626 = arith.index_cast %1625 : i32 to index
    %c2_1587 = arith.constant 2 : index
    %1627 = vector.load %arg2[%c0_1585, %c2_1586, %1626, %c2_1587] : memref<1x3x18x18xf32, #tpu.memory_space<vmem>>, vector<1x1x1x16xf32>
    %1628 = vector.shape_cast %1627 : vector<1x1x1x16xf32> to vector<1x16xf32>
    %c1_i32_1588 = arith.constant 1 : i32
    %1629 = arith.addi %0, %c1_i32_1588 : i32
    %c0_i32_1589 = arith.constant 0 : i32
    %1630 = arith.addi %1629, %c0_i32_1589 : i32
    %c0_1590 = arith.constant 0 : index
    %c2_1591 = arith.constant 2 : index
    %1631 = arith.index_cast %1630 : i32 to index
    %c2_1592 = arith.constant 2 : index
    %1632 = vector.load %arg2[%c0_1590, %c2_1591, %1631, %c2_1592] : memref<1x3x18x18xf32, #tpu.memory_space<vmem>>, vector<1x1x1x16xf32>
    %1633 = vector.shape_cast %1632 : vector<1x1x1x16xf32> to vector<1x16xf32>
    %c2_i32_1593 = arith.constant 2 : i32
    %1634 = arith.addi %0, %c2_i32_1593 : i32
    %c0_i32_1594 = arith.constant 0 : i32
    %1635 = arith.addi %1634, %c0_i32_1594 : i32
    %c0_1595 = arith.constant 0 : index
    %c2_1596 = arith.constant 2 : index
    %1636 = arith.index_cast %1635 : i32 to index
    %c2_1597 = arith.constant 2 : index
    %1637 = vector.load %arg2[%c0_1595, %c2_1596, %1636, %c2_1597] : memref<1x3x18x18xf32, #tpu.memory_space<vmem>>, vector<1x1x1x16xf32>
    %1638 = vector.shape_cast %1637 : vector<1x1x1x16xf32> to vector<1x16xf32>
    %c3_i32_1598 = arith.constant 3 : i32
    %1639 = arith.addi %0, %c3_i32_1598 : i32
    %c0_i32_1599 = arith.constant 0 : i32
    %1640 = arith.addi %1639, %c0_i32_1599 : i32
    %c0_1600 = arith.constant 0 : index
    %c2_1601 = arith.constant 2 : index
    %1641 = arith.index_cast %1640 : i32 to index
    %c2_1602 = arith.constant 2 : index
    %1642 = vector.load %arg2[%c0_1600, %c2_1601, %1641, %c2_1602] : memref<1x3x18x18xf32, #tpu.memory_space<vmem>>, vector<1x1x1x16xf32>
    %1643 = vector.shape_cast %1642 : vector<1x1x1x16xf32> to vector<1x16xf32>
    %c4_i32_1603 = arith.constant 4 : i32
    %1644 = arith.addi %0, %c4_i32_1603 : i32
    %c0_i32_1604 = arith.constant 0 : i32
    %1645 = arith.addi %1644, %c0_i32_1604 : i32
    %c0_1605 = arith.constant 0 : index
    %c2_1606 = arith.constant 2 : index
    %1646 = arith.index_cast %1645 : i32 to index
    %c2_1607 = arith.constant 2 : index
    %1647 = vector.load %arg2[%c0_1605, %c2_1606, %1646, %c2_1607] : memref<1x3x18x18xf32, #tpu.memory_space<vmem>>, vector<1x1x1x16xf32>
    %1648 = vector.shape_cast %1647 : vector<1x1x1x16xf32> to vector<1x16xf32>
    %c5_i32_1608 = arith.constant 5 : i32
    %1649 = arith.addi %0, %c5_i32_1608 : i32
    %c0_i32_1609 = arith.constant 0 : i32
    %1650 = arith.addi %1649, %c0_i32_1609 : i32
    %c0_1610 = arith.constant 0 : index
    %c2_1611 = arith.constant 2 : index
    %1651 = arith.index_cast %1650 : i32 to index
    %c2_1612 = arith.constant 2 : index
    %1652 = vector.load %arg2[%c0_1610, %c2_1611, %1651, %c2_1612] : memref<1x3x18x18xf32, #tpu.memory_space<vmem>>, vector<1x1x1x16xf32>
    %1653 = vector.shape_cast %1652 : vector<1x1x1x16xf32> to vector<1x16xf32>
    %c6_i32_1613 = arith.constant 6 : i32
    %1654 = arith.addi %0, %c6_i32_1613 : i32
    %c0_i32_1614 = arith.constant 0 : i32
    %1655 = arith.addi %1654, %c0_i32_1614 : i32
    %c0_1615 = arith.constant 0 : index
    %c2_1616 = arith.constant 2 : index
    %1656 = arith.index_cast %1655 : i32 to index
    %c2_1617 = arith.constant 2 : index
    %1657 = vector.load %arg2[%c0_1615, %c2_1616, %1656, %c2_1617] : memref<1x3x18x18xf32, #tpu.memory_space<vmem>>, vector<1x1x1x16xf32>
    %1658 = vector.shape_cast %1657 : vector<1x1x1x16xf32> to vector<1x16xf32>
    %c7_i32_1618 = arith.constant 7 : i32
    %1659 = arith.addi %0, %c7_i32_1618 : i32
    %c0_i32_1619 = arith.constant 0 : i32
    %1660 = arith.addi %1659, %c0_i32_1619 : i32
    %c0_1620 = arith.constant 0 : index
    %c2_1621 = arith.constant 2 : index
    %1661 = arith.index_cast %1660 : i32 to index
    %c2_1622 = arith.constant 2 : index
    %1662 = vector.load %arg2[%c0_1620, %c2_1621, %1661, %c2_1622] : memref<1x3x18x18xf32, #tpu.memory_space<vmem>>, vector<1x1x1x16xf32>
    %1663 = vector.shape_cast %1662 : vector<1x1x1x16xf32> to vector<1x16xf32>
    %c8_i32_1623 = arith.constant 8 : i32
    %1664 = arith.addi %0, %c8_i32_1623 : i32
    %c0_i32_1624 = arith.constant 0 : i32
    %1665 = arith.addi %1664, %c0_i32_1624 : i32
    %c0_1625 = arith.constant 0 : index
    %c2_1626 = arith.constant 2 : index
    %1666 = arith.index_cast %1665 : i32 to index
    %c2_1627 = arith.constant 2 : index
    %1667 = vector.load %arg2[%c0_1625, %c2_1626, %1666, %c2_1627] : memref<1x3x18x18xf32, #tpu.memory_space<vmem>>, vector<1x1x1x16xf32>
    %1668 = vector.shape_cast %1667 : vector<1x1x1x16xf32> to vector<1x16xf32>
    %c9_i32_1628 = arith.constant 9 : i32
    %1669 = arith.addi %0, %c9_i32_1628 : i32
    %c0_i32_1629 = arith.constant 0 : i32
    %1670 = arith.addi %1669, %c0_i32_1629 : i32
    %c0_1630 = arith.constant 0 : index
    %c2_1631 = arith.constant 2 : index
    %1671 = arith.index_cast %1670 : i32 to index
    %c2_1632 = arith.constant 2 : index
    %1672 = vector.load %arg2[%c0_1630, %c2_1631, %1671, %c2_1632] : memref<1x3x18x18xf32, #tpu.memory_space<vmem>>, vector<1x1x1x16xf32>
    %1673 = vector.shape_cast %1672 : vector<1x1x1x16xf32> to vector<1x16xf32>
    %c10_i32_1633 = arith.constant 10 : i32
    %1674 = arith.addi %0, %c10_i32_1633 : i32
    %c0_i32_1634 = arith.constant 0 : i32
    %1675 = arith.addi %1674, %c0_i32_1634 : i32
    %c0_1635 = arith.constant 0 : index
    %c2_1636 = arith.constant 2 : index
    %1676 = arith.index_cast %1675 : i32 to index
    %c2_1637 = arith.constant 2 : index
    %1677 = vector.load %arg2[%c0_1635, %c2_1636, %1676, %c2_1637] : memref<1x3x18x18xf32, #tpu.memory_space<vmem>>, vector<1x1x1x16xf32>
    %1678 = vector.shape_cast %1677 : vector<1x1x1x16xf32> to vector<1x16xf32>
    %c11_i32_1638 = arith.constant 11 : i32
    %1679 = arith.addi %0, %c11_i32_1638 : i32
    %c0_i32_1639 = arith.constant 0 : i32
    %1680 = arith.addi %1679, %c0_i32_1639 : i32
    %c0_1640 = arith.constant 0 : index
    %c2_1641 = arith.constant 2 : index
    %1681 = arith.index_cast %1680 : i32 to index
    %c2_1642 = arith.constant 2 : index
    %1682 = vector.load %arg2[%c0_1640, %c2_1641, %1681, %c2_1642] : memref<1x3x18x18xf32, #tpu.memory_space<vmem>>, vector<1x1x1x16xf32>
    %1683 = vector.shape_cast %1682 : vector<1x1x1x16xf32> to vector<1x16xf32>
    %c12_i32_1643 = arith.constant 12 : i32
    %1684 = arith.addi %0, %c12_i32_1643 : i32
    %c0_i32_1644 = arith.constant 0 : i32
    %1685 = arith.addi %1684, %c0_i32_1644 : i32
    %c0_1645 = arith.constant 0 : index
    %c2_1646 = arith.constant 2 : index
    %1686 = arith.index_cast %1685 : i32 to index
    %c2_1647 = arith.constant 2 : index
    %1687 = vector.load %arg2[%c0_1645, %c2_1646, %1686, %c2_1647] : memref<1x3x18x18xf32, #tpu.memory_space<vmem>>, vector<1x1x1x16xf32>
    %1688 = vector.shape_cast %1687 : vector<1x1x1x16xf32> to vector<1x16xf32>
    %c13_i32_1648 = arith.constant 13 : i32
    %1689 = arith.addi %0, %c13_i32_1648 : i32
    %c0_i32_1649 = arith.constant 0 : i32
    %1690 = arith.addi %1689, %c0_i32_1649 : i32
    %c0_1650 = arith.constant 0 : index
    %c2_1651 = arith.constant 2 : index
    %1691 = arith.index_cast %1690 : i32 to index
    %c2_1652 = arith.constant 2 : index
    %1692 = vector.load %arg2[%c0_1650, %c2_1651, %1691, %c2_1652] : memref<1x3x18x18xf32, #tpu.memory_space<vmem>>, vector<1x1x1x16xf32>
    %1693 = vector.shape_cast %1692 : vector<1x1x1x16xf32> to vector<1x16xf32>
    %c14_i32_1653 = arith.constant 14 : i32
    %1694 = arith.addi %0, %c14_i32_1653 : i32
    %c0_i32_1654 = arith.constant 0 : i32
    %1695 = arith.addi %1694, %c0_i32_1654 : i32
    %c0_1655 = arith.constant 0 : index
    %c2_1656 = arith.constant 2 : index
    %1696 = arith.index_cast %1695 : i32 to index
    %c2_1657 = arith.constant 2 : index
    %1697 = vector.load %arg2[%c0_1655, %c2_1656, %1696, %c2_1657] : memref<1x3x18x18xf32, #tpu.memory_space<vmem>>, vector<1x1x1x16xf32>
    %1698 = vector.shape_cast %1697 : vector<1x1x1x16xf32> to vector<1x16xf32>
    %c15_i32_1658 = arith.constant 15 : i32
    %1699 = arith.addi %0, %c15_i32_1658 : i32
    %c0_i32_1659 = arith.constant 0 : i32
    %1700 = arith.addi %1699, %c0_i32_1659 : i32
    %c0_1660 = arith.constant 0 : index
    %c2_1661 = arith.constant 2 : index
    %1701 = arith.index_cast %1700 : i32 to index
    %c2_1662 = arith.constant 2 : index
    %1702 = vector.load %arg2[%c0_1660, %c2_1661, %1701, %c2_1662] : memref<1x3x18x18xf32, #tpu.memory_space<vmem>>, vector<1x1x1x16xf32>
    %1703 = vector.shape_cast %1702 : vector<1x1x1x16xf32> to vector<1x16xf32>
    %1704 = tpu.concatenate %1628, %1633, %1638, %1643, %1648, %1653, %1658, %1663, %1668, %1673, %1678, %1683, %1688, %1693, %1698, %1703 in 1 : vector<1x16xf32>, vector<1x16xf32>, vector<1x16xf32>, vector<1x16xf32>, vector<1x16xf32>, vector<1x16xf32>, vector<1x16xf32>, vector<1x16xf32>, vector<1x16xf32>, vector<1x16xf32>, vector<1x16xf32>, vector<1x16xf32>, vector<1x16xf32>, vector<1x16xf32>, vector<1x16xf32>, vector<1x16xf32> -> vector<1x256xf32>
    %c0_i32_1663 = arith.constant 0 : i32
    %1705 = arith.addi %0, %c0_i32_1663 : i32
    %c1_i32_1664 = arith.constant 1 : i32
    %1706 = arith.addi %1705, %c1_i32_1664 : i32
    %c0_1665 = arith.constant 0 : index
    %c2_1666 = arith.constant 2 : index
    %1707 = arith.index_cast %1706 : i32 to index
    %c0_1667 = arith.constant 0 : index
    %1708 = vector.load %arg2[%c0_1665, %c2_1666, %1707, %c0_1667] : memref<1x3x18x18xf32, #tpu.memory_space<vmem>>, vector<1x1x1x16xf32>
    %1709 = vector.shape_cast %1708 : vector<1x1x1x16xf32> to vector<1x16xf32>
    %c1_i32_1668 = arith.constant 1 : i32
    %1710 = arith.addi %0, %c1_i32_1668 : i32
    %c1_i32_1669 = arith.constant 1 : i32
    %1711 = arith.addi %1710, %c1_i32_1669 : i32
    %c0_1670 = arith.constant 0 : index
    %c2_1671 = arith.constant 2 : index
    %1712 = arith.index_cast %1711 : i32 to index
    %c0_1672 = arith.constant 0 : index
    %1713 = vector.load %arg2[%c0_1670, %c2_1671, %1712, %c0_1672] : memref<1x3x18x18xf32, #tpu.memory_space<vmem>>, vector<1x1x1x16xf32>
    %1714 = vector.shape_cast %1713 : vector<1x1x1x16xf32> to vector<1x16xf32>
    %c2_i32_1673 = arith.constant 2 : i32
    %1715 = arith.addi %0, %c2_i32_1673 : i32
    %c1_i32_1674 = arith.constant 1 : i32
    %1716 = arith.addi %1715, %c1_i32_1674 : i32
    %c0_1675 = arith.constant 0 : index
    %c2_1676 = arith.constant 2 : index
    %1717 = arith.index_cast %1716 : i32 to index
    %c0_1677 = arith.constant 0 : index
    %1718 = vector.load %arg2[%c0_1675, %c2_1676, %1717, %c0_1677] : memref<1x3x18x18xf32, #tpu.memory_space<vmem>>, vector<1x1x1x16xf32>
    %1719 = vector.shape_cast %1718 : vector<1x1x1x16xf32> to vector<1x16xf32>
    %c3_i32_1678 = arith.constant 3 : i32
    %1720 = arith.addi %0, %c3_i32_1678 : i32
    %c1_i32_1679 = arith.constant 1 : i32
    %1721 = arith.addi %1720, %c1_i32_1679 : i32
    %c0_1680 = arith.constant 0 : index
    %c2_1681 = arith.constant 2 : index
    %1722 = arith.index_cast %1721 : i32 to index
    %c0_1682 = arith.constant 0 : index
    %1723 = vector.load %arg2[%c0_1680, %c2_1681, %1722, %c0_1682] : memref<1x3x18x18xf32, #tpu.memory_space<vmem>>, vector<1x1x1x16xf32>
    %1724 = vector.shape_cast %1723 : vector<1x1x1x16xf32> to vector<1x16xf32>
    %c4_i32_1683 = arith.constant 4 : i32
    %1725 = arith.addi %0, %c4_i32_1683 : i32
    %c1_i32_1684 = arith.constant 1 : i32
    %1726 = arith.addi %1725, %c1_i32_1684 : i32
    %c0_1685 = arith.constant 0 : index
    %c2_1686 = arith.constant 2 : index
    %1727 = arith.index_cast %1726 : i32 to index
    %c0_1687 = arith.constant 0 : index
    %1728 = vector.load %arg2[%c0_1685, %c2_1686, %1727, %c0_1687] : memref<1x3x18x18xf32, #tpu.memory_space<vmem>>, vector<1x1x1x16xf32>
    %1729 = vector.shape_cast %1728 : vector<1x1x1x16xf32> to vector<1x16xf32>
    %c5_i32_1688 = arith.constant 5 : i32
    %1730 = arith.addi %0, %c5_i32_1688 : i32
    %c1_i32_1689 = arith.constant 1 : i32
    %1731 = arith.addi %1730, %c1_i32_1689 : i32
    %c0_1690 = arith.constant 0 : index
    %c2_1691 = arith.constant 2 : index
    %1732 = arith.index_cast %1731 : i32 to index
    %c0_1692 = arith.constant 0 : index
    %1733 = vector.load %arg2[%c0_1690, %c2_1691, %1732, %c0_1692] : memref<1x3x18x18xf32, #tpu.memory_space<vmem>>, vector<1x1x1x16xf32>
    %1734 = vector.shape_cast %1733 : vector<1x1x1x16xf32> to vector<1x16xf32>
    %c6_i32_1693 = arith.constant 6 : i32
    %1735 = arith.addi %0, %c6_i32_1693 : i32
    %c1_i32_1694 = arith.constant 1 : i32
    %1736 = arith.addi %1735, %c1_i32_1694 : i32
    %c0_1695 = arith.constant 0 : index
    %c2_1696 = arith.constant 2 : index
    %1737 = arith.index_cast %1736 : i32 to index
    %c0_1697 = arith.constant 0 : index
    %1738 = vector.load %arg2[%c0_1695, %c2_1696, %1737, %c0_1697] : memref<1x3x18x18xf32, #tpu.memory_space<vmem>>, vector<1x1x1x16xf32>
    %1739 = vector.shape_cast %1738 : vector<1x1x1x16xf32> to vector<1x16xf32>
    %c7_i32_1698 = arith.constant 7 : i32
    %1740 = arith.addi %0, %c7_i32_1698 : i32
    %c1_i32_1699 = arith.constant 1 : i32
    %1741 = arith.addi %1740, %c1_i32_1699 : i32
    %c0_1700 = arith.constant 0 : index
    %c2_1701 = arith.constant 2 : index
    %1742 = arith.index_cast %1741 : i32 to index
    %c0_1702 = arith.constant 0 : index
    %1743 = vector.load %arg2[%c0_1700, %c2_1701, %1742, %c0_1702] : memref<1x3x18x18xf32, #tpu.memory_space<vmem>>, vector<1x1x1x16xf32>
    %1744 = vector.shape_cast %1743 : vector<1x1x1x16xf32> to vector<1x16xf32>
    %c8_i32_1703 = arith.constant 8 : i32
    %1745 = arith.addi %0, %c8_i32_1703 : i32
    %c1_i32_1704 = arith.constant 1 : i32
    %1746 = arith.addi %1745, %c1_i32_1704 : i32
    %c0_1705 = arith.constant 0 : index
    %c2_1706 = arith.constant 2 : index
    %1747 = arith.index_cast %1746 : i32 to index
    %c0_1707 = arith.constant 0 : index
    %1748 = vector.load %arg2[%c0_1705, %c2_1706, %1747, %c0_1707] : memref<1x3x18x18xf32, #tpu.memory_space<vmem>>, vector<1x1x1x16xf32>
    %1749 = vector.shape_cast %1748 : vector<1x1x1x16xf32> to vector<1x16xf32>
    %c9_i32_1708 = arith.constant 9 : i32
    %1750 = arith.addi %0, %c9_i32_1708 : i32
    %c1_i32_1709 = arith.constant 1 : i32
    %1751 = arith.addi %1750, %c1_i32_1709 : i32
    %c0_1710 = arith.constant 0 : index
    %c2_1711 = arith.constant 2 : index
    %1752 = arith.index_cast %1751 : i32 to index
    %c0_1712 = arith.constant 0 : index
    %1753 = vector.load %arg2[%c0_1710, %c2_1711, %1752, %c0_1712] : memref<1x3x18x18xf32, #tpu.memory_space<vmem>>, vector<1x1x1x16xf32>
    %1754 = vector.shape_cast %1753 : vector<1x1x1x16xf32> to vector<1x16xf32>
    %c10_i32_1713 = arith.constant 10 : i32
    %1755 = arith.addi %0, %c10_i32_1713 : i32
    %c1_i32_1714 = arith.constant 1 : i32
    %1756 = arith.addi %1755, %c1_i32_1714 : i32
    %c0_1715 = arith.constant 0 : index
    %c2_1716 = arith.constant 2 : index
    %1757 = arith.index_cast %1756 : i32 to index
    %c0_1717 = arith.constant 0 : index
    %1758 = vector.load %arg2[%c0_1715, %c2_1716, %1757, %c0_1717] : memref<1x3x18x18xf32, #tpu.memory_space<vmem>>, vector<1x1x1x16xf32>
    %1759 = vector.shape_cast %1758 : vector<1x1x1x16xf32> to vector<1x16xf32>
    %c11_i32_1718 = arith.constant 11 : i32
    %1760 = arith.addi %0, %c11_i32_1718 : i32
    %c1_i32_1719 = arith.constant 1 : i32
    %1761 = arith.addi %1760, %c1_i32_1719 : i32
    %c0_1720 = arith.constant 0 : index
    %c2_1721 = arith.constant 2 : index
    %1762 = arith.index_cast %1761 : i32 to index
    %c0_1722 = arith.constant 0 : index
    %1763 = vector.load %arg2[%c0_1720, %c2_1721, %1762, %c0_1722] : memref<1x3x18x18xf32, #tpu.memory_space<vmem>>, vector<1x1x1x16xf32>
    %1764 = vector.shape_cast %1763 : vector<1x1x1x16xf32> to vector<1x16xf32>
    %c12_i32_1723 = arith.constant 12 : i32
    %1765 = arith.addi %0, %c12_i32_1723 : i32
    %c1_i32_1724 = arith.constant 1 : i32
    %1766 = arith.addi %1765, %c1_i32_1724 : i32
    %c0_1725 = arith.constant 0 : index
    %c2_1726 = arith.constant 2 : index
    %1767 = arith.index_cast %1766 : i32 to index
    %c0_1727 = arith.constant 0 : index
    %1768 = vector.load %arg2[%c0_1725, %c2_1726, %1767, %c0_1727] : memref<1x3x18x18xf32, #tpu.memory_space<vmem>>, vector<1x1x1x16xf32>
    %1769 = vector.shape_cast %1768 : vector<1x1x1x16xf32> to vector<1x16xf32>
    %c13_i32_1728 = arith.constant 13 : i32
    %1770 = arith.addi %0, %c13_i32_1728 : i32
    %c1_i32_1729 = arith.constant 1 : i32
    %1771 = arith.addi %1770, %c1_i32_1729 : i32
    %c0_1730 = arith.constant 0 : index
    %c2_1731 = arith.constant 2 : index
    %1772 = arith.index_cast %1771 : i32 to index
    %c0_1732 = arith.constant 0 : index
    %1773 = vector.load %arg2[%c0_1730, %c2_1731, %1772, %c0_1732] : memref<1x3x18x18xf32, #tpu.memory_space<vmem>>, vector<1x1x1x16xf32>
    %1774 = vector.shape_cast %1773 : vector<1x1x1x16xf32> to vector<1x16xf32>
    %c14_i32_1733 = arith.constant 14 : i32
    %1775 = arith.addi %0, %c14_i32_1733 : i32
    %c1_i32_1734 = arith.constant 1 : i32
    %1776 = arith.addi %1775, %c1_i32_1734 : i32
    %c0_1735 = arith.constant 0 : index
    %c2_1736 = arith.constant 2 : index
    %1777 = arith.index_cast %1776 : i32 to index
    %c0_1737 = arith.constant 0 : index
    %1778 = vector.load %arg2[%c0_1735, %c2_1736, %1777, %c0_1737] : memref<1x3x18x18xf32, #tpu.memory_space<vmem>>, vector<1x1x1x16xf32>
    %1779 = vector.shape_cast %1778 : vector<1x1x1x16xf32> to vector<1x16xf32>
    %c15_i32_1738 = arith.constant 15 : i32
    %1780 = arith.addi %0, %c15_i32_1738 : i32
    %c1_i32_1739 = arith.constant 1 : i32
    %1781 = arith.addi %1780, %c1_i32_1739 : i32
    %c0_1740 = arith.constant 0 : index
    %c2_1741 = arith.constant 2 : index
    %1782 = arith.index_cast %1781 : i32 to index
    %c0_1742 = arith.constant 0 : index
    %1783 = vector.load %arg2[%c0_1740, %c2_1741, %1782, %c0_1742] : memref<1x3x18x18xf32, #tpu.memory_space<vmem>>, vector<1x1x1x16xf32>
    %1784 = vector.shape_cast %1783 : vector<1x1x1x16xf32> to vector<1x16xf32>
    %1785 = tpu.concatenate %1709, %1714, %1719, %1724, %1729, %1734, %1739, %1744, %1749, %1754, %1759, %1764, %1769, %1774, %1779, %1784 in 1 : vector<1x16xf32>, vector<1x16xf32>, vector<1x16xf32>, vector<1x16xf32>, vector<1x16xf32>, vector<1x16xf32>, vector<1x16xf32>, vector<1x16xf32>, vector<1x16xf32>, vector<1x16xf32>, vector<1x16xf32>, vector<1x16xf32>, vector<1x16xf32>, vector<1x16xf32>, vector<1x16xf32>, vector<1x16xf32> -> vector<1x256xf32>
    %c0_i32_1743 = arith.constant 0 : i32
    %1786 = arith.addi %0, %c0_i32_1743 : i32
    %c1_i32_1744 = arith.constant 1 : i32
    %1787 = arith.addi %1786, %c1_i32_1744 : i32
    %c0_1745 = arith.constant 0 : index
    %c2_1746 = arith.constant 2 : index
    %1788 = arith.index_cast %1787 : i32 to index
    %c1_1747 = arith.constant 1 : index
    %1789 = vector.load %arg2[%c0_1745, %c2_1746, %1788, %c1_1747] : memref<1x3x18x18xf32, #tpu.memory_space<vmem>>, vector<1x1x1x16xf32>
    %1790 = vector.shape_cast %1789 : vector<1x1x1x16xf32> to vector<1x16xf32>
    %c1_i32_1748 = arith.constant 1 : i32
    %1791 = arith.addi %0, %c1_i32_1748 : i32
    %c1_i32_1749 = arith.constant 1 : i32
    %1792 = arith.addi %1791, %c1_i32_1749 : i32
    %c0_1750 = arith.constant 0 : index
    %c2_1751 = arith.constant 2 : index
    %1793 = arith.index_cast %1792 : i32 to index
    %c1_1752 = arith.constant 1 : index
    %1794 = vector.load %arg2[%c0_1750, %c2_1751, %1793, %c1_1752] : memref<1x3x18x18xf32, #tpu.memory_space<vmem>>, vector<1x1x1x16xf32>
    %1795 = vector.shape_cast %1794 : vector<1x1x1x16xf32> to vector<1x16xf32>
    %c2_i32_1753 = arith.constant 2 : i32
    %1796 = arith.addi %0, %c2_i32_1753 : i32
    %c1_i32_1754 = arith.constant 1 : i32
    %1797 = arith.addi %1796, %c1_i32_1754 : i32
    %c0_1755 = arith.constant 0 : index
    %c2_1756 = arith.constant 2 : index
    %1798 = arith.index_cast %1797 : i32 to index
    %c1_1757 = arith.constant 1 : index
    %1799 = vector.load %arg2[%c0_1755, %c2_1756, %1798, %c1_1757] : memref<1x3x18x18xf32, #tpu.memory_space<vmem>>, vector<1x1x1x16xf32>
    %1800 = vector.shape_cast %1799 : vector<1x1x1x16xf32> to vector<1x16xf32>
    %c3_i32_1758 = arith.constant 3 : i32
    %1801 = arith.addi %0, %c3_i32_1758 : i32
    %c1_i32_1759 = arith.constant 1 : i32
    %1802 = arith.addi %1801, %c1_i32_1759 : i32
    %c0_1760 = arith.constant 0 : index
    %c2_1761 = arith.constant 2 : index
    %1803 = arith.index_cast %1802 : i32 to index
    %c1_1762 = arith.constant 1 : index
    %1804 = vector.load %arg2[%c0_1760, %c2_1761, %1803, %c1_1762] : memref<1x3x18x18xf32, #tpu.memory_space<vmem>>, vector<1x1x1x16xf32>
    %1805 = vector.shape_cast %1804 : vector<1x1x1x16xf32> to vector<1x16xf32>
    %c4_i32_1763 = arith.constant 4 : i32
    %1806 = arith.addi %0, %c4_i32_1763 : i32
    %c1_i32_1764 = arith.constant 1 : i32
    %1807 = arith.addi %1806, %c1_i32_1764 : i32
    %c0_1765 = arith.constant 0 : index
    %c2_1766 = arith.constant 2 : index
    %1808 = arith.index_cast %1807 : i32 to index
    %c1_1767 = arith.constant 1 : index
    %1809 = vector.load %arg2[%c0_1765, %c2_1766, %1808, %c1_1767] : memref<1x3x18x18xf32, #tpu.memory_space<vmem>>, vector<1x1x1x16xf32>
    %1810 = vector.shape_cast %1809 : vector<1x1x1x16xf32> to vector<1x16xf32>
    %c5_i32_1768 = arith.constant 5 : i32
    %1811 = arith.addi %0, %c5_i32_1768 : i32
    %c1_i32_1769 = arith.constant 1 : i32
    %1812 = arith.addi %1811, %c1_i32_1769 : i32
    %c0_1770 = arith.constant 0 : index
    %c2_1771 = arith.constant 2 : index
    %1813 = arith.index_cast %1812 : i32 to index
    %c1_1772 = arith.constant 1 : index
    %1814 = vector.load %arg2[%c0_1770, %c2_1771, %1813, %c1_1772] : memref<1x3x18x18xf32, #tpu.memory_space<vmem>>, vector<1x1x1x16xf32>
    %1815 = vector.shape_cast %1814 : vector<1x1x1x16xf32> to vector<1x16xf32>
    %c6_i32_1773 = arith.constant 6 : i32
    %1816 = arith.addi %0, %c6_i32_1773 : i32
    %c1_i32_1774 = arith.constant 1 : i32
    %1817 = arith.addi %1816, %c1_i32_1774 : i32
    %c0_1775 = arith.constant 0 : index
    %c2_1776 = arith.constant 2 : index
    %1818 = arith.index_cast %1817 : i32 to index
    %c1_1777 = arith.constant 1 : index
    %1819 = vector.load %arg2[%c0_1775, %c2_1776, %1818, %c1_1777] : memref<1x3x18x18xf32, #tpu.memory_space<vmem>>, vector<1x1x1x16xf32>
    %1820 = vector.shape_cast %1819 : vector<1x1x1x16xf32> to vector<1x16xf32>
    %c7_i32_1778 = arith.constant 7 : i32
    %1821 = arith.addi %0, %c7_i32_1778 : i32
    %c1_i32_1779 = arith.constant 1 : i32
    %1822 = arith.addi %1821, %c1_i32_1779 : i32
    %c0_1780 = arith.constant 0 : index
    %c2_1781 = arith.constant 2 : index
    %1823 = arith.index_cast %1822 : i32 to index
    %c1_1782 = arith.constant 1 : index
    %1824 = vector.load %arg2[%c0_1780, %c2_1781, %1823, %c1_1782] : memref<1x3x18x18xf32, #tpu.memory_space<vmem>>, vector<1x1x1x16xf32>
    %1825 = vector.shape_cast %1824 : vector<1x1x1x16xf32> to vector<1x16xf32>
    %c8_i32_1783 = arith.constant 8 : i32
    %1826 = arith.addi %0, %c8_i32_1783 : i32
    %c1_i32_1784 = arith.constant 1 : i32
    %1827 = arith.addi %1826, %c1_i32_1784 : i32
    %c0_1785 = arith.constant 0 : index
    %c2_1786 = arith.constant 2 : index
    %1828 = arith.index_cast %1827 : i32 to index
    %c1_1787 = arith.constant 1 : index
    %1829 = vector.load %arg2[%c0_1785, %c2_1786, %1828, %c1_1787] : memref<1x3x18x18xf32, #tpu.memory_space<vmem>>, vector<1x1x1x16xf32>
    %1830 = vector.shape_cast %1829 : vector<1x1x1x16xf32> to vector<1x16xf32>
    %c9_i32_1788 = arith.constant 9 : i32
    %1831 = arith.addi %0, %c9_i32_1788 : i32
    %c1_i32_1789 = arith.constant 1 : i32
    %1832 = arith.addi %1831, %c1_i32_1789 : i32
    %c0_1790 = arith.constant 0 : index
    %c2_1791 = arith.constant 2 : index
    %1833 = arith.index_cast %1832 : i32 to index
    %c1_1792 = arith.constant 1 : index
    %1834 = vector.load %arg2[%c0_1790, %c2_1791, %1833, %c1_1792] : memref<1x3x18x18xf32, #tpu.memory_space<vmem>>, vector<1x1x1x16xf32>
    %1835 = vector.shape_cast %1834 : vector<1x1x1x16xf32> to vector<1x16xf32>
    %c10_i32_1793 = arith.constant 10 : i32
    %1836 = arith.addi %0, %c10_i32_1793 : i32
    %c1_i32_1794 = arith.constant 1 : i32
    %1837 = arith.addi %1836, %c1_i32_1794 : i32
    %c0_1795 = arith.constant 0 : index
    %c2_1796 = arith.constant 2 : index
    %1838 = arith.index_cast %1837 : i32 to index
    %c1_1797 = arith.constant 1 : index
    %1839 = vector.load %arg2[%c0_1795, %c2_1796, %1838, %c1_1797] : memref<1x3x18x18xf32, #tpu.memory_space<vmem>>, vector<1x1x1x16xf32>
    %1840 = vector.shape_cast %1839 : vector<1x1x1x16xf32> to vector<1x16xf32>
    %c11_i32_1798 = arith.constant 11 : i32
    %1841 = arith.addi %0, %c11_i32_1798 : i32
    %c1_i32_1799 = arith.constant 1 : i32
    %1842 = arith.addi %1841, %c1_i32_1799 : i32
    %c0_1800 = arith.constant 0 : index
    %c2_1801 = arith.constant 2 : index
    %1843 = arith.index_cast %1842 : i32 to index
    %c1_1802 = arith.constant 1 : index
    %1844 = vector.load %arg2[%c0_1800, %c2_1801, %1843, %c1_1802] : memref<1x3x18x18xf32, #tpu.memory_space<vmem>>, vector<1x1x1x16xf32>
    %1845 = vector.shape_cast %1844 : vector<1x1x1x16xf32> to vector<1x16xf32>
    %c12_i32_1803 = arith.constant 12 : i32
    %1846 = arith.addi %0, %c12_i32_1803 : i32
    %c1_i32_1804 = arith.constant 1 : i32
    %1847 = arith.addi %1846, %c1_i32_1804 : i32
    %c0_1805 = arith.constant 0 : index
    %c2_1806 = arith.constant 2 : index
    %1848 = arith.index_cast %1847 : i32 to index
    %c1_1807 = arith.constant 1 : index
    %1849 = vector.load %arg2[%c0_1805, %c2_1806, %1848, %c1_1807] : memref<1x3x18x18xf32, #tpu.memory_space<vmem>>, vector<1x1x1x16xf32>
    %1850 = vector.shape_cast %1849 : vector<1x1x1x16xf32> to vector<1x16xf32>
    %c13_i32_1808 = arith.constant 13 : i32
    %1851 = arith.addi %0, %c13_i32_1808 : i32
    %c1_i32_1809 = arith.constant 1 : i32
    %1852 = arith.addi %1851, %c1_i32_1809 : i32
    %c0_1810 = arith.constant 0 : index
    %c2_1811 = arith.constant 2 : index
    %1853 = arith.index_cast %1852 : i32 to index
    %c1_1812 = arith.constant 1 : index
    %1854 = vector.load %arg2[%c0_1810, %c2_1811, %1853, %c1_1812] : memref<1x3x18x18xf32, #tpu.memory_space<vmem>>, vector<1x1x1x16xf32>
    %1855 = vector.shape_cast %1854 : vector<1x1x1x16xf32> to vector<1x16xf32>
    %c14_i32_1813 = arith.constant 14 : i32
    %1856 = arith.addi %0, %c14_i32_1813 : i32
    %c1_i32_1814 = arith.constant 1 : i32
    %1857 = arith.addi %1856, %c1_i32_1814 : i32
    %c0_1815 = arith.constant 0 : index
    %c2_1816 = arith.constant 2 : index
    %1858 = arith.index_cast %1857 : i32 to index
    %c1_1817 = arith.constant 1 : index
    %1859 = vector.load %arg2[%c0_1815, %c2_1816, %1858, %c1_1817] : memref<1x3x18x18xf32, #tpu.memory_space<vmem>>, vector<1x1x1x16xf32>
    %1860 = vector.shape_cast %1859 : vector<1x1x1x16xf32> to vector<1x16xf32>
    %c15_i32_1818 = arith.constant 15 : i32
    %1861 = arith.addi %0, %c15_i32_1818 : i32
    %c1_i32_1819 = arith.constant 1 : i32
    %1862 = arith.addi %1861, %c1_i32_1819 : i32
    %c0_1820 = arith.constant 0 : index
    %c2_1821 = arith.constant 2 : index
    %1863 = arith.index_cast %1862 : i32 to index
    %c1_1822 = arith.constant 1 : index
    %1864 = vector.load %arg2[%c0_1820, %c2_1821, %1863, %c1_1822] : memref<1x3x18x18xf32, #tpu.memory_space<vmem>>, vector<1x1x1x16xf32>
    %1865 = vector.shape_cast %1864 : vector<1x1x1x16xf32> to vector<1x16xf32>
    %1866 = tpu.concatenate %1790, %1795, %1800, %1805, %1810, %1815, %1820, %1825, %1830, %1835, %1840, %1845, %1850, %1855, %1860, %1865 in 1 : vector<1x16xf32>, vector<1x16xf32>, vector<1x16xf32>, vector<1x16xf32>, vector<1x16xf32>, vector<1x16xf32>, vector<1x16xf32>, vector<1x16xf32>, vector<1x16xf32>, vector<1x16xf32>, vector<1x16xf32>, vector<1x16xf32>, vector<1x16xf32>, vector<1x16xf32>, vector<1x16xf32>, vector<1x16xf32> -> vector<1x256xf32>
    %c0_i32_1823 = arith.constant 0 : i32
    %1867 = arith.addi %0, %c0_i32_1823 : i32
    %c1_i32_1824 = arith.constant 1 : i32
    %1868 = arith.addi %1867, %c1_i32_1824 : i32
    %c0_1825 = arith.constant 0 : index
    %c2_1826 = arith.constant 2 : index
    %1869 = arith.index_cast %1868 : i32 to index
    %c2_1827 = arith.constant 2 : index
    %1870 = vector.load %arg2[%c0_1825, %c2_1826, %1869, %c2_1827] : memref<1x3x18x18xf32, #tpu.memory_space<vmem>>, vector<1x1x1x16xf32>
    %1871 = vector.shape_cast %1870 : vector<1x1x1x16xf32> to vector<1x16xf32>
    %c1_i32_1828 = arith.constant 1 : i32
    %1872 = arith.addi %0, %c1_i32_1828 : i32
    %c1_i32_1829 = arith.constant 1 : i32
    %1873 = arith.addi %1872, %c1_i32_1829 : i32
    %c0_1830 = arith.constant 0 : index
    %c2_1831 = arith.constant 2 : index
    %1874 = arith.index_cast %1873 : i32 to index
    %c2_1832 = arith.constant 2 : index
    %1875 = vector.load %arg2[%c0_1830, %c2_1831, %1874, %c2_1832] : memref<1x3x18x18xf32, #tpu.memory_space<vmem>>, vector<1x1x1x16xf32>
    %1876 = vector.shape_cast %1875 : vector<1x1x1x16xf32> to vector<1x16xf32>
    %c2_i32_1833 = arith.constant 2 : i32
    %1877 = arith.addi %0, %c2_i32_1833 : i32
    %c1_i32_1834 = arith.constant 1 : i32
    %1878 = arith.addi %1877, %c1_i32_1834 : i32
    %c0_1835 = arith.constant 0 : index
    %c2_1836 = arith.constant 2 : index
    %1879 = arith.index_cast %1878 : i32 to index
    %c2_1837 = arith.constant 2 : index
    %1880 = vector.load %arg2[%c0_1835, %c2_1836, %1879, %c2_1837] : memref<1x3x18x18xf32, #tpu.memory_space<vmem>>, vector<1x1x1x16xf32>
    %1881 = vector.shape_cast %1880 : vector<1x1x1x16xf32> to vector<1x16xf32>
    %c3_i32_1838 = arith.constant 3 : i32
    %1882 = arith.addi %0, %c3_i32_1838 : i32
    %c1_i32_1839 = arith.constant 1 : i32
    %1883 = arith.addi %1882, %c1_i32_1839 : i32
    %c0_1840 = arith.constant 0 : index
    %c2_1841 = arith.constant 2 : index
    %1884 = arith.index_cast %1883 : i32 to index
    %c2_1842 = arith.constant 2 : index
    %1885 = vector.load %arg2[%c0_1840, %c2_1841, %1884, %c2_1842] : memref<1x3x18x18xf32, #tpu.memory_space<vmem>>, vector<1x1x1x16xf32>
    %1886 = vector.shape_cast %1885 : vector<1x1x1x16xf32> to vector<1x16xf32>
    %c4_i32_1843 = arith.constant 4 : i32
    %1887 = arith.addi %0, %c4_i32_1843 : i32
    %c1_i32_1844 = arith.constant 1 : i32
    %1888 = arith.addi %1887, %c1_i32_1844 : i32
    %c0_1845 = arith.constant 0 : index
    %c2_1846 = arith.constant 2 : index
    %1889 = arith.index_cast %1888 : i32 to index
    %c2_1847 = arith.constant 2 : index
    %1890 = vector.load %arg2[%c0_1845, %c2_1846, %1889, %c2_1847] : memref<1x3x18x18xf32, #tpu.memory_space<vmem>>, vector<1x1x1x16xf32>
    %1891 = vector.shape_cast %1890 : vector<1x1x1x16xf32> to vector<1x16xf32>
    %c5_i32_1848 = arith.constant 5 : i32
    %1892 = arith.addi %0, %c5_i32_1848 : i32
    %c1_i32_1849 = arith.constant 1 : i32
    %1893 = arith.addi %1892, %c1_i32_1849 : i32
    %c0_1850 = arith.constant 0 : index
    %c2_1851 = arith.constant 2 : index
    %1894 = arith.index_cast %1893 : i32 to index
    %c2_1852 = arith.constant 2 : index
    %1895 = vector.load %arg2[%c0_1850, %c2_1851, %1894, %c2_1852] : memref<1x3x18x18xf32, #tpu.memory_space<vmem>>, vector<1x1x1x16xf32>
    %1896 = vector.shape_cast %1895 : vector<1x1x1x16xf32> to vector<1x16xf32>
    %c6_i32_1853 = arith.constant 6 : i32
    %1897 = arith.addi %0, %c6_i32_1853 : i32
    %c1_i32_1854 = arith.constant 1 : i32
    %1898 = arith.addi %1897, %c1_i32_1854 : i32
    %c0_1855 = arith.constant 0 : index
    %c2_1856 = arith.constant 2 : index
    %1899 = arith.index_cast %1898 : i32 to index
    %c2_1857 = arith.constant 2 : index
    %1900 = vector.load %arg2[%c0_1855, %c2_1856, %1899, %c2_1857] : memref<1x3x18x18xf32, #tpu.memory_space<vmem>>, vector<1x1x1x16xf32>
    %1901 = vector.shape_cast %1900 : vector<1x1x1x16xf32> to vector<1x16xf32>
    %c7_i32_1858 = arith.constant 7 : i32
    %1902 = arith.addi %0, %c7_i32_1858 : i32
    %c1_i32_1859 = arith.constant 1 : i32
    %1903 = arith.addi %1902, %c1_i32_1859 : i32
    %c0_1860 = arith.constant 0 : index
    %c2_1861 = arith.constant 2 : index
    %1904 = arith.index_cast %1903 : i32 to index
    %c2_1862 = arith.constant 2 : index
    %1905 = vector.load %arg2[%c0_1860, %c2_1861, %1904, %c2_1862] : memref<1x3x18x18xf32, #tpu.memory_space<vmem>>, vector<1x1x1x16xf32>
    %1906 = vector.shape_cast %1905 : vector<1x1x1x16xf32> to vector<1x16xf32>
    %c8_i32_1863 = arith.constant 8 : i32
    %1907 = arith.addi %0, %c8_i32_1863 : i32
    %c1_i32_1864 = arith.constant 1 : i32
    %1908 = arith.addi %1907, %c1_i32_1864 : i32
    %c0_1865 = arith.constant 0 : index
    %c2_1866 = arith.constant 2 : index
    %1909 = arith.index_cast %1908 : i32 to index
    %c2_1867 = arith.constant 2 : index
    %1910 = vector.load %arg2[%c0_1865, %c2_1866, %1909, %c2_1867] : memref<1x3x18x18xf32, #tpu.memory_space<vmem>>, vector<1x1x1x16xf32>
    %1911 = vector.shape_cast %1910 : vector<1x1x1x16xf32> to vector<1x16xf32>
    %c9_i32_1868 = arith.constant 9 : i32
    %1912 = arith.addi %0, %c9_i32_1868 : i32
    %c1_i32_1869 = arith.constant 1 : i32
    %1913 = arith.addi %1912, %c1_i32_1869 : i32
    %c0_1870 = arith.constant 0 : index
    %c2_1871 = arith.constant 2 : index
    %1914 = arith.index_cast %1913 : i32 to index
    %c2_1872 = arith.constant 2 : index
    %1915 = vector.load %arg2[%c0_1870, %c2_1871, %1914, %c2_1872] : memref<1x3x18x18xf32, #tpu.memory_space<vmem>>, vector<1x1x1x16xf32>
    %1916 = vector.shape_cast %1915 : vector<1x1x1x16xf32> to vector<1x16xf32>
    %c10_i32_1873 = arith.constant 10 : i32
    %1917 = arith.addi %0, %c10_i32_1873 : i32
    %c1_i32_1874 = arith.constant 1 : i32
    %1918 = arith.addi %1917, %c1_i32_1874 : i32
    %c0_1875 = arith.constant 0 : index
    %c2_1876 = arith.constant 2 : index
    %1919 = arith.index_cast %1918 : i32 to index
    %c2_1877 = arith.constant 2 : index
    %1920 = vector.load %arg2[%c0_1875, %c2_1876, %1919, %c2_1877] : memref<1x3x18x18xf32, #tpu.memory_space<vmem>>, vector<1x1x1x16xf32>
    %1921 = vector.shape_cast %1920 : vector<1x1x1x16xf32> to vector<1x16xf32>
    %c11_i32_1878 = arith.constant 11 : i32
    %1922 = arith.addi %0, %c11_i32_1878 : i32
    %c1_i32_1879 = arith.constant 1 : i32
    %1923 = arith.addi %1922, %c1_i32_1879 : i32
    %c0_1880 = arith.constant 0 : index
    %c2_1881 = arith.constant 2 : index
    %1924 = arith.index_cast %1923 : i32 to index
    %c2_1882 = arith.constant 2 : index
    %1925 = vector.load %arg2[%c0_1880, %c2_1881, %1924, %c2_1882] : memref<1x3x18x18xf32, #tpu.memory_space<vmem>>, vector<1x1x1x16xf32>
    %1926 = vector.shape_cast %1925 : vector<1x1x1x16xf32> to vector<1x16xf32>
    %c12_i32_1883 = arith.constant 12 : i32
    %1927 = arith.addi %0, %c12_i32_1883 : i32
    %c1_i32_1884 = arith.constant 1 : i32
    %1928 = arith.addi %1927, %c1_i32_1884 : i32
    %c0_1885 = arith.constant 0 : index
    %c2_1886 = arith.constant 2 : index
    %1929 = arith.index_cast %1928 : i32 to index
    %c2_1887 = arith.constant 2 : index
    %1930 = vector.load %arg2[%c0_1885, %c2_1886, %1929, %c2_1887] : memref<1x3x18x18xf32, #tpu.memory_space<vmem>>, vector<1x1x1x16xf32>
    %1931 = vector.shape_cast %1930 : vector<1x1x1x16xf32> to vector<1x16xf32>
    %c13_i32_1888 = arith.constant 13 : i32
    %1932 = arith.addi %0, %c13_i32_1888 : i32
    %c1_i32_1889 = arith.constant 1 : i32
    %1933 = arith.addi %1932, %c1_i32_1889 : i32
    %c0_1890 = arith.constant 0 : index
    %c2_1891 = arith.constant 2 : index
    %1934 = arith.index_cast %1933 : i32 to index
    %c2_1892 = arith.constant 2 : index
    %1935 = vector.load %arg2[%c0_1890, %c2_1891, %1934, %c2_1892] : memref<1x3x18x18xf32, #tpu.memory_space<vmem>>, vector<1x1x1x16xf32>
    %1936 = vector.shape_cast %1935 : vector<1x1x1x16xf32> to vector<1x16xf32>
    %c14_i32_1893 = arith.constant 14 : i32
    %1937 = arith.addi %0, %c14_i32_1893 : i32
    %c1_i32_1894 = arith.constant 1 : i32
    %1938 = arith.addi %1937, %c1_i32_1894 : i32
    %c0_1895 = arith.constant 0 : index
    %c2_1896 = arith.constant 2 : index
    %1939 = arith.index_cast %1938 : i32 to index
    %c2_1897 = arith.constant 2 : index
    %1940 = vector.load %arg2[%c0_1895, %c2_1896, %1939, %c2_1897] : memref<1x3x18x18xf32, #tpu.memory_space<vmem>>, vector<1x1x1x16xf32>
    %1941 = vector.shape_cast %1940 : vector<1x1x1x16xf32> to vector<1x16xf32>
    %c15_i32_1898 = arith.constant 15 : i32
    %1942 = arith.addi %0, %c15_i32_1898 : i32
    %c1_i32_1899 = arith.constant 1 : i32
    %1943 = arith.addi %1942, %c1_i32_1899 : i32
    %c0_1900 = arith.constant 0 : index
    %c2_1901 = arith.constant 2 : index
    %1944 = arith.index_cast %1943 : i32 to index
    %c2_1902 = arith.constant 2 : index
    %1945 = vector.load %arg2[%c0_1900, %c2_1901, %1944, %c2_1902] : memref<1x3x18x18xf32, #tpu.memory_space<vmem>>, vector<1x1x1x16xf32>
    %1946 = vector.shape_cast %1945 : vector<1x1x1x16xf32> to vector<1x16xf32>
    %1947 = tpu.concatenate %1871, %1876, %1881, %1886, %1891, %1896, %1901, %1906, %1911, %1916, %1921, %1926, %1931, %1936, %1941, %1946 in 1 : vector<1x16xf32>, vector<1x16xf32>, vector<1x16xf32>, vector<1x16xf32>, vector<1x16xf32>, vector<1x16xf32>, vector<1x16xf32>, vector<1x16xf32>, vector<1x16xf32>, vector<1x16xf32>, vector<1x16xf32>, vector<1x16xf32>, vector<1x16xf32>, vector<1x16xf32>, vector<1x16xf32>, vector<1x16xf32> -> vector<1x256xf32>
    %c0_i32_1903 = arith.constant 0 : i32
    %1948 = arith.addi %0, %c0_i32_1903 : i32
    %c2_i32_1904 = arith.constant 2 : i32
    %1949 = arith.addi %1948, %c2_i32_1904 : i32
    %c0_1905 = arith.constant 0 : index
    %c2_1906 = arith.constant 2 : index
    %1950 = arith.index_cast %1949 : i32 to index
    %c0_1907 = arith.constant 0 : index
    %1951 = vector.load %arg2[%c0_1905, %c2_1906, %1950, %c0_1907] : memref<1x3x18x18xf32, #tpu.memory_space<vmem>>, vector<1x1x1x16xf32>
    %1952 = vector.shape_cast %1951 : vector<1x1x1x16xf32> to vector<1x16xf32>
    %c1_i32_1908 = arith.constant 1 : i32
    %1953 = arith.addi %0, %c1_i32_1908 : i32
    %c2_i32_1909 = arith.constant 2 : i32
    %1954 = arith.addi %1953, %c2_i32_1909 : i32
    %c0_1910 = arith.constant 0 : index
    %c2_1911 = arith.constant 2 : index
    %1955 = arith.index_cast %1954 : i32 to index
    %c0_1912 = arith.constant 0 : index
    %1956 = vector.load %arg2[%c0_1910, %c2_1911, %1955, %c0_1912] : memref<1x3x18x18xf32, #tpu.memory_space<vmem>>, vector<1x1x1x16xf32>
    %1957 = vector.shape_cast %1956 : vector<1x1x1x16xf32> to vector<1x16xf32>
    %c2_i32_1913 = arith.constant 2 : i32
    %1958 = arith.addi %0, %c2_i32_1913 : i32
    %c2_i32_1914 = arith.constant 2 : i32
    %1959 = arith.addi %1958, %c2_i32_1914 : i32
    %c0_1915 = arith.constant 0 : index
    %c2_1916 = arith.constant 2 : index
    %1960 = arith.index_cast %1959 : i32 to index
    %c0_1917 = arith.constant 0 : index
    %1961 = vector.load %arg2[%c0_1915, %c2_1916, %1960, %c0_1917] : memref<1x3x18x18xf32, #tpu.memory_space<vmem>>, vector<1x1x1x16xf32>
    %1962 = vector.shape_cast %1961 : vector<1x1x1x16xf32> to vector<1x16xf32>
    %c3_i32_1918 = arith.constant 3 : i32
    %1963 = arith.addi %0, %c3_i32_1918 : i32
    %c2_i32_1919 = arith.constant 2 : i32
    %1964 = arith.addi %1963, %c2_i32_1919 : i32
    %c0_1920 = arith.constant 0 : index
    %c2_1921 = arith.constant 2 : index
    %1965 = arith.index_cast %1964 : i32 to index
    %c0_1922 = arith.constant 0 : index
    %1966 = vector.load %arg2[%c0_1920, %c2_1921, %1965, %c0_1922] : memref<1x3x18x18xf32, #tpu.memory_space<vmem>>, vector<1x1x1x16xf32>
    %1967 = vector.shape_cast %1966 : vector<1x1x1x16xf32> to vector<1x16xf32>
    %c4_i32_1923 = arith.constant 4 : i32
    %1968 = arith.addi %0, %c4_i32_1923 : i32
    %c2_i32_1924 = arith.constant 2 : i32
    %1969 = arith.addi %1968, %c2_i32_1924 : i32
    %c0_1925 = arith.constant 0 : index
    %c2_1926 = arith.constant 2 : index
    %1970 = arith.index_cast %1969 : i32 to index
    %c0_1927 = arith.constant 0 : index
    %1971 = vector.load %arg2[%c0_1925, %c2_1926, %1970, %c0_1927] : memref<1x3x18x18xf32, #tpu.memory_space<vmem>>, vector<1x1x1x16xf32>
    %1972 = vector.shape_cast %1971 : vector<1x1x1x16xf32> to vector<1x16xf32>
    %c5_i32_1928 = arith.constant 5 : i32
    %1973 = arith.addi %0, %c5_i32_1928 : i32
    %c2_i32_1929 = arith.constant 2 : i32
    %1974 = arith.addi %1973, %c2_i32_1929 : i32
    %c0_1930 = arith.constant 0 : index
    %c2_1931 = arith.constant 2 : index
    %1975 = arith.index_cast %1974 : i32 to index
    %c0_1932 = arith.constant 0 : index
    %1976 = vector.load %arg2[%c0_1930, %c2_1931, %1975, %c0_1932] : memref<1x3x18x18xf32, #tpu.memory_space<vmem>>, vector<1x1x1x16xf32>
    %1977 = vector.shape_cast %1976 : vector<1x1x1x16xf32> to vector<1x16xf32>
    %c6_i32_1933 = arith.constant 6 : i32
    %1978 = arith.addi %0, %c6_i32_1933 : i32
    %c2_i32_1934 = arith.constant 2 : i32
    %1979 = arith.addi %1978, %c2_i32_1934 : i32
    %c0_1935 = arith.constant 0 : index
    %c2_1936 = arith.constant 2 : index
    %1980 = arith.index_cast %1979 : i32 to index
    %c0_1937 = arith.constant 0 : index
    %1981 = vector.load %arg2[%c0_1935, %c2_1936, %1980, %c0_1937] : memref<1x3x18x18xf32, #tpu.memory_space<vmem>>, vector<1x1x1x16xf32>
    %1982 = vector.shape_cast %1981 : vector<1x1x1x16xf32> to vector<1x16xf32>
    %c7_i32_1938 = arith.constant 7 : i32
    %1983 = arith.addi %0, %c7_i32_1938 : i32
    %c2_i32_1939 = arith.constant 2 : i32
    %1984 = arith.addi %1983, %c2_i32_1939 : i32
    %c0_1940 = arith.constant 0 : index
    %c2_1941 = arith.constant 2 : index
    %1985 = arith.index_cast %1984 : i32 to index
    %c0_1942 = arith.constant 0 : index
    %1986 = vector.load %arg2[%c0_1940, %c2_1941, %1985, %c0_1942] : memref<1x3x18x18xf32, #tpu.memory_space<vmem>>, vector<1x1x1x16xf32>
    %1987 = vector.shape_cast %1986 : vector<1x1x1x16xf32> to vector<1x16xf32>
    %c8_i32_1943 = arith.constant 8 : i32
    %1988 = arith.addi %0, %c8_i32_1943 : i32
    %c2_i32_1944 = arith.constant 2 : i32
    %1989 = arith.addi %1988, %c2_i32_1944 : i32
    %c0_1945 = arith.constant 0 : index
    %c2_1946 = arith.constant 2 : index
    %1990 = arith.index_cast %1989 : i32 to index
    %c0_1947 = arith.constant 0 : index
    %1991 = vector.load %arg2[%c0_1945, %c2_1946, %1990, %c0_1947] : memref<1x3x18x18xf32, #tpu.memory_space<vmem>>, vector<1x1x1x16xf32>
    %1992 = vector.shape_cast %1991 : vector<1x1x1x16xf32> to vector<1x16xf32>
    %c9_i32_1948 = arith.constant 9 : i32
    %1993 = arith.addi %0, %c9_i32_1948 : i32
    %c2_i32_1949 = arith.constant 2 : i32
    %1994 = arith.addi %1993, %c2_i32_1949 : i32
    %c0_1950 = arith.constant 0 : index
    %c2_1951 = arith.constant 2 : index
    %1995 = arith.index_cast %1994 : i32 to index
    %c0_1952 = arith.constant 0 : index
    %1996 = vector.load %arg2[%c0_1950, %c2_1951, %1995, %c0_1952] : memref<1x3x18x18xf32, #tpu.memory_space<vmem>>, vector<1x1x1x16xf32>
    %1997 = vector.shape_cast %1996 : vector<1x1x1x16xf32> to vector<1x16xf32>
    %c10_i32_1953 = arith.constant 10 : i32
    %1998 = arith.addi %0, %c10_i32_1953 : i32
    %c2_i32_1954 = arith.constant 2 : i32
    %1999 = arith.addi %1998, %c2_i32_1954 : i32
    %c0_1955 = arith.constant 0 : index
    %c2_1956 = arith.constant 2 : index
    %2000 = arith.index_cast %1999 : i32 to index
    %c0_1957 = arith.constant 0 : index
    %2001 = vector.load %arg2[%c0_1955, %c2_1956, %2000, %c0_1957] : memref<1x3x18x18xf32, #tpu.memory_space<vmem>>, vector<1x1x1x16xf32>
    %2002 = vector.shape_cast %2001 : vector<1x1x1x16xf32> to vector<1x16xf32>
    %c11_i32_1958 = arith.constant 11 : i32
    %2003 = arith.addi %0, %c11_i32_1958 : i32
    %c2_i32_1959 = arith.constant 2 : i32
    %2004 = arith.addi %2003, %c2_i32_1959 : i32
    %c0_1960 = arith.constant 0 : index
    %c2_1961 = arith.constant 2 : index
    %2005 = arith.index_cast %2004 : i32 to index
    %c0_1962 = arith.constant 0 : index
    %2006 = vector.load %arg2[%c0_1960, %c2_1961, %2005, %c0_1962] : memref<1x3x18x18xf32, #tpu.memory_space<vmem>>, vector<1x1x1x16xf32>
    %2007 = vector.shape_cast %2006 : vector<1x1x1x16xf32> to vector<1x16xf32>
    %c12_i32_1963 = arith.constant 12 : i32
    %2008 = arith.addi %0, %c12_i32_1963 : i32
    %c2_i32_1964 = arith.constant 2 : i32
    %2009 = arith.addi %2008, %c2_i32_1964 : i32
    %c0_1965 = arith.constant 0 : index
    %c2_1966 = arith.constant 2 : index
    %2010 = arith.index_cast %2009 : i32 to index
    %c0_1967 = arith.constant 0 : index
    %2011 = vector.load %arg2[%c0_1965, %c2_1966, %2010, %c0_1967] : memref<1x3x18x18xf32, #tpu.memory_space<vmem>>, vector<1x1x1x16xf32>
    %2012 = vector.shape_cast %2011 : vector<1x1x1x16xf32> to vector<1x16xf32>
    %c13_i32_1968 = arith.constant 13 : i32
    %2013 = arith.addi %0, %c13_i32_1968 : i32
    %c2_i32_1969 = arith.constant 2 : i32
    %2014 = arith.addi %2013, %c2_i32_1969 : i32
    %c0_1970 = arith.constant 0 : index
    %c2_1971 = arith.constant 2 : index
    %2015 = arith.index_cast %2014 : i32 to index
    %c0_1972 = arith.constant 0 : index
    %2016 = vector.load %arg2[%c0_1970, %c2_1971, %2015, %c0_1972] : memref<1x3x18x18xf32, #tpu.memory_space<vmem>>, vector<1x1x1x16xf32>
    %2017 = vector.shape_cast %2016 : vector<1x1x1x16xf32> to vector<1x16xf32>
    %c14_i32_1973 = arith.constant 14 : i32
    %2018 = arith.addi %0, %c14_i32_1973 : i32
    %c2_i32_1974 = arith.constant 2 : i32
    %2019 = arith.addi %2018, %c2_i32_1974 : i32
    %c0_1975 = arith.constant 0 : index
    %c2_1976 = arith.constant 2 : index
    %2020 = arith.index_cast %2019 : i32 to index
    %c0_1977 = arith.constant 0 : index
    %2021 = vector.load %arg2[%c0_1975, %c2_1976, %2020, %c0_1977] : memref<1x3x18x18xf32, #tpu.memory_space<vmem>>, vector<1x1x1x16xf32>
    %2022 = vector.shape_cast %2021 : vector<1x1x1x16xf32> to vector<1x16xf32>
    %c15_i32_1978 = arith.constant 15 : i32
    %2023 = arith.addi %0, %c15_i32_1978 : i32
    %c2_i32_1979 = arith.constant 2 : i32
    %2024 = arith.addi %2023, %c2_i32_1979 : i32
    %c0_1980 = arith.constant 0 : index
    %c2_1981 = arith.constant 2 : index
    %2025 = arith.index_cast %2024 : i32 to index
    %c0_1982 = arith.constant 0 : index
    %2026 = vector.load %arg2[%c0_1980, %c2_1981, %2025, %c0_1982] : memref<1x3x18x18xf32, #tpu.memory_space<vmem>>, vector<1x1x1x16xf32>
    %2027 = vector.shape_cast %2026 : vector<1x1x1x16xf32> to vector<1x16xf32>
    %2028 = tpu.concatenate %1952, %1957, %1962, %1967, %1972, %1977, %1982, %1987, %1992, %1997, %2002, %2007, %2012, %2017, %2022, %2027 in 1 : vector<1x16xf32>, vector<1x16xf32>, vector<1x16xf32>, vector<1x16xf32>, vector<1x16xf32>, vector<1x16xf32>, vector<1x16xf32>, vector<1x16xf32>, vector<1x16xf32>, vector<1x16xf32>, vector<1x16xf32>, vector<1x16xf32>, vector<1x16xf32>, vector<1x16xf32>, vector<1x16xf32>, vector<1x16xf32> -> vector<1x256xf32>
    %c0_i32_1983 = arith.constant 0 : i32
    %2029 = arith.addi %0, %c0_i32_1983 : i32
    %c2_i32_1984 = arith.constant 2 : i32
    %2030 = arith.addi %2029, %c2_i32_1984 : i32
    %c0_1985 = arith.constant 0 : index
    %c2_1986 = arith.constant 2 : index
    %2031 = arith.index_cast %2030 : i32 to index
    %c1_1987 = arith.constant 1 : index
    %2032 = vector.load %arg2[%c0_1985, %c2_1986, %2031, %c1_1987] : memref<1x3x18x18xf32, #tpu.memory_space<vmem>>, vector<1x1x1x16xf32>
    %2033 = vector.shape_cast %2032 : vector<1x1x1x16xf32> to vector<1x16xf32>
    %c1_i32_1988 = arith.constant 1 : i32
    %2034 = arith.addi %0, %c1_i32_1988 : i32
    %c2_i32_1989 = arith.constant 2 : i32
    %2035 = arith.addi %2034, %c2_i32_1989 : i32
    %c0_1990 = arith.constant 0 : index
    %c2_1991 = arith.constant 2 : index
    %2036 = arith.index_cast %2035 : i32 to index
    %c1_1992 = arith.constant 1 : index
    %2037 = vector.load %arg2[%c0_1990, %c2_1991, %2036, %c1_1992] : memref<1x3x18x18xf32, #tpu.memory_space<vmem>>, vector<1x1x1x16xf32>
    %2038 = vector.shape_cast %2037 : vector<1x1x1x16xf32> to vector<1x16xf32>
    %c2_i32_1993 = arith.constant 2 : i32
    %2039 = arith.addi %0, %c2_i32_1993 : i32
    %c2_i32_1994 = arith.constant 2 : i32
    %2040 = arith.addi %2039, %c2_i32_1994 : i32
    %c0_1995 = arith.constant 0 : index
    %c2_1996 = arith.constant 2 : index
    %2041 = arith.index_cast %2040 : i32 to index
    %c1_1997 = arith.constant 1 : index
    %2042 = vector.load %arg2[%c0_1995, %c2_1996, %2041, %c1_1997] : memref<1x3x18x18xf32, #tpu.memory_space<vmem>>, vector<1x1x1x16xf32>
    %2043 = vector.shape_cast %2042 : vector<1x1x1x16xf32> to vector<1x16xf32>
    %c3_i32_1998 = arith.constant 3 : i32
    %2044 = arith.addi %0, %c3_i32_1998 : i32
    %c2_i32_1999 = arith.constant 2 : i32
    %2045 = arith.addi %2044, %c2_i32_1999 : i32
    %c0_2000 = arith.constant 0 : index
    %c2_2001 = arith.constant 2 : index
    %2046 = arith.index_cast %2045 : i32 to index
    %c1_2002 = arith.constant 1 : index
    %2047 = vector.load %arg2[%c0_2000, %c2_2001, %2046, %c1_2002] : memref<1x3x18x18xf32, #tpu.memory_space<vmem>>, vector<1x1x1x16xf32>
    %2048 = vector.shape_cast %2047 : vector<1x1x1x16xf32> to vector<1x16xf32>
    %c4_i32_2003 = arith.constant 4 : i32
    %2049 = arith.addi %0, %c4_i32_2003 : i32
    %c2_i32_2004 = arith.constant 2 : i32
    %2050 = arith.addi %2049, %c2_i32_2004 : i32
    %c0_2005 = arith.constant 0 : index
    %c2_2006 = arith.constant 2 : index
    %2051 = arith.index_cast %2050 : i32 to index
    %c1_2007 = arith.constant 1 : index
    %2052 = vector.load %arg2[%c0_2005, %c2_2006, %2051, %c1_2007] : memref<1x3x18x18xf32, #tpu.memory_space<vmem>>, vector<1x1x1x16xf32>
    %2053 = vector.shape_cast %2052 : vector<1x1x1x16xf32> to vector<1x16xf32>
    %c5_i32_2008 = arith.constant 5 : i32
    %2054 = arith.addi %0, %c5_i32_2008 : i32
    %c2_i32_2009 = arith.constant 2 : i32
    %2055 = arith.addi %2054, %c2_i32_2009 : i32
    %c0_2010 = arith.constant 0 : index
    %c2_2011 = arith.constant 2 : index
    %2056 = arith.index_cast %2055 : i32 to index
    %c1_2012 = arith.constant 1 : index
    %2057 = vector.load %arg2[%c0_2010, %c2_2011, %2056, %c1_2012] : memref<1x3x18x18xf32, #tpu.memory_space<vmem>>, vector<1x1x1x16xf32>
    %2058 = vector.shape_cast %2057 : vector<1x1x1x16xf32> to vector<1x16xf32>
    %c6_i32_2013 = arith.constant 6 : i32
    %2059 = arith.addi %0, %c6_i32_2013 : i32
    %c2_i32_2014 = arith.constant 2 : i32
    %2060 = arith.addi %2059, %c2_i32_2014 : i32
    %c0_2015 = arith.constant 0 : index
    %c2_2016 = arith.constant 2 : index
    %2061 = arith.index_cast %2060 : i32 to index
    %c1_2017 = arith.constant 1 : index
    %2062 = vector.load %arg2[%c0_2015, %c2_2016, %2061, %c1_2017] : memref<1x3x18x18xf32, #tpu.memory_space<vmem>>, vector<1x1x1x16xf32>
    %2063 = vector.shape_cast %2062 : vector<1x1x1x16xf32> to vector<1x16xf32>
    %c7_i32_2018 = arith.constant 7 : i32
    %2064 = arith.addi %0, %c7_i32_2018 : i32
    %c2_i32_2019 = arith.constant 2 : i32
    %2065 = arith.addi %2064, %c2_i32_2019 : i32
    %c0_2020 = arith.constant 0 : index
    %c2_2021 = arith.constant 2 : index
    %2066 = arith.index_cast %2065 : i32 to index
    %c1_2022 = arith.constant 1 : index
    %2067 = vector.load %arg2[%c0_2020, %c2_2021, %2066, %c1_2022] : memref<1x3x18x18xf32, #tpu.memory_space<vmem>>, vector<1x1x1x16xf32>
    %2068 = vector.shape_cast %2067 : vector<1x1x1x16xf32> to vector<1x16xf32>
    %c8_i32_2023 = arith.constant 8 : i32
    %2069 = arith.addi %0, %c8_i32_2023 : i32
    %c2_i32_2024 = arith.constant 2 : i32
    %2070 = arith.addi %2069, %c2_i32_2024 : i32
    %c0_2025 = arith.constant 0 : index
    %c2_2026 = arith.constant 2 : index
    %2071 = arith.index_cast %2070 : i32 to index
    %c1_2027 = arith.constant 1 : index
    %2072 = vector.load %arg2[%c0_2025, %c2_2026, %2071, %c1_2027] : memref<1x3x18x18xf32, #tpu.memory_space<vmem>>, vector<1x1x1x16xf32>
    %2073 = vector.shape_cast %2072 : vector<1x1x1x16xf32> to vector<1x16xf32>
    %c9_i32_2028 = arith.constant 9 : i32
    %2074 = arith.addi %0, %c9_i32_2028 : i32
    %c2_i32_2029 = arith.constant 2 : i32
    %2075 = arith.addi %2074, %c2_i32_2029 : i32
    %c0_2030 = arith.constant 0 : index
    %c2_2031 = arith.constant 2 : index
    %2076 = arith.index_cast %2075 : i32 to index
    %c1_2032 = arith.constant 1 : index
    %2077 = vector.load %arg2[%c0_2030, %c2_2031, %2076, %c1_2032] : memref<1x3x18x18xf32, #tpu.memory_space<vmem>>, vector<1x1x1x16xf32>
    %2078 = vector.shape_cast %2077 : vector<1x1x1x16xf32> to vector<1x16xf32>
    %c10_i32_2033 = arith.constant 10 : i32
    %2079 = arith.addi %0, %c10_i32_2033 : i32
    %c2_i32_2034 = arith.constant 2 : i32
    %2080 = arith.addi %2079, %c2_i32_2034 : i32
    %c0_2035 = arith.constant 0 : index
    %c2_2036 = arith.constant 2 : index
    %2081 = arith.index_cast %2080 : i32 to index
    %c1_2037 = arith.constant 1 : index
    %2082 = vector.load %arg2[%c0_2035, %c2_2036, %2081, %c1_2037] : memref<1x3x18x18xf32, #tpu.memory_space<vmem>>, vector<1x1x1x16xf32>
    %2083 = vector.shape_cast %2082 : vector<1x1x1x16xf32> to vector<1x16xf32>
    %c11_i32_2038 = arith.constant 11 : i32
    %2084 = arith.addi %0, %c11_i32_2038 : i32
    %c2_i32_2039 = arith.constant 2 : i32
    %2085 = arith.addi %2084, %c2_i32_2039 : i32
    %c0_2040 = arith.constant 0 : index
    %c2_2041 = arith.constant 2 : index
    %2086 = arith.index_cast %2085 : i32 to index
    %c1_2042 = arith.constant 1 : index
    %2087 = vector.load %arg2[%c0_2040, %c2_2041, %2086, %c1_2042] : memref<1x3x18x18xf32, #tpu.memory_space<vmem>>, vector<1x1x1x16xf32>
    %2088 = vector.shape_cast %2087 : vector<1x1x1x16xf32> to vector<1x16xf32>
    %c12_i32_2043 = arith.constant 12 : i32
    %2089 = arith.addi %0, %c12_i32_2043 : i32
    %c2_i32_2044 = arith.constant 2 : i32
    %2090 = arith.addi %2089, %c2_i32_2044 : i32
    %c0_2045 = arith.constant 0 : index
    %c2_2046 = arith.constant 2 : index
    %2091 = arith.index_cast %2090 : i32 to index
    %c1_2047 = arith.constant 1 : index
    %2092 = vector.load %arg2[%c0_2045, %c2_2046, %2091, %c1_2047] : memref<1x3x18x18xf32, #tpu.memory_space<vmem>>, vector<1x1x1x16xf32>
    %2093 = vector.shape_cast %2092 : vector<1x1x1x16xf32> to vector<1x16xf32>
    %c13_i32_2048 = arith.constant 13 : i32
    %2094 = arith.addi %0, %c13_i32_2048 : i32
    %c2_i32_2049 = arith.constant 2 : i32
    %2095 = arith.addi %2094, %c2_i32_2049 : i32
    %c0_2050 = arith.constant 0 : index
    %c2_2051 = arith.constant 2 : index
    %2096 = arith.index_cast %2095 : i32 to index
    %c1_2052 = arith.constant 1 : index
    %2097 = vector.load %arg2[%c0_2050, %c2_2051, %2096, %c1_2052] : memref<1x3x18x18xf32, #tpu.memory_space<vmem>>, vector<1x1x1x16xf32>
    %2098 = vector.shape_cast %2097 : vector<1x1x1x16xf32> to vector<1x16xf32>
    %c14_i32_2053 = arith.constant 14 : i32
    %2099 = arith.addi %0, %c14_i32_2053 : i32
    %c2_i32_2054 = arith.constant 2 : i32
    %2100 = arith.addi %2099, %c2_i32_2054 : i32
    %c0_2055 = arith.constant 0 : index
    %c2_2056 = arith.constant 2 : index
    %2101 = arith.index_cast %2100 : i32 to index
    %c1_2057 = arith.constant 1 : index
    %2102 = vector.load %arg2[%c0_2055, %c2_2056, %2101, %c1_2057] : memref<1x3x18x18xf32, #tpu.memory_space<vmem>>, vector<1x1x1x16xf32>
    %2103 = vector.shape_cast %2102 : vector<1x1x1x16xf32> to vector<1x16xf32>
    %c15_i32_2058 = arith.constant 15 : i32
    %2104 = arith.addi %0, %c15_i32_2058 : i32
    %c2_i32_2059 = arith.constant 2 : i32
    %2105 = arith.addi %2104, %c2_i32_2059 : i32
    %c0_2060 = arith.constant 0 : index
    %c2_2061 = arith.constant 2 : index
    %2106 = arith.index_cast %2105 : i32 to index
    %c1_2062 = arith.constant 1 : index
    %2107 = vector.load %arg2[%c0_2060, %c2_2061, %2106, %c1_2062] : memref<1x3x18x18xf32, #tpu.memory_space<vmem>>, vector<1x1x1x16xf32>
    %2108 = vector.shape_cast %2107 : vector<1x1x1x16xf32> to vector<1x16xf32>
    %2109 = tpu.concatenate %2033, %2038, %2043, %2048, %2053, %2058, %2063, %2068, %2073, %2078, %2083, %2088, %2093, %2098, %2103, %2108 in 1 : vector<1x16xf32>, vector<1x16xf32>, vector<1x16xf32>, vector<1x16xf32>, vector<1x16xf32>, vector<1x16xf32>, vector<1x16xf32>, vector<1x16xf32>, vector<1x16xf32>, vector<1x16xf32>, vector<1x16xf32>, vector<1x16xf32>, vector<1x16xf32>, vector<1x16xf32>, vector<1x16xf32>, vector<1x16xf32> -> vector<1x256xf32>
    %c0_i32_2063 = arith.constant 0 : i32
    %2110 = arith.addi %0, %c0_i32_2063 : i32
    %c2_i32_2064 = arith.constant 2 : i32
    %2111 = arith.addi %2110, %c2_i32_2064 : i32
    %c0_2065 = arith.constant 0 : index
    %c2_2066 = arith.constant 2 : index
    %2112 = arith.index_cast %2111 : i32 to index
    %c2_2067 = arith.constant 2 : index
    %2113 = vector.load %arg2[%c0_2065, %c2_2066, %2112, %c2_2067] : memref<1x3x18x18xf32, #tpu.memory_space<vmem>>, vector<1x1x1x16xf32>
    %2114 = vector.shape_cast %2113 : vector<1x1x1x16xf32> to vector<1x16xf32>
    %c1_i32_2068 = arith.constant 1 : i32
    %2115 = arith.addi %0, %c1_i32_2068 : i32
    %c2_i32_2069 = arith.constant 2 : i32
    %2116 = arith.addi %2115, %c2_i32_2069 : i32
    %c0_2070 = arith.constant 0 : index
    %c2_2071 = arith.constant 2 : index
    %2117 = arith.index_cast %2116 : i32 to index
    %c2_2072 = arith.constant 2 : index
    %2118 = vector.load %arg2[%c0_2070, %c2_2071, %2117, %c2_2072] : memref<1x3x18x18xf32, #tpu.memory_space<vmem>>, vector<1x1x1x16xf32>
    %2119 = vector.shape_cast %2118 : vector<1x1x1x16xf32> to vector<1x16xf32>
    %c2_i32_2073 = arith.constant 2 : i32
    %2120 = arith.addi %0, %c2_i32_2073 : i32
    %c2_i32_2074 = arith.constant 2 : i32
    %2121 = arith.addi %2120, %c2_i32_2074 : i32
    %c0_2075 = arith.constant 0 : index
    %c2_2076 = arith.constant 2 : index
    %2122 = arith.index_cast %2121 : i32 to index
    %c2_2077 = arith.constant 2 : index
    %2123 = vector.load %arg2[%c0_2075, %c2_2076, %2122, %c2_2077] : memref<1x3x18x18xf32, #tpu.memory_space<vmem>>, vector<1x1x1x16xf32>
    %2124 = vector.shape_cast %2123 : vector<1x1x1x16xf32> to vector<1x16xf32>
    %c3_i32_2078 = arith.constant 3 : i32
    %2125 = arith.addi %0, %c3_i32_2078 : i32
    %c2_i32_2079 = arith.constant 2 : i32
    %2126 = arith.addi %2125, %c2_i32_2079 : i32
    %c0_2080 = arith.constant 0 : index
    %c2_2081 = arith.constant 2 : index
    %2127 = arith.index_cast %2126 : i32 to index
    %c2_2082 = arith.constant 2 : index
    %2128 = vector.load %arg2[%c0_2080, %c2_2081, %2127, %c2_2082] : memref<1x3x18x18xf32, #tpu.memory_space<vmem>>, vector<1x1x1x16xf32>
    %2129 = vector.shape_cast %2128 : vector<1x1x1x16xf32> to vector<1x16xf32>
    %c4_i32_2083 = arith.constant 4 : i32
    %2130 = arith.addi %0, %c4_i32_2083 : i32
    %c2_i32_2084 = arith.constant 2 : i32
    %2131 = arith.addi %2130, %c2_i32_2084 : i32
    %c0_2085 = arith.constant 0 : index
    %c2_2086 = arith.constant 2 : index
    %2132 = arith.index_cast %2131 : i32 to index
    %c2_2087 = arith.constant 2 : index
    %2133 = vector.load %arg2[%c0_2085, %c2_2086, %2132, %c2_2087] : memref<1x3x18x18xf32, #tpu.memory_space<vmem>>, vector<1x1x1x16xf32>
    %2134 = vector.shape_cast %2133 : vector<1x1x1x16xf32> to vector<1x16xf32>
    %c5_i32_2088 = arith.constant 5 : i32
    %2135 = arith.addi %0, %c5_i32_2088 : i32
    %c2_i32_2089 = arith.constant 2 : i32
    %2136 = arith.addi %2135, %c2_i32_2089 : i32
    %c0_2090 = arith.constant 0 : index
    %c2_2091 = arith.constant 2 : index
    %2137 = arith.index_cast %2136 : i32 to index
    %c2_2092 = arith.constant 2 : index
    %2138 = vector.load %arg2[%c0_2090, %c2_2091, %2137, %c2_2092] : memref<1x3x18x18xf32, #tpu.memory_space<vmem>>, vector<1x1x1x16xf32>
    %2139 = vector.shape_cast %2138 : vector<1x1x1x16xf32> to vector<1x16xf32>
    %c6_i32_2093 = arith.constant 6 : i32
    %2140 = arith.addi %0, %c6_i32_2093 : i32
    %c2_i32_2094 = arith.constant 2 : i32
    %2141 = arith.addi %2140, %c2_i32_2094 : i32
    %c0_2095 = arith.constant 0 : index
    %c2_2096 = arith.constant 2 : index
    %2142 = arith.index_cast %2141 : i32 to index
    %c2_2097 = arith.constant 2 : index
    %2143 = vector.load %arg2[%c0_2095, %c2_2096, %2142, %c2_2097] : memref<1x3x18x18xf32, #tpu.memory_space<vmem>>, vector<1x1x1x16xf32>
    %2144 = vector.shape_cast %2143 : vector<1x1x1x16xf32> to vector<1x16xf32>
    %c7_i32_2098 = arith.constant 7 : i32
    %2145 = arith.addi %0, %c7_i32_2098 : i32
    %c2_i32_2099 = arith.constant 2 : i32
    %2146 = arith.addi %2145, %c2_i32_2099 : i32
    %c0_2100 = arith.constant 0 : index
    %c2_2101 = arith.constant 2 : index
    %2147 = arith.index_cast %2146 : i32 to index
    %c2_2102 = arith.constant 2 : index
    %2148 = vector.load %arg2[%c0_2100, %c2_2101, %2147, %c2_2102] : memref<1x3x18x18xf32, #tpu.memory_space<vmem>>, vector<1x1x1x16xf32>
    %2149 = vector.shape_cast %2148 : vector<1x1x1x16xf32> to vector<1x16xf32>
    %c8_i32_2103 = arith.constant 8 : i32
    %2150 = arith.addi %0, %c8_i32_2103 : i32
    %c2_i32_2104 = arith.constant 2 : i32
    %2151 = arith.addi %2150, %c2_i32_2104 : i32
    %c0_2105 = arith.constant 0 : index
    %c2_2106 = arith.constant 2 : index
    %2152 = arith.index_cast %2151 : i32 to index
    %c2_2107 = arith.constant 2 : index
    %2153 = vector.load %arg2[%c0_2105, %c2_2106, %2152, %c2_2107] : memref<1x3x18x18xf32, #tpu.memory_space<vmem>>, vector<1x1x1x16xf32>
    %2154 = vector.shape_cast %2153 : vector<1x1x1x16xf32> to vector<1x16xf32>
    %c9_i32_2108 = arith.constant 9 : i32
    %2155 = arith.addi %0, %c9_i32_2108 : i32
    %c2_i32_2109 = arith.constant 2 : i32
    %2156 = arith.addi %2155, %c2_i32_2109 : i32
    %c0_2110 = arith.constant 0 : index
    %c2_2111 = arith.constant 2 : index
    %2157 = arith.index_cast %2156 : i32 to index
    %c2_2112 = arith.constant 2 : index
    %2158 = vector.load %arg2[%c0_2110, %c2_2111, %2157, %c2_2112] : memref<1x3x18x18xf32, #tpu.memory_space<vmem>>, vector<1x1x1x16xf32>
    %2159 = vector.shape_cast %2158 : vector<1x1x1x16xf32> to vector<1x16xf32>
    %c10_i32_2113 = arith.constant 10 : i32
    %2160 = arith.addi %0, %c10_i32_2113 : i32
    %c2_i32_2114 = arith.constant 2 : i32
    %2161 = arith.addi %2160, %c2_i32_2114 : i32
    %c0_2115 = arith.constant 0 : index
    %c2_2116 = arith.constant 2 : index
    %2162 = arith.index_cast %2161 : i32 to index
    %c2_2117 = arith.constant 2 : index
    %2163 = vector.load %arg2[%c0_2115, %c2_2116, %2162, %c2_2117] : memref<1x3x18x18xf32, #tpu.memory_space<vmem>>, vector<1x1x1x16xf32>
    %2164 = vector.shape_cast %2163 : vector<1x1x1x16xf32> to vector<1x16xf32>
    %c11_i32_2118 = arith.constant 11 : i32
    %2165 = arith.addi %0, %c11_i32_2118 : i32
    %c2_i32_2119 = arith.constant 2 : i32
    %2166 = arith.addi %2165, %c2_i32_2119 : i32
    %c0_2120 = arith.constant 0 : index
    %c2_2121 = arith.constant 2 : index
    %2167 = arith.index_cast %2166 : i32 to index
    %c2_2122 = arith.constant 2 : index
    %2168 = vector.load %arg2[%c0_2120, %c2_2121, %2167, %c2_2122] : memref<1x3x18x18xf32, #tpu.memory_space<vmem>>, vector<1x1x1x16xf32>
    %2169 = vector.shape_cast %2168 : vector<1x1x1x16xf32> to vector<1x16xf32>
    %c12_i32_2123 = arith.constant 12 : i32
    %2170 = arith.addi %0, %c12_i32_2123 : i32
    %c2_i32_2124 = arith.constant 2 : i32
    %2171 = arith.addi %2170, %c2_i32_2124 : i32
    %c0_2125 = arith.constant 0 : index
    %c2_2126 = arith.constant 2 : index
    %2172 = arith.index_cast %2171 : i32 to index
    %c2_2127 = arith.constant 2 : index
    %2173 = vector.load %arg2[%c0_2125, %c2_2126, %2172, %c2_2127] : memref<1x3x18x18xf32, #tpu.memory_space<vmem>>, vector<1x1x1x16xf32>
    %2174 = vector.shape_cast %2173 : vector<1x1x1x16xf32> to vector<1x16xf32>
    %c13_i32_2128 = arith.constant 13 : i32
    %2175 = arith.addi %0, %c13_i32_2128 : i32
    %c2_i32_2129 = arith.constant 2 : i32
    %2176 = arith.addi %2175, %c2_i32_2129 : i32
    %c0_2130 = arith.constant 0 : index
    %c2_2131 = arith.constant 2 : index
    %2177 = arith.index_cast %2176 : i32 to index
    %c2_2132 = arith.constant 2 : index
    %2178 = vector.load %arg2[%c0_2130, %c2_2131, %2177, %c2_2132] : memref<1x3x18x18xf32, #tpu.memory_space<vmem>>, vector<1x1x1x16xf32>
    %2179 = vector.shape_cast %2178 : vector<1x1x1x16xf32> to vector<1x16xf32>
    %c14_i32_2133 = arith.constant 14 : i32
    %2180 = arith.addi %0, %c14_i32_2133 : i32
    %c2_i32_2134 = arith.constant 2 : i32
    %2181 = arith.addi %2180, %c2_i32_2134 : i32
    %c0_2135 = arith.constant 0 : index
    %c2_2136 = arith.constant 2 : index
    %2182 = arith.index_cast %2181 : i32 to index
    %c2_2137 = arith.constant 2 : index
    %2183 = vector.load %arg2[%c0_2135, %c2_2136, %2182, %c2_2137] : memref<1x3x18x18xf32, #tpu.memory_space<vmem>>, vector<1x1x1x16xf32>
    %2184 = vector.shape_cast %2183 : vector<1x1x1x16xf32> to vector<1x16xf32>
    %c15_i32_2138 = arith.constant 15 : i32
    %2185 = arith.addi %0, %c15_i32_2138 : i32
    %c2_i32_2139 = arith.constant 2 : i32
    %2186 = arith.addi %2185, %c2_i32_2139 : i32
    %c0_2140 = arith.constant 0 : index
    %c2_2141 = arith.constant 2 : index
    %2187 = arith.index_cast %2186 : i32 to index
    %c2_2142 = arith.constant 2 : index
    %2188 = vector.load %arg2[%c0_2140, %c2_2141, %2187, %c2_2142] : memref<1x3x18x18xf32, #tpu.memory_space<vmem>>, vector<1x1x1x16xf32>
    %2189 = vector.shape_cast %2188 : vector<1x1x1x16xf32> to vector<1x16xf32>
    %2190 = tpu.concatenate %2114, %2119, %2124, %2129, %2134, %2139, %2144, %2149, %2154, %2159, %2164, %2169, %2174, %2179, %2184, %2189 in 1 : vector<1x16xf32>, vector<1x16xf32>, vector<1x16xf32>, vector<1x16xf32>, vector<1x16xf32>, vector<1x16xf32>, vector<1x16xf32>, vector<1x16xf32>, vector<1x16xf32>, vector<1x16xf32>, vector<1x16xf32>, vector<1x16xf32>, vector<1x16xf32>, vector<1x16xf32>, vector<1x16xf32>, vector<1x16xf32> -> vector<1x256xf32>
    %2191 = tpu.concatenate %84, %165, %246, %327, %408, %489, %570, %651, %732, %813, %894, %975, %1056, %1137, %1218, %1299 in 0 : vector<1x256xf32>, vector<1x256xf32>, vector<1x256xf32>, vector<1x256xf32>, vector<1x256xf32>, vector<1x256xf32>, vector<1x256xf32>, vector<1x256xf32>, vector<1x256xf32>, vector<1x256xf32>, vector<1x256xf32>, vector<1x256xf32>, vector<1x256xf32>, vector<1x256xf32>, vector<1x256xf32>, vector<1x256xf32> -> vector<16x256xf32>
    %2192 = tpu.concatenate %1380, %1461, %1542, %1623, %1704, %1785, %1866, %1947, %2028, %2109, %2190 in 0 : vector<1x256xf32>, vector<1x256xf32>, vector<1x256xf32>, vector<1x256xf32>, vector<1x256xf32>, vector<1x256xf32>, vector<1x256xf32>, vector<1x256xf32>, vector<1x256xf32>, vector<1x256xf32>, vector<1x256xf32> -> vector<11x256xf32>
    %2193 = tpu.concatenate %2191, %2192 in 0 : vector<16x256xf32>, vector<11x256xf32> -> vector<27x256xf32>
    %2194 = arith.truncf %2193 : vector<27x256xf32> to vector<27x256xbf16>
    %c0_2143 = arith.constant 0 : index
    %c0_2144 = arith.constant 0 : index
    %2195 = vector.load %arg3[%c0_2143, %c0_2144] : memref<128x27xbf16, #tpu.memory_space<vmem>>, vector<128x27xbf16>
    %cst = arith.constant dense<0.000000e+00> : vector<128x256xf32>
    %2196 = tpu.matmul %2195, %2194, %cst {dimension_numbers = #tpu.dot_dimension_numbers<[1], [0], [0], [1], [0, 0, 1, 1], [], []>} : vector<128x27xbf16>, vector<27x256xbf16>, vector<128x256xf32> -> vector<128x256xf32>
    %c0_2145 = arith.constant 0 : index
    %c0_2146 = arith.constant 0 : index
    %2197 = vector.load %arg4[%c0_2145, %c0_2146] : memref<128x1xf32, #tpu.memory_space<vmem>>, vector<128x1xf32>
    %2198 = vector.broadcast %2197 : vector<128x1xf32> to vector<128x256xf32>
    %2199 = arith.addf %2196, %2198 : vector<128x256xf32>
    %cst_2147 = arith.constant 0.000000e+00 : f32
    %2200 = vector.broadcast %cst_2147 : f32 to vector<128x256xf32>
    %2201 = arith.maximumf %2199, %2200 : vector<128x256xf32>
    %c0_2148 = arith.constant 0 : index
    %c0_2149 = arith.constant 0 : index
    %2202 = vector.load %arg6[%c0_2148, %c0_2149] : memref<128x1xf32, #tpu.memory_space<vmem>>, vector<128x1xf32>
    %cst_2150 = arith.constant dense<0.000000e+00> : vector<128xf32>
    %2203 = vector.multi_reduction <add>, %2201, %cst_2150 [1] : vector<128x256xf32> to vector<128xf32>
    %2204 = vector.shape_cast %2203 : vector<128xf32> to vector<128x1xf32>
    %2205 = arith.addf %2202, %2204 : vector<128x1xf32>
    %c0_2151 = arith.constant 0 : index
    %c0_2152 = arith.constant 0 : index
    %2206 = vector.load %arg6[%c0_2151, %c0_2152] : memref<128x1xf32, #tpu.memory_space<vmem>>, vector<128x1xf32>
    tpu.vector_store %arg6[%c0_2151, %c0_2152], %2205 {strides = array<i32>} : memref<128x1xf32, #tpu.memory_space<vmem>>, vector<128x1xf32>,
    %c0_i32_2153 = arith.constant 0 : i32
    %2207 = arith.cmpi eq, %arg1, %c0_i32_2153 : i32
    %2208 = arith.extui %2207 : i1 to i32
    %c0_i32_2154 = arith.constant 0 : i32
    %2209 = arith.cmpi ne, %2208, %c0_i32_2154 : i32
    scf.if %2209 {
      %c0_2155 = arith.constant 0 : index
      %c0_2156 = arith.constant 0 : index
      %2210 = vector.load %arg6[%c0_2155, %c0_2156] : memref<128x1xf32, #tpu.memory_space<vmem>>, vector<128x1xf32>
      %cst_2157 = arith.constant 3.906250e-03 : f32
      %2211 = vector.broadcast %cst_2157 : f32 to vector<128x1xf32>
      %2212 = arith.mulf %2210, %2211 : vector<128x1xf32>
      %c0_2158 = arith.constant 0 : index
      %c0_2159 = arith.constant 0 : index
      %c0_2160 = arith.constant 0 : index
      %2213 = vector.load %arg5[%c0_2158, %c0_2159, %c0_2160] : memref<1x128x1xf32, #tpu.memory_space<vmem>>, vector<1x128x1xf32>
      %2214 = vector.shape_cast %2213 : vector<1x128x1xf32> to vector<128x1xf32>
      %2215 = vector.shape_cast %2212 : vector<128x1xf32> to vector<1x128x1xf32>
      tpu.vector_store %arg5[%c0_2158, %c0_2159, %c0_2160], %2215 {strides = array<i32>} : memref<1x128x1xf32, #tpu.memory_space<vmem>>, vector<1x128x1xf32>,
    } else {
    }
    return
  }
  func.func @transform_0(%arg0: i32, %arg1: i32) -> (i32, i32, i32, i32) {
    %c0_i32 = arith.constant 0 : i32
    %c0_i32_0 = arith.constant 0 : i32
    %c0_i32_1 = arith.constant 0 : i32
    %c0_i32_2 = arith.constant 0 : i32
    return %arg0, %c0_i32, %c0_i32_0, %c0_i32_1 : i32, i32, i32, i32
  }
  func.func @transform_1(%arg0: i32, %arg1: i32) -> (i32, i32) {
    %c0_i32 = arith.constant 0 : i32
    %c0_i32_0 = arith.constant 0 : i32
    %c0_i32_1 = arith.constant 0 : i32
    return %c0_i32, %c0_i32_0 : i32, i32
  }
  func.func @transform_2(%arg0: i32, %arg1: i32) -> (i32, i32) {
    %c0_i32 = arith.constant 0 : i32
    %c0_i32_0 = arith.constant 0 : i32
    %c0_i32_1 = arith.constant 0 : i32
    return %c0_i32, %c0_i32_0 : i32, i32
  }
  func.func @transform_3(%arg0: i32, %arg1: i32) -> (i32, i32, i32) {
    %c0_i32 = arith.constant 0 : i32
    %c0_i32_0 = arith.constant 0 : i32
    %c0_i32_1 = arith.constant 0 : i32
    return %arg0, %c0_i32, %c0_i32_0 : i32, i32, i32
  }
}

module attributes {stable_mosaic.version = 11 : i64} {
  func.func @_fc_kernel(%arg0: memref<2x128xf32, #tpu.memory_space<vmem>>, %arg1: memref<128x128xf32, #tpu.memory_space<vmem>>, %arg2: memref<1x128xf32, #tpu.memory_space<vmem>>, %arg3: memref<2x128xf32, #tpu.memory_space<vmem>>) attributes {dimension_semantics = [], scalar_prefetch = 0 : i64, scratch_operands = 0 : i64, tpu.core_type = #tpu.core_type<tc>} {
    %c0 = arith.constant 0 : index
    %c0_0 = arith.constant 0 : index
    %0 = vector.load %arg0[%c0, %c0_0] : memref<2x128xf32, #tpu.memory_space<vmem>>, vector<2x128xf32>
    %c0_1 = arith.constant 0 : index
    %c0_2 = arith.constant 0 : index
    %1 = vector.load %arg1[%c0_1, %c0_2] : memref<128x128xf32, #tpu.memory_space<vmem>>, vector<128x128xf32>
    %cst = arith.constant dense<0.000000e+00> : vector<2x128xf32>
    %2 = tpu.matmul %0, %1, %cst {dimension_numbers = #tpu.dot_dimension_numbers<[1], [0], [0], [1], [0, 0, 1, 1], [], []>} : vector<2x128xf32>, vector<128x128xf32>, vector<2x128xf32> -> vector<2x128xf32>
    %c0_3 = arith.constant 0 : index
    %c0_4 = arith.constant 0 : index
    %3 = vector.load %arg2[%c0_3, %c0_4] : memref<1x128xf32, #tpu.memory_space<vmem>>, vector<1x128xf32>
    %4 = vector.broadcast %3 : vector<1x128xf32> to vector<2x128xf32>
    %5 = arith.addf %2, %4 : vector<2x128xf32>
    %c0_5 = arith.constant 0 : index
    %c0_6 = arith.constant 0 : index
    %6 = vector.load %arg3[%c0_5, %c0_6] : memref<2x128xf32, #tpu.memory_space<vmem>>, vector<2x128xf32>
    tpu.vector_store %arg3[%c0_5, %c0_6], %5 {strides = array<i32>} : memref<2x128xf32, #tpu.memory_space<vmem>>, vector<2x128xf32>,
    return
  }
}

</mosaic_0001>

<bundles_post_ra>
// kernel: stn_dcnn_forward.6
= control target key start
LH: loop header
LB: loop body
LE: loop exit
PB: predicated region body
PF: predicated region fallthrough
CT: control target
= control target key end

     0   :  { %s247_s1 = inlined_call_operand.vmem [shape: f32[128,128], index: 1, kind: input, shape index: {}]   ;;  %s248_s3 = inlined_call_operand.vmem [shape: f32[128,128], index: 3, kind: input, shape index: {}]   ;;  %s249_s2 = inlined_call_operand.vmem [shape: f32[1,128], index: 2, kind: input, shape index: {}]   ;;  %s250_s0 = inlined_call_operand.vmem [shape: f32[2,128], index: 0, kind: input, shape index: {}]   ;;  %s251_s4 = inlined_call_operand.vmem [shape: f32[1,128], index: 4, kind: input, shape index: {}]   ;;  %s252_s5 = inlined_call_operand.vmem [shape: f32[2,128], index: 5, kind: output, shape index: {}]  }
   0x1   :  { %v36_v0 = vld [vmem:[%s247_s1 + $0x78] sm:$0xff]  ;;  %v35_v1 = vld [vmem:[%s247_s1 + $0x70] sm:$0xff]  ;;  %v34_v2 = vld [vmem:[%s247_s1 + $0x68] sm:$0xff] }
   0x2   :  { %41 = vmatpush.msra.mxu0 %v36_v0  ;;  %v33_v3 = vld [vmem:[%s247_s1 + $0x60] sm:$0xff]  ;;  %v77_v4 = vld [vmem:[%s248_s3 + $0x78] sm:$0xff]  ;;  %v76_v6 = vld [vmem:[%s248_s3 + $0x70] sm:$0xff] }
   0x3   :  { %v32_v5 = vld [vmem:[%s247_s1 + $0x58] sm:$0xff]  ;;  %82 = vmatpush.msra.mxu1 %v77_v4  ;;  %v75_v7 = vld [vmem:[%s248_s3 + $0x68] sm:$0xff]  ;;  %v31_v8 = vld [vmem:[%s247_s1 + $0x50] sm:$0xff] }
   0x4   :  { %42 = vmatpush.msra.mxu0 %v35_v1  ;;  %v74_v9 = vld [vmem:[%s248_s3 + $0x60] sm:$0xff]  ;;  %v30_v10 = vld [vmem:[%s247_s1 + $0x48] sm:$0xff]  ;;  %v73_v11 = vld [vmem:[%s248_s3 + $0x58] sm:$0xff] }
   0x5   :  { %83 = vmatpush.msra.mxu1 %v76_v6  ;;  %v29_v12 = vld [vmem:[%s247_s1 + $0x40] sm:$0xff]  ;;  %v72_v13 = vld [vmem:[%s248_s3 + $0x50] sm:$0xff]  ;;  %v28_v14 = vld [vmem:[%s247_s1 + $0x38] sm:$0xff] }
   0x6   :  { %43 = vmatpush.msra.mxu0 %v34_v2  ;;  %v71_v15 = vld [vmem:[%s248_s3 + $0x48] sm:$0xff]  ;;  %v27_v16 = vld [vmem:[%s247_s1 + $0x30] sm:$0xff]  ;;  %v70_v17 = vld [vmem:[%s248_s3 + $0x40] sm:$0xff] }
   0x7   :  { %84 = vmatpush.msra.mxu1 %v75_v7  ;;  %v26_v18 = vld [vmem:[%s247_s1 + $0x28] sm:$0xff]  ;;  %v69_v19 = vld [vmem:[%s248_s3 + $0x38] sm:$0xff]  ;;  %v25_v20 = vld [vmem:[%s247_s1 + $0x20] sm:$0xff] }
   0x8   :  { %44 = vmatpush.msra.mxu0 %v33_v3  ;;  %v68_v21 = vld [vmem:[%s248_s3 + $0x30] sm:$0xff]  ;;  %v24_v22 = vld [vmem:[%s247_s1 + $0x18] sm:$0xff]  ;;  %v67_v23 = vld [vmem:[%s248_s3 + $0x28] sm:$0xff] }
   0x9   :  { %85 = vmatpush.msra.mxu1 %v74_v9  ;;  %v23_v24 = vld [vmem:[%s247_s1 + $0x10] sm:$0xff]  ;;  %v66_v25 = vld [vmem:[%s248_s3 + $0x20] sm:$0xff]  ;;  %v22_v26 = vld [vmem:[%s247_s1 + $0x8] sm:$0xff] }
   0xa   :  { %45 = vmatpush.msra.mxu0 %v32_v5  ;;  %v65_v27 = vld [vmem:[%s248_s3 + $0x18] sm:$0xff]  ;;  %v21_v28 = vld [vmem:[%s247_s1] sm:$0xff]  ;;  %v64_v30 = vld [vmem:[%s248_s3 + $0x10] sm:$0xff] }
   0xb   :  { %86 = vmatpush.msra.mxu1 %v73_v11  ;;  %v20_v29 = vld [vmem:[%s250_s0] sm:$0x3]  ;;  %v63_v31 = vld [vmem:[%s248_s3 + $0x8] sm:$0xff] }
   0xc   :  { %46 = vmatpush.msra.mxu0 %v31_v8  ;;  %v62_v32 = vld [vmem:[%s248_s3] sm:$0xff] }
   0xd   :  { %87 = vmatpush.msra.mxu1 %v72_v13  ;;  %v107_v33 = vld [vmem:[%s249_s2] ss:$0 sm:$0xff] }
   0xe   :  { %47 = vmatpush.msra.mxu0 %v30_v10  ;;  %v108_v37 = vld [vmem:[%s251_s4] ss:$0 sm:$0xff] }
   0xf   :  { %88 = vmatpush.msra.mxu1 %v71_v15 }
  0x10   :  { %48 = vmatpush.msra.mxu0 %v29_v12 }
  0x11   :  { %89 = vmatpush.msra.mxu1 %v70_v17 }
  0x12   :  { %49 = vmatpush.msra.mxu0 %v28_v14 }
  0x13   :  { %90 = vmatpush.msra.mxu1 %v69_v19 }
  0x14   :  { %50 = vmatpush.msra.mxu0 %v27_v16 }
  0x15   :  { %91 = vmatpush.msra.mxu1 %v68_v21 }
  0x16   :  { %51 = vmatpush.msra.mxu0 %v26_v18 }
  0x17   :  { %92 = vmatpush.msra.mxu1 %v67_v23 }
  0x18   :  { %52 = vmatpush.msra.mxu0 %v25_v20 }
  0x19   :  { %93 = vmatpush.msra.mxu1 %v66_v25 }
  0x1a   :  { %53 = vmatpush.msra.mxu0 %v24_v22 }
  0x1b   :  { %94 = vmatpush.msra.mxu1 %v65_v27 }
  0x1c   :  { %54 = vmatpush.msra.mxu0 %v23_v24 }
  0x1d   :  { %95 = vmatpush.msra.mxu1 %v64_v30 }
  0x1e   :  { %55 = vmatpush.msra.mxu0 %v22_v26 }
  0x1f   :  { %96 = vmatpush.msra.mxu1 %v63_v31 }
  0x20   :  { %56 = vmatpush.msra.mxu0 %v21_v28 }
  0x21   :  { %57 = vmatmul.f32.vlgmr.msra.gmra.mxu0 %v20_v29  ;;  %97 = vmatpush.msra.mxu1 %v62_v32 }
  0x9e   :  { %v58_v34 = vpop.f32.mrf.mxu0 }
  0x9f   :  { %v59_v35 = vadd.f32 %v107_v33, %v58_v34 }
  0xa1   :  { %v61_v36 = vmax.f32 %v59_v35, 0.0 }
  0xa3   :  { %98 = vmatmul.f32.vlgmr.msra.gmra.mxu1 %v61_v36 }
 0x120   :  { %v99_v38 = vpop.f32.mrf.mxu1 }
 0x121   :  { %v100_v39 = vadd.f32 %v108_v37, %v99_v38 }
 0x123   :  { %102 = vst [vmem:[%s252_s5] sm:$0x3] %v100_v39 }

// kernel: stn_dcnn_forward.7
= control target key start
LH: loop header
LB: loop body
LE: loop exit
PB: predicated region body
PF: predicated region fallthrough
CT: control target
= control target key end

     0   :  { %s788_s12 = smov 0   ;;  %s790_s13 = smov 0   ;;  %s857_s0 = inlined_call_operand.vmem [shape: f32[2,1,256], index: 0, kind: input, shape index: {}]   ;;  %s858_s1 = inlined_call_operand.vmem [shape: f32[2,1,256], index: 1, kind: input, shape index: {}]   ;;  %s859_s2 = inlined_call_operand.vmem [shape: bf16[2,3,16,16], index: 2, kind: input, shape index: {}]   ;;  %s860_s3 = inlined_call_operand.vmem [shape: f32[2,3,256], index: 3, kind: output, shape index: {}]  }
   0x1   :  { %s792_s14 = smov 0  }
   0x2 LB: > { %s25_s15 = sadd.s32 1, %s762_s13  ;;  %p671_p0 = scmp.ge.s32.totalorder %s766_s14, 1  ;;  %s766_s14 = sphi %s792_s14, %s13_s14   ;;  %s762_s13 = sphi %s790_s13, %s862_s13   ;;  %s758_s12 = sphi %s788_s12, %s861_s12  }
   0x3   : > { %p27_p1 = scmp.ge.s32.totalorder %s25_s15, 2  ;;  %p183_p2 = scmp.lt.s32.totalorder %s766_s14, 3 }
   0x5   : > { %s864_s15 = smov (%p27_p1, %s25_s15), 0  ;;  %p184_p3 = pnand %p671_p0, %p183_p2 }
   0x6   : > { %p228_p4 = scmp.lt.s32.totalorder (!%p184_p3), %s758_s12, 1 }
   0x7   : > { %187 = sbr.rel (%p184_p3) target bundleno = 213 (0xd5), region = 32 }
   0xc   : > { %s866_s12 = smov (!%p228_p4, %s758_s12), 1  ;;  %v276_v2 = vlaneseq  ;;  %vm379_vm15 = vcmask 130048  }
   0xd   : > { %s672_s16 = sshll.u32 %s866_s12, 1  ;;  %s705_s20 = smul.u32 24, %s866_s12 }
   0xe   : > { %s243_s19 = scalar_lea.vmem %s858_s1, %s672_s16  ;;  %v814_v8 = vshrl.u32 %v276_v2, 7  ;;  %s234_s26 = scalar_lea.vmem %s857_s0, %s672_s16 }
   0xf   : > { %v262_v0 = vld [vmem:[%s243_s19] sm:$0x3]  ;;  %s249_s23 = scalar_lea.vmem %s859_s2, %s705_s20  ;;  %s701_s27 = sshll.u32 %s866_s12, 3 }
  0x10   : > { %v263_v1 = vfloor.f32 %v262_v0  ;;  %v817_v13 = vadd.s32 8, %v814_v8  ;;  %v702_v41 = vld [vmem:[%s249_s23] sm:$0xff]  ;;  %v703_v42 = vld [vmem:[%s249_s23 + $0x8] sm:$0xff]  ;;  %v704_v43 = vld [vmem:[%s249_s23 + $0x10] sm:$0xff]  ;;  %s258_s30 = scalar_lea.vmem %s860_s3, %s701_s27 }
  0x11   : > { %v261_v44 = vld [vmem:[%s234_s26] sm:$0x3] }
  0x12   : > { %v264_v3 = vsub.f32 %v262_v0, %v263_v1  ;;  %vm269_vm0 = vcmp.ge.f32.partialorder %v263_v1, 0.0  ;;  %vm270_vm1 = vcmp.le.f32.partialorder %v263_v1, 15.0  ;;  %v273_v4 = vmax.f32 %v263_v1, 0.0 }
  0x13   : > { %v294_v5 = vadd.f32 1.0, %v263_v1  ;;  %vm271_vm2 = vmand %vm269_vm0, %vm270_vm1  ;;  %v266_v45 = vfloor.f32 %v261_v44 }
  0x14   : > { %v265_v6 = vsub.f32 1.0, %v264_v3  ;;  %v274_v7 = vmin.f32 %v273_v4, 15.0 }
  0x15   : > { %vm295_vm3 = vcmp.ge.f32.partialorder %v294_v5, 0.0  ;;  %vm296_vm4 = vcmp.le.f32.partialorder %v294_v5, 15.0  ;;  %v299_v9 = vmax.f32 %v294_v5, 0.0  ;;  %v345_v46 = vadd.f32 1.0, %v266_v45 }
  0x16   : > { %v707_v10 = vcvt.f32.s32 %v274_v7  ;;  %vm297_vm5 = vmand %vm295_vm3, %vm296_vm4  ;;  %v272_v12 = vsel %vm271_vm2, %v265_v6, 0.0  ;;  %v327_v49 = vmax.f32 %v266_v45, 0.0  ;;  %v267_v52 = vsub.f32 %v261_v44, %v266_v45 }
  0x17   : > { %v300_v11 = vmin.f32 %v299_v9, 15.0  ;;  %v298_v18 = vsel %vm297_vm5, %v264_v3, 0.0  ;;  %v286_v19 = vperm.slane %v272_v12, 0  ;;  %v287_v21 = vperm.slane %v272_v12, 1 }
  0x18   : > { %v279_v14 = vperm.slane %v707_v10, 0  ;;  %v280_v15 = vperm.slane %v707_v10, 1  ;;  %v309_v23 = vperm.slane %v298_v18, 0  ;;  %v310_v24 = vperm.slane %v298_v18, 1 }
  0x19   : > { %vm708_vm6 = vcmp.lt.s32.totalorder %v300_v11, 0  ;;  %v709_v16 = vceil.f32 %v300_v11  ;;  %v710_v17 = vfloor.f32 %v300_v11  ;;  %v350_v47 = vmax.f32 %v345_v46, 0.0 }
  0x1a   : > { %vm281_vm7 = vcmp.eq.s32.totalorder %v814_v8, %v279_v14  ;;  %vm283_vm8 = vcmp.eq.s32.totalorder %v817_v13, %v279_v14  ;;  %vm282_vm9 = vcmp.eq.s32.totalorder %v814_v8, %v280_v15  ;;  %vm284_vm10 = vcmp.eq.s32.totalorder %v817_v13, %v280_v15 }
  0x1b   : > { %v711_v20 = vsel %vm708_vm6, %v709_v16, %v710_v17  ;;  %v290_v27 = vsel %vm281_vm7, %v286_v19, 0.0  ;;  %v292_v28 = vsel %vm283_vm8, %v286_v19, 0.0  ;;  %v291_v29 = vsel %vm282_vm9, %v287_v21, 0.0 }
  0x1c   : > { %v712_v22 = vcvt.f32.s32 %v711_v20  ;;  %v293_v30 = vsel %vm284_vm10, %v287_v21, 0.0  ;;  %v351_v48 = vmin.f32 %v350_v47, 15.0  ;;  %v328_v53 = vmin.f32 %v327_v49, 15.0 }
  0x1d   : > { %vm323_vm1 = vcmp.ge.f32.partialorder %v266_v45, 0.0  ;;  %vm324_vm2 = vcmp.le.f32.partialorder %v266_v45, 15.0  ;;  %vm346_vm3 = vcmp.ge.f32.partialorder %v345_v46, 0.0  ;;  %vm347_vm4 = vcmp.le.f32.partialorder %v345_v46, 15.0 }
  0x1e   : > { %v302_v25 = vperm.slane %v712_v22, 0  ;;  %v303_v26 = vperm.slane %v712_v22, 1  ;;  %v716_v50 = vceil.f32 %v351_v48  ;;  %v717_v51 = vfloor.f32 %v351_v48  ;;  %vm325_vm5 = vmand %vm323_vm1, %vm324_vm2 }
  0x1f   : > { %vm715_vm0 = vcmp.lt.s32.totalorder %v351_v48, 0  ;;  %v268_v55 = vsub.f32 1.0, %v267_v52  ;;  %v714_v56 = vcvt.f32.s32 %v328_v53  ;;  %vm348_vm6 = vmand %vm346_vm3, %vm347_vm4  ;;  %vm552_vm1 = vcmask 1043456  }
  0x20   : > { %vm304_vm11 = vcmp.eq.s32.totalorder %v814_v8, %v302_v25  ;;  %vm306_vm12 = vcmp.eq.s32.totalorder %v817_v13, %v302_v25  ;;  %vm305_vm13 = vcmp.eq.s32.totalorder %v814_v8, %v303_v26  ;;  %vm307_vm14 = vcmp.eq.s32.totalorder %v817_v13, %v303_v26 }
  0x21   : > { %v313_v31 = vsel %vm304_vm11, %v309_v23, 0.0  ;;  %v315_v32 = vsel %vm306_vm12, %v309_v23, 0.0  ;;  %v314_v33 = vsel %vm305_vm13, %v310_v24, 0.0  ;;  %v316_v34 = vsel %vm307_vm14, %v310_v24, 0.0 }
  0x22   : > { %v317_v35 = vadd.f32 %v313_v31, %v290_v27  ;;  %v319_v36 = vadd.f32 %v315_v32, %v292_v28  ;;  %v318_v37 = vadd.f32 %v314_v33, %v291_v29  ;;  %v320_v38 = vadd.f32 %v316_v34, %v293_v30 }
  0x23   : > { %v718_v54 = vsel %vm715_vm0, %v716_v50, %v717_v51  ;;  %v326_v58 = vsel %vm325_vm5, %v268_v55, 0.0  ;;  %v349_v59 = vsel %vm348_vm6, %v267_v52, 0.0  ;;  %v331_v60 = vperm.slane %v714_v56, 1 }
  0x24   : > { %v321_v39 = vpack.c.bf16 %v319_v36, %v317_v35  ;;  %v322_v40 = vpack.c.bf16 %v320_v38, %v318_v37  ;;  %v719_v57 = vcvt.f32.s32 %v718_v54  ;;  %v330_v62 = vperm.slane %v714_v56, 0 }
  0x25   : > { %vm335_vm7 = vcmp.eq.s32.totalorder %v817_v13, %v331_v60  ;;  %v338_v2 = vperm.slane %v326_v58, 1  ;;  %v361_v3 = vperm.slane %v349_v59, 1  ;;  %vm333_vm9 = vcmp.eq.s32.totalorder %v814_v8, %v331_v60 }
  0x26   : > { %390 = vmatpush.bf16.msra.mxu0 %v321_v39  ;;  %404 = vmatpush.bf16.msra.mxu1 %v322_v40  ;;  %v354_v61 = vperm.slane %v719_v57, 1  ;;  %v353_v63 = vperm.slane %v719_v57, 0  ;;  %vm334_vm11 = vcmp.eq.s32.totalorder %v817_v13, %v330_v62  ;;  %v337_v4 = vperm.slane %v326_v58, 0 }
  0x27   : > { %447 = vmatpush.bf16.msra.mxu2 %v321_v39  ;;  %461 = vmatpush.bf16.msra.mxu3 %v322_v40  ;;  %v360_v5 = vperm.slane %v349_v59, 0  ;;  %v344_v6 = vsel %vm335_vm7, %v338_v2, 0.0  ;;  %vm332_vm13 = vcmp.eq.s32.totalorder %v814_v8, %v330_v62  ;;  %v342_v9 = vsel %vm333_vm9, %v338_v2, 0.0 }
  0x28   : > { %vm358_vm8 = vcmp.eq.s32.totalorder %v817_v13, %v354_v61  ;;  %vm356_vm10 = vcmp.eq.s32.totalorder %v814_v8, %v354_v61  ;;  %vm357_vm12 = vcmp.eq.s32.totalorder %v817_v13, %v353_v63  ;;  %vm355_vm14 = vcmp.eq.s32.totalorder %v814_v8, %v353_v63 }
  0x29   : > { %681 = vmatmul.msk.bf16.vlgmr.msra.gmra.mxu0 %vm379_vm15, %v702_v41  ;;  %682 = vmatmul.msk.bf16.vlgmr.msra.gmra.mxu1 %vm379_vm15, %v702_v41  ;;  %v367_v7 = vsel %vm358_vm8, %v361_v3, 0.0  ;;  %v365_v10 = vsel %vm356_vm10, %v361_v3, 0.0  ;;  %v343_v11 = vsel %vm334_vm11, %v337_v4, 0.0  ;;  %v366_v12 = vsel %vm357_vm12, %v360_v5, 0.0 }
  0x2a   : > { %518 = vmatpush.bf16.msrb.mxu1 %v322_v40  ;;  %504 = vmatpush.bf16.msrb.mxu0 %v321_v39  ;;  %v371_v14 = vadd.f32 %v367_v7, %v344_v6  ;;  %v341_v15 = vsel %vm332_vm13, %v337_v4, 0.0  ;;  %v364_v16 = vsel %vm355_vm14, %v360_v5, 0.0  ;;  %v369_v19 = vadd.f32 %v365_v10, %v342_v9 }
  0x2b   : > { %689 = vmatmul.msk.bf16.vlgmr.msra.gmra.mxu2 %vm379_vm15, %v703_v42  ;;  %690 = vmatmul.msk.bf16.vlgmr.msra.gmra.mxu3 %vm379_vm15, %v703_v42  ;;  %v370_v20 = vadd.f32 %v366_v12, %v343_v11  ;;  %v368_v22 = vadd.f32 %v364_v16, %v341_v15  ;;  %vm546_vm0 = vcmask 1041408  }
  0x39   : > { %697 = vmatmul.msk.bf16.vlgmr.msrb.gmra.mxu0 %vm379_vm15, %v704_v43  ;;  %698 = vmatmul.msk.bf16.vlgmr.msrb.gmra.mxu1 %vm379_vm15, %v704_v43  ;;  %vm543_vm15 = vcmask 1040384  }
  0xa6   : > { %v392_v0 = vpop.f32.mrf.mxu0  ;;  %v406_v1 = vpop.f32.mrf.mxu1 }
  0xa7   : > { %v412_v24 = vmul.f32 %v406_v1, %v369_v19  ;;  %v411_v26 = vmul.f32 %v392_v0, %v368_v22 }
  0xae   : > { %v449_v17 = vpop.f32.mrf.mxu2  ;;  %v463_v18 = vpop.f32.mrf.mxu3 }
  0xaf   : > { %v394_v13 = vpop.f32.mrf.mxu0  ;;  %v408_v21 = vpop.f32.mrf.mxu1  ;;  %v468_v27 = vmul.f32 %v449_v17, %v368_v22  ;;  %v469_v8 = vmul.f32 %v463_v18, %v369_v19 }
  0xb0   : > { %v414_v23 = vmul.f32 %v408_v21, %v371_v14  ;;  %v413_v25 = vmul.f32 %v394_v13, %v370_v20 }
  0xb2   : > { %v422_v28 = vadd.f32 %v414_v23, %v412_v24  ;;  %v415_v31 = vadd.f32 %v413_v25, %v411_v26 }
  0xb4   : > { %v423_v36 = vrot.slane %v422_v28, 4  ;;  %v416_v39 = vrot.slane %v415_v31, 4 }
  0xb6   : > { %v451_v29 = vpop.f32.mrf.mxu2  ;;  %v465_v30 = vpop.f32.mrf.mxu3  ;;  %v424_v42 = vadd.f32 %v423_v36, %v422_v28  ;;  %v417_v45 = vadd.f32 %v416_v39, %v415_v31 }
  0xb7   : > { %v470_v32 = vmul.f32 %v451_v29, %v370_v20  ;;  %v471_v33 = vmul.f32 %v465_v30, %v371_v14  ;;  %v506_v34 = vpop.f32.mrf.mxu0  ;;  %v520_v35 = vpop.f32.mrf.mxu1 }
  0xb8   : > { %v525_v49 = vmul.f32 %v506_v34, %v368_v22  ;;  %v526_v50 = vmul.f32 %v520_v35, %v369_v19  ;;  %v425_v53 = vrot.slane %v424_v42, 2  ;;  %v418_v57 = vrot.slane %v417_v45, 2 }
  0xb9   : > { %v472_v37 = vadd.f32 %v470_v32, %v468_v27  ;;  %v479_v38 = vadd.f32 %v471_v33, %v469_v8 }
  0xba   : > { %v426_v61 = vadd.f32 %v425_v53, %v424_v42  ;;  %v419_v1 = vadd.f32 %v418_v57, %v417_v45 }
  0xbb   : > { %v473_v40 = vrot.slane %v472_v37, 4  ;;  %v480_v41 = vrot.slane %v479_v38, 4 }
  0xbc   : > { %v427_v5 = vrot.slane %v426_v61, 1  ;;  %v420_v10 = vrot.slane %v419_v1, 1 }
  0xbd   : > { %v474_v43 = vadd.f32 %v473_v40, %v472_v37  ;;  %v481_v44 = vadd.f32 %v480_v41, %v479_v38 }
  0xbe   : > { %v428_v15 = vadd.f32 %v427_v5, %v426_v61  ;;  %v421_v19 = vadd.f32 %v420_v10, %v419_v1 }
  0xbf   : > { %v482_v46 = vrot.slane %v481_v44, 2  ;;  %v508_v47 = vpop.f32.mrf.mxu0  ;;  %v522_v48 = vpop.f32.mrf.mxu1  ;;  %v475_v54 = vrot.slane %v474_v43, 2 }
  0xc0   : > { %v527_v51 = vmul.f32 %v508_v47, %v370_v20  ;;  %v528_v52 = vmul.f32 %v522_v48, %v371_v14 }
  0xc1   : > { %v483_v58 = vadd.f32 %v482_v46, %v481_v44  ;;  %v476_v62 = vadd.f32 %v475_v54, %v474_v43 }
  0xc2   : > { %v529_v55 = vadd.f32 %v527_v51, %v525_v49  ;;  %v536_v56 = vadd.f32 %v528_v52, %v526_v50 }
  0xc3   : > { %v484_v2 = vrot.slane %v483_v58, 1  ;;  %v477_v6 = vrot.slane %v476_v62, 1 }
  0xc4   : > { %v530_v59 = vrot.slane %v529_v55, 4  ;;  %v537_v60 = vrot.slane %v536_v56, 4 }
  0xc5   : > { %v485_v11 = vadd.f32 %v484_v2, %v483_v58  ;;  %v478_v16 = vadd.f32 %v477_v6, %v476_v62 }
  0xc6   : > { %v531_v63 = vadd.f32 %v530_v59, %v529_v55  ;;  %v538_v0 = vadd.f32 %v537_v60, %v536_v56 }
  0xc7   : > { %v545_v20 = vsel %vm543_vm15, %v428_v15, %v485_v11  ;;  %v544_v21 = vsel %vm543_vm15, %v421_v19, %v478_v16 }
  0xc8   : > { %v532_v3 = vrot.slane %v531_v63, 2  ;;  %v539_v4 = vrot.slane %v538_v0, 2 }
  0xca   : > { %v533_v7 = vadd.f32 %v532_v3, %v531_v63  ;;  %v540_v9 = vadd.f32 %v539_v4, %v538_v0 }
  0xcc   : > { %v534_v12 = vrot.slane %v533_v7, 1  ;;  %v541_v14 = vrot.slane %v540_v9, 1 }
  0xce   : > { %v535_v17 = vadd.f32 %v534_v12, %v533_v7  ;;  %v542_v18 = vadd.f32 %v541_v14, %v540_v9 }
  0xd0   : > { %v548_v13 = vsel %vm546_vm0, %v545_v20, %v542_v18  ;;  %v547_v23 = vsel %vm546_vm0, %v544_v21, %v535_v17 }
  0xd1   : > { %v551_v22 = vrot.slane %v548_v13, 4 }
  0xd3   : > { %v553_v24 = vsel %vm552_vm1, %v547_v23, %v551_v22 }
  0xd4   : > { %555 = vst [vmem:[%s258_s30] sm:$0x77] %v553_v24 }
  0xd5 PF: > { %s13_s14 = sadd.s32 1, %s766_s14   ;;  %s861_s12 = smov %s762_s13 }
  0xd6   : > { %p10_p5 = scmp.ge.s32.totalorder %s13_s14, 4   ;;  %s862_s13 = smov %s864_s15 }
  0xd8   :  { %12 = sbr.rel (!%p10_p5) target bundleno = 2 (0x2), region = 70 }

// kernel: stn_dcnn_forward.9
= control target key start
LH: loop header
LB: loop body
LE: loop exit
PB: predicated region body
PF: predicated region fallthrough
CT: control target
= control target key end

     0   :  { %s179_s0 = inlined_call_operand.vmem [shape: f32[2,128], index: 0, kind: input, shape index: {}]   ;;  %s180_s1 = inlined_call_operand.vmem [shape: f32[128,128], index: 1, kind: input, shape index: {}]   ;;  %s181_s2 = inlined_call_operand.vmem [shape: f32[1,128], index: 2, kind: input, shape index: {}]   ;;  %s182_s3 = inlined_call_operand.hbm [shape: f32[2,128], index: 3, kind: output, shape index: {}]  }
   0x1   :  { %v31_v0 = vld [vmem:[%s180_s1 + $0x78] sm:$0xff]  ;;  %v30_v1 = vld [vmem:[%s180_s1 + $0x70] sm:$0xff]  ;;  %v29_v2 = vld [vmem:[%s180_s1 + $0x68] sm:$0xff] }
   0x2   :  { %36 = vmatpush.msra.mxu0 %v31_v0  ;;  %v28_v3 = vld [vmem:[%s180_s1 + $0x60] sm:$0xff]  ;;  %v27_v4 = vld [vmem:[%s180_s1 + $0x58] sm:$0xff] }
   0x4   :  { %37 = vmatpush.msra.mxu0 %v30_v1 }
   0x6   :  { %38 = vmatpush.msra.mxu0 %v29_v2 }
   0x7   :  { %8 = vsyncpa [#allocation3], 0  ;;  %v26_v5 = vld [vmem:[%s180_s1 + $0x50] sm:$0xff]  ;;  %v25_v6 = vld [vmem:[%s180_s1 + $0x48] sm:$0xff]  ;;  %s101_s21 = smov [#allocation2]   ;;  %s64_s25 = sshll.u32 %s182_s3, 4  ;;  %s65_s25 = int_to_ptr.hbm [resolvable:$true] %s64_s25 }
   0x8   :  { %39 = vmatpush.msra.mxu0 %v28_v3  ;;  %v24_v7 = vld [vmem:[%s180_s1 + $0x40] sm:$0xff]  ;;  %v23_v8 = vld [vmem:[%s180_s1 + $0x38] sm:$0xff]  ;;  %v22_v9 = vld [vmem:[%s180_s1 + $0x30] sm:$0xff]  ;;  %s62_s22 = sshll.u32 %s101_s21, 4  ;;  %s63_s22 = int_to_ptr.vmem [resolvable:$true] %s62_s22 }
   0x9   :  { %v21_v10 = vld [vmem:[%s180_s1 + $0x28] sm:$0xff]  ;;  %v20_v11 = vld [vmem:[%s180_s1 + $0x20] sm:$0xff]  ;;  %v19_v12 = vld [vmem:[%s180_s1 + $0x18] sm:$0xff] }
   0xa   :  { %40 = vmatpush.msra.mxu0 %v27_v4  ;;  %v18_v13 = vld [vmem:[%s180_s1 + $0x10] sm:$0xff]  ;;  %v17_v14 = vld [vmem:[%s180_s1 + $0x8] sm:$0xff]  ;;  %v16_v15 = vld [vmem:[%s180_s1] sm:$0xff] }
   0xb   :  { %v15_v16 = vld [vmem:[%s179_s0] sm:$0x3] }
   0xc   :  { %41 = vmatpush.msra.mxu0 %v26_v5  ;;  %v74_v17 = vld [vmem:[%s181_s2] ss:$0 sm:$0xff] }
   0xe   :  { %42 = vmatpush.msra.mxu0 %v25_v6 }
  0x10   :  { %43 = vmatpush.msra.mxu0 %v24_v7 }
  0x12   :  { %44 = vmatpush.msra.mxu0 %v23_v8 }
  0x14   :  { %45 = vmatpush.msra.mxu0 %v22_v9 }
  0x16   :  { %46 = vmatpush.msra.mxu0 %v21_v10 }
  0x18   :  { %47 = vmatpush.msra.mxu0 %v20_v11 }
  0x1a   :  { %48 = vmatpush.msra.mxu0 %v19_v12 }
  0x1c   :  { %49 = vmatpush.msra.mxu0 %v18_v13 }
  0x1e   :  { %50 = vmatpush.msra.mxu0 %v17_v14 }
  0x20   :  { %51 = vmatpush.msra.mxu0 %v16_v15 }
  0x21   :  { %52 = vmatmul.f32.vlgmr.msra.gmra.mxu0 %v15_v16 }
  0x9e   :  { %v53_v18 = vpop.f32.mrf.mxu0 }
  0x9f   :  { %v54_v19 = vadd.f32 %v74_v17, %v53_v18 }
  0xa1   :  { %56 = vst [vmem:[#allocation2] sm:$0x3] %v54_v19 }
  0xa2   :  { %67 = dma.vmem_to_hbm [thread:$0]  %s63_s22, 32, %s65_s25, [#allocation3]  }
  0xa3   :  { %99 = dma.done.wait [#allocation3], 32  }
  0xa4   :  { %100 = vsyncadd [#allocation3], 4294967264 }
  0xa5   :  { %72 = vsyncpa [#allocation3], 1 }

// kernel: stn_dcnn_forward.5
= control target key start
LH: loop header
LB: loop body
LE: loop exit
PB: predicated region body
PF: predicated region fallthrough
CT: control target
= control target key end

     0   :  { %s4225_s12 = smov 0   ;;  %s4227_s13 = smov 0   ;;  %s6090_s0 = inlined_call_operand.vmem [shape: f32[2,3,18,18], index: 0, kind: input, shape index: {}]   ;;  %s6091_s1 = inlined_call_operand.vmem [shape: bf16[128,27], index: 1, kind: input, shape index: {}]   ;;  %s6092_s2 = inlined_call_operand.vmem [shape: f32[128,1], index: 2, kind: input, shape index: {}]   ;;  %s6093_s3 = inlined_call_operand.vmem [shape: f32[2,128,1], index: 3, kind: output, shape index: {}]  }
   0x1   :  { %s4229_s14 = smov 0  }
   0x2 LB: > { %s25_s15 = sadd.s32 1, %s4173_s13  ;;  %p2934_p0 = scmp.ge.s32.totalorder %s4177_s14, 1  ;;  %s4177_s14 = sphi %s4229_s14, %s13_s14   ;;  %s4173_s13 = sphi %s4227_s13, %s6272_s13   ;;  %s4169_s12 = sphi %s4225_s12, %s6271_s12  }
   0x3   : > { %p27_p1 = scmp.ge.s32.totalorder %s25_s15, 2  ;;  %p149_p2 = scmp.lt.s32.totalorder %s4177_s14, 3 }
   0x5   : > { %s6274_s15 = smov (%p27_p1, %s25_s15), 0  ;;  %p150_p3 = pnand %p2934_p0, %p149_p2 }
   0x7   : > { %153 = sbr.rel (%p150_p3) target bundleno = 1033 (0x409), region = 32 }
   0xc   : > { %p173_p4 = scmp.lt.s32.totalorder %s4169_s12, 1  ;;  %s4179_s20 = smov 80   ;;  %vm309_vm0 = vcmask 130048   ;;  %vm311_vm1 = vcmask 261120   ;;  %vm313_vm2 = vcmask 392192   ;;  %vm315_vm3 = vcmask 523264  }
   0xd   : > { %s4180_s21 = smov 48   ;;  %s4181_s22 = smov 16   ;;  %vm317_vm4 = vcmask 654336   ;;  %vm319_vm5 = vcmask 785408   ;;  %vm321_vm6 = vcmask 916480   ;;  %vm2132_vm7 = vcmask 1040384  }
   0xe   : > { %s6276_s12 = smov (!%p173_p4, %s4169_s12), 1  ;;  %s6100_s23 = smov 96   ;;  %vm2135_vm8 = vcmask 1041408   ;;  %vm2138_vm9 = vcmask 1042432   ;;  %vm2141_vm10 = vcmask 1043456   ;;  %vm2144_vm11 = vcmask 1044480  }
   0xf   : > { %s3054_s16 = smul.u32 72, %s6276_s12  ;;  %s6108_s24 = smov 64   ;;  %vm2147_vm12 = vcmask 1045504   ;;  %vm2150_vm13 = vcmask 1046528   ;;  %vm2395_vm14 = vcmask 220160   ;;  %vm189_vm15 = vcmask 7168  }
  0x10   : > { %s4184_s25 = smov 32   ;;  %s4185_s26 = smov 15  }
  0x11   : > { %s4249_s19 = scalar_lea.vmem %s6090_s0, %s3054_s16  ;;  %s6160_s27 = smov 112  }
  0x12   : > { %v2942_v0 = vld [vmem:[%s4249_s19 + $0x5] sm:$0x1]  ;;  %v2950_v1 = vld [vmem:[%s4249_s19 + $0xd] sm:$0x1]  ;;  %v2940_v2 = vld [vmem:[%s4249_s19 + $0x3] sm:$0x1] }
  0x13   : > { %v4254_v3 = vpack.i.bf16 %v2950_v1, %v2942_v0  ;;  %v2948_v4 = vld [vmem:[%s4249_s19 + $0xb] sm:$0x1]  ;;  %v2938_v5 = vld [vmem:[%s4249_s19 + $0x1] sm:$0x1]  ;;  %v4259_v6 = vld [vmem:[%s4249_s19 + $0x9] sm:$0x1] }
  0x14   : > { %v4261_v7 = vpack.i.bf16 %v2948_v4, %v2940_v2  ;;  %v4264_v8 = vpack.i.bf16 %v4259_v6, %v2938_v5  ;;  %v2943_v9 = vld [vmem:[%s4249_s19 + $0x6] sm:$0x1]  ;;  %v2951_v10 = vld [vmem:[%s4249_s19 + $0xe] sm:$0x1]  ;;  %v2941_v11 = vld [vmem:[%s4249_s19 + $0x4] sm:$0x1] }
  0x15   : > { %3126 = vrot.lane.b32.xlu2 %v4254_v3, %s4179_s20  ;;  %v2949_v12 = vld [vmem:[%s4249_s19 + $0xc] sm:$0x1]  ;;  %v2939_v13 = vld [vmem:[%s4249_s19 + $0x2] sm:$0x1]  ;;  %v2947_v14 = vld [vmem:[%s4249_s19 + $0xa] sm:$0x1]  ;;  %v4278_v15 = vpack.i.bf16 %v2951_v10, %v2943_v9 }
  0x16   : > { %3116 = vrot.lane.b32.xlu1 %v4261_v7, %s4180_s21  ;;  %3106 = vrot.lane.b32.xlu0 %v4264_v8, %s4181_s22  ;;  %v4280_v16 = vpack.i.bf16 %v2949_v12, %v2941_v11  ;;  %v4282_v17 = vpack.i.bf16 %v2947_v14, %v2939_v13  ;;  %v2944_v18 = vld [vmem:[%s4249_s19 + $0x7] sm:$0x1]  ;;  %v2952_v19 = vld [vmem:[%s4249_s19 + $0xf] sm:$0x1]  ;;  %s6098_s28 = smov 127   ;;  %s4188_s29 = smov 63  }
  0x17   : > { %v207_v20 = vld [vmem:[%s4249_s19] sm:$0x1]  ;;  %v2945_v21 = vld [vmem:[%s4249_s19 + $0x8] sm:$0x1]  ;;  %v4294_v22 = vpack.i.bf16 %v2952_v19, %v2944_v18  ;;  %s4189_s30 = smov 31   ;;  %s4190_s4 = smov 47  }
  0x18   : > { %v3140_v23 = vpack.i.bf16 %v2945_v21, %v207_v20  ;;  %s4191_s5 = smov 111   ;;  %s6096_s6 = smov 79   ;;  %v2953_v24 = vld [vmem:[%s4249_s19 + $0x10] sm:$0x1]  ;;  %v2954_v36 = vld [vmem:[%s4249_s19 + $0x11] sm:$0x1] }
  0x19   : > { %s4193_s7 = smov 95   ;;  %s6094_s8 = smov 30   ;;  %v4337_v25 = vpack.i.bf16 %v2953_v24, %v2945_v21  ;;  %v3365_v39 = vpack.i.bf16 %v2954_v36, %v4259_v6  ;;  %v2958_v55 = vld [vmem:[%s4249_s19 + $0x1b] sm:$0x1]  ;;  %v2966_v56 = vld [vmem:[%s4249_s19 + $0x23] sm:$0x1] }
  0x1a   : > { %s4195_s9 = smov 126   ;;  %s6158_s10 = smov 14   ;;  %v4479_v57 = vld [vmem:[%s4249_s19 + $0x19] sm:$0x1]  ;;  %v4484_v59 = vld [vmem:[%s4249_s19 + $0x21] sm:$0x1]  ;;  %v4492_v0 = vpack.i.bf16 %v2966_v56, %v2958_v55 }
  0x1b   : > { %s4197_s11 = smov 78   ;;  %s4198_s16 = smov 46   ;;  %v2957_v60 = vld [vmem:[%s4249_s19 + $0x1a] sm:$0x1]  ;;  %v2965_v61 = vld [vmem:[%s4249_s19 + $0x22] sm:$0x1]  ;;  %v4496_v1 = vpack.i.bf16 %v4484_v59, %v4479_v57 }
  0x1c   : > { %s6156_s17 = smov 62   ;;  %s6129_s18 = smov 94   ;;  %v4498_v2 = vpack.i.bf16 %v2965_v61, %v2957_v60  ;;  %v2969_v4 = vld [vmem:[%s4249_s19 + $0x26] sm:$0x1]  ;;  %v2959_v5 = vld [vmem:[%s4249_s19 + $0x1c] sm:$0x1] }
  0x1d   : > { %3131 = vrot.lane.b32.xlu2 %v4278_v15, %s6100_s23  ;;  %v2968_v9 = vld [vmem:[%s4249_s19 + $0x25] sm:$0x1]  ;;  %v4535_v18 = vld [vmem:[%s4249_s19 + $0x18] sm:$0x1]  ;;  %v4538_v19 = vld [vmem:[%s4249_s19 + $0x20] sm:$0x1] }
  0x1e   : > { %3121 = vrot.lane.b32.xlu1 %v4280_v16, %s6108_s24  ;;  %3111 = vrot.lane.b32.xlu0 %v4282_v17, %s4184_s25 }
  0x25   : > { %3146 = vrot.lane.b32.xlu2 %v4264_v8, %s4185_s26 }
  0x26   : > { %3136 = vrot.lane.b32.xlu0 %v4294_v22, %s6160_s27  ;;  %3141 = vrot.lane.b32.xlu1 %v3140_v23, %s6098_s28 }
  0x2d   : > { %3161 = vrot.lane.b32.xlu2 %v4280_v16, %s4188_s29 }
  0x2e   : > { %3151 = vrot.lane.b32.xlu0 %v4282_v17, %s4189_s30  ;;  %3156 = vrot.lane.b32.xlu1 %v4261_v7, %s4190_s4 }
  0x35   : > { %3176 = vrot.lane.b32.xlu2 %v4294_v22, %s4191_s5 }
  0x36   : > { %3166 = vrot.lane.b32.xlu0 %v4254_v3, %s6096_s6  ;;  %3171 = vrot.lane.b32.xlu1 %v4278_v15, %s4193_s7 }
  0x3d   : > { %3191 = vrot.lane.b32.xlu2 %v4282_v17, %s6094_s8  ;;  %s4201_s8 = smov 110  }
  0x3e   : > { %3181 = vrot.lane.b32.xlu0 %v3140_v23, %s4195_s9  ;;  %3186 = vrot.lane.b32.xlu1 %v4264_v8, %s6158_s10  ;;  %v3485_v23 = vpack.i.bf16 %v4538_v19, %v4535_v18 }
  0x45   : > { %3206 = vrot.lane.b32.xlu2 %v4254_v3, %s4197_s11 }
  0x46   : > { %3196 = vrot.lane.b32.xlu0 %v4261_v7, %s4198_s16  ;;  %3201 = vrot.lane.b32.xlu1 %v4280_v16, %s6156_s17 }
  0x4d   : > { %3221 = vrot.lane.b32.xlu2 %v4282_v17, %s4181_s22 }
  0x4e   : > { %3211 = vrot.lane.b32.xlu0 %v4278_v15, %s6129_s18  ;;  %3216 = vrot.lane.b32.xlu1 %v4294_v22, %s4201_s8 }
  0x55   : > { %3236 = vrot.lane.b32.xlu2 %v4254_v3, %s6108_s24 }
  0x56   : > { %3226 = vrot.lane.b32.xlu0 %v4261_v7, %s4184_s25  ;;  %3231 = vrot.lane.b32.xlu1 %v4280_v16, %s4180_s21 }
  0x5d   : > { %3251 = vrot.lane.b32.xlu2 %v4337_v25, %s6160_s27 }
  0x5e   : > { %3241 = vrot.lane.b32.xlu0 %v4278_v15, %s4179_s20  ;;  %3246 = vrot.lane.b32.xlu1 %v4294_v22, %s6100_s23 }
  0x65   : > { %3266 = vrot.lane.b32.xlu2 %v4261_v7, %s4189_s30 }
  0x66   : > { %3256 = vrot.lane.b32.xlu0 %v4264_v8, %s6098_s28  ;;  %3261 = vrot.lane.b32.xlu1 %v4282_v17, %s4185_s26 }
  0x6d   : > { %3281 = vrot.lane.b32.xlu2 %v4278_v15, %s6096_s6  ;;  %s6161_s6 = smov 30  }
  0x6e   : > { %3271 = vrot.lane.b32.xlu0 %v4280_v16, %s4190_s4  ;;  %3276 = vrot.lane.b32.xlu1 %v4254_v3, %s4188_s29 }
  0x6f   : > { %v4357_v26 = vpop.permute.xlu2 %3126 }
  0x75   : > { %3296 = vrot.lane.b32.xlu2 %v4264_v8, %s4195_s9  ;;  %v2960_v8 = vld [vmem:[%s4249_s19 + $0x1d] sm:$0x1] }
  0x76   : > { %3286 = vrot.lane.b32.xlu0 %v4294_v22, %s4193_s7  ;;  %3291 = vrot.lane.b32.xlu1 %v4337_v25, %s4191_s5  ;;  %v4522_v14 = vpack.i.bf16 %v2968_v9, %v2960_v8 }
  0x77   : > { %v4365_v27 = vpop.permute.xlu2 %3131 }
  0x7d   : > { %3311 = vrot.lane.b32.xlu2 %v4280_v16, %s4198_s16 }
  0x7e   : > { %3301 = vrot.lane.b32.xlu0 %v4282_v17, %s6158_s10  ;;  %3306 = vrot.lane.b32.xlu1 %v4261_v7, %s6161_s6 }
  0x7f   : > { %v4373_v28 = vpop.permute.xlu2 %3146 }
  0x85   : > { %3326 = vrot.lane.b32.xlu2 %v4294_v22, %s6129_s18 }
  0x86   : > { %3316 = vrot.lane.b32.xlu0 %v4254_v3, %s6156_s17  ;;  %3321 = vrot.lane.b32.xlu1 %v4278_v15, %s4197_s11 }
  0x87   : > { %v4381_v29 = vpop.permute.xlu2 %3161 }
  0x88   : > { %v4383_v30 = vpop.permute.xlu1 %3116  ;;  %v4385_v31 = vpop.permute.xlu0 %3106 }
  0x8d   : > { %3341 = vrot.lane.b32.xlu2 %v4280_v16, %s4184_s25 }
  0x8e   : > { %3331 = vrot.lane.b32.xlu0 %v4337_v25, %s4201_s8  ;;  %3336 = vrot.lane.b32.xlu1 %v4261_v7, %s4181_s22 }
  0x8f   : > { %v4393_v32 = vpop.permute.xlu2 %3176 }
  0x90   : > { %v4395_v33 = vpop.permute.xlu1 %3121  ;;  %v4397_v34 = vpop.permute.xlu0 %3111 }
  0x95   : > { %3356 = vrot.lane.b32.xlu2 %v4294_v22, %s4179_s20 }
  0x96   : > { %3346 = vrot.lane.b32.xlu0 %v4254_v3, %s4180_s21  ;;  %3351 = vrot.lane.b32.xlu1 %v4278_v15, %s6108_s24 }
  0x97   : > { %v4405_v35 = vpop.permute.xlu2 %3191 }
  0x98   : > { %6162 = vst [vmem:[#allocation3_spill] sm:$0xff] %v4405_v35  ;;  %v4408_v37 = vpop.permute.xlu0 %3136  ;;  %v4410_v38 = vpop.permute.xlu1 %3141 }
  0x99   : > { %6163 = vst [vmem:[#allocation4_spill] sm:$0xff] %v4408_v37 }
  0x9d   : > { %3371 = vrot.lane.b32.xlu2 %v4282_v17, %s6098_s28  ;;  %s6169_s28 = smov 79  }
  0x9e   : > { %3361 = vrot.lane.b32.xlu0 %v4337_v25, %s6100_s23  ;;  %3366 = vrot.lane.b32.xlu1 %v3365_v39, %s6160_s27 }
  0x9f   : > { %v4418_v40 = vpop.permute.xlu2 %3206 }
  0xa0   : > { %6164 = vst [vmem:[#allocation5_spill] sm:$0xff] %v4418_v40  ;;  %v4420_v41 = vpop.permute.xlu0 %3151  ;;  %v4422_v42 = vpop.permute.xlu1 %3156 }
  0xa1   : > { %6165 = vst [vmem:[#allocation6_spill] sm:$0xff] %v4422_v42 }
  0xa5   : > { %3386 = vrot.lane.b32.xlu2 %v4254_v3, %s4190_s4 }
  0xa6   : > { %3376 = vrot.lane.b32.xlu0 %v4261_v7, %s4185_s26  ;;  %3381 = vrot.lane.b32.xlu1 %v4280_v16, %s4189_s30 }
  0xa7   : > { %v4430_v43 = vpop.permute.xlu2 %3221 }
  0xa8   : > { %6166 = vst [vmem:[#allocation7_spill] sm:$0xff] %v4430_v43  ;;  %v4432_v44 = vpop.permute.xlu0 %3166  ;;  %v4434_v45 = vpop.permute.xlu1 %3171 }
  0xa9   : > { %6167 = vst [vmem:[#allocation8_spill] sm:$0xff] %v4432_v44 }
  0xaa   : > { %6168 = vst [vmem:[#allocation9_spill] sm:$0xff] %v4434_v45 }
  0xad   : > { %3401 = vrot.lane.b32.xlu2 %v4337_v25, %s4193_s7 }
  0xae   : > { %3391 = vrot.lane.b32.xlu0 %v4278_v15, %s4188_s29  ;;  %3396 = vrot.lane.b32.xlu1 %v4294_v22, %s6169_s28 }
  0xaf   : > { %v4442_v46 = vpop.permute.xlu2 %3236 }
  0xb0   : > { %6170 = vst [vmem:[#allocation10_spill] sm:$0xff] %v4442_v46  ;;  %v4444_v47 = vpop.permute.xlu0 %3181  ;;  %v4446_v48 = vpop.permute.xlu1 %3186 }
  0xb1   : > { %6171 = vst [vmem:[#allocation11_spill] sm:$0xff] %v4444_v47 }
  0xb2   : > { %6172 = vst [vmem:[#allocation12_spill] sm:$0xff] %v4446_v48 }
  0xb5   : > { %3416 = vrot.lane.b32.xlu2 %v4261_v7, %s6158_s10  ;;  %v2967_v7 = vld [vmem:[%s4249_s19 + $0x24] sm:$0x1] }
  0xb6   : > { %3406 = vrot.lane.b32.xlu0 %v3365_v39, %s4191_s5  ;;  %3411 = vrot.lane.b32.xlu1 %v4282_v17, %s4195_s9  ;;  %v4520_v13 = vpack.i.bf16 %v2967_v7, %v2959_v5  ;;  %v2970_v17 = vld [vmem:[%s4249_s19 + $0x27] sm:$0x1] }
  0xb7   : > { %v4453_v49 = vpop.permute.xlu2 %3251 }
  0xb8   : > { %6173 = vst [vmem:[#allocation13_spill] sm:$0xff] %v4453_v49  ;;  %v4455_v50 = vpop.permute.xlu0 %3196  ;;  %v4457_v51 = vpop.permute.xlu1 %3201  ;;  %v2972_v49 = vld [vmem:[%s4249_s19 + $0x29] sm:$0x1] }
  0xb9   : > { %6174 = vst [vmem:[#allocation14_spill] sm:$0xff] %v4455_v50 }
  0xba   : > { %6175 = vst [vmem:[#allocation15_spill] sm:$0xff] %v4457_v51 }
  0xbd   : > { %3431 = vrot.lane.b32.xlu2 %v4278_v15, %s6156_s17  ;;  %v2962_v15 = vld [vmem:[%s4249_s19 + $0x1f] sm:$0x1] }
  0xbe   : > { %3421 = vrot.lane.b32.xlu0 %v4280_v16, %s6161_s6  ;;  %3426 = vrot.lane.b32.xlu1 %v4254_v3, %s4198_s16  ;;  %v2961_v3 = vld [vmem:[%s4249_s19 + $0x1e] sm:$0x1] }
  0xbf   : > { %v4465_v52 = vpop.permute.xlu2 %3266  ;;  %v4518_v12 = vpack.i.bf16 %v2969_v4, %v2961_v3 }
  0xc0   : > { %6176 = vst [vmem:[#allocation16_spill] sm:$0xff] %v4465_v52  ;;  %v4467_v53 = vpop.permute.xlu0 %3211  ;;  %v4469_v54 = vpop.permute.xlu1 %3216 }
  0xc1   : > { %6177 = vst [vmem:[#allocation17_spill] sm:$0xff] %v4467_v53 }
  0xc2   : > { %6178 = vst [vmem:[#allocation18_spill] sm:$0xff] %v4469_v54 }
  0xc5   : > { %3446 = vrot.lane.b32.xlu2 %v3365_v39, %s4201_s8 }
  0xc6   : > { %3436 = vrot.lane.b32.xlu0 %v4294_v22, %s4197_s11  ;;  %3441 = vrot.lane.b32.xlu1 %v4337_v25, %s6129_s18  ;;  %v4544_v22 = vpack.i.bf16 %v2970_v17, %v2962_v15 }
  0xc7   : > { %v4481_v58 = vpop.permute.xlu2 %3281 }
  0xc8   : > { %6179 = vst [vmem:[#allocation19_spill] sm:$0xff] %v4481_v58  ;;  %v4488_v62 = vpop.permute.xlu0 %3226  ;;  %v4490_v63 = vpop.permute.xlu1 %3231 }
  0xc9   : > { %6180 = vst [vmem:[#allocation20_spill] sm:$0xff] %v4488_v62 }
  0xca   : > { %6181 = vst [vmem:[#allocation21_spill] sm:$0xff] %v4490_v63 }
  0xcd   : > { %3461 = vrot.lane.b32.xlu2 %v4492_v0, %s4180_s21 }
  0xce   : > { %3451 = vrot.lane.b32.xlu0 %v4496_v1, %s4181_s22  ;;  %3456 = vrot.lane.b32.xlu1 %v4498_v2, %s4184_s25 }
  0xcf   : > { %v4509_v6 = vpop.permute.xlu2 %3296 }
  0xd0   : > { %6182 = vst [vmem:[#allocation22_spill] sm:$0xff] %v4509_v6  ;;  %v4514_v10 = vpop.permute.xlu0 %3241  ;;  %v4516_v11 = vpop.permute.xlu1 %3246 }
  0xd1   : > { %6183 = vst [vmem:[#allocation23_spill] sm:$0xff] %v4514_v10 }
  0xd2   : > { %6184 = vst [vmem:[#allocation24_spill] sm:$0xff] %v4516_v11 }
  0xd5   : > { %3476 = vrot.lane.b32.xlu2 %v4518_v12, %s6100_s23  ;;  %s6188_s23 = smov 127  }
  0xd6   : > { %3466 = vrot.lane.b32.xlu0 %v4520_v13, %s6108_s24  ;;  %3471 = vrot.lane.b32.xlu1 %v4522_v14, %s4179_s20 }
  0xd7   : > { %v4531_v16 = vpop.permute.xlu2 %3311 }
  0xd8   : > { %6185 = vst [vmem:[#allocation25_spill] sm:$0xff] %v4531_v16  ;;  %v4540_v20 = vpop.permute.xlu0 %3256  ;;  %v4542_v21 = vpop.permute.xlu1 %3261 }
  0xd9   : > { %6186 = vst [vmem:[#allocation26_spill] sm:$0xff] %v4540_v20 }
  0xda   : > { %6187 = vst [vmem:[#allocation27_spill] sm:$0xff] %v4542_v21 }
  0xdd   : > { %3491 = vrot.lane.b32.xlu2 %v4496_v1, %s4185_s26 }
  0xde   : > { %3481 = vrot.lane.b32.xlu0 %v4544_v22, %s6160_s27  ;;  %3486 = vrot.lane.b32.xlu1 %v3485_v23, %s6188_s23 }
  0xdf   : > { %v4553_v24 = vpop.permute.xlu2 %3326 }
  0xe0   : > { %6189 = vst [vmem:[#allocation28_spill] sm:$0xff] %v4553_v24  ;;  %v4555_v25 = vpop.permute.xlu0 %3271  ;;  %v4557_v36 = vpop.permute.xlu1 %3276 }
  0xe1   : > { %6190 = vst [vmem:[#allocation29_spill] sm:$0xff] %v4555_v25  ;;  %v4726_v25 = vpack.i.bf16 %v2972_v49, %v4484_v59 }
  0xe2   : > { %6191 = vst [vmem:[#allocation30_spill] sm:$0xff] %v4557_v36 }
  0xe5   : > { %3506 = vrot.lane.b32.xlu2 %v4520_v13, %s4188_s29 }
  0xe6   : > { %3496 = vrot.lane.b32.xlu0 %v4498_v2, %s4189_s30  ;;  %3501 = vrot.lane.b32.xlu1 %v4492_v0, %s4190_s4 }
  0xe7   : > { %v4565_v39 = vpop.permute.xlu2 %3341 }
  0xe8   : > { %6192 = vst [vmem:[#allocation31_spill] sm:$0xff] %v4565_v39  ;;  %v4567_v55 = vpop.permute.xlu0 %3286  ;;  %v4569_v56 = vpop.permute.xlu1 %3291 }
  0xe9   : > { %6193 = vst [vmem:[#allocation32_spill] sm:$0xff] %v4567_v55 }
  0xea   : > { %6194 = vst [vmem:[#allocation33_spill] sm:$0xff] %v4569_v56 }
  0xed   : > { %3521 = vrot.lane.b32.xlu2 %v4544_v22, %s4191_s5 }
  0xee   : > { %3511 = vrot.lane.b32.xlu0 %v4522_v14, %s6169_s28  ;;  %3516 = vrot.lane.b32.xlu1 %v4518_v12, %s4193_s7 }
  0xef   : > { %v4577_v60 = vpop.permute.xlu2 %3356 }
  0xf0   : > { %6195 = vst [vmem:[#allocation34_spill] sm:$0xff] %v4577_v60  ;;  %v4579_v61 = vpop.permute.xlu0 %3301  ;;  %v4581_v3 = vpop.permute.xlu1 %3306 }
  0xf1   : > { %6196 = vst [vmem:[#allocation35_spill] sm:$0xff] %v4579_v61 }
  0xf2   : > { %6197 = vst [vmem:[#allocation36_spill] sm:$0xff] %v4581_v3 }
  0xf5   : > { %3536 = vrot.lane.b32.xlu2 %v4498_v2, %s6161_s6 }
  0xf6   : > { %3526 = vrot.lane.b32.xlu0 %v3485_v23, %s4195_s9  ;;  %3531 = vrot.lane.b32.xlu1 %v4496_v1, %s6158_s10 }
  0xf7   : > { %v4588_v4 = vpop.permute.xlu2 %3371 }
  0xf8   : > { %6198 = vst [vmem:[#allocation37_spill] sm:$0xff] %v4588_v4  ;;  %v4590_v5 = vpop.permute.xlu0 %3316  ;;  %v4592_v7 = vpop.permute.xlu1 %3321 }
  0xf9   : > { %6199 = vst [vmem:[#allocation38_spill] sm:$0xff] %v4590_v5 }
  0xfa   : > { %6200 = vst [vmem:[#allocation39_spill] sm:$0xff] %v4592_v7 }
  0xfd   : > { %3551 = vrot.lane.b32.xlu2 %v4522_v14, %s4197_s11 }
  0xfe   : > { %3541 = vrot.lane.b32.xlu0 %v4492_v0, %s4198_s16  ;;  %3546 = vrot.lane.b32.xlu1 %v4520_v13, %s6156_s17 }
  0xff   : > { %v4600_v8 = vpop.permute.xlu2 %3386 }
 0x100   : > { %6201 = vst [vmem:[#allocation40_spill] sm:$0xff] %v4600_v8  ;;  %v4602_v9 = vpop.permute.xlu0 %3331  ;;  %v4604_v15 = vpop.permute.xlu1 %3336  ;;  %v2971_v8 = vld [vmem:[%s4249_s19 + $0x28] sm:$0x1] }
 0x101   : > { %6202 = vst [vmem:[#allocation41_spill] sm:$0xff] %v4602_v9 }
 0x102   : > { %6203 = vst [vmem:[#allocation42_spill] sm:$0xff] %v4604_v15 }
 0x105   : > { %3566 = vrot.lane.b32.xlu2 %v4498_v2, %s4181_s22 }
 0x106   : > { %3556 = vrot.lane.b32.xlu0 %v4518_v12, %s6129_s18  ;;  %3561 = vrot.lane.b32.xlu1 %v4544_v22, %s4201_s8 }
 0x107   : > { %v4612_v17 = vpop.permute.xlu2 %3401 }
 0x108   : > { %6204 = vst [vmem:[#allocation43_spill] sm:$0xff] %v4612_v17  ;;  %v4614_v23 = vpop.permute.xlu0 %3346  ;;  %v4616_v4 = vpop.permute.xlu1 %3351  ;;  %v4632_v17 = vpack.i.bf16 %v2971_v8, %v4538_v19 }
 0x109   : > { %6205 = vst [vmem:[#allocation44_spill] sm:$0xff] %v4614_v23 }
 0x10a   : > { %6206 = vst [vmem:[#allocation45_spill] sm:$0xff] %v4616_v4 }
 0x10d   : > { %3581 = vrot.lane.b32.xlu2 %v4522_v14, %s6108_s24  ;;  %s6209_s24 = smov 96  }
 0x10e   : > { %3571 = vrot.lane.b32.xlu0 %v4492_v0, %s4184_s25  ;;  %3576 = vrot.lane.b32.xlu1 %v4520_v13, %s4180_s21 }
 0x10f   : > { %v4625_v9 = vpop.permute.xlu2 %3416 }
 0x110   : > { %v4627_v60 = vpop.permute.xlu0 %3361  ;;  %v4629_v7 = vpop.permute.xlu1 %3366  ;;  %v3419_v54 = vunpack.i.h.bf16 %v4625_v9  ;;  %v3418_v63 = vunpack.i.l.bf16 %v4625_v9 }
 0x111   : > { %6207 = vst [vmem:[#allocation46_spill] sm:$0xff] %v4627_v60 }
 0x112   : > { %6208 = vst [vmem:[#allocation47_spill] sm:$0xff] %v4629_v7 }
 0x115   : > { %3596 = vrot.lane.b32.xlu2 %v4632_v17, %s6160_s27 }
 0x116   : > { %3586 = vrot.lane.b32.xlu0 %v4518_v12, %s4179_s20  ;;  %3591 = vrot.lane.b32.xlu1 %v4544_v22, %s6209_s24 }
 0x117   : > { %v4640_v4 = vpop.permute.xlu2 %3431 }
 0x118   : > { %v4642_v23 = vpop.permute.xlu0 %3376  ;;  %v4644_v15 = vpop.permute.xlu1 %3381 }
 0x119   : > { %6210 = vst [vmem:[#allocation48_spill] sm:$0xff] %v4642_v23 }
 0x11a   : > { %6211 = vst [vmem:[#allocation49_spill] sm:$0xff] %v4644_v15 }
 0x11d   : > { %3611 = vrot.lane.b32.xlu2 %v4492_v0, %s4189_s30 }
 0x11e   : > { %3601 = vrot.lane.b32.xlu0 %v4496_v1, %s6188_s23  ;;  %3606 = vrot.lane.b32.xlu1 %v4498_v2, %s4185_s26 }
 0x11f   : > { %v4652_v8 = vpop.permute.xlu2 %3446 }
 0x120   : > { %v4654_v7 = vpop.permute.xlu0 %3391  ;;  %v4656_v60 = vpop.permute.xlu1 %3396 }
 0x121   : > { %6212 = vst [vmem:[#allocation50_spill] sm:$0xff] %v4654_v7 }
 0x122   : > { %6213 = vst [vmem:[#allocation51_spill] sm:$0xff] %v4656_v60 }
 0x125   : > { %3626 = vrot.lane.b32.xlu2 %v4518_v12, %s6169_s28 }
 0x126   : > { %3616 = vrot.lane.b32.xlu0 %v4520_v13, %s4190_s4  ;;  %3621 = vrot.lane.b32.xlu1 %v4522_v14, %s4188_s29 }
 0x127   : > { %v4664_v15 = vpop.permute.xlu2 %3461 }
 0x128   : > { %v4666_v23 = vpop.permute.xlu0 %3406  ;;  %v3412_v39 = vpop.permute.xlu1 %3411  ;;  %v3464_v9 = vunpack.i.h.bf16 %v4664_v15 }
 0x129   : > { %6214 = vst [vmem:[#allocation52_spill] sm:$0xff] %v4666_v23  ;;  %v3414_v46 = vunpack.i.h.bf16 %v3412_v39  ;;  %v3413_v62 = vunpack.i.l.bf16 %v3412_v39 }
 0x12b   : > { %v817_v40 = vsel %vm309_vm0, %v3414_v46, %v3419_v54  ;;  %v810_v44 = vsel %vm309_vm0, %v3413_v62, %v3418_v63  ;;  %v3434_v46 = vunpack.i.h.bf16 %v4640_v4 }
 0x12d   : > { %3641 = vrot.lane.b32.xlu2 %v4496_v1, %s4195_s9 }
 0x12e   : > { %3631 = vrot.lane.b32.xlu0 %v4544_v22, %s4193_s7  ;;  %3636 = vrot.lane.b32.xlu1 %v4632_v17, %s4191_s5 }
 0x12f   : > { %v4674_v60 = vpop.permute.xlu2 %3476 }
 0x130   : > { %v3422_v7 = vpop.permute.xlu0 %3421  ;;  %v4676_v5 = vpop.permute.xlu1 %3426 }
 0x131   : > { %v3424_v43 = vunpack.i.h.bf16 %v3422_v7  ;;  %v3423_v51 = vunpack.i.l.bf16 %v3422_v7  ;;  %v3429_v48 = vunpack.i.h.bf16 %v4676_v5  ;;  %v3428_v47 = vunpack.i.l.bf16 %v4676_v5 }
 0x133   : > { %v811_v39 = vsel %vm311_vm1, %v810_v44, %v3423_v51  ;;  %v818_v7 = vsel %vm311_vm1, %v817_v40, %v3424_v43  ;;  %v3479_v44 = vunpack.i.h.bf16 %v4674_v60 }
 0x134   : > { %v819_v35 = vsel %vm313_vm2, %v818_v7, %v3429_v48 }
 0x135   : > { %3656 = vrot.lane.b32.xlu2 %v4520_v13, %s4198_s16  ;;  %v820_v48 = vsel %vm315_vm3, %v819_v35, %v3434_v46 }
 0x136   : > { %3646 = vrot.lane.b32.xlu0 %v4498_v2, %s6158_s10  ;;  %3651 = vrot.lane.b32.xlu1 %v4492_v0, %s6161_s6 }
 0x137   : > { %v4684_v1 = vpop.permute.xlu2 %3491 }
 0x138   : > { %v4686_v23 = vpop.permute.xlu0 %3436  ;;  %v4688_v24 = vpop.permute.xlu1 %3441 }
 0x139   : > { %v3438_v37 = vunpack.i.l.bf16 %v4686_v23  ;;  %v3439_v7 = vunpack.i.h.bf16 %v4686_v23 }
 0x13d   : > { %3671 = vrot.lane.b32.xlu2 %v4544_v22, %s6129_s18  ;;  %s6215_s18 = smov 64  }
 0x13e   : > { %3661 = vrot.lane.b32.xlu0 %v4522_v14, %s6156_s17  ;;  %3666 = vrot.lane.b32.xlu1 %v4518_v12, %s4197_s11 }
 0x13f   : > { %v4696_v16 = vpop.permute.xlu2 %3506 }
 0x140   : > { %v3452_v3 = vpop.permute.xlu0 %3451  ;;  %v4698_v56 = vpop.permute.xlu1 %3456 }
 0x141   : > { %v3454_v50 = vunpack.i.h.bf16 %v3452_v3  ;;  %v3453_v45 = vunpack.i.l.bf16 %v3452_v3  ;;  %v3459_v54 = vunpack.i.h.bf16 %v4698_v56  ;;  %v3458_v62 = vunpack.i.l.bf16 %v4698_v56 }
 0x142   : > { %v3433_v3 = vunpack.i.l.bf16 %v4640_v4  ;;  %v812_v56 = vsel %vm313_vm2, %v811_v39, %v3428_v47  ;;  %v3463_v4 = vunpack.i.l.bf16 %v4664_v15  ;;  %v3494_v15 = vunpack.i.h.bf16 %v4684_v1 }
 0x143   : > { %v935_v40 = vsel %vm309_vm0, %v4538_v19, %v3454_v50  ;;  %v928_v43 = vsel %vm309_vm0, %v4535_v18, %v3453_v45  ;;  %v3478_v19 = vunpack.i.l.bf16 %v4674_v60  ;;  %v3493_v39 = vunpack.i.l.bf16 %v4684_v1 }
 0x144   : > { %v936_v42 = vsel %vm311_vm1, %v935_v40, %v3459_v54  ;;  %v929_v50 = vsel %vm311_vm1, %v928_v43, %v3458_v62  ;;  %v813_v47 = vsel %vm315_vm3, %v812_v56, %v3433_v3  ;;  %v3444_v54 = vunpack.i.h.bf16 %v4688_v24 }
 0x145   : > { %3686 = vrot.lane.b32.xlu2 %v4520_v13, %s4184_s25  ;;  %v930_v60 = vsel %vm313_vm2, %v929_v50, %v3463_v4  ;;  %v4823_v56 = vsel %vm317_vm4, %v820_v48, %v3439_v7  ;;  %v3509_v4 = vunpack.i.h.bf16 %v4696_v16 }
 0x146   : > { %3676 = vrot.lane.b32.xlu0 %v4632_v17, %s4201_s8  ;;  %3681 = vrot.lane.b32.xlu1 %v4492_v0, %s4181_s22 }
 0x147   : > { %v4706_v6 = vpop.permute.xlu2 %3521 }
 0x148   : > { %v4708_v61 = vpop.permute.xlu0 %3466  ;;  %v4710_v55 = vpop.permute.xlu1 %3471 }
 0x149   : > { %v3469_v45 = vunpack.i.h.bf16 %v4708_v61  ;;  %v3468_v18 = vunpack.i.l.bf16 %v4708_v61  ;;  %v937_v61 = vsel %vm313_vm2, %v936_v42, %v3464_v9  ;;  %v3474_v62 = vunpack.i.h.bf16 %v4710_v55 }
 0x14a   : > { %v3473_v35 = vunpack.i.l.bf16 %v4710_v55  ;;  %v4815_v42 = vsel %vm317_vm4, %v813_v47, %v3438_v37  ;;  %v3443_v55 = vunpack.i.l.bf16 %v4688_v24 }
 0x14b   : > { %v931_v23 = vsel %vm315_vm3, %v930_v60, %v3468_v18  ;;  %v938_v1 = vsel %vm315_vm3, %v937_v61, %v3469_v45 }
 0x14c   : > { %v932_v50 = vsel %vm317_vm4, %v931_v23, %v3473_v35  ;;  %v939_v37 = vsel %vm317_vm4, %v938_v1, %v3474_v62 }
 0x14d   : > { %3701 = vrot.lane.b32.xlu2 %v4544_v22, %s4179_s20  ;;  %v933_v23 = vsel %vm319_vm5, %v932_v50, %v3478_v19  ;;  %v940_v1 = vsel %vm319_vm5, %v939_v37, %v3479_v44 }
 0x14e   : > { %3691 = vrot.lane.b32.xlu0 %v4522_v14, %s4180_s21  ;;  %3696 = vrot.lane.b32.xlu1 %v4518_v12, %s6215_s18 }
 0x14f   : > { %v4718_v58 = vpop.permute.xlu2 %3536 }
 0x150   : > { %v4721_v36 = vpop.permute.xlu0 %3481  ;;  %v4723_v11 = vpop.permute.xlu1 %3486 }
 0x151   : > { %v3488_v46 = vunpack.i.l.bf16 %v4723_v11  ;;  %v3484_v45 = vunpack.i.h.bf16 %v4721_v36  ;;  %v3483_v18 = vunpack.i.l.bf16 %v4721_v36 }
 0x153   : > { %v992_v47 = vsel %vm309_vm0, %v3488_v46, %v3493_v39  ;;  %v3523_v39 = vunpack.i.l.bf16 %v4706_v6 }
 0x155   : > { %3716 = vrot.lane.b32.xlu2 %v4498_v2, %s6188_s23 }
 0x156   : > { %3706 = vrot.lane.b32.xlu0 %v4632_v17, %s6209_s24  ;;  %3711 = vrot.lane.b32.xlu1 %v4726_v25, %s6160_s27 }
 0x157   : > { %v4734_v10 = vpop.permute.xlu2 %3551 }
 0x158   : > { %v4736_v21 = vpop.permute.xlu0 %3496  ;;  %v4738_v20 = vpop.permute.xlu1 %3501 }
 0x159   : > { %v3499_v40 = vunpack.i.h.bf16 %v4736_v21  ;;  %v3498_v43 = vunpack.i.l.bf16 %v4736_v21  ;;  %v3504_v7 = vunpack.i.h.bf16 %v4738_v20 }
 0x15b   : > { %v993_v60 = vsel %vm311_vm1, %v992_v47, %v3498_v43 }
 0x15d   : > { %3731 = vrot.lane.b32.xlu2 %v4522_v14, %s4190_s4 }
 0x15e   : > { %3721 = vrot.lane.b32.xlu0 %v4492_v0, %s4185_s26  ;;  %3726 = vrot.lane.b32.xlu1 %v4520_v13, %s4189_s30 }
 0x15f   : > { %v4746_v49 = vpop.permute.xlu2 %3566 }
 0x160   : > { %v4749_v53 = vpop.permute.xlu0 %3511  ;;  %v4751_v52 = vpop.permute.xlu1 %3516  ;;  %v3569_v50 = vunpack.i.h.bf16 %v4746_v49  ;;  %v3568_v37 = vunpack.i.l.bf16 %v4746_v49  ;;  %v2976_v49 = vld [vmem:[%s4249_s19 + $0x33] sm:$0x1] }
 0x161   : > { %v3514_v47 = vunpack.i.h.bf16 %v4749_v53 }
 0x165   : > { %3746 = vrot.lane.b32.xlu2 %v4632_v17, %s4193_s7 }
 0x166   : > { %3736 = vrot.lane.b32.xlu0 %v4518_v12, %s4188_s29  ;;  %3741 = vrot.lane.b32.xlu1 %v4544_v22, %s6169_s28 }
 0x167   : > { %v4769_v63 = vpop.permute.xlu2 %3581 }
 0x168   : > { %v4777_v51 = vpop.permute.xlu0 %3526  ;;  %v4779_v5 = vpop.permute.xlu1 %3531 }
 0x169   : > { %v3529_v61 = vunpack.i.h.bf16 %v4777_v51  ;;  %v3528_v62 = vunpack.i.l.bf16 %v4777_v51  ;;  %v3534_v35 = vunpack.i.h.bf16 %v4779_v5  ;;  %v3533_v36 = vunpack.i.l.bf16 %v4779_v5 }
 0x16a   : > { %v3538_v51 = vunpack.i.l.bf16 %v4718_v58  ;;  %v4857_v5 = vsel %vm321_vm6, %v940_v1, %v3484_v45  ;;  %v3513_v45 = vunpack.i.l.bf16 %v4749_v53 }
 0x16d   : > { %3761 = vrot.lane.b32.xlu2 %v4492_v0, %s6158_s10  ;;  %v3489_v0 = vunpack.i.h.bf16 %v4723_v11  ;;  %v3508_v11 = vunpack.i.l.bf16 %v4696_v16  ;;  %v3503_v16 = vunpack.i.l.bf16 %v4738_v20  ;;  %v3539_v20 = vunpack.i.h.bf16 %v4718_v58 }
 0x16e   : > { %3751 = vrot.lane.b32.xlu0 %v4726_v25, %s4191_s5  ;;  %3756 = vrot.lane.b32.xlu1 %v4498_v2, %s4195_s9  ;;  %v1054_v58 = vsel %vm309_vm0, %v3528_v62, %v3533_v36  ;;  %v3518_v36 = vunpack.i.l.bf16 %v4751_v52 }
 0x16f   : > { %v4812_v3 = vpop.permute.xlu2 %3596  ;;  %v999_v21 = vsel %vm309_vm0, %v3489_v0, %v3494_v15  ;;  %v3524_v15 = vunpack.i.h.bf16 %v4706_v6  ;;  %v994_v44 = vsel %vm313_vm2, %v993_v60, %v3503_v16 }
 0x170   : > { %v3542_v2 = vpop.permute.xlu0 %3541  ;;  %v4820_v9 = vpop.permute.xlu1 %3546  ;;  %v1000_v48 = vsel %vm311_vm1, %v999_v21, %v3499_v40  ;;  %v3553_v21 = vunpack.i.l.bf16 %v4734_v10  ;;  %v995_v60 = vsel %vm315_vm3, %v994_v44, %v3508_v11  ;;  %v1121_v11 = vsel %vm309_vm0, %v4484_v59, %v3569_v50  ;;  %v2975_v44 = vld [vmem:[%s4249_s19 + $0x32] sm:$0x1] }
 0x171   : > { %v1001_v19 = vsel %vm313_vm2, %v1000_v48, %v3504_v7  ;;  %v3544_v40 = vunpack.i.h.bf16 %v3542_v2  ;;  %v3543_v43 = vunpack.i.l.bf16 %v3542_v2  ;;  %v1055_v48 = vsel %vm311_vm1, %v1054_v58, %v3538_v51  ;;  %v2982_v51 = vld [vmem:[%s4249_s19 + $0x39] sm:$0x1] }
 0x172   : > { %v3549_v2 = vunpack.i.h.bf16 %v4820_v9  ;;  %v3548_v16 = vunpack.i.l.bf16 %v4820_v9  ;;  %v1002_v62 = vsel %vm315_vm3, %v1001_v19, %v3509_v4  ;;  %v1114_v9 = vsel %vm309_vm0, %v4479_v57, %v3568_v37 }
 0x173   : > { %v1056_v53 = vsel %vm313_vm2, %v1055_v48, %v3543_v43  ;;  %v996_v4 = vsel %vm317_vm4, %v995_v60, %v3513_v45  ;;  %v1003_v1 = vsel %vm317_vm4, %v1002_v62, %v3514_v47  ;;  %v3583_v59 = vunpack.i.l.bf16 %v4769_v63 }
 0x174   : > { %v1057_v19 = vsel %vm315_vm3, %v1056_v53, %v3548_v16  ;;  %v997_v45 = vsel %vm319_vm5, %v996_v4, %v3518_v36  ;;  %v2979_v53 = vld [vmem:[%s4249_s19 + $0x36] sm:$0x1]  ;;  %v815_v4 = vsel %vm319_vm5, %v4815_v42, %v3443_v55  ;;  %v3599_v24 = vunpack.i.h.bf16 %v4812_v3 }
 0x175   : > { %3776 = vrot.lane.b32.xlu2 %v4518_v12, %s6156_s17  ;;  %v4854_v12 = vsel %vm321_vm6, %v933_v23, %v3483_v18  ;;  %v3554_v18 = vunpack.i.h.bf16 %v4734_v10  ;;  %s6216_s17 = smov 94   ;;  %v2974_v23 = vld [vmem:[%s4249_s19 + $0x31] sm:$0x1]  ;;  %v998_v42 = vsel %vm321_vm6, %v997_v45, %v3523_v39 }
 0x176   : > { %3766 = vrot.lane.b32.xlu0 %v4520_v13, %s6161_s6  ;;  %3771 = vrot.lane.b32.xlu1 %v4522_v14, %s4198_s16  ;;  %v1061_v14 = vsel %vm309_vm0, %v3529_v61, %v3534_v35  ;;  %v2984_v61 = vld [vmem:[%s4249_s19 + $0x3b] sm:$0x1]  ;;  %v3519_v35 = vunpack.i.h.bf16 %v4751_v52  ;;  %v2983_v52 = vld [vmem:[%s4249_s19 + $0x3a] sm:$0x1]  ;;  %v4915_v60 = vpack.i.bf16 %v2982_v51, %v2974_v23  ;;  %v2092_v36 = vrot.slane %v4854_v12, 7 }
 0x177   : > { %v4859_v0 = vpop.permute.xlu2 %3611  ;;  %v1062_v7 = vsel %vm311_vm1, %v1061_v14, %v3539_v20  ;;  %v4904_v57 = vpack.i.bf16 %v2984_v61, %v2976_v49  ;;  %v4917_v48 = vpack.i.bf16 %v2983_v52, %v2975_v44  ;;  %v2093_v23 = vrot.slane %v4857_v5, 7  ;;  %v2978_v51 = vld [vmem:[%s4249_s19 + $0x35] sm:$0x1]  ;;  %v2986_v44 = vld [vmem:[%s4249_s19 + $0x3d] sm:$0x1] }
 0x178   : > { %v4863_v13 = vpop.permute.xlu0 %3556  ;;  %v4865_v46 = vpop.permute.xlu1 %3561  ;;  %v1063_v10 = vsel %vm313_vm2, %v1062_v7, %v3544_v40  ;;  %v1004_v47 = vsel %vm319_vm5, %v1003_v1, %v3519_v35  ;;  %v1058_v7 = vsel %vm317_vm4, %v1057_v19, %v3553_v21  ;;  %v2977_v1 = vld [vmem:[%s4249_s19 + $0x34] sm:$0x1] }
 0x179   : > { %v3558_v14 = vunpack.i.l.bf16 %v4863_v13  ;;  %v3564_v49 = vunpack.i.h.bf16 %v4865_v46  ;;  %v3563_v61 = vunpack.i.l.bf16 %v4865_v46  ;;  %v1005_v55 = vsel %vm321_vm6, %v1004_v47, %v3524_v15 }
 0x17a   : > { %v6217_v47 = vunpack.i.h.bf16 %v4652_v8 }
 0x17b   : > { %v1059_v21 = vsel %vm319_vm5, %v1058_v7, %v3558_v14  ;;  %v2098_v14 = vrot.slane %v998_v42, 6 }
 0x17d   : > { %3791 = vrot.lane.b32.xlu2 %v4726_v25, %s4201_s8  ;;  %v3584_v25 = vunpack.i.h.bf16 %v4769_v63 }
 0x17e   : > { %3781 = vrot.lane.b32.xlu0 %v4544_v22, %s4197_s11  ;;  %3786 = vrot.lane.b32.xlu1 %v4632_v17, %s6216_s17  ;;  %v1064_v22 = vsel %vm315_vm3, %v1063_v10, %v3549_v2  ;;  %v3559_v17 = vunpack.i.h.bf16 %v4863_v13  ;;  %v2987_v10 = vld [vmem:[%s4249_s19 + $0x3e] sm:$0x1] }
 0x17f   : > { %v4902_v20 = vpop.permute.xlu2 %3626  ;;  %v1065_v13 = vsel %vm317_vm4, %v1064_v22, %v3554_v18  ;;  %v4959_v5 = vpack.i.bf16 %v2987_v10, %v2979_v53  ;;  %v2980_v53 = vld [vmem:[%s4249_s19 + $0x37] sm:$0x1] }
 0x180   : > { %v3572_v58 = vpop.permute.xlu0 %3571  ;;  %v3577_v40 = vpop.permute.xlu1 %3576  ;;  %v1066_v18 = vsel %vm319_vm5, %v1065_v13, %v3559_v17 }
 0x181   : > { %v3574_v43 = vunpack.i.h.bf16 %v3572_v58  ;;  %v3573_v50 = vunpack.i.l.bf16 %v3572_v58  ;;  %v3579_v63 = vunpack.i.h.bf16 %v3577_v40  ;;  %v3578_v37 = vunpack.i.l.bf16 %v3577_v40 }
 0x182   : > { %v1067_v39 = vsel %vm321_vm6, %v1066_v18, %v3564_v49  ;;  %v2099_v58 = vrot.slane %v1005_v55, 6 }
 0x183   : > { %v1122_v2 = vsel %vm311_vm1, %v1121_v11, %v3574_v43  ;;  %v1115_v16 = vsel %vm311_vm1, %v1114_v9, %v3573_v50  ;;  %v3448_v9 = vunpack.i.l.bf16 %v4652_v8  ;;  %v4970_v43 = vpack.i.bf16 %v2986_v44, %v2978_v51 }
 0x184   : > { %v1123_v62 = vsel %vm313_vm2, %v1122_v2, %v3579_v63  ;;  %v1116_v35 = vsel %vm313_vm2, %v1115_v16, %v3578_v37  ;;  %v2105_v63 = vrot.slane %v1067_v39, 5 }
 0x185   : > { %3806 = vrot.lane.b32.xlu2 %v4904_v57, %s4180_s21  ;;  %v1117_v11 = vsel %vm315_vm3, %v1116_v35, %v3583_v59  ;;  %v1124_v46 = vsel %vm315_vm3, %v1123_v62, %v3584_v25  ;;  %v822_v25 = vsel %vm319_vm5, %v4823_v56, %v3444_v54  ;;  %v2985_v59 = vld [vmem:[%s4249_s19 + $0x3c] sm:$0x1]  ;;  %v3598_v54 = vunpack.i.l.bf16 %v4812_v3 }
 0x186   : > { %3796 = vrot.lane.b32.xlu0 %v4915_v60, %s4181_s22  ;;  %3801 = vrot.lane.b32.xlu1 %v4917_v48, %s4184_s25  ;;  %v1060_v56 = vsel %vm321_vm6, %v1059_v21, %v3563_v61  ;;  %v4968_v40 = vpack.i.bf16 %v2985_v59, %v2977_v1  ;;  %v816_v45 = vsel %vm321_vm6, %v815_v4, %v3448_v9  ;;  %v5000_v9 = vld [vmem:[%s4249_s19 + $0x38] sm:$0x1]  ;;  %v3613_v1 = vunpack.i.l.bf16 %v4859_v0 }
 0x187   : > { %v4957_v12 = vpop.permute.xlu2 %3641  ;;  %v2104_v50 = vrot.slane %v1060_v56, 5  ;;  %v823_v7 = vsel %vm321_vm6, %v822_v25, %v6217_v47  ;;  %v2153_v16 = vsel %vm2132_vm7, %v816_v45, %v2092_v36 }
 0x188   : > { %v3587_v52 = vpop.permute.xlu0 %3586  ;;  %v3592_v6 = vpop.permute.xlu1 %3591  ;;  %v2154_v49 = vsel %vm2132_vm7, %v823_v7, %v2093_v23  ;;  %v2155_v10 = vsel %vm2135_vm8, %v2153_v16, %v2098_v14  ;;  %v3614_v23 = vunpack.i.h.bf16 %v4859_v0 }
 0x189   : > { %v3589_v19 = vunpack.i.h.bf16 %v3587_v52  ;;  %v3588_v15 = vunpack.i.l.bf16 %v3587_v52  ;;  %v3594_v22 = vunpack.i.h.bf16 %v3592_v6  ;;  %v3593_v17 = vunpack.i.l.bf16 %v3592_v6 }
 0x18a   : > { %v2156_v21 = vsel %vm2135_vm8, %v2154_v49, %v2099_v58  ;;  %v2157_v4 = vsel %vm2138_vm9, %v2155_v10, %v2104_v50 }
 0x18b   : > { %v1118_v3 = vsel %vm317_vm4, %v1117_v11, %v3588_v15  ;;  %v1125_v37 = vsel %vm317_vm4, %v1124_v46, %v3589_v19  ;;  %v2988_v11 = vld [vmem:[%s4249_s19 + $0x3f] sm:$0x1]  ;;  %v4997_v46 = vld [vmem:[%s4249_s19 + $0x30] sm:$0x1]  ;;  %v2158_v36 = vsel %vm2138_vm9, %v2156_v21, %v2105_v63 }
 0x18c   : > { %v1119_v13 = vsel %vm319_vm5, %v1118_v3, %v3593_v17  ;;  %v1126_v2 = vsel %vm319_vm5, %v1125_v37, %v3594_v22  ;;  %v5008_v56 = vpack.i.bf16 %v2988_v11, %v2980_v53  ;;  %v5012_v39 = vpack.i.bf16 %v5000_v9, %v4997_v46 }
 0x18d   : > { %v1120_v61 = vsel %vm321_vm6, %v1119_v13, %v3598_v54  ;;  %v1127_v62 = vsel %vm321_vm6, %v1126_v2, %v3599_v24  ;;  %3821 = vrot.lane.b32.xlu2 %v4959_v5, %s6209_s24  ;;  %v3629_v22 = vunpack.i.h.bf16 %v4902_v20  ;;  %v3628_v17 = vunpack.i.l.bf16 %v4902_v20 }
 0x18e   : > { %v2110_v8 = vrot.slane %v1120_v61, 4  ;;  %v2111_v35 = vrot.slane %v1127_v62, 4  ;;  %3811 = vrot.lane.b32.xlu0 %v4968_v40, %s6215_s18  ;;  %3816 = vrot.lane.b32.xlu1 %v4970_v43, %s4179_s20 }
 0x18f   : > { %v4993_v18 = vpop.permute.xlu2 %3656 }
 0x190   : > { %v3602_v25 = vpop.permute.xlu0 %3601  ;;  %v3607_v42 = vpop.permute.xlu1 %3606  ;;  %v2159_v55 = vsel %vm2141_vm10, %v2157_v4, %v2110_v8  ;;  %v2160_v59 = vsel %vm2141_vm10, %v2158_v36, %v2111_v35 }
 0x191   : > { %v3604_v51 = vunpack.i.h.bf16 %v3602_v25  ;;  %v3603_v44 = vunpack.i.l.bf16 %v3602_v25  ;;  %v3609_v24 = vunpack.i.h.bf16 %v3607_v42  ;;  %v3608_v54 = vunpack.i.l.bf16 %v3607_v42 }
 0x193   : > { %v1183_v52 = vsel %vm309_vm0, %v3604_v51, %v3609_v24  ;;  %v1176_v0 = vsel %vm309_vm0, %v3603_v44, %v3608_v54  ;;  %v3643_v44 = vunpack.i.l.bf16 %v4957_v12  ;;  %v3659_v24 = vunpack.i.h.bf16 %v4993_v18 }
 0x194   : > { %v1177_v6 = vsel %vm311_vm1, %v1176_v0, %v3613_v1  ;;  %v1184_v19 = vsel %vm311_vm1, %v1183_v52, %v3614_v23  ;;  %v3644_v1 = vunpack.i.h.bf16 %v4957_v12  ;;  %v3658_v54 = vunpack.i.l.bf16 %v4993_v18 }
 0x195   : > { %3836 = vrot.lane.b32.xlu2 %v4915_v60, %s4185_s26 }
 0x196   : > { %3826 = vrot.lane.b32.xlu0 %v5008_v56, %s6160_s27  ;;  %3831 = vrot.lane.b32.xlu1 %v5012_v39, %s6188_s23 }
 0x197   : > { %v5024_v15 = vpop.permute.xlu2 %3671 }
 0x198   : > { %v3617_v14 = vpop.permute.xlu0 %3616  ;;  %v3622_v58 = vpop.permute.xlu1 %3621 }
 0x199   : > { %v3619_v50 = vunpack.i.h.bf16 %v3617_v14  ;;  %v3618_v63 = vunpack.i.l.bf16 %v3617_v14  ;;  %v3624_v3 = vunpack.i.h.bf16 %v3622_v58  ;;  %v3623_v37 = vunpack.i.l.bf16 %v3622_v58 }
 0x19b   : > { %v1178_v45 = vsel %vm313_vm2, %v1177_v6, %v3618_v63  ;;  %v1185_v47 = vsel %vm313_vm2, %v1184_v19, %v3619_v50  ;;  %v3674_v63 = vunpack.i.h.bf16 %v5024_v15 }
 0x19c   : > { %v1179_v7 = vsel %vm315_vm3, %v1178_v45, %v3623_v37  ;;  %v1186_v13 = vsel %vm315_vm3, %v1185_v47, %v3624_v3  ;;  %v3673_v3 = vunpack.i.l.bf16 %v5024_v15 }
 0x19d   : > { %3851 = vrot.lane.b32.xlu2 %v4968_v40, %s4188_s29  ;;  %v1180_v2 = vsel %vm317_vm4, %v1179_v7, %v3628_v17  ;;  %v1187_v20 = vsel %vm317_vm4, %v1186_v13, %v3629_v22 }
 0x19e   : > { %3841 = vrot.lane.b32.xlu0 %v4917_v48, %s4189_s30  ;;  %3846 = vrot.lane.b32.xlu1 %v4904_v57, %s4190_s4 }
 0x19f   : > { %v5040_v16 = vpop.permute.xlu2 %3686 }
 0x1a0   : > { %v3632_v49 = vpop.permute.xlu0 %3631  ;;  %v3637_v61 = vpop.permute.xlu1 %3636 }
 0x1a1   : > { %v3634_v62 = vunpack.i.h.bf16 %v3632_v49  ;;  %v3633_v8 = vunpack.i.l.bf16 %v3632_v49  ;;  %v3639_v35 = vunpack.i.h.bf16 %v3637_v61  ;;  %v3638_v53 = vunpack.i.l.bf16 %v3637_v61 }
 0x1a3   : > { %v1181_v10 = vsel %vm319_vm5, %v1180_v2, %v3633_v8  ;;  %v1188_v21 = vsel %vm319_vm5, %v1187_v20, %v3634_v62 }
 0x1a4   : > { %v1182_v11 = vsel %vm321_vm6, %v1181_v10, %v3638_v53  ;;  %v1189_v4 = vsel %vm321_vm6, %v1188_v21, %v3639_v35  ;;  %v3689_v35 = vunpack.i.h.bf16 %v5040_v16  ;;  %v3688_v53 = vunpack.i.l.bf16 %v5040_v16 }
 0x1a5   : > { %v2116_v36 = vrot.slane %v1182_v11, 3  ;;  %v2117_v23 = vrot.slane %v1189_v4, 3  ;;  %3866 = vrot.lane.b32.xlu2 %v5008_v56, %s4191_s5 }
 0x1a6   : > { %3856 = vrot.lane.b32.xlu0 %v4970_v43, %s6169_s28  ;;  %3861 = vrot.lane.b32.xlu1 %v4959_v5, %s4193_s7 }
 0x1a7   : > { %v5053_v25 = vpop.permute.xlu2 %3701  ;;  %v2161_v42 = vsel %vm2144_vm11, %v2159_v55, %v2116_v36  ;;  %v2162_v51 = vsel %vm2144_vm11, %v2160_v59, %v2117_v23 }
 0x1a8   : > { %v3647_v52 = vpop.permute.xlu0 %3646  ;;  %v3652_v0 = vpop.permute.xlu1 %3651 }
 0x1a9   : > { %v3649_v6 = vunpack.i.h.bf16 %v3647_v52  ;;  %v3648_v19 = vunpack.i.l.bf16 %v3647_v52  ;;  %v3654_v22 = vunpack.i.h.bf16 %v3652_v0  ;;  %v3653_v17 = vunpack.i.l.bf16 %v3652_v0  ;;  %v4144_v52 = vld [vmem:[%s4249_s19 + $0x1a] sm:$0x1] }
 0x1ab   : > { %v1245_v14 = vsel %vm309_vm0, %v3644_v1, %v3649_v6  ;;  %v1238_v58 = vsel %vm309_vm0, %v3643_v44, %v3648_v19 }
 0x1ac   : > { %v1246_v55 = vsel %vm311_vm1, %v1245_v14, %v3654_v22  ;;  %v1239_v59 = vsel %vm311_vm1, %v1238_v58, %v3653_v17 }
 0x1ad   : > { %3881 = vrot.lane.b32.xlu2 %v4917_v48, %s6161_s6  ;;  %v1240_v12 = vsel %vm313_vm2, %v1239_v59, %v3658_v54  ;;  %v1247_v18 = vsel %vm313_vm2, %v1246_v55, %v3659_v24  ;;  %v4143_v24 = vld [vmem:[%s4249_s19 + $0x22] sm:$0x1]  ;;  %v3704_v55 = vunpack.i.h.bf16 %v5053_v25  ;;  %v3703_v59 = vunpack.i.l.bf16 %v5053_v25 }
 0x1ae   : > { %3871 = vrot.lane.b32.xlu0 %v5012_v39, %s4195_s9  ;;  %3876 = vrot.lane.b32.xlu1 %v4915_v60, %s6158_s10  ;;  %s6218_s10 = smov 62  }
 0x1af   : > { %v5072_v50 = vpop.permute.xlu2 %3716 }
 0x1b0   : > { %v3662_v37 = vpop.permute.xlu0 %3661  ;;  %v3667_v45 = vpop.permute.xlu1 %3666 }
 0x1b1   : > { %v3664_v47 = vunpack.i.h.bf16 %v3662_v37  ;;  %v3663_v7 = vunpack.i.l.bf16 %v3662_v37  ;;  %v3669_v13 = vunpack.i.h.bf16 %v3667_v45  ;;  %v3668_v2 = vunpack.i.l.bf16 %v3667_v45 }
 0x1b3   : > { %v1241_v20 = vsel %vm315_vm3, %v1240_v12, %v3663_v7  ;;  %v1248_v49 = vsel %vm315_vm3, %v1247_v18, %v3664_v47 }
 0x1b4   : > { %v1242_v39 = vsel %vm317_vm4, %v1241_v20, %v3668_v2  ;;  %v1249_v61 = vsel %vm317_vm4, %v1248_v49, %v3669_v13  ;;  %v2989_v2 = vld [vmem:[%s4249_s19 + $0x40] sm:$0x1] }
 0x1b5   : > { %3896 = vrot.lane.b32.xlu2 %v4970_v43, %s4197_s11  ;;  %v1243_v15 = vsel %vm319_vm5, %v1242_v39, %v3673_v3  ;;  %v1250_v62 = vsel %vm319_vm5, %v1249_v61, %v3674_v63  ;;  %v5128_v61 = vpack.i.bf16 %v2989_v2, %v5000_v9 }
 0x1b6   : > { %3886 = vrot.lane.b32.xlu0 %v4904_v57, %s4198_s16  ;;  %3891 = vrot.lane.b32.xlu1 %v4968_v40, %s6218_s10 }
 0x1b7   : > { %v5088_v8 = vpop.permute.xlu2 %3731 }
 0x1b8   : > { %v3677_v10 = vpop.permute.xlu0 %3676  ;;  %v3682_v21 = vpop.permute.xlu1 %3681 }
 0x1b9   : > { %v3679_v11 = vunpack.i.h.bf16 %v3677_v10  ;;  %v3678_v4 = vunpack.i.l.bf16 %v3677_v10  ;;  %v3684_v36 = vunpack.i.h.bf16 %v3682_v21  ;;  %v3683_v23 = vunpack.i.l.bf16 %v3682_v21 }
 0x1bb   : > { %v1244_v1 = vsel %vm321_vm6, %v1243_v15, %v3678_v4  ;;  %v1251_v44 = vsel %vm321_vm6, %v1250_v62, %v3679_v11  ;;  %v1305_v54 = vsel %vm309_vm0, %v4143_v24, %v3684_v36  ;;  %v1298_v0 = vsel %vm309_vm0, %v4144_v52, %v3683_v23 }
 0x1bc   : > { %v2122_v6 = vrot.slane %v1244_v1, 2  ;;  %v2123_v19 = vrot.slane %v1251_v44, 2  ;;  %v1299_v16 = vsel %vm311_vm1, %v1298_v0, %v3688_v53  ;;  %v1306_v22 = vsel %vm311_vm1, %v1305_v54, %v3689_v35 }
 0x1bd   : > { %3911 = vrot.lane.b32.xlu2 %v4917_v48, %s4181_s22  ;;  %v3719_v1 = vunpack.i.h.bf16 %v5072_v50  ;;  %v3718_v52 = vunpack.i.l.bf16 %v5072_v50  ;;  %v3734_v0 = vunpack.i.h.bf16 %v5088_v8 }
 0x1be   : > { %3901 = vrot.lane.b32.xlu0 %v4959_v5, %s6216_s17  ;;  %3906 = vrot.lane.b32.xlu1 %v5008_v56, %s4201_s8  ;;  %v2163_v17 = vsel %vm2147_vm12, %v2161_v42, %v2122_v6  ;;  %v2164_v14 = vsel %vm2147_vm12, %v2162_v51, %v2123_v19  ;;  %v3733_v6 = vunpack.i.l.bf16 %v5088_v8 }
 0x1bf   : > { %v5108_v58 = vpop.permute.xlu2 %3746 }
 0x1c0   : > { %v3692_v12 = vpop.permute.xlu0 %3691  ;;  %v3697_v18 = vpop.permute.xlu1 %3696 }
 0x1c1   : > { %v3694_v63 = vunpack.i.h.bf16 %v3692_v12  ;;  %v3693_v3 = vunpack.i.l.bf16 %v3692_v12  ;;  %v3699_v37 = vunpack.i.h.bf16 %v3697_v18  ;;  %v3698_v45 = vunpack.i.l.bf16 %v3697_v18 }
 0x1c3   : > { %v1300_v47 = vsel %vm313_vm2, %v1299_v16, %v3693_v3  ;;  %v1307_v7 = vsel %vm313_vm2, %v1306_v22, %v3694_v63 }
 0x1c4   : > { %v1301_v42 = vsel %vm315_vm3, %v1300_v47, %v3698_v45  ;;  %v1308_v51 = vsel %vm315_vm3, %v1307_v7, %v3699_v37  ;;  %v3749_v37 = vunpack.i.h.bf16 %v5108_v58  ;;  %v3748_v45 = vunpack.i.l.bf16 %v5108_v58 }
 0x1c5   : > { %3926 = vrot.lane.b32.xlu2 %v4970_v43, %s6215_s18  ;;  %v1302_v13 = vsel %vm317_vm4, %v1301_v42, %v3703_v59  ;;  %v1309_v25 = vsel %vm317_vm4, %v1308_v51, %v3704_v55 }
 0x1c6   : > { %3916 = vrot.lane.b32.xlu0 %v4904_v57, %s4184_s25  ;;  %3921 = vrot.lane.b32.xlu1 %v4968_v40, %s4180_s21 }
 0x1c7   : > { %v5125_v20 = vpop.permute.xlu2 %3761 }
 0x1c8   : > { %v3707_v49 = vpop.permute.xlu0 %3706  ;;  %v3712_v39 = vpop.permute.xlu1 %3711 }
 0x1c9   : > { %v3709_v15 = vunpack.i.h.bf16 %v3707_v49  ;;  %v3708_v62 = vunpack.i.l.bf16 %v3707_v49  ;;  %v3714_v35 = vunpack.i.h.bf16 %v3712_v39  ;;  %v3713_v53 = vunpack.i.l.bf16 %v3712_v39 }
 0x1cb   : > { %v1303_v10 = vsel %vm319_vm5, %v1302_v13, %v3708_v62  ;;  %v1310_v21 = vsel %vm319_vm5, %v1309_v25, %v3709_v15 }
 0x1cc   : > { %v1304_v11 = vsel %vm321_vm6, %v1303_v10, %v3713_v53  ;;  %v1311_v4 = vsel %vm321_vm6, %v1310_v21, %v3714_v35  ;;  %v3764_v35 = vunpack.i.h.bf16 %v5125_v20  ;;  %v3763_v53 = vunpack.i.l.bf16 %v5125_v20 }
 0x1cd   : > { %v2128_v36 = vrot.slane %v1304_v11, 1  ;;  %v2129_v23 = vrot.slane %v1311_v4, 1  ;;  %3941 = vrot.lane.b32.xlu2 %v5128_v61, %s6160_s27  ;;  %s6219_s27 = smov 14  }
 0x1ce   : > { %3931 = vrot.lane.b32.xlu0 %v4959_v5, %s4179_s20  ;;  %3936 = vrot.lane.b32.xlu1 %v5008_v56, %s6209_s24 }
 0x1cf   : > { %v5141_v44 = vpop.permute.xlu2 %3776  ;;  %v5144_v24 = vsel %vm2150_vm13, %v2163_v17, %v2128_v36  ;;  %v5147_v54 = vsel %vm2150_vm13, %v2164_v14, %v2129_v23 }
 0x1d0   : > { %v3722_v19 = vpop.permute.xlu0 %3721  ;;  %v3727_v16 = vpop.permute.xlu1 %3726 }
 0x1d1   : > { %v3724_v22 = vunpack.i.h.bf16 %v3722_v19  ;;  %v3723_v55 = vunpack.i.l.bf16 %v3722_v19  ;;  %v3729_v59 = vunpack.i.h.bf16 %v3727_v16  ;;  %v3728_v12 = vunpack.i.l.bf16 %v3727_v16 }
 0x1d2   : > { %v3779_v16 = vunpack.i.h.bf16 %v5141_v44 }
 0x1d3   : > { %v1367_v18 = vsel %vm309_vm0, %v3719_v1, %v3724_v22  ;;  %v1360_v17 = vsel %vm309_vm0, %v3718_v52, %v3723_v55  ;;  %v3778_v22 = vunpack.i.l.bf16 %v5141_v44 }
 0x1d4   : > { %v1368_v63 = vsel %vm311_vm1, %v1367_v18, %v3729_v59  ;;  %v1361_v14 = vsel %vm311_vm1, %v1360_v17, %v3728_v12 }
 0x1d5   : > { %3956 = vrot.lane.b32.xlu2 %v4904_v57, %s4189_s30  ;;  %v1362_v50 = vsel %vm313_vm2, %v1361_v14, %v3733_v6  ;;  %v1369_v8 = vsel %vm313_vm2, %v1368_v63, %v3734_v0 }
 0x1d6   : > { %3946 = vrot.lane.b32.xlu0 %v4915_v60, %s6188_s23  ;;  %3951 = vrot.lane.b32.xlu1 %v4917_v48, %s4185_s26 }
 0x1d7   : > { %v5164_v3 = vpop.permute.xlu2 %3791 }
 0x1d8   : > { %v3737_v47 = vpop.permute.xlu0 %3736  ;;  %v3742_v7 = vpop.permute.xlu1 %3741 }
 0x1d9   : > { %v3739_v42 = vunpack.i.h.bf16 %v3737_v47  ;;  %v3738_v51 = vunpack.i.l.bf16 %v3737_v47  ;;  %v3744_v13 = vunpack.i.h.bf16 %v3742_v7  ;;  %v3743_v25 = vunpack.i.l.bf16 %v3742_v7 }
 0x1da   : > { %v3794_v47 = vunpack.i.h.bf16 %v5164_v3  ;;  %v3793_v7 = vunpack.i.l.bf16 %v5164_v3 }
 0x1db   : > { %v1363_v2 = vsel %vm315_vm3, %v1362_v50, %v3738_v51  ;;  %v1370_v49 = vsel %vm315_vm3, %v1369_v8, %v3739_v42 }
 0x1dc   : > { %v1364_v39 = vsel %vm317_vm4, %v1363_v2, %v3743_v25  ;;  %v1371_v15 = vsel %vm317_vm4, %v1370_v49, %v3744_v13 }
 0x1dd   : > { %3971 = vrot.lane.b32.xlu2 %v4959_v5, %s6169_s28  ;;  %v1365_v62 = vsel %vm319_vm5, %v1364_v39, %v3748_v45  ;;  %v1372_v58 = vsel %vm319_vm5, %v1371_v15, %v3749_v37 }
 0x1de   : > { %3961 = vrot.lane.b32.xlu0 %v4968_v40, %s4190_s4  ;;  %3966 = vrot.lane.b32.xlu1 %v4970_v43, %s4188_s29 }
 0x1df   : > { %v5182_v10 = vpop.permute.xlu2 %3806 }
 0x1e0   : > { %v3752_v21 = vpop.permute.xlu0 %3751  ;;  %v3757_v11 = vpop.permute.xlu1 %3756 }
 0x1e1   : > { %v3754_v4 = vunpack.i.h.bf16 %v3752_v21  ;;  %v3753_v36 = vunpack.i.l.bf16 %v3752_v21  ;;  %v3759_v23 = vunpack.i.h.bf16 %v3757_v11  ;;  %v3758_v1 = vunpack.i.l.bf16 %v3757_v11 }
 0x1e3   : > { %v1366_v52 = vsel %vm321_vm6, %v1365_v62, %v3753_v36  ;;  %v1373_v0 = vsel %vm321_vm6, %v1372_v58, %v3754_v4  ;;  %v1429_v6 = vsel %vm309_vm0, %v3759_v23, %v3764_v35  ;;  %v1422_v19 = vsel %vm309_vm0, %v3758_v1, %v3763_v53 }
 0x1e4   : > { %v3809_v4 = vunpack.i.h.bf16 %v5182_v10  ;;  %v3808_v36 = vunpack.i.l.bf16 %v5182_v10 }
 0x1e5   : > { %3986 = vrot.lane.b32.xlu2 %v4915_v60, %s4195_s9 }
 0x1e6   : > { %3976 = vrot.lane.b32.xlu0 %v5008_v56, %s4193_s7  ;;  %3981 = vrot.lane.b32.xlu1 %v5128_v61, %s4191_s5 }
 0x1e7   : > { %v5194_v20 = vpop.permute.xlu2 %3821 }
 0x1e8   : > { %v3767_v55 = vpop.permute.xlu0 %3766  ;;  %v3772_v59 = vpop.permute.xlu1 %3771 }
 0x1e9   : > { %v3769_v12 = vunpack.i.h.bf16 %v3767_v55  ;;  %v3768_v18 = vunpack.i.l.bf16 %v3767_v55  ;;  %v3774_v17 = vunpack.i.h.bf16 %v3772_v59  ;;  %v3773_v63 = vunpack.i.l.bf16 %v3772_v59 }
 0x1eb   : > { %v1423_v60 = vsel %vm311_vm1, %v1422_v19, %v3768_v18  ;;  %v1430_v14 = vsel %vm311_vm1, %v1429_v6, %v3769_v12 }
 0x1ec   : > { %v1424_v50 = vsel %vm313_vm2, %v1423_v60, %v3773_v63  ;;  %v1431_v8 = vsel %vm313_vm2, %v1430_v14, %v3774_v17  ;;  %v3823_v63 = vunpack.i.l.bf16 %v5194_v20 }
 0x1ed   : > { %4001 = vrot.lane.b32.xlu2 %v4968_v40, %s4198_s16  ;;  %v1425_v37 = vsel %vm315_vm3, %v1424_v50, %v3778_v22  ;;  %v1432_v44 = vsel %vm315_vm3, %v1431_v8, %v3779_v16 }
 0x1ee   : > { %3991 = vrot.lane.b32.xlu0 %v4917_v48, %s6219_s27  ;;  %3996 = vrot.lane.b32.xlu1 %v4904_v57, %s6161_s6 }
 0x1ef   : > { %v5210_v45 = vpop.permute.xlu2 %3836 }
 0x1f0   : > { %v3782_v42 = vpop.permute.xlu0 %3781  ;;  %v3787_v51 = vpop.permute.xlu1 %3786 }
 0x1f1   : > { %v3784_v13 = vunpack.i.h.bf16 %v3782_v42  ;;  %v3783_v25 = vunpack.i.l.bf16 %v3782_v42  ;;  %v3789_v2 = vunpack.i.h.bf16 %v3787_v51  ;;  %v3788_v49 = vunpack.i.l.bf16 %v3787_v51 }
 0x1f3   : > { %v1426_v39 = vsel %vm317_vm4, %v1425_v37, %v3783_v25  ;;  %v1433_v15 = vsel %vm317_vm4, %v1432_v44, %v3784_v13  ;;  %v3839_v25 = vunpack.i.h.bf16 %v5210_v45 }
 0x1f4   : > { %v1427_v62 = vsel %vm319_vm5, %v1426_v39, %v3788_v49  ;;  %v1434_v58 = vsel %vm319_vm5, %v1433_v15, %v3789_v2  ;;  %v3838_v2 = vunpack.i.l.bf16 %v5210_v45 }
 0x1f5   : > { %v1428_v35 = vsel %vm321_vm6, %v1427_v62, %v3793_v7  ;;  %v1435_v53 = vsel %vm321_vm6, %v1434_v58, %v3794_v47  ;;  %4016 = vrot.lane.b32.xlu2 %v5008_v56, %s6216_s17 }
 0x1f6   : > { %v2169_v3 = vrot.slane %v1428_v35, 7  ;;  %v2170_v21 = vrot.slane %v1435_v53, 7  ;;  %4006 = vrot.lane.b32.xlu0 %v4970_v43, %s6218_s10  ;;  %4011 = vrot.lane.b32.xlu1 %v4959_v5, %s4197_s11 }
 0x1f7   : > { %v5226_v11 = vpop.permute.xlu2 %3851 }
 0x1f8   : > { %v3797_v23 = vpop.permute.xlu0 %3796  ;;  %v3802_v1 = vpop.permute.xlu1 %3801  ;;  %v2221_v6 = vsel %vm2132_vm7, %v1366_v52, %v2169_v3  ;;  %v2222_v19 = vsel %vm2132_vm7, %v1373_v0, %v2170_v21 }
 0x1f9   : > { %v3799_v16 = vunpack.i.h.bf16 %v3797_v23  ;;  %v3798_v22 = vunpack.i.l.bf16 %v3797_v23  ;;  %v3804_v55 = vunpack.i.h.bf16 %v3802_v1  ;;  %v3803_v59 = vunpack.i.l.bf16 %v3802_v1 }
 0x1fb   : > { %v1547_v12 = vsel %vm309_vm0, %v5000_v9, %v3799_v16  ;;  %v1540_v18 = vsel %vm309_vm0, %v4997_v46, %v3798_v22  ;;  %v3824_v46 = vunpack.i.h.bf16 %v5194_v20  ;;  %v3854_v22 = vunpack.i.h.bf16 %v5226_v11 }
 0x1fc   : > { %v1548_v17 = vsel %vm311_vm1, %v1547_v12, %v3804_v55  ;;  %v1541_v10 = vsel %vm311_vm1, %v1540_v18, %v3803_v59  ;;  %v3853_v55 = vunpack.i.l.bf16 %v5226_v11 }
 0x1fd   : > { %4031 = vrot.lane.b32.xlu2 %v4904_v57, %s4185_s26  ;;  %v1542_v52 = vsel %vm313_vm2, %v1541_v10, %v3808_v36  ;;  %v1549_v0 = vsel %vm313_vm2, %v1548_v17, %v3809_v4 }
 0x1fe   : > { %4021 = vrot.lane.b32.xlu0 %v5128_v61, %s4201_s8  ;;  %4026 = vrot.lane.b32.xlu1 %v4917_v48, %s6188_s23  ;;  %s3041_s23 = sshll.u32 %s6276_s12, 7 }
 0x1ff   : > { %v5246_v9 = vpop.permute.xlu2 %3866 }
 0x200   : > { %v3812_v60 = vpop.permute.xlu0 %3811  ;;  %v3817_v14 = vpop.permute.xlu1 %3816 }
 0x201   : > { %v3814_v50 = vunpack.i.h.bf16 %v3812_v60  ;;  %v3813_v8 = vunpack.i.l.bf16 %v3812_v60  ;;  %v3819_v37 = vunpack.i.h.bf16 %v3817_v14  ;;  %v3818_v44 = vunpack.i.l.bf16 %v3817_v14 }
 0x202   : > { %v3869_v60 = vunpack.i.h.bf16 %v5246_v9  ;;  %v3868_v14 = vunpack.i.l.bf16 %v5246_v9 }
 0x203   : > { %v1543_v47 = vsel %vm315_vm3, %v1542_v52, %v3813_v8  ;;  %v1550_v7 = vsel %vm315_vm3, %v1549_v0, %v3814_v50 }
 0x204   : > { %v1544_v42 = vsel %vm317_vm4, %v1543_v47, %v3818_v44  ;;  %v1551_v51 = vsel %vm317_vm4, %v1550_v7, %v3819_v37 }
 0x205   : > { %4046 = vrot.lane.b32.xlu2 %v4904_v57, %s6219_s27  ;;  %v1545_v13 = vsel %vm319_vm5, %v1544_v42, %v3823_v63  ;;  %v1552_v20 = vsel %vm319_vm5, %v1551_v51, %v3824_v46 }
 0x206   : > { %4036 = vrot.lane.b32.xlu0 %v4968_v40, %s4189_s30  ;;  %4041 = vrot.lane.b32.xlu1 %v4917_v48, %s4195_s9 }
 0x207   : > { %v5264_v49 = vpop.permute.xlu2 %3881 }
 0x208   : > { %v3827_v39 = vpop.permute.xlu0 %3826  ;;  %v3832_v15 = vpop.permute.xlu1 %3831 }
 0x209   : > { %v3829_v62 = vunpack.i.h.bf16 %v3827_v39  ;;  %v3828_v58 = vunpack.i.l.bf16 %v3827_v39  ;;  %v3834_v35 = vunpack.i.h.bf16 %v3832_v15  ;;  %v3833_v53 = vunpack.i.l.bf16 %v3832_v15 }
 0x20a   : > { %v3884_v15 = vunpack.i.h.bf16 %v5264_v49 }
 0x20b   : > { %v1546_v3 = vsel %vm321_vm6, %v1545_v13, %v3828_v58  ;;  %v1553_v21 = vsel %vm321_vm6, %v1552_v20, %v3829_v62  ;;  %v1611_v4 = vsel %vm309_vm0, %v3834_v35, %v3839_v25  ;;  %v1604_v48 = vsel %vm309_vm0, %v3833_v53, %v3838_v2 }
 0x20c   : > { %v2175_v36 = vrot.slane %v1546_v3, 6  ;;  %v2176_v23 = vrot.slane %v1553_v21, 6  ;;  %v3883_v62 = vunpack.i.l.bf16 %v5264_v49 }
 0x20d   : > { %4061 = vrot.lane.b32.xlu2 %v4968_v40, %s6161_s6 }
 0x20e   : > { %v2223_v45 = vsel %vm2135_vm8, %v2221_v6, %v2175_v36  ;;  %v2224_v1 = vsel %vm2135_vm8, %v2222_v19, %v2176_v23  ;;  %4051 = vrot.lane.b32.xlu0 %v4904_v57, %s4181_s22  ;;  %4056 = vrot.lane.b32.xlu1 %v4970_v43, %s4190_s4 }
 0x20f   : > { %v5278_v16 = vpop.permute.xlu2 %3896 }
 0x210   : > { %v3842_v59 = vpop.permute.xlu0 %3841  ;;  %v3847_v12 = vpop.permute.xlu1 %3846 }
 0x211   : > { %v3844_v18 = vunpack.i.h.bf16 %v3842_v59  ;;  %v3843_v17 = vunpack.i.l.bf16 %v3842_v59  ;;  %v3849_v10 = vunpack.i.h.bf16 %v3847_v12  ;;  %v3848_v6 = vunpack.i.l.bf16 %v3847_v12 }
 0x212   : > { %v3898_v59 = vunpack.i.l.bf16 %v5278_v16 }
 0x213   : > { %v1605_v19 = vsel %vm311_vm1, %v1604_v48, %v3843_v17  ;;  %v1612_v52 = vsel %vm311_vm1, %v1611_v4, %v3844_v18 }
 0x214   : > { %v1606_v57 = vsel %vm313_vm2, %v1605_v19, %v3848_v6  ;;  %v1613_v0 = vsel %vm313_vm2, %v1612_v52, %v3849_v10  ;;  %v4145_v52 = vld [vmem:[%s4249_s19 + $0x39] sm:$0x1] }
 0x215   : > { %4076 = vrot.lane.b32.xlu2 %v4970_v43, %s4198_s16  ;;  %v1607_v46 = vsel %vm315_vm3, %v1606_v57, %v3853_v55  ;;  %v1614_v11 = vsel %vm315_vm3, %v1613_v0, %v3854_v22  ;;  %v3899_v55 = vunpack.i.h.bf16 %v5278_v16 }
 0x216   : > { %4066 = vrot.lane.b32.xlu0 %v4968_v40, %s4184_s25  ;;  %4071 = vrot.lane.b32.xlu1 %v4959_v5, %s4188_s29  ;;  %s6032_s25 = scalar_lea.vmem %s6093_s3, %s3041_s23 }
 0x217   : > { %v5294_v63 = vpop.permute.xlu2 %3911 }
 0x218   : > { %v3857_v50 = vpop.permute.xlu0 %3856  ;;  %v3862_v8 = vpop.permute.xlu1 %3861 }
 0x219   : > { %v3859_v37 = vunpack.i.h.bf16 %v3857_v50  ;;  %v3858_v44 = vunpack.i.l.bf16 %v3857_v50  ;;  %v3864_v47 = vunpack.i.h.bf16 %v3862_v8  ;;  %v3863_v7 = vunpack.i.l.bf16 %v3862_v8 }
 0x21b   : > { %v1608_v42 = vsel %vm317_vm4, %v1607_v46, %v3858_v44  ;;  %v1615_v51 = vsel %vm317_vm4, %v1614_v11, %v3859_v37 }
 0x21c   : > { %v1609_v40 = vsel %vm319_vm5, %v1608_v42, %v3863_v7  ;;  %v1616_v13 = vsel %vm319_vm5, %v1615_v51, %v3864_v47 }
 0x21d   : > { %v1610_v20 = vsel %vm321_vm6, %v1609_v40, %v3868_v14  ;;  %v1617_v25 = vsel %vm321_vm6, %v1616_v13, %v3869_v60  ;;  %4091 = vrot.lane.b32.xlu2 %v4959_v5, %s6218_s10 }
 0x21e   : > { %v2181_v9 = vrot.slane %v1610_v20, 5  ;;  %v2182_v2 = vrot.slane %v1617_v25, 5  ;;  %4081 = vrot.lane.b32.xlu0 %v4970_v43, %s4180_s21  ;;  %4086 = vrot.lane.b32.xlu1 %v5008_v56, %s6169_s28  ;;  %v3914_v25 = vunpack.i.h.bf16 %v5294_v63 }
 0x21f   : > { %v5310_v39 = vpop.permute.xlu2 %3926 }
 0x220   : > { %v3872_v58 = vpop.permute.xlu0 %3871  ;;  %v3877_v35 = vpop.permute.xlu1 %3876  ;;  %v2225_v53 = vsel %vm2138_vm9, %v2223_v45, %v2181_v9  ;;  %v2226_v3 = vsel %vm2138_vm9, %v2224_v1, %v2182_v2  ;;  %v2990_v1 = vld [vmem:[%s4249_s19 + $0x41] sm:$0x1]  ;;  %v3913_v9 = vunpack.i.l.bf16 %v5294_v63 }
 0x221   : > { %v3874_v21 = vunpack.i.h.bf16 %v3872_v58  ;;  %v3873_v4 = vunpack.i.l.bf16 %v3872_v58  ;;  %v3879_v48 = vunpack.i.h.bf16 %v3877_v35  ;;  %v3878_v43 = vunpack.i.l.bf16 %v3877_v35 }
 0x222   : > { %v4115_v57 = vpack.i.bf16 %v2990_v1, %v4145_v52  ;;  %v3929_v58 = vunpack.i.h.bf16 %v5310_v39  ;;  %v3928_v35 = vunpack.i.l.bf16 %v5310_v39 }
 0x223   : > { %v1673_v36 = vsel %vm309_vm0, %v3874_v21, %v3879_v48  ;;  %v1666_v23 = vsel %vm309_vm0, %v3873_v4, %v3878_v43 }
 0x224   : > { %v1667_v22 = vsel %vm311_vm1, %v1666_v23, %v3883_v62  ;;  %v1674_v49 = vsel %vm311_vm1, %v1673_v36, %v3884_v15  ;;  %v4146_v23 = vld [vmem:[%s4249_s19 + $0x31] sm:$0x1] }
 0x225   : > { %4106 = vrot.lane.b32.xlu2 %v5008_v56, %s4197_s11 }
 0x226   : > { %4096 = vrot.lane.b32.xlu0 %v4959_v5, %s6215_s18  ;;  %4101 = vrot.lane.b32.xlu1 %v5128_v61, %s4193_s7 }
 0x227   : > { %v5326_v45 = vpop.permute.xlu2 %3941 }
 0x228   : > { %v3887_v12 = vpop.permute.xlu0 %3886  ;;  %v3892_v18 = vpop.permute.xlu1 %3891 }
 0x229   : > { %v3889_v17 = vunpack.i.h.bf16 %v3887_v12  ;;  %v3888_v10 = vunpack.i.l.bf16 %v3887_v12  ;;  %v3894_v6 = vunpack.i.h.bf16 %v3892_v18  ;;  %v3893_v19 = vunpack.i.l.bf16 %v3892_v18 }
 0x22a   : > { %v3944_v12 = vunpack.i.h.bf16 %v5326_v45  ;;  %v3943_v18 = vunpack.i.l.bf16 %v5326_v45 }
 0x22b   : > { %v1668_v5 = vsel %vm313_vm2, %v1667_v22, %v3888_v10  ;;  %v1675_v0 = vsel %vm313_vm2, %v1674_v49, %v3889_v17  ;;  %v1726_v22 = vsel %vm309_vm0, %v4146_v23, %v3913_v9 }
 0x22c   : > { %v1669_v46 = vsel %vm315_vm3, %v1668_v5, %v3893_v19  ;;  %v1676_v11 = vsel %vm315_vm3, %v1675_v0, %v3894_v6  ;;  %v3109_v5 = vunpack.i.h.bf16 %v4385_v31  ;;  %v3108_v0 = vunpack.i.l.bf16 %v4385_v31  ;;  %v4148_v31 = vld [vmem:[%s4249_s19] sm:$0x1] }
 0x22d   : > { %4121 = vrot.lane.b32.xlu2 %v5128_v61, %s6216_s17  ;;  %v1670_v16 = vsel %vm317_vm4, %v1669_v46, %v3898_v59  ;;  %v1677_v60 = vsel %vm317_vm4, %v1676_v11, %v3899_v55  ;;  %v3114_v46 = vunpack.i.h.bf16 %v4397_v34  ;;  %v3113_v11 = vunpack.i.l.bf16 %v4397_v34 }
 0x22e   : > { %4111 = vrot.lane.b32.xlu0 %v5008_v56, %s4179_s20  ;;  %4116 = vrot.lane.b32.xlu1 %v4115_v57, %s4191_s5  ;;  %s6220_s20 = smov 112  }
 0x22f   : > { %v5343_v14 = vpop.permute.xlu2 %3956 }
 0x230   : > { %v3902_v50 = vpop.permute.xlu0 %3901  ;;  %v3907_v8 = vpop.permute.xlu1 %3906 }
 0x231   : > { %v3904_v37 = vunpack.i.h.bf16 %v3902_v50  ;;  %v3903_v44 = vunpack.i.l.bf16 %v3902_v50  ;;  %v3909_v47 = vunpack.i.h.bf16 %v3907_v8  ;;  %v3908_v7 = vunpack.i.l.bf16 %v3907_v8 }
 0x233   : > { %v1671_v42 = vsel %vm319_vm5, %v1670_v16, %v3903_v44  ;;  %v1678_v51 = vsel %vm319_vm5, %v1677_v60, %v3904_v37  ;;  %v4147_v44 = vld [vmem:[%s4249_s19 + $0x8] sm:$0x1] }
 0x234   : > { %v1672_v40 = vsel %vm321_vm6, %v1671_v42, %v3908_v7  ;;  %v1679_v13 = vsel %vm321_vm6, %v1678_v51, %v3909_v47  ;;  %v323_v47 = vsel %vm309_vm0, %v4147_v44, %v3109_v5  ;;  %v310_v7 = vsel %vm309_vm0, %v4148_v31, %v3108_v0 }
 0x235   : > { %v2187_v20 = vrot.slane %v1672_v40, 4  ;;  %v2188_v56 = vrot.slane %v1679_v13, 4  ;;  %4136 = vrot.lane.b32.xlu2 %v4115_v57, %s6220_s20  ;;  %v312_v51 = vsel %vm311_vm1, %v310_v7, %v3113_v11  ;;  %v324_v40 = vsel %vm311_vm1, %v323_v47, %v3114_v46  ;;  %v6222_v47 = vld [vmem:[#allocation6_spill] sm:$0xff] }
 0x236   : > { %4126 = vrot.lane.b32.xlu0 %v5128_v61, %s6209_s24  ;;  %4131 = vrot.lane.b32.xlu1 %v4115_v57, %s4201_s8  ;;  %v1733_v61 = vsel %vm309_vm0, %v4145_v52, %v3914_v25  ;;  %v3959_v13 = vunpack.i.h.bf16 %v5343_v14  ;;  %v3159_v31 = vunpack.i.h.bf16 %v6222_v47  ;;  %v3158_v7 = vunpack.i.l.bf16 %v6222_v47 }
 0x237   : > { %v2227_v2 = vsel %vm2141_vm10, %v2225_v53, %v2187_v20  ;;  %v2228_v15 = vsel %vm2141_vm10, %v2226_v3, %v2188_v56  ;;  %v5357_v62 = vpop.permute.xlu2 %3971  ;;  %v3958_v20 = vunpack.i.l.bf16 %v5343_v14  ;;  %v3129_v14 = vunpack.i.h.bf16 %v4357_v26 }
 0x238   : > { %v3917_v21 = vpop.permute.xlu0 %3916  ;;  %v3922_v4 = vpop.permute.xlu1 %3921 }
 0x239   : > { %v3919_v48 = vunpack.i.h.bf16 %v3917_v21  ;;  %v3918_v43 = vunpack.i.l.bf16 %v3917_v21  ;;  %v3924_v63 = vunpack.i.h.bf16 %v3922_v4  ;;  %v3923_v36 = vunpack.i.l.bf16 %v3922_v4 }
 0x23b   : > { %v1734_v53 = vsel %vm311_vm1, %v1733_v61, %v3919_v48  ;;  %v1727_v3 = vsel %vm311_vm1, %v1726_v22, %v3918_v43  ;;  %v3128_v61 = vunpack.i.l.bf16 %v4357_v26  ;;  %v3123_v26 = vunpack.i.l.bf16 %v4395_v33 }
 0x23c   : > { %v1735_v49 = vsel %vm313_vm2, %v1734_v53, %v3924_v63  ;;  %v1728_v1 = vsel %vm313_vm2, %v1727_v3, %v3923_v36  ;;  %v3119_v63 = vunpack.i.h.bf16 %v4383_v30  ;;  %v3118_v36 = vunpack.i.l.bf16 %v4383_v30 }
 0x23d   : > { %v1729_v39 = vsel %vm315_vm3, %v1728_v1, %v3928_v35  ;;  %v1736_v55 = vsel %vm315_vm3, %v1735_v49, %v3929_v58  ;;  %v3134_v49 = vunpack.i.h.bf16 %v4365_v27  ;;  %v3133_v30 = vunpack.i.l.bf16 %v4365_v27 }
 0x23e   : > { %v325_v22 = vsel %vm313_vm2, %v324_v40, %v3119_v63  ;;  %v3124_v1 = vunpack.i.h.bf16 %v4395_v33  ;;  %v3143_v27 = vunpack.i.l.bf16 %v4410_v38  ;;  %v3153_v33 = vunpack.i.l.bf16 %v4420_v41 }
 0x23f   : > { %v5370_v59 = vpop.permute.xlu2 %3986 }
 0x240   : > { %v3932_v17 = vpop.permute.xlu0 %3931  ;;  %v3937_v10 = vpop.permute.xlu1 %3936 }
 0x241   : > { %v3934_v6 = vunpack.i.h.bf16 %v3932_v17  ;;  %v3933_v19 = vunpack.i.l.bf16 %v3932_v17  ;;  %v3939_v52 = vunpack.i.h.bf16 %v3937_v10  ;;  %v3938_v57 = vunpack.i.l.bf16 %v3937_v10 }
 0x242   : > { %v326_v10 = vsel %vm315_vm3, %v325_v22, %v3124_v1 }
 0x243   : > { %v1730_v16 = vsel %vm317_vm4, %v1729_v39, %v3933_v19  ;;  %v1737_v45 = vsel %vm317_vm4, %v1736_v55, %v3934_v6  ;;  %v3149_v39 = vunpack.i.h.bf16 %v4373_v28  ;;  %v3148_v55 = vunpack.i.l.bf16 %v4373_v28 }
 0x244   : > { %v1731_v60 = vsel %vm319_vm5, %v1730_v16, %v3938_v57  ;;  %v1738_v50 = vsel %vm319_vm5, %v1737_v45, %v3939_v52  ;;  %v3144_v6 = vunpack.i.h.bf16 %v4410_v38  ;;  %v3154_v19 = vunpack.i.h.bf16 %v4420_v41  ;;  %v6221_v45 = vld [vmem:[#allocation4_spill] sm:$0xff] }
 0x245   : > { %v1732_v8 = vsel %vm321_vm6, %v1731_v60, %v3943_v18  ;;  %v1739_v37 = vsel %vm321_vm6, %v1738_v50, %v3944_v12  ;;  %v3164_v12 = vunpack.i.h.bf16 %v4381_v29  ;;  %v3163_v18 = vunpack.i.l.bf16 %v4381_v29 }
 0x246   : > { %v2193_v42 = vrot.slane %v1732_v8, 3  ;;  %v2194_v34 = vrot.slane %v1739_v37, 3  ;;  %v3974_v52 = vunpack.i.h.bf16 %v5357_v62  ;;  %v3973_v28 = vunpack.i.l.bf16 %v5357_v62 }
 0x247   : > { %v5398_v35 = vpop.permute.xlu2 %4001  ;;  %v3179_v16 = vunpack.i.h.bf16 %v4393_v32  ;;  %v3138_v60 = vunpack.i.l.bf16 %v6221_v45  ;;  %v327_v50 = vsel %vm317_vm4, %v326_v10, %v3129_v14  ;;  %v387_v41 = vsel %vm309_vm0, %v3144_v6, %v3149_v39 }
 0x248   : > { %v3947_v56 = vpop.permute.xlu0 %3946  ;;  %v3952_v25 = vpop.permute.xlu1 %3951  ;;  %v5393_v9 = vsel %vm2144_vm11, %v2227_v2, %v2193_v42  ;;  %v5396_v58 = vsel %vm2144_vm11, %v2228_v15, %v2194_v34  ;;  %v314_v15 = vsel %vm313_vm2, %v312_v51, %v3118_v36  ;;  %v380_v8 = vsel %vm309_vm0, %v3143_v27, %v3148_v55  ;;  %v6224_v36 = vld [vmem:[#allocation11_spill] sm:$0xff] }
 0x249   : > { %v3949_v21 = vunpack.i.h.bf16 %v3947_v56  ;;  %v3948_v4 = vunpack.i.l.bf16 %v3947_v56  ;;  %v3954_v48 = vunpack.i.h.bf16 %v3952_v25  ;;  %v3953_v43 = vunpack.i.l.bf16 %v3952_v25  ;;  %v6223_v25 = vld [vmem:[#allocation3_spill] sm:$0xff] }
 0x24a   : > { %v316_v17 = vsel %vm315_vm3, %v314_v15, %v3123_v26  ;;  %v381_v51 = vsel %vm311_vm1, %v380_v8, %v3153_v33  ;;  %v388_v40 = vsel %vm311_vm1, %v387_v41, %v3154_v19  ;;  %v3178_v56 = vunpack.i.l.bf16 %v4393_v32  ;;  %v6234_v32 = vld [vmem:[#allocation21_spill] sm:$0xff] }
 0x24b   : > { %v1795_v2 = vsel %vm309_vm0, %v3949_v21, %v3954_v48  ;;  %v1788_v23 = vsel %vm309_vm0, %v3948_v4, %v3953_v43  ;;  %v318_v38 = vsel %vm317_vm4, %v316_v17, %v3128_v61  ;;  %v3194_v21 = vunpack.i.h.bf16 %v6223_v25  ;;  %v6225_v61 = vld [vmem:[#allocation12_spill] sm:$0xff]  ;;  %v6227_v17 = vld [vmem:[#allocation5_spill] sm:$0xff] }
 0x24c   : > { %v1789_v53 = vsel %vm311_vm1, %v1788_v23, %v3958_v20  ;;  %v1796_v3 = vsel %vm311_vm1, %v1795_v2, %v3959_v13  ;;  %v320_v4 = vsel %vm319_vm5, %v318_v38, %v3133_v30  ;;  %v5448_v48 = vsel %vm319_vm5, %v327_v50, %v3134_v49 }
 0x24d   : > { %v3193_v43 = vunpack.i.l.bf16 %v6223_v25  ;;  %v3139_v63 = vunpack.i.h.bf16 %v6221_v45  ;;  %v3183_v14 = vunpack.i.l.bf16 %v6224_v36  ;;  %v3188_v2 = vunpack.i.l.bf16 %v6225_v61 }
 0x24e   : > { %v5455_v23 = vsel %vm321_vm6, %v320_v4, %v3138_v60  ;;  %v382_v15 = vsel %vm313_vm2, %v381_v51, %v3158_v7  ;;  %v389_v22 = vsel %vm313_vm2, %v388_v40, %v3159_v31  ;;  %v3208_v10 = vunpack.i.l.bf16 %v6227_v17  ;;  %v6230_v7 = vld [vmem:[#allocation15_spill] sm:$0xff] }
 0x24f   : > { %v5432_v37 = vpop.permute.xlu2 %4016  ;;  %v3184_v27 = vunpack.i.h.bf16 %v6224_v36  ;;  %v3189_v19 = vunpack.i.h.bf16 %v6225_v61  ;;  %v383_v33 = vsel %vm315_vm3, %v382_v15, %v3163_v18  ;;  %v3989_v40 = vunpack.i.h.bf16 %v5370_v59 }
 0x250   : > { %v3962_v57 = vpop.permute.xlu0 %3961  ;;  %v3967_v5 = vpop.permute.xlu1 %3966  ;;  %v4003_v25 = vunpack.i.l.bf16 %v5398_v35 }
 0x251   : > { %v3964_v0 = vunpack.i.h.bf16 %v3962_v57  ;;  %v3963_v29 = vunpack.i.l.bf16 %v3962_v57  ;;  %v3969_v46 = vunpack.i.h.bf16 %v3967_v5  ;;  %v3968_v11 = vunpack.i.l.bf16 %v3967_v5 }
 0x252   : > { %v390_v5 = vsel %vm315_vm3, %v389_v22, %v3164_v12 }
 0x253   : > { %v1790_v62 = vsel %vm313_vm2, %v1789_v53, %v3963_v29  ;;  %v1797_v44 = vsel %vm313_vm2, %v1796_v3, %v3964_v0  ;;  %v6226_v53 = vld [vmem:[#allocation8_spill] sm:$0xff]  ;;  %v6228_v0 = vld [vmem:[#allocation9_spill] sm:$0xff] }
 0x254   : > { %v1791_v42 = vsel %vm315_vm3, %v1790_v62, %v3968_v11  ;;  %v1798_v34 = vsel %vm315_vm3, %v1797_v44, %v3969_v46  ;;  %v3168_v3 = vunpack.i.l.bf16 %v6226_v53  ;;  %v3169_v6 = vunpack.i.h.bf16 %v6226_v53  ;;  %v6229_v44 = vld [vmem:[#allocation14_spill] sm:$0xff] }
 0x255   : > { %v1792_v13 = vsel %vm317_vm4, %v1791_v42, %v3973_v28  ;;  %v1799_v20 = vsel %vm317_vm4, %v1798_v34, %v3974_v52  ;;  %v442_v52 = vsel %vm309_vm0, %v3183_v14, %v3188_v2  ;;  %v3174_v29 = vunpack.i.h.bf16 %v6228_v0 }
 0x256   : > { %v384_v60 = vsel %vm317_vm4, %v383_v33, %v3168_v3  ;;  %v3173_v38 = vunpack.i.l.bf16 %v6228_v0  ;;  %v391_v8 = vsel %vm317_vm4, %v390_v5, %v3169_v6  ;;  %v449_v62 = vsel %vm309_vm0, %v3184_v27, %v3189_v19  ;;  %v4150_v0 = vld [vmem:[%s4249_s19 + $0x1] sm:$0x1] }
 0x257   : > { %v5474_v50 = vpop.permute.xlu2 %4031  ;;  %v3198_v12 = vunpack.i.l.bf16 %v6229_v44  ;;  %v443_v47 = vsel %vm311_vm1, %v442_v52, %v3193_v43  ;;  %v3199_v31 = vunpack.i.h.bf16 %v6229_v44  ;;  %v3203_v42 = vunpack.i.l.bf16 %v6230_v7  ;;  %v6232_v52 = vld [vmem:[#allocation20_spill] sm:$0xff] }
 0x258   : > { %v3977_v30 = vpop.permute.xlu0 %3976  ;;  %v3982_v49 = vpop.permute.xlu1 %3981  ;;  %v3204_v3 = vunpack.i.h.bf16 %v6230_v7  ;;  %v5518_v19 = vsel %vm321_vm6, %v5448_v48, %v3139_v63  ;;  %v3209_v33 = vunpack.i.h.bf16 %v6227_v17 }
 0x259   : > { %v3979_v1 = vunpack.i.h.bf16 %v3977_v30  ;;  %v3978_v26 = vunpack.i.l.bf16 %v3977_v30  ;;  %v3984_v39 = vunpack.i.h.bf16 %v3982_v49  ;;  %v3983_v55 = vunpack.i.l.bf16 %v3982_v49 }
 0x25a   : > { %v444_v53 = vsel %vm313_vm2, %v443_v47, %v3198_v12  ;;  %v392_v49 = vsel %vm319_vm5, %v391_v8, %v3174_v29  ;;  %v6235_v47 = vld [vmem:[#allocation16_spill] sm:$0xff] }
 0x25b   : > { %v1793_v28 = vsel %vm319_vm5, %v1792_v13, %v3978_v26  ;;  %v1800_v57 = vsel %vm319_vm5, %v1799_v20, %v3979_v1  ;;  %v3988_v13 = vunpack.i.l.bf16 %v5370_v59  ;;  %v4004_v20 = vunpack.i.h.bf16 %v5398_v35 }
 0x25c   : > { %v1794_v46 = vsel %vm321_vm6, %v1793_v28, %v3983_v55  ;;  %v1801_v11 = vsel %vm321_vm6, %v1800_v57, %v3984_v39  ;;  %v450_v59 = vsel %vm311_vm1, %v449_v62, %v3194_v21  ;;  %v445_v55 = vsel %vm315_vm3, %v444_v53, %v3203_v42 }
 0x25d   : > { %v2199_v18 = vrot.slane %v1794_v46, 2  ;;  %v2200_v41 = vrot.slane %v1801_v11, 2  ;;  %v451_v1 = vsel %vm313_vm2, %v450_v59, %v3199_v31  ;;  %v3229_v28 = vunpack.i.h.bf16 %v6232_v52  ;;  %v6233_v11 = vld [vmem:[#allocation10_spill] sm:$0xff] }
 0x25e   : > { %v3228_v57 = vunpack.i.l.bf16 %v6232_v52  ;;  %v5530_v45 = vsel %vm321_vm6, %v392_v49, %v3179_v16  ;;  %v452_v48 = vsel %vm315_vm3, %v451_v1, %v3204_v3  ;;  %v3234_v62 = vunpack.i.h.bf16 %v6234_v32 }
 0x25f   : > { %v5484_v34 = vsel %vm2147_vm12, %v5393_v9, %v2199_v18  ;;  %v5488_v51 = vsel %vm2147_vm12, %v5396_v58, %v2200_v41  ;;  %v6231_v9 = vld [vmem:[#allocation7_spill] sm:$0xff]  ;;  %v385_v58 = vsel %vm319_vm5, %v384_v60, %v3173_v38  ;;  %v5533_v63 = vpop.permute.xlu2 %4046  ;;  %v3239_v60 = vunpack.i.h.bf16 %v6233_v11 }
 0x260   : > { %v3992_v4 = vpop.permute.xlu0 %3991  ;;  %v3997_v43 = vpop.permute.xlu1 %3996  ;;  %v3224_v15 = vunpack.i.h.bf16 %v6231_v9  ;;  %v3223_v22 = vunpack.i.l.bf16 %v6231_v9  ;;  %v5509_v21 = vsel %vm321_vm6, %v385_v58, %v3178_v56  ;;  %v4149_v56 = vld [vmem:[%s4249_s19 + $0x9] sm:$0x1]  ;;  %v3238_v38 = vunpack.i.l.bf16 %v6233_v11  ;;  %v6239_v58 = vld [vmem:[#allocation27_spill] sm:$0xff]  ;;  %v6241_v11 = vld [vmem:[#allocation29_spill] sm:$0xff] }
 0x261   : > { %v3994_v36 = vunpack.i.h.bf16 %v3992_v4  ;;  %v3993_v14 = vunpack.i.l.bf16 %v3992_v4  ;;  %v3999_v61 = vunpack.i.h.bf16 %v3997_v43  ;;  %v3998_v2 = vunpack.i.l.bf16 %v3997_v43  ;;  %v6237_v43 = vld [vmem:[#allocation18_spill] sm:$0xff] }
 0x262   : > { %v509_v5 = vsel %vm309_vm0, %v4149_v56, %v3224_v15  ;;  %v502_v29 = vsel %vm309_vm0, %v4150_v0, %v3223_v22  ;;  %v2050_v46 = vrot.slane %v5509_v21, 7  ;;  %v446_v18 = vsel %vm317_vm4, %v445_v55, %v3208_v10  ;;  %v6238_v15 = vld [vmem:[#allocation26_spill] sm:$0xff] }
 0x263   : > { %v1857_v35 = vsel %vm309_vm0, %v3989_v40, %v3994_v36  ;;  %v1850_v30 = vsel %vm309_vm0, %v3988_v13, %v3993_v14  ;;  %v3233_v16 = vunpack.i.l.bf16 %v6234_v32  ;;  %v3269_v31 = vunpack.i.h.bf16 %v6235_v47  ;;  %v6236_v13 = vld [vmem:[#allocation17_spill] sm:$0xff] }
 0x264   : > { %v1858_v26 = vsel %vm311_vm1, %v1857_v35, %v3999_v61  ;;  %v1851_v39 = vsel %vm311_vm1, %v1850_v30, %v3998_v2  ;;  %v453_v7 = vsel %vm317_vm4, %v452_v48, %v3209_v33  ;;  %v510_v42 = vsel %vm311_vm1, %v509_v5, %v3229_v28 }
 0x265   : > { %v1852_v6 = vsel %vm313_vm2, %v1851_v39, %v4003_v25  ;;  %v1859_v27 = vsel %vm313_vm2, %v1858_v26, %v4004_v20  ;;  %v503_v40 = vsel %vm311_vm1, %v502_v29, %v3228_v57  ;;  %v3268_v17 = vunpack.i.l.bf16 %v6235_v47 }
 0x266   : > { %v3213_v10 = vunpack.i.l.bf16 %v6236_v13  ;;  %v3214_v4 = vunpack.i.h.bf16 %v6236_v13  ;;  %v3219_v36 = vunpack.i.h.bf16 %v6237_v43  ;;  %v511_v2 = vsel %vm313_vm2, %v510_v42, %v3234_v62 }
 0x267   : > { %v504_v9 = vsel %vm313_vm2, %v503_v40, %v3233_v16  ;;  %v3259_v22 = vunpack.i.h.bf16 %v6238_v15  ;;  %v3264_v53 = vunpack.i.h.bf16 %v6239_v58  ;;  %v3258_v59 = vunpack.i.l.bf16 %v6238_v15  ;;  %v5573_v5 = vpop.permute.xlu2 %4061 }
 0x268   : > { %v4007_v41 = vpop.permute.xlu0 %4006  ;;  %v4012_v8 = vpop.permute.xlu1 %4011  ;;  %v3263_v3 = vunpack.i.l.bf16 %v6239_v58  ;;  %v4019_v35 = vunpack.i.h.bf16 %v5432_v37  ;;  %v4018_v30 = vunpack.i.l.bf16 %v5432_v37  ;;  %v447_v49 = vsel %vm319_vm5, %v446_v18, %v3213_v10  ;;  %v6243_v10 = vld [vmem:[#allocation30_spill] sm:$0xff]  ;;  %v6245_v58 = vld [vmem:[#allocation19_spill] sm:$0xff] }
 0x269   : > { %v4009_v44 = vunpack.i.h.bf16 %v4007_v41  ;;  %v4008_v12 = vunpack.i.l.bf16 %v4007_v41  ;;  %v4014_v20 = vunpack.i.h.bf16 %v4012_v8  ;;  %v4013_v25 = vunpack.i.l.bf16 %v4012_v8 }
 0x26a   : > { %v3218_v1 = vunpack.i.l.bf16 %v6237_v43  ;;  %v454_v55 = vsel %vm319_vm5, %v453_v7, %v3214_v4  ;;  %v505_v33 = vsel %vm315_vm3, %v504_v9, %v3238_v38  ;;  %v512_v52 = vsel %vm315_vm3, %v511_v2, %v3239_v60  ;;  %v6242_v60 = vld [vmem:[#allocation24_spill] sm:$0xff]  ;;  %v6244_v2 = vld [vmem:[#allocation13_spill] sm:$0xff] }
 0x26b   : > { %v1853_v14 = vsel %vm315_vm3, %v1852_v6, %v4008_v12  ;;  %v1860_v61 = vsel %vm315_vm3, %v1859_v27, %v4009_v44  ;;  %v6240_v6 = vld [vmem:[#allocation23_spill] sm:$0xff]  ;;  %v571_v56 = vsel %vm309_vm0, %v3259_v22, %v3264_v53  ;;  %v564_v48 = vsel %vm309_vm0, %v3258_v59, %v3263_v3 }
 0x26c   : > { %v1854_v26 = vsel %vm317_vm4, %v1853_v14, %v4013_v25  ;;  %v1861_v39 = vsel %vm317_vm4, %v1860_v61, %v4014_v20  ;;  %v3243_v27 = vunpack.i.l.bf16 %v6240_v6  ;;  %v3244_v37 = vunpack.i.h.bf16 %v6240_v6 }
 0x26d   : > { %v3273_v18 = vunpack.i.l.bf16 %v6241_v11  ;;  %v1855_v41 = vsel %vm319_vm5, %v1854_v26, %v4018_v30  ;;  %v1862_v38 = vsel %vm319_vm5, %v1861_v39, %v4019_v35  ;;  %v3249_v8 = vunpack.i.h.bf16 %v6242_v60  ;;  %v6246_v35 = vld [vmem:[#allocation32_spill] sm:$0xff] }
 0x26e   : > { %v3274_v32 = vunpack.i.h.bf16 %v6241_v11  ;;  %v506_v44 = vsel %vm317_vm4, %v505_v33, %v3243_v27  ;;  %v3248_v12 = vunpack.i.l.bf16 %v6242_v60  ;;  %v513_v42 = vsel %vm317_vm4, %v512_v52, %v3244_v37 }
 0x26f   : > { %v565_v40 = vsel %vm311_vm1, %v564_v48, %v3268_v17  ;;  %v572_v13 = vsel %vm311_vm1, %v571_v56, %v3269_v31  ;;  %v3278_v20 = vunpack.i.l.bf16 %v6243_v10  ;;  %v3279_v4 = vunpack.i.h.bf16 %v6243_v10  ;;  %v5624_v33 = vpop.permute.xlu2 %4076 }
 0x270   : > { %v4022_v28 = vpop.permute.xlu0 %4021  ;;  %v5569_v57 = vpop.permute.xlu1 %4026  ;;  %v566_v25 = vsel %vm313_vm2, %v565_v40, %v3273_v18  ;;  %v2051_v61 = vrot.slane %v5530_v45, 7  ;;  %v3254_v17 = vunpack.i.h.bf16 %v6244_v2  ;;  %v2133_v31 = vsel %vm2132_vm7, %v5455_v23, %v2050_v46  ;;  %v6250_v18 = vld [vmem:[#allocation36_spill] sm:$0xff] }
 0x271   : > { %v4024_v0 = vunpack.i.h.bf16 %v4022_v28  ;;  %v4023_v29 = vunpack.i.l.bf16 %v4022_v28  ;;  %v573_v9 = vsel %vm313_vm2, %v572_v13, %v3274_v32  ;;  %v3253_v15 = vunpack.i.l.bf16 %v6244_v2 }
 0x272   : > { %v455_v22 = vsel %vm321_vm6, %v454_v55, %v3219_v36  ;;  %v3284_v59 = vunpack.i.h.bf16 %v6245_v58  ;;  %v507_v21 = vsel %vm319_vm5, %v506_v44, %v3248_v12  ;;  %v514_v23 = vsel %vm319_vm5, %v513_v42, %v3249_v8  ;;  %v6248_v55 = vld [vmem:[#allocation22_spill] sm:$0xff]  ;;  %v6251_v42 = vld [vmem:[#allocation25_spill] sm:$0xff] }
 0x273   : > { %v1856_v62 = vsel %vm321_vm6, %v1855_v41, %v4023_v29  ;;  %v1863_v16 = vsel %vm321_vm6, %v1862_v38, %v4024_v0  ;;  %v567_v46 = vsel %vm315_vm3, %v566_v25, %v3278_v20  ;;  %v574_v3 = vsel %vm315_vm3, %v573_v9, %v3279_v4  ;;  %v6249_v29 = vld [vmem:[#allocation33_spill] sm:$0xff] }
 0x274   : > { %v2205_v47 = vrot.slane %v1856_v62, 1  ;;  %v2206_v7 = vrot.slane %v1863_v16, 1  ;;  %v3289_v30 = vunpack.i.h.bf16 %v6246_v35  ;;  %v3288_v36 = vunpack.i.l.bf16 %v6246_v35 }
 0x275   : > { %v2057_v39 = vrot.slane %v455_v22, 6  ;;  %v3299_v6 = vunpack.i.h.bf16 %v6248_v55  ;;  %v3298_v52 = vunpack.i.l.bf16 %v6248_v55  ;;  %v5628_v28 = vsel %vm321_vm6, %v507_v21, %v3253_v15  ;;  %v6254_v22 = vld [vmem:[#allocation31_spill] sm:$0xff] }
 0x276   : > { %v5593_v43 = vsel %vm2150_vm13, %v5484_v34, %v2205_v47  ;;  %v5597_v14 = vsel %vm2150_vm13, %v5488_v51, %v2206_v7  ;;  %v448_v34 = vsel %vm321_vm6, %v447_v49, %v3218_v1  ;;  %v3283_v51 = vunpack.i.l.bf16 %v6245_v58  ;;  %v6247_v49 = vld [vmem:[#allocation35_spill] sm:$0xff] }
 0x277   : > { %v3303_v1 = vunpack.i.l.bf16 %v6247_v49  ;;  %v2056_v26 = vrot.slane %v448_v34, 6  ;;  %v3304_v27 = vunpack.i.h.bf16 %v6247_v49  ;;  %v5631_v37 = vsel %vm321_vm6, %v514_v23, %v3254_v17  ;;  %v5682_v55 = vpop.permute.xlu2 %4091 }
 0x278   : > { %v5610_v53 = vpop.permute.xlu0 %4036  ;;  %v5612_v45 = vpop.permute.xlu1 %4041  ;;  %v568_v56 = vsel %vm317_vm4, %v567_v46, %v3283_v51  ;;  %v575_v0 = vsel %vm317_vm4, %v574_v3, %v3284_v59  ;;  %v3294_v48 = vunpack.i.h.bf16 %v6249_v29  ;;  %v3293_v11 = vunpack.i.l.bf16 %v6249_v29  ;;  %v6255_v51 = vld [vmem:[#allocation42_spill] sm:$0xff] }
 0x279   : > { %v3308_v41 = vunpack.i.l.bf16 %v6250_v18  ;;  %v569_v38 = vsel %vm319_vm5, %v568_v56, %v3288_v36  ;;  %v576_v60 = vsel %vm319_vm5, %v575_v0, %v3289_v30  ;;  %v626_v8 = vsel %vm309_vm0, %v3298_v52, %v3303_v1  ;;  %v6256_v36 = vld [vmem:[#allocation39_spill] sm:$0xff]  ;;  %v6259_v52 = vld [vmem:[#allocation37_spill] sm:$0xff] }
 0x27a   : > { %v3309_v32 = vunpack.i.h.bf16 %v6250_v18  ;;  %v2134_v62 = vsel %vm2132_vm7, %v5518_v19, %v2051_v61  ;;  %v5645_v16 = vsel %vm2135_vm8, %v2133_v31, %v2056_v26  ;;  %v633_v44 = vsel %vm309_vm0, %v3299_v6, %v3304_v27  ;;  %v6252_v61 = vld [vmem:[#allocation28_spill] sm:$0xff]  ;;  %v6253_v31 = vld [vmem:[#allocation38_spill] sm:$0xff]  ;;  %v4152_v18 = vld [vmem:[%s4249_s19 + $0x2] sm:$0x1] }
 0x27b   : > { %v5649_v12 = vsel %vm2135_vm8, %v2134_v62, %v2057_v39  ;;  %v2062_v47 = vrot.slane %v5628_v28, 5  ;;  %v2063_v7 = vrot.slane %v5631_v37, 5  ;;  %v3313_v40 = vunpack.i.l.bf16 %v6251_v42  ;;  %v6257_v26 = vld [vmem:[#allocation48_spill] sm:$0xff]  ;;  %v6258_v6 = vld [vmem:[#allocation34_spill] sm:$0xff]  ;;  %v2267_v37 = vld [vmem:[%s6092_s2 + $0x40] sm:$0xff] }
 0x27c   : > { %v3314_v19 = vunpack.i.h.bf16 %v6251_v42  ;;  %v5660_v20 = vsel %vm321_vm6, %v569_v38, %v3293_v11  ;;  %v5663_v25 = vsel %vm321_vm6, %v576_v60, %v3294_v48  ;;  %v627_v4 = vsel %vm311_vm1, %v626_v8, %v3308_v41  ;;  %v4151_v48 = vld [vmem:[%s4249_s19 + $0xa] sm:$0x1]  ;;  %v6261_v42 = vld [vmem:[#allocation49_spill] sm:$0xff] }
 0x27d   : > { %v3329_v2 = vunpack.i.h.bf16 %v6252_v61  ;;  %v634_v17 = vsel %vm311_vm1, %v633_v44, %v3309_v32  ;;  %v3319_v9 = vunpack.i.h.bf16 %v6253_v31  ;;  %v3318_v15 = vunpack.i.l.bf16 %v6253_v31  ;;  %v6260_v38 = vld [vmem:[#allocation44_spill] sm:$0xff] }
 0x27e   : > { %v3328_v34 = vunpack.i.l.bf16 %v6252_v61  ;;  %v3344_v58 = vunpack.i.h.bf16 %v6254_v22  ;;  %v3339_v59 = vunpack.i.h.bf16 %v6255_v51  ;;  %v3338_v21 = vunpack.i.l.bf16 %v6255_v51 }
 0x27f   : > { %v3343_v23 = vunpack.i.l.bf16 %v6254_v22  ;;  %v2068_v46 = vrot.slane %v5660_v20, 4  ;;  %v2069_v3 = vrot.slane %v5663_v25, 4  ;;  %v628_v35 = vsel %vm313_vm2, %v627_v4, %v3313_v40 }
 0x280   : > { %v5654_v13 = vpop.permute.xlu0 %4051  ;;  %v5656_v10 = vpop.permute.xlu1 %4056  ;;  %v635_v30 = vsel %vm313_vm2, %v634_v17, %v3314_v19  ;;  %v3324_v49 = vunpack.i.h.bf16 %v6256_v36  ;;  %v3323_v1 = vunpack.i.l.bf16 %v6256_v36  ;;  %v3378_v39 = vunpack.i.l.bf16 %v6257_v26  ;;  %v6264_v36 = vld [vmem:[#allocation40_spill] sm:$0xff] }
 0x281   : > { %v3359_v27 = vunpack.i.h.bf16 %v6258_v6  ;;  %v3373_v56 = vunpack.i.l.bf16 %v6259_v52  ;;  %v629_v0 = vsel %vm315_vm3, %v628_v35, %v3318_v15  ;;  %v636_v29 = vsel %vm315_vm3, %v635_v30, %v3319_v9  ;;  %v6262_v9 = vld [vmem:[#allocation41_spill] sm:$0xff] }
 0x282   : > { %v693_v11 = vsel %vm309_vm0, %v4151_v48, %v3339_v59  ;;  %v686_v41 = vsel %vm309_vm0, %v4152_v18, %v3338_v21  ;;  %v3349_v60 = vunpack.i.h.bf16 %v6260_v38  ;;  %v3348_v8 = vunpack.i.l.bf16 %v6260_v38  ;;  %v6263_v21 = vld [vmem:[#allocation45_spill] sm:$0xff] }
 0x283   : > { %v3358_v32 = vunpack.i.l.bf16 %v6258_v6  ;;  %v3374_v62 = vunpack.i.h.bf16 %v6259_v52  ;;  %v3379_v44 = vunpack.i.h.bf16 %v6257_v26  ;;  %v3383_v40 = vunpack.i.l.bf16 %v6261_v42 }
 0x284   : > { %v630_v17 = vsel %vm317_vm4, %v629_v0, %v3323_v1  ;;  %v637_v31 = vsel %vm317_vm4, %v636_v29, %v3324_v49  ;;  %v3333_v15 = vunpack.i.l.bf16 %v6262_v9  ;;  %v748_v22 = vsel %vm309_vm0, %v3373_v56, %v3378_v39  ;;  %v6265_v29 = vld [vmem:[#allocation43_spill] sm:$0xff] }
 0x285   : > { %v687_v51 = vsel %vm311_vm1, %v686_v41, %v3343_v23  ;;  %v694_v59 = vsel %vm311_vm1, %v693_v11, %v3344_v58  ;;  %v3354_v35 = vunpack.i.h.bf16 %v6263_v21  ;;  %v3353_v30 = vunpack.i.l.bf16 %v6263_v21  ;;  %v6266_v11 = vld [vmem:[#allocation50_spill] sm:$0xff] }
 0x286   : > { %v3388_v26 = vunpack.i.l.bf16 %v6264_v36  ;;  %v688_v6 = vsel %vm313_vm2, %v687_v51, %v3348_v8  ;;  %v695_v1 = vsel %vm313_vm2, %v694_v59, %v3349_v60  ;;  %v3384_v49 = vunpack.i.h.bf16 %v6261_v42  ;;  %v6267_v60 = vld [vmem:[#allocation46_spill] sm:$0xff] }
 0x287   : > { %v3389_v52 = vunpack.i.h.bf16 %v6264_v36  ;;  %v631_v39 = vsel %vm319_vm5, %v630_v17, %v3328_v34  ;;  %v755_v23 = vsel %vm309_vm0, %v3374_v62, %v3379_v44  ;;  %v749_v58 = vsel %vm311_vm1, %v748_v22, %v3383_v40  ;;  %v6268_v40 = vld [vmem:[#allocation51_spill] sm:$0xff] }
 0x288   : > { %v5698_v19 = vpop.permute.xlu0 %4066  ;;  %v5700_v4 = vpop.permute.xlu1 %4071  ;;  %v3334_v56 = vunpack.i.h.bf16 %v6262_v9  ;;  %v5720_v0 = vsel %vm321_vm6, %v631_v39, %v3333_v15  ;;  %v3403_v48 = vunpack.i.l.bf16 %v6265_v29  ;;  %v3393_v18 = vunpack.i.l.bf16 %v6266_v11 }
 0x289   : > { %v689_v41 = vsel %vm315_vm3, %v688_v6, %v3353_v30  ;;  %v696_v38 = vsel %vm315_vm3, %v695_v1, %v3354_v35  ;;  %v3364_v8 = vunpack.i.h.bf16 %v6267_v60  ;;  %v3363_v34 = vunpack.i.l.bf16 %v6267_v60  ;;  %v5732_v9 = vpop.permute.xlu2 %4106 }
 0x28a   : > { %v756_v62 = vsel %vm311_vm1, %v755_v23, %v3384_v49  ;;  %v3394_v44 = vunpack.i.h.bf16 %v6266_v11  ;;  %v750_v42 = vsel %vm313_vm2, %v749_v58, %v3388_v26  ;;  %v3398_v17 = vunpack.i.l.bf16 %v6268_v40  ;;  %v6269_v26 = vld [vmem:[#allocation47_spill] sm:$0xff] }
 0x28b   : > { %v4049_v15 = vunpack.i.h.bf16 %v5533_v63  ;;  %v4048_v22 = vunpack.i.l.bf16 %v5533_v63  ;;  %v4044_v51 = vunpack.i.h.bf16 %v5612_v45  ;;  %v4043_v59 = vunpack.i.l.bf16 %v5612_v45 }
 0x28c   : > { %v690_v30 = vsel %vm317_vm4, %v689_v41, %v3358_v32  ;;  %v697_v36 = vsel %vm317_vm4, %v696_v38, %v3359_v27  ;;  %v3368_v6 = vunpack.i.l.bf16 %v6269_v26  ;;  %v751_v1 = vsel %vm315_vm3, %v750_v42, %v3393_v18 }
 0x28d   : > { %v691_v49 = vsel %vm319_vm5, %v690_v30, %v3363_v34  ;;  %v3369_v63 = vunpack.i.h.bf16 %v6269_v26  ;;  %v757_v39 = vsel %vm313_vm2, %v756_v62, %v3389_v52  ;;  %v3399_v45 = vunpack.i.h.bf16 %v6268_v40  ;;  %v6270_v62 = vld [vmem:[#allocation52_spill] sm:$0xff] }
 0x28e   : > { %v698_v23 = vsel %vm319_vm5, %v697_v36, %v3364_v8  ;;  %v758_v58 = vsel %vm315_vm3, %v757_v39, %v3394_v44  ;;  %v4064_v32 = vunpack.i.h.bf16 %v5573_v5  ;;  %v4063_v27 = vunpack.i.l.bf16 %v5573_v5 }
 0x28f   : > { %v638_v11 = vsel %vm319_vm5, %v637_v31, %v3329_v2  ;;  %v752_v18 = vsel %vm317_vm4, %v751_v1, %v3398_v17  ;;  %v2041_v41 = vsel %vm309_vm0, %v4044_v51, %v4049_v15  ;;  %v2034_v52 = vsel %vm309_vm0, %v4043_v59, %v4048_v22 }
 0x290   : > { %v5738_v21 = vpop.permute.xlu0 %4081  ;;  %v5740_v35 = vpop.permute.xlu1 %4086  ;;  %v5761_v38 = vsel %vm321_vm6, %v638_v11, %v3334_v56  ;;  %v2074_v60 = vrot.slane %v5720_v0, 3  ;;  %v3404_v8 = vunpack.i.h.bf16 %v6265_v29  ;;  %v5766_v34 = vsel %vm321_vm6, %v691_v49, %v3368_v6  ;;  %v3042_v0 = vld [vmem:[%s6091_s1] sm:$0xff] }
 0x291   : > { %v5769_v5 = vsel %vm321_vm6, %v698_v23, %v3369_v63  ;;  %v5772_v61 = vsel %vm317_vm4, %v758_v58, %v3399_v45  ;;  %v4079_v2 = vunpack.i.h.bf16 %v5624_v33  ;;  %v4078_v31 = vunpack.i.l.bf16 %v5624_v33  ;;  %v4122_v49 = vpop.permute.xlu2 %4121 }
 0x292   : > { %v3409_v56 = vunpack.i.h.bf16 %v6270_v62  ;;  %v2042_v44 = vsel %vm311_vm1, %v2041_v41, %v4064_v32  ;;  %v2035_v42 = vsel %vm311_vm1, %v2034_v52, %v4063_v27  ;;  %v5780_v40 = vsel %vm319_vm5, %v752_v18, %v3403_v48 }
 0x293   : > { %v4034_v17 = vunpack.i.h.bf16 %v5474_v50  ;;  %v4033_v15 = vunpack.i.l.bf16 %v5474_v50  ;;  %v4029_v22 = vunpack.i.h.bf16 %v5569_v57  ;;  %v4028_v51 = vunpack.i.l.bf16 %v5569_v57 }
 0x294   : > { %v3408_v30 = vunpack.i.l.bf16 %v6270_v62  ;;  %v4094_v36 = vunpack.i.h.bf16 %v5682_v55  ;;  %v4093_v26 = vunpack.i.l.bf16 %v5682_v55  ;;  %v4038_v48 = vunpack.i.l.bf16 %v5610_v53  ;;  %v2260_v55 = vld [vmem:[%s6092_s2 + $0x8] sm:$0xff] }
 0x295   : > { %v4039_v6 = vunpack.i.h.bf16 %v5610_v53  ;;  %v4108_v50 = vunpack.i.l.bf16 %v5732_v9  ;;  %v2036_v1 = vsel %vm313_vm2, %v2035_v42, %v4078_v31  ;;  %v2043_v57 = vsel %vm313_vm2, %v2042_v44, %v4079_v2  ;;  %v2259_v53 = vld [vmem:[%s6092_s2] sm:$0xff]  ;;  %v4153_v42 = vld [vmem:[%s4249_s19 + $0x3a] sm:$0x1] }
 0x296   : > { %v4109_v63 = vunpack.i.h.bf16 %v5732_v9  ;;  %v4054_v39 = vunpack.i.h.bf16 %v5654_v13  ;;  %v4053_v45 = vunpack.i.l.bf16 %v5654_v13  ;;  %v4058_v23 = vunpack.i.l.bf16 %v5656_v10 }
 0x297   : > { %v1979_v58 = vsel %vm309_vm0, %v4029_v22, %v4034_v17  ;;  %v1972_v32 = vsel %vm309_vm0, %v4028_v51, %v4033_v15  ;;  %v4059_v9 = vunpack.i.h.bf16 %v5656_v10  ;;  %v2037_v13 = vsel %vm315_vm3, %v2036_v1, %v4093_v26  ;;  %v4154_v15 = vld [vmem:[%s4249_s19 + $0x32] sm:$0x1] }
 0x298   : > { %v5786_v59 = vpop.permute.xlu0 %4096  ;;  %v5788_v33 = vpop.permute.xlu1 %4101  ;;  %v1973_v27 = vsel %vm311_vm1, %v1972_v32, %v4038_v48  ;;  %v4124_v11 = vunpack.i.h.bf16 %v4122_v49  ;;  %v4123_v18 = vunpack.i.l.bf16 %v4122_v49  ;;  %v4202_v41 = vmov 0   ;;  %v2262_v32 = vld [vmem:[%s6092_s2 + $0x18] sm:$0xff] }
 0x299   : > { %4141 = vset.pattern.permute.xlu1 %v4202_v41  ;;  %4140 = vset.pattern.permute.xlu0 %v4202_v41  ;;  %v1980_v52 = vsel %vm311_vm1, %v1979_v58, %v4039_v6  ;;  %v2038_v2 = vsel %vm317_vm4, %v2037_v13, %v4108_v50  ;;  %v2044_v31 = vsel %vm315_vm3, %v2043_v57, %v4094_v36  ;;  %v4068_v44 = vunpack.i.l.bf16 %v5698_v19 }
 0x29a   : > { %2282 = vperm.xlu1 %4141, %v2260_v55   ;;  %2277 = vperm.xlu0 %4140, %v2259_v53   ;;  %v2045_v10 = vsel %vm317_vm4, %v2044_v31, %v4109_v63  ;;  %v1917_v17 = vsel %vm309_vm0, %v4153_v42, %v4054_v39  ;;  %v1910_v22 = vsel %vm309_vm0, %v4154_v15, %v4053_v45  ;;  %v4069_v48 = vunpack.i.h.bf16 %v5698_v19 }
 0x29b   : > { %v1974_v51 = vsel %vm313_vm2, %v1973_v27, %v4058_v23  ;;  %4142 = vset.pattern.permute.xlu2 %v4202_v41  ;;  %v1981_v26 = vsel %vm313_vm2, %v1980_v52, %v4059_v9  ;;  %v4074_v36 = vunpack.i.h.bf16 %v5700_v4  ;;  %v4073_v6 = vunpack.i.l.bf16 %v5700_v4 }
 0x29c   : > { %v2039_v57 = vsel %vm319_vm5, %v2038_v2, %v4123_v18  ;;  %v2046_v49 = vsel %vm319_vm5, %v2045_v10, %v4124_v11  ;;  %v4089_v63 = vunpack.i.h.bf16 %v5740_v35  ;;  %v4088_v39 = vunpack.i.l.bf16 %v5740_v35  ;;  %v4137_v18 = vpop.permute.xlu2 %4136 }
 0x29d   : > { %v1911_v45 = vsel %vm311_vm1, %v1910_v22, %v4068_v44  ;;  %v4104_v23 = vunpack.i.h.bf16 %v5788_v33  ;;  %v4103_v19 = vunpack.i.l.bf16 %v5788_v33  ;;  %v4084_v55 = vunpack.i.h.bf16 %v5738_v21 }
 0x29e   : > { %v4083_v4 = vunpack.i.l.bf16 %v5738_v21  ;;  %v1975_v9 = vsel %vm315_vm3, %v1974_v51, %v4073_v6  ;;  %v1982_v35 = vsel %vm315_vm3, %v1981_v26, %v4074_v36  ;;  %v4099_v27 = vunpack.i.h.bf16 %v5786_v59 }
 0x29f   : > { %v4098_v13 = vunpack.i.l.bf16 %v5786_v59  ;;  %v1918_v33 = vsel %vm311_vm1, %v1917_v17, %v4069_v48  ;;  %v1976_v11 = vsel %vm317_vm4, %v1975_v9, %v4088_v39  ;;  %v1983_v21 = vsel %vm317_vm4, %v1982_v35, %v4089_v63  ;;  %v2264_v9 = vld [vmem:[%s6092_s2 + $0x28] sm:$0xff]  ;;  %v2265_v35 = vld [vmem:[%s6092_s2 + $0x30] sm:$0xff] }
 0x2a0   : > { %v4112_v50 = vpop.permute.xlu0 %4111  ;;  %v4117_v1 = vpop.permute.xlu1 %4116  ;;  %v4203_v41 = vmov 65535   ;;  %v1977_v2 = vsel %vm319_vm5, %v1976_v11, %v4103_v19  ;;  %v1984_v31 = vsel %vm319_vm5, %v1983_v21, %v4104_v23  ;;  %v1912_v42 = vsel %vm313_vm2, %v1911_v45, %v4083_v4 }
 0x2a1   : > { %v4119_v53 = vunpack.i.h.bf16 %v4117_v1  ;;  %v4118_v58 = vunpack.i.l.bf16 %v4117_v1  ;;  %v2420_v52 = vsel %vm2144_vm11, 4294967295, %v4203_v41  ;;  %v4114_v44 = vunpack.i.h.bf16 %v4112_v50 }
 0x2a2   : > { %v4113_v10 = vunpack.i.l.bf16 %v4112_v50  ;;  %2292 = vperm.xlu1 %4141, %v2262_v32   ;;  %v1919_v59 = vsel %vm313_vm2, %v1918_v33, %v4084_v55  ;;  %v1913_v22 = vsel %vm315_vm3, %v1912_v42, %v4098_v13  ;;  %v4139_v36 = vunpack.i.h.bf16 %v4137_v18  ;;  %2302 = vperm.xlu0 %4140, %v2264_v9   ;;  %v2273_v42 = vld [vmem:[%s6092_s2 + $0x70] sm:$0xff] }
 0x2a3   : > { %v1978_v17 = vsel %vm321_vm6, %v1977_v2, %v4118_v58  ;;  %v1985_v15 = vsel %vm321_vm6, %v1984_v31, %v4119_v53  ;;  %v1920_v51 = vsel %vm315_vm3, %v1919_v59, %v4099_v27  ;;  %v4138_v6 = vunpack.i.l.bf16 %v4137_v18  ;;  %v2274_v59 = vld [vmem:[%s6092_s2 + $0x78] sm:$0xff] }
 0x2a4   : > { %v1914_v45 = vsel %vm317_vm4, %v1913_v22, %v4113_v10  ;;  %v1921_v23 = vsel %vm317_vm4, %v1920_v51, %v4114_v44  ;;  %v2211_v19 = vrot.slane %v1978_v17, 7  ;;  %v2212_v55 = vrot.slane %v1985_v15, 7  ;;  %v3043_v17 = vld [vmem:[%s6091_s1 + $0x8] sm:$0xff]  ;;  %v2263_v22 = vld [vmem:[%s6092_s2 + $0x20] sm:$0xff]  ;;  %v2266_v51 = vld [vmem:[%s6092_s2 + $0x38] sm:$0xff] }
 0x2a5   : > { %v760_v18 = vsel %vm319_vm5, %v5772_v61, %v3404_v8  ;;  %v2421_v2 = vsel %vm2147_vm12, %v2420_v52, 0  ;;  %v2075_v10 = vrot.slane %v5761_v38, 3  ;;  %v2081_v8 = vrot.slane %v5769_v5, 2  ;;  %v2261_v5 = vld [vmem:[%s6092_s2 + $0x10] sm:$0xff]  ;;  %v3047_v15 = vld [vmem:[%s6091_s1 + $0x28] sm:$0xff] }
 0x2a6   : > { %v761_v44 = vsel %vm321_vm6, %v760_v18, %v3409_v56  ;;  %v2139_v52 = vsel %vm2138_vm9, %v5645_v16, %v2062_v47  ;;  %v2140_v62 = vsel %vm2138_vm9, %v5649_v12, %v2063_v7  ;;  %v2268_v47 = vld [vmem:[%s6092_s2 + $0x48] sm:$0xff]  ;;  %2287 = vperm.xlu2 %4142, %v2261_v5  }
 0x2a7   : > { %v2143_v28 = vsel %vm2141_vm10, %v2140_v62, %v2069_v3 }
 0x2a8   : > { %v4127_v26 = vpop.permute.xlu0 %4126  ;;  %v4132_v48 = vpop.permute.xlu1 %4131  ;;  %v2146_v12 = vsel %vm2144_vm11, %v2143_v28, %v2075_v10 }
 0x2a9   : > { %v4129_v1 = vunpack.i.h.bf16 %v4127_v26  ;;  %v4128_v63 = vunpack.i.l.bf16 %v4127_v26  ;;  %v4134_v50 = vunpack.i.h.bf16 %v4132_v48  ;;  %v4133_v39 = vunpack.i.l.bf16 %v4132_v48  ;;  %v3044_v26 = vld [vmem:[%s6091_s1 + $0x10] sm:$0xff] }
 0x2aa   : > { %2307 = vperm.xlu1 %4141, %v2265_v35   ;;  %v2149_v20 = vsel %vm2147_vm12, %v2146_v12, %v2081_v8  ;;  %2317 = vperm.xlu0 %4140, %v2267_v37   ;;  %v3048_v48 = vld [vmem:[%s6091_s1 + $0x30] sm:$0xff] }
 0x2ab   : > { %v1915_v4 = vsel %vm319_vm5, %v1914_v45, %v4128_v63  ;;  %v1922_v53 = vsel %vm319_vm5, %v1921_v23, %v4129_v1  ;;  %v2040_v58 = vsel %vm321_vm6, %v2039_v57, %v4133_v39  ;;  %v2047_v32 = vsel %vm321_vm6, %v2046_v49, %v4134_v50  ;;  %v3045_v1 = vld [vmem:[%s6091_s1 + $0x18] sm:$0xff] }
 0x2ac   : > { %v2217_v27 = vrot.slane %v2040_v58, 6  ;;  %v2218_v13 = vrot.slane %v2047_v32, 6  ;;  %v1916_v33 = vsel %vm321_vm6, %v1915_v4, %v4138_v6  ;;  %v1923_v11 = vsel %vm321_vm6, %v1922_v53, %v4139_v36  ;;  %v2269_v36 = vld [vmem:[%s6092_s2 + $0x50] sm:$0xff]  ;;  %v2272_v6 = vld [vmem:[%s6092_s2 + $0x68] sm:$0xff]  ;;  %v3049_v63 = vld [vmem:[%s6091_s1 + $0x38] sm:$0xff] }
 0x2ad   : > { %v2235_v21 = vsel %vm2132_vm7, %v1916_v33, %v2211_v19  ;;  %v2236_v57 = vsel %vm2132_vm7, %v1923_v11, %v2212_v55  ;;  %v754_v49 = vsel %vm321_vm6, %v5780_v40, %v3408_v30  ;;  %v2080_v40 = vrot.slane %v5766_v34, 2 }
 0x2ae   : > { %v2237_v41 = vsel %vm2135_vm8, %v2235_v21, %v2217_v27  ;;  %v2238_v31 = vsel %vm2135_vm8, %v2236_v57, %v2218_v13  ;;  %v2086_v61 = vrot.slane %v754_v49, 1  ;;  %2297 = vperm.xlu2 %4142, %v2263_v22  }
 0x2af   : > { %v2241_v29 = vpack.c.bf16 %v2237_v41, %v5593_v43  ;;  %v2242_v30 = vpack.c.bf16 %v2238_v31, %v5597_v14  ;;  %v2142_v43 = vsel %vm2141_vm10, %v2139_v52, %v2068_v46  ;;  %v2087_v14 = vrot.slane %v761_v44, 1 }
 0x2b0   : > { %v2145_v34 = vsel %vm2144_vm11, %v2142_v43, %v2074_v60  ;;  %v3046_v60 = vld [vmem:[%s6091_s1 + $0x20] sm:$0xff] }
 0x2b1   : > { %v2423_v38 = vand.u32 %v2421_v2, %v2241_v29  ;;  %v2426_v56 = vand.u32 %v2421_v2, %v2242_v30  ;;  %v2148_v16 = vsel %vm2147_vm12, %v2145_v34, %v2080_v40  ;;  %v2152_v46 = vsel %vm2150_vm13, %v2149_v20, %v2087_v14 }
 0x2b2   : > { %v2151_v7 = vsel %vm2150_vm13, %v2148_v16, %v2086_v61  ;;  %v2240_v3 = vpack.c.bf16 %v5147_v54, %v2152_v46  ;;  %2322 = vperm.xlu1 %4141, %v2268_v47   ;;  %v2271_v54 = vld [vmem:[%s6092_s2 + $0x60] sm:$0xff] }
 0x2b3   : > { %2434 = vmatpush.bf16.msra.mxu0 %v2423_v38  ;;  %3050 = vmatpush.bf16.msra.mxu2 %v2423_v38  ;;  %v2239_v25 = vpack.c.bf16 %v5144_v24, %v2151_v7  ;;  %v2270_v24 = vld [vmem:[%s6092_s2 + $0x58] sm:$0xff] }
 0x2b4   : > { %2483 = vmatpush.bf16.msra.mxu1 %v2426_v56  ;;  %3052 = vmatpush.bf16.msra.mxu3 %v2426_v56 }
 0x2b5   : > { %2332 = vperm.xlu0 %4140, %v2270_v24  }
 0x2b6   : > { %2312 = vperm.xlu2 %4142, %v2266_v51  }
 0x2b7   : > { %2435 = vmatpush.bf16.msra.mxu0 %v2239_v25  ;;  %3051 = vmatpush.bf16.msra.mxu2 %v2239_v25 }
 0x2b8   : > { %2484 = vmatpush.bf16.msra.mxu1 %v2240_v3  ;;  %3053 = vmatpush.bf16.msra.mxu3 %v2240_v3 }
 0x2ba   : > { %3023 = vmatmul.msk.bf16.vlgmr.msra.gmra.mxu0 %vm2395_vm14, %v3042_v0  ;;  %3027 = vmatmul.msk.bf16.vlgmr.msra.gmra.mxu2 %vm2395_vm14, %v3046_v60 }
 0x2bb   : > { %3031 = vmatmul.msk.bf16.vlgmr.msra.gmra.mxu1 %vm2395_vm14, %v3042_v0  ;;  %3035 = vmatmul.msk.bf16.vlgmr.msra.gmra.mxu3 %vm2395_vm14, %v3046_v60 }
 0x2bc   : > { %2337 = vperm.xlu1 %4141, %v2271_v54  }
 0x2bd   : > { %2347 = vperm.xlu0 %4140, %v2273_v42  }
 0x2be   : > { %2327 = vperm.xlu2 %4142, %v2269_v36  }
 0x2c4   : > { %2352 = vperm.xlu1 %4141, %v2274_v59  }
 0x2c6   : > { %2342 = vperm.xlu2 %4142, %v2272_v6  }
 0x2ca   : > { %3024 = vmatmul.msk.bf16.gmra.mxu0 %vm2395_vm14, %v3043_v17  ;;  %3028 = vmatmul.msk.bf16.gmra.mxu2 %vm2395_vm14, %v3047_v15 }
 0x2cb   : > { %3032 = vmatmul.msk.bf16.gmra.mxu1 %vm2395_vm14, %v3043_v17  ;;  %3036 = vmatmul.msk.bf16.gmra.mxu3 %vm2395_vm14, %v3047_v15 }
 0x2da   : > { %3025 = vmatmul.msk.bf16.gmra.mxu0 %vm2395_vm14, %v3044_v26  ;;  %3029 = vmatmul.msk.bf16.gmra.mxu2 %vm2395_vm14, %v3048_v48 }
 0x2db   : > { %3033 = vmatmul.msk.bf16.gmra.mxu1 %vm2395_vm14, %v3044_v26  ;;  %3037 = vmatmul.msk.bf16.gmra.mxu3 %vm2395_vm14, %v3048_v48 }
 0x2ea   : > { %3026 = vmatmul.msk.bf16.gmra.mxu0 %vm2395_vm14, %v3045_v1  ;;  %3030 = vmatmul.msk.bf16.gmra.mxu2 %vm2395_vm14, %v3049_v63 }
 0x2eb   : > { %3034 = vmatmul.msk.bf16.gmra.mxu1 %vm2395_vm14, %v3045_v1  ;;  %3038 = vmatmul.msk.bf16.gmra.mxu3 %vm2395_vm14, %v3049_v63 }
 0x300   : > { %v2288_v41 = vpop.permute.xlu2 %2287 }
 0x308   : > { %v2298_v47 = vpop.permute.xlu2 %2297 }
 0x30c   : > { %v2278_v50 = vpop.permute.xlu0 %2277  ;;  %v2283_v9 = vpop.permute.xlu1 %2282 }
 0x314   : > { %v2293_v52 = vpop.permute.xlu1 %2292  ;;  %v2303_v16 = vpop.permute.xlu0 %2302 }
 0x31c   : > { %v2308_v54 = vpop.permute.xlu1 %2307  ;;  %v2318_v59 = vpop.permute.xlu0 %2317 }
 0x337   : > { %v2437_v39 = vpop.f32.mrf.mxu0 }
 0x338   : > { %v2438_v45 = vadd.f32 %v2437_v39, %v2278_v50  ;;  %v2486_v23 = vpop.f32.mrf.mxu1  ;;  %v2323_v39 = vpop.permute.xlu1 %2322 }
 0x339   : > { %v2487_v19 = vadd.f32 %v2486_v23, %v2278_v50 }
 0x33a   : > { %v2526_v55 = vmax.f32 %v2438_v45, 0.0 }
 0x33b   : > { %v2527_v4 = vmax.f32 %v2487_v19, 0.0 }
 0x33d   : > { %v2574_v53 = vadd.f32 %v2527_v4, %v2526_v55  ;;  %v2457_v58 = vpop.f32.mrf.mxu2  ;;  %v2313_v4 = vpop.permute.xlu2 %2312 }
 0x33e   : > { %v2506_v32 = vpop.f32.mrf.mxu3  ;;  %v2458_v48 = vadd.f32 %v2457_v58, %v2318_v59  ;;  %v2333_v58 = vpop.permute.xlu0 %2332 }
 0x33f   : > { %2575 = vadd.xlane.f32.xlu2 %v2574_v53  ;;  %v2439_v35 = vpop.f32.mrf.mxu0  ;;  %v2507_v36 = vadd.f32 %v2506_v32, %v2318_v59 }
 0x340   : > { %v2440_v27 = vadd.f32 %v2439_v35, %v2283_v9  ;;  %v2488_v13 = vpop.f32.mrf.mxu1  ;;  %v2542_v19 = vmax.f32 %v2458_v48, 0.0 }
 0x341   : > { %v2489_v33 = vadd.f32 %v2488_v13, %v2283_v9  ;;  %v2543_v55 = vmax.f32 %v2507_v36, 0.0  ;;  %v4204_v9 = vmov 0.0  }
 0x342   : > { %v2528_v11 = vmax.f32 %v2440_v27, 0.0  ;;  %190 = vst.msk [vmem:[#allocation2] sm:$0xff] %vm189_vm15, %v4204_v9 }
 0x343   : > { %v2529_v21 = vmax.f32 %v2489_v33, 0.0  ;;  %191 = vst.msk [vmem:[#allocation2 + $0x8] sm:$0xff] %vm189_vm15, %v4204_v9 }
 0x344   : > { %192 = vst.msk [vmem:[#allocation2 + $0x10] sm:$0xff] %vm189_vm15, %v4204_v9 }
 0x345   : > { %v2577_v57 = vadd.f32 %v2529_v21, %v2528_v11  ;;  %v5987_v49 = vpop.f32.mrf.mxu2  ;;  %193 = vst.msk [vmem:[#allocation2 + $0x18] sm:$0xff] %vm189_vm15, %v4204_v9 }
 0x346   : > { %v5989_v18 = vpop.f32.mrf.mxu3  ;;  %v2460_v35 = vadd.f32 %v5987_v49, %v2323_v39  ;;  %194 = vst.msk [vmem:[#allocation2 + $0x20] sm:$0xff] %vm189_vm15, %v4204_v9 }
 0x347   : > { %2578 = vadd.xlane.f32.xlu0 %v2577_v57  ;;  %v2442_v2 = vpop.f32.mrf.mxu0  ;;  %v2509_v13 = vadd.f32 %v5989_v18, %v2323_v39  ;;  %v2598_v57 = vadd.f32 %v2543_v55, %v2542_v19  ;;  %195 = vst.msk [vmem:[#allocation2 + $0x28] sm:$0xff] %vm189_vm15, %v4204_v9 }
 0x348   : > { %v2443_v31 = vadd.f32 %v2442_v2, %v2288_v41  ;;  %v2491_v44 = vpop.f32.mrf.mxu1  ;;  %196 = vst.msk [vmem:[#allocation2 + $0x30] sm:$0xff] %vm189_vm15, %v4204_v9 }
 0x349   : > { %v2492_v10 = vadd.f32 %v2491_v44, %v2288_v41  ;;  %v2544_v41 = vmax.f32 %v2460_v35, 0.0  ;;  %197 = vst.msk [vmem:[#allocation2 + $0x38] sm:$0xff] %vm189_vm15, %v4204_v9 }
 0x34a   : > { %v2530_v40 = vmax.f32 %v2443_v31, 0.0  ;;  %v2545_v31 = vmax.f32 %v2509_v13, 0.0  ;;  %198 = vst.msk [vmem:[#allocation2 + $0x40] sm:$0xff] %vm189_vm15, %v4204_v9 }
 0x34b   : > { %v2531_v29 = vmax.f32 %v2492_v10, 0.0  ;;  %199 = vst.msk [vmem:[#allocation2 + $0x48] sm:$0xff] %vm189_vm15, %v4204_v9 }
 0x34c   : > { %200 = vst.msk [vmem:[#allocation2 + $0x50] sm:$0xff] %vm189_vm15, %v4204_v9 }
 0x34d   : > { %v2580_v30 = vadd.f32 %v2531_v29, %v2530_v40  ;;  %v5991_v8 = vpop.f32.mrf.mxu2  ;;  %201 = vst.msk [vmem:[#allocation2 + $0x58] sm:$0xff] %vm189_vm15, %v4204_v9 }
 0x34e   : > { %v5993_v61 = vpop.f32.mrf.mxu3  ;;  %202 = vst.msk [vmem:[#allocation2 + $0x60] sm:$0xff] %vm189_vm15, %v4204_v9 }
 0x34f   : > { %2581 = vadd.xlane.f32.xlu1 %v2580_v30  ;;  %v2444_v62 = vpop.f32.mrf.mxu0  ;;  %203 = vst.msk [vmem:[#allocation2 + $0x68] sm:$0xff] %vm189_vm15, %v4204_v9 }
 0x350   : > { %v2445_v38 = vadd.f32 %v2444_v62, %v2293_v52  ;;  %v2493_v56 = vpop.f32.mrf.mxu1  ;;  %204 = vst.msk [vmem:[#allocation2 + $0x70] sm:$0xff] %vm189_vm15, %v4204_v9 }
 0x351   : > { %v2494_v43 = vadd.f32 %v2493_v56, %v2293_v52  ;;  %v2338_v52 = vpop.permute.xlu1 %2337  ;;  %205 = vst.msk [vmem:[#allocation2 + $0x78] sm:$0xff] %vm189_vm15, %v4204_v9 }
 0x352   : > { %v2532_v14 = vmax.f32 %v2445_v38, 0.0  ;;  %v2328_v38 = vpop.permute.xlu2 %2327 }
 0x353   : > { %v2533_v34 = vmax.f32 %v2494_v43, 0.0 }
 0x355   : > { %v2583_v28 = vadd.f32 %v2533_v34, %v2532_v14  ;;  %v2464_v37 = vpop.f32.mrf.mxu2  ;;  %v2348_v14 = vpop.permute.xlu0 %2347 }
 0x356   : > { %v2513_v12 = vpop.f32.mrf.mxu3  ;;  %v2465_v33 = vadd.f32 %v2464_v37, %v2333_v58 }
 0x357   : > { %2584 = vadd.xlane.f32.xlu2 %v2583_v28  ;;  %v2447_v7 = vpop.f32.mrf.mxu0  ;;  %v2514_v11 = vadd.f32 %v2513_v12, %v2333_v58  ;;  %v2601_v28 = vadd.f32 %v2545_v31, %v2544_v41  ;;  %v2560_v58 = vld [vmem:[#allocation2 + $0x10] sm:$0xff] }
 0x358   : > { %v2448_v20 = vadd.f32 %v2447_v7, %v2298_v47  ;;  %v2496_v25 = vpop.f32.mrf.mxu1  ;;  %v2548_v44 = vmax.f32 %v2465_v33, 0.0  ;;  %v2463_v7 = vadd.f32 %v5991_v8, %v2328_v38  ;;  %v2561_v33 = vld [vmem:[#allocation2 + $0x18] sm:$0xff] }
 0x359   : > { %v2497_v46 = vadd.f32 %v2496_v25, %v2298_v47  ;;  %v2549_v18 = vmax.f32 %v2514_v11, 0.0  ;;  %v2353_v8 = vpop.permute.xlu1 %2352 }
 0x35a   : > { %v2534_v3 = vmax.f32 %v2448_v20, 0.0  ;;  %v2512_v20 = vadd.f32 %v5993_v61, %v2328_v38  ;;  %v2343_v61 = vpop.permute.xlu2 %2342  ;;  %v2566_v38 = vld [vmem:[#allocation2 + $0x40] sm:$0xff] }
 0x35b   : > { %v2535_v0 = vmax.f32 %v2497_v46, 0.0  ;;  %v2607_v43 = vadd.f32 %v2549_v18, %v2548_v44 }
 0x35d   : > { %v2586_v60 = vadd.f32 %v2535_v0, %v2534_v3  ;;  %v5995_v24 = vpop.f32.mrf.mxu2 }
 0x35e   : > { %v5997_v5 = vpop.f32.mrf.mxu3  ;;  %v2468_v34 = vadd.f32 %v5995_v24, %v2338_v52  ;;  %v2547_v24 = vmax.f32 %v2512_v20, 0.0  ;;  %v2565_v20 = vld [vmem:[#allocation2 + $0x38] sm:$0xff] }
 0x35f   : > { %2587 = vadd.xlane.f32.xlu2 %v2586_v60  ;;  %v2449_v42 = vpop.f32.mrf.mxu0  ;;  %v2517_v37 = vadd.f32 %v5997_v5, %v2338_v52  ;;  %v2546_v60 = vmax.f32 %v2463_v7, 0.0 }
 0x360   : > { %v2450_v17 = vadd.f32 %v2449_v42, %v2303_v16  ;;  %v2498_v15 = vpop.f32.mrf.mxu1  ;;  %v2550_v25 = vmax.f32 %v2468_v34, 0.0 }
 0x361   : > { %v2499_v22 = vadd.f32 %v2498_v15, %v2303_v16  ;;  %v2551_v46 = vmax.f32 %v2517_v37, 0.0 }
 0x362   : > { %v2536_v51 = vmax.f32 %v2450_v17, 0.0 }
 0x363   : > { %v2537_v26 = vmax.f32 %v2499_v22, 0.0  ;;  %v2610_v42 = vadd.f32 %v2551_v46, %v2550_v25 }
 0x365   : > { %v2589_v6 = vadd.f32 %v2537_v26, %v2536_v51  ;;  %v5999_v1 = vpop.f32.mrf.mxu2  ;;  %v2604_v26 = vadd.f32 %v2547_v24, %v2546_v60 }
 0x366   : > { %v6001_v63 = vpop.f32.mrf.mxu3  ;;  %v2470_v22 = vadd.f32 %v5999_v1, %v2343_v61  ;;  %v2559_v1 = vld [vmem:[#allocation2 + $0x8] sm:$0xff] }
 0x367   : > { %2590 = vadd.xlane.f32.xlu0 %v2589_v6  ;;  %v2452_v50 = vpop.f32.mrf.mxu0  ;;  %v2519_v51 = vadd.f32 %v6001_v63, %v2343_v61 }
 0x368   : > { %v2453_v45 = vadd.f32 %v2452_v50, %v2308_v54  ;;  %v2501_v23 = vpop.f32.mrf.mxu1  ;;  %v2552_v6 = vmax.f32 %v2470_v22, 0.0 }
 0x369   : > { %v2502_v53 = vadd.f32 %v2501_v23, %v2308_v54  ;;  %v2553_v50 = vmax.f32 %v2519_v51, 0.0  ;;  %v2558_v23 = vld [vmem:[#allocation2] sm:$0xff] }
 0x36a   : > { %v2538_v32 = vmax.f32 %v2453_v45, 0.0 }
 0x36b   : > { %v2539_v27 = vmax.f32 %v2502_v53, 0.0  ;;  %v2613_v45 = vadd.f32 %v2553_v50, %v2552_v6 }
 0x36d   : > { %v2592_v21 = vadd.f32 %v2539_v27, %v2538_v32  ;;  %v2472_v2 = vpop.f32.mrf.mxu2 }
 0x36e   : > { %v2521_v10 = vpop.f32.mrf.mxu3  ;;  %v2473_v16 = vadd.f32 %v2472_v2, %v2348_v14  ;;  %v2562_v2 = vld [vmem:[#allocation2 + $0x20] sm:$0xff] }
 0x36f   : > { %2593 = vadd.xlane.f32.xlu1 %v2592_v21  ;;  %2599 = vadd.xlane.f32.xlu0 %v2598_v57  ;;  %v2454_v49 = vpop.f32.mrf.mxu0  ;;  %v2522_v12 = vadd.f32 %v2521_v10, %v2348_v14  ;;  %v2563_v10 = vld [vmem:[#allocation2 + $0x28] sm:$0xff] }
 0x370   : > { %v2455_v40 = vadd.f32 %v2454_v49, %v2313_v4  ;;  %v2503_v29 = vpop.f32.mrf.mxu1  ;;  %v2554_v3 = vmax.f32 %v2473_v16, 0.0  ;;  %v2567_v16 = vld [vmem:[#allocation2 + $0x48] sm:$0xff] }
 0x371   : > { %v2504_v30 = vadd.f32 %v2503_v29, %v2313_v4  ;;  %v2555_v0 = vmax.f32 %v2522_v12, 0.0  ;;  %v2569_v12 = vld [vmem:[#allocation2 + $0x58] sm:$0xff] }
 0x372   : > { %v2540_v62 = vmax.f32 %v2455_v40, 0.0 }
 0x373   : > { %v2541_v56 = vmax.f32 %v2504_v30, 0.0  ;;  %v2616_v59 = vadd.f32 %v2555_v0, %v2554_v3 }
 0x375   : > { %v2595_v47 = vadd.f32 %v2541_v56, %v2540_v62  ;;  %v2474_v54 = vpop.f32.mrf.mxu2  ;;  %v2564_v62 = vld [vmem:[#allocation2 + $0x30] sm:$0xff] }
 0x376   : > { %v2523_v5 = vpop.f32.mrf.mxu3  ;;  %v2475_v17 = vadd.f32 %v2474_v54, %v2353_v8 }
 0x377   : > { %2602 = vadd.xlane.f32.xlu1 %v2601_v28  ;;  %2608 = vadd.xlane.f32.xlu0 %v2607_v43  ;;  %v2524_v15 = vadd.f32 %v2523_v5, %v2353_v8  ;;  %v2570_v8 = vld [vmem:[#allocation2 + $0x60] sm:$0xff] }
 0x378   : > { %2596 = vadd.xlane.f32.xlu2 %v2595_v47  ;;  %v2556_v48 = vmax.f32 %v2475_v17, 0.0  ;;  %v2568_v17 = vld [vmem:[#allocation2 + $0x50] sm:$0xff] }
 0x379   : > { %v2557_v36 = vmax.f32 %v2524_v15, 0.0 }
 0x37b   : > { %v2619_v39 = vadd.f32 %v2557_v36, %v2556_v48 }
 0x37f   : > { %2611 = vadd.xlane.f32.xlu1 %v2610_v42  ;;  %2617 = vadd.xlane.f32.xlu0 %v2616_v59  ;;  %v2572_v42 = vld [vmem:[#allocation2 + $0x70] sm:$0xff] }
 0x380   : > { %2605 = vadd.xlane.f32.xlu2 %v2604_v26 }
 0x387   : > { %2620 = vadd.xlane.f32.xlu1 %v2619_v39 }
 0x388   : > { %2614 = vadd.xlane.f32.xlu2 %v2613_v45  ;;  %v2573_v45 = vld [vmem:[#allocation2 + $0x78] sm:$0xff] }
 0x3b2   : > { %v2576_v19 = vpop.xlane.xlu2 %2575 }
 0x3b3   : > { %v2622_v55 = vadd.f32 %v2576_v19, %v2558_v23  ;;  %v2571_v19 = vld [vmem:[#allocation2 + $0x68] sm:$0xff] }
 0x3b5   : > { %2639 = vst.msk [vmem:[#allocation2] sm:$0xff] %vm189_vm15, %v2622_v55 }
 0x3ba   : > { %v2579_v63 = vpop.xlane.xlu0 %2578 }
 0x3bb   : > { %v2623_v4 = vadd.f32 %v2579_v63, %v2559_v1 }
 0x3bc   : > { %v2658_v53 = vld [vmem:[#allocation2] sm:$0xff] }
 0x3bd   : > { %v2674_v9 = vmul.f32 0.00390625, %v2658_v53  ;;  %2640 = vst.msk [vmem:[#allocation2 + $0x8] sm:$0xff] %vm189_vm15, %v2623_v4 }
 0x3bf   : > { %2690 = vst.msk [vmem:[%s6032_s25] sm:$0xff] %vm189_vm15, %v2674_v9 }
 0x3c2   : > { %v2582_v32 = vpop.xlane.xlu1 %2581 }
 0x3c3   : > { %v2624_v35 = vadd.f32 %v2582_v32, %v2560_v58 }
 0x3c4   : > { %v2659_v27 = vld [vmem:[#allocation2 + $0x8] sm:$0xff] }
 0x3c5   : > { %v2675_v13 = vmul.f32 0.00390625, %v2659_v27  ;;  %2641 = vst.msk [vmem:[#allocation2 + $0x10] sm:$0xff] %vm189_vm15, %v2624_v35 }
 0x3c7   : > { %2691 = vst.msk [vmem:[%s6032_s25 + $0x8] sm:$0xff] %vm189_vm15, %v2675_v13 }
 0x3ca   : > { %v2585_v11 = vpop.xlane.xlu2 %2584 }
 0x3cb   : > { %v2625_v21 = vadd.f32 %v2585_v11, %v2561_v33 }
 0x3cc   : > { %v2660_v57 = vld [vmem:[#allocation2 + $0x10] sm:$0xff] }
 0x3cd   : > { %v2676_v41 = vmul.f32 0.00390625, %v2660_v57  ;;  %2642 = vst.msk [vmem:[#allocation2 + $0x18] sm:$0xff] %vm189_vm15, %v2625_v21 }
 0x3cf   : > { %2692 = vst.msk [vmem:[%s6032_s25 + $0x10] sm:$0xff] %vm189_vm15, %v2676_v41 }
 0x3d2   : > { %v2588_v49 = vpop.xlane.xlu2 %2587 }
 0x3d3   : > { %v2626_v31 = vadd.f32 %v2588_v49, %v2562_v2 }
 0x3d4   : > { %v2661_v44 = vld [vmem:[#allocation2 + $0x18] sm:$0xff] }
 0x3d5   : > { %v2677_v18 = vmul.f32 0.00390625, %v2661_v44  ;;  %2643 = vst.msk [vmem:[#allocation2 + $0x20] sm:$0xff] %vm189_vm15, %v2626_v31 }
 0x3d7   : > { %2693 = vst.msk [vmem:[%s6032_s25 + $0x18] sm:$0xff] %vm189_vm15, %v2677_v18 }
 0x3da   : > { %v2591_v40 = vpop.xlane.xlu0 %2590 }
 0x3db   : > { %v2627_v29 = vadd.f32 %v2591_v40, %v2563_v10 }
 0x3dc   : > { %v2662_v30 = vld [vmem:[#allocation2 + $0x20] sm:$0xff] }
 0x3dd   : > { %v2678_v52 = vmul.f32 0.00390625, %v2662_v30  ;;  %2644 = vst.msk [vmem:[#allocation2 + $0x28] sm:$0xff] %vm189_vm15, %v2627_v29 }
 0x3df   : > { %2694 = vst.msk [vmem:[%s6032_s25 + $0x20] sm:$0xff] %vm189_vm15, %v2678_v52 }
 0x3e2   : > { %v2594_v56 = vpop.xlane.xlu1 %2593  ;;  %v2600_v43 = vpop.xlane.xlu0 %2599 }
 0x3e3   : > { %v2628_v14 = vadd.f32 %v2594_v56, %v2564_v62  ;;  %v2630_v34 = vadd.f32 %v2600_v43, %v2566_v38 }
 0x3e4   : > { %v2663_v28 = vld [vmem:[#allocation2 + $0x28] sm:$0xff] }
 0x3e5   : > { %v2679_v37 = vmul.f32 0.00390625, %v2663_v28  ;;  %2645 = vst.msk [vmem:[#allocation2 + $0x30] sm:$0xff] %vm189_vm15, %v2628_v14 }
 0x3e6   : > { %2647 = vst.msk [vmem:[#allocation2 + $0x40] sm:$0xff] %vm189_vm15, %v2630_v34 }
 0x3e7   : > { %2695 = vst.msk [vmem:[%s6032_s25 + $0x28] sm:$0xff] %vm189_vm15, %v2679_v37 }
 0x3ea   : > { %v2603_v47 = vpop.xlane.xlu1 %2602  ;;  %v2609_v7 = vpop.xlane.xlu0 %2608 }
 0x3eb   : > { %v2631_v25 = vadd.f32 %v2603_v47, %v2567_v16  ;;  %v2633_v46 = vadd.f32 %v2609_v7, %v2569_v12  ;;  %v2597_v3 = vpop.xlane.xlu2 %2596 }
 0x3ec   : > { %v2664_v0 = vld [vmem:[#allocation2 + $0x30] sm:$0xff]  ;;  %v2629_v54 = vadd.f32 %v2597_v3, %v2565_v20 }
 0x3ed   : > { %v2680_v60 = vmul.f32 0.00390625, %v2664_v0  ;;  %v2666_v24 = vld [vmem:[#allocation2 + $0x40] sm:$0xff]  ;;  %2648 = vst.msk [vmem:[#allocation2 + $0x48] sm:$0xff] %vm189_vm15, %v2631_v25 }
 0x3ee   : > { %v2682_v5 = vmul.f32 0.00390625, %v2666_v24  ;;  %2650 = vst.msk [vmem:[#allocation2 + $0x58] sm:$0xff] %vm189_vm15, %v2633_v46 }
 0x3ef   : > { %2696 = vst.msk [vmem:[%s6032_s25 + $0x30] sm:$0xff] %vm189_vm15, %v2680_v60 }
 0x3f0   : > { %2698 = vst.msk [vmem:[%s6032_s25 + $0x40] sm:$0xff] %vm189_vm15, %v2682_v5 }
 0x3f1   : > { %2646 = vst.msk [vmem:[#allocation2 + $0x38] sm:$0xff] %vm189_vm15, %v2629_v54 }
 0x3f2   : > { %v2612_v61 = vpop.xlane.xlu1 %2611  ;;  %v2618_v59 = vpop.xlane.xlu0 %2617 }
 0x3f3   : > { %v2634_v15 = vadd.f32 %v2612_v61, %v2570_v8  ;;  %v2636_v22 = vadd.f32 %v2618_v59, %v2572_v42  ;;  %v2606_v51 = vpop.xlane.xlu2 %2605 }
 0x3f4   : > { %v2667_v26 = vld [vmem:[#allocation2 + $0x48] sm:$0xff]  ;;  %v2632_v6 = vadd.f32 %v2606_v51, %v2568_v17 }
 0x3f5   : > { %v2683_v48 = vmul.f32 0.00390625, %v2667_v26  ;;  %v2669_v36 = vld [vmem:[#allocation2 + $0x58] sm:$0xff]  ;;  %2651 = vst.msk [vmem:[#allocation2 + $0x60] sm:$0xff] %vm189_vm15, %v2634_v15 }
 0x3f6   : > { %v2685_v50 = vmul.f32 0.00390625, %v2669_v36  ;;  %2653 = vst.msk [vmem:[#allocation2 + $0x70] sm:$0xff] %vm189_vm15, %v2636_v22 }
 0x3f7   : > { %2699 = vst.msk [vmem:[%s6032_s25 + $0x48] sm:$0xff] %vm189_vm15, %v2683_v48 }
 0x3f8   : > { %2701 = vst.msk [vmem:[%s6032_s25 + $0x58] sm:$0xff] %vm189_vm15, %v2685_v50  ;;  %v2665_v39 = vld [vmem:[#allocation2 + $0x38] sm:$0xff] }
 0x3f9   : > { %v2681_v23 = vmul.f32 0.00390625, %v2665_v39  ;;  %2649 = vst.msk [vmem:[#allocation2 + $0x50] sm:$0xff] %vm189_vm15, %v2632_v6 }
 0x3fa   : > { %v2621_v55 = vpop.xlane.xlu1 %2620 }
 0x3fb   : > { %2697 = vst.msk [vmem:[%s6032_s25 + $0x38] sm:$0xff] %vm189_vm15, %v2681_v23  ;;  %v2637_v1 = vadd.f32 %v2621_v55, %v2573_v45  ;;  %v2615_v63 = vpop.xlane.xlu2 %2614 }
 0x3fc   : > { %v2670_v4 = vld [vmem:[#allocation2 + $0x60] sm:$0xff]  ;;  %v2635_v53 = vadd.f32 %v2615_v63, %v2571_v19 }
 0x3fd   : > { %v2686_v9 = vmul.f32 0.00390625, %v2670_v4  ;;  %v2672_v58 = vld [vmem:[#allocation2 + $0x70] sm:$0xff]  ;;  %2654 = vst.msk [vmem:[#allocation2 + $0x78] sm:$0xff] %vm189_vm15, %v2637_v1 }
 0x3fe   : > { %v2688_v32 = vmul.f32 0.00390625, %v2672_v58  ;;  %2652 = vst.msk [vmem:[#allocation2 + $0x68] sm:$0xff] %vm189_vm15, %v2635_v53 }
 0x3ff   : > { %2702 = vst.msk [vmem:[%s6032_s25 + $0x60] sm:$0xff] %vm189_vm15, %v2686_v9 }
 0x400   : > { %2704 = vst.msk [vmem:[%s6032_s25 + $0x70] sm:$0xff] %vm189_vm15, %v2688_v32  ;;  %v2668_v35 = vld [vmem:[#allocation2 + $0x50] sm:$0xff] }
 0x401   : > { %v2684_v27 = vmul.f32 0.00390625, %v2668_v35 }
 0x403   : > { %2700 = vst.msk [vmem:[%s6032_s25 + $0x50] sm:$0xff] %vm189_vm15, %v2684_v27 }
 0x404   : > { %v2673_v13 = vld [vmem:[#allocation2 + $0x78] sm:$0xff] }
 0x405   : > { %v2689_v33 = vmul.f32 0.00390625, %v2673_v13  ;;  %v2671_v11 = vld [vmem:[#allocation2 + $0x68] sm:$0xff] }
 0x406   : > { %v2687_v21 = vmul.f32 0.00390625, %v2671_v11 }
 0x407   : > { %2705 = vst.msk [vmem:[%s6032_s25 + $0x78] sm:$0xff] %vm189_vm15, %v2689_v33 }
 0x408   : > { %2703 = vst.msk [vmem:[%s6032_s25 + $0x68] sm:$0xff] %vm189_vm15, %v2687_v21 }
 0x409 PF: > { %s13_s14 = sadd.s32 1, %s4177_s14   ;;  %s6271_s12 = smov %s4173_s13 }
 0x40a   : > { %p10_p5 = scmp.ge.s32.totalorder %s13_s14, 4   ;;  %s6272_s13 = smov %s6274_s15 }
 0x40c   :  { %12 = sbr.rel (!%p10_p5) target bundleno = 2 (0x2), region = 124 }

</bundles_post_ra>
